<compile_context>
chip_gen: v7x
topology: tpu7x:2x2x1
jax: 0.10.0
libtpu: 0.0.40
codegen_flags: <defaults>
</compile_context>

<pallas_src>
import functools

import jax
import jax.numpy as jnp
from jax.experimental import pallas as pl
from jax.experimental.pallas import tpu as pltpu

LANE = 128


def _rup(n, m=LANE):
    return ((n + m - 1) // m) * m


def _pad_last(x, cp):
    c = x.shape[-1]
    if c == cp:
        return x
    cfg = [(0, 0)] * (x.ndim - 1) + [(0, cp - c)]
    return jnp.pad(x, cfg)


_VMEM_LIMIT = None


def _vmem_limit_bytes():
    """Generation-aware VMEM budget."""
    global _VMEM_LIMIT
    if _VMEM_LIMIT is None:
        cap = 64 * 1024 * 1024
        try:
            info = pltpu.get_tpu_info()
            cap = int(getattr(info, "vmem_capacity_bytes", cap))
        except Exception:
            pass
        if cap >= 120 * 1024 * 1024:        # 128 MiB parts (v5e / v6e)
            _VMEM_LIMIT = 96 * 1024 * 1024
        else:                               # 64 MiB parts (v7x)
            _VMEM_LIMIT = int(cap * 0.65)
    return _VMEM_LIMIT


def _pick_rows(h, w, max_elems):
    """Largest divisor TH of h with TH*w <= max_elems (whole image if small)."""
    if h * w <= max_elems:
        return h
    best = 1
    for th in range(1, h + 1):
        if h % th == 0 and th * w <= max_elems:
            best = th
    return best


# ----------------------------- in-kernel math -------------------------------

def _erf(x):
    # Abramowitz & Stegun 7.1.26 rational approximation, |err| <= 1.5e-7.
    # TODO(synk): replace with native erf lowering if/when Mosaic guarantees it.
    p = 0.3275911
    a1, a2, a3, a4, a5 = (0.254829592, -0.284496736, 1.421413741,
                          -1.453152027, 1.061405429)
    ax = jnp.abs(x)
    t = 1.0 / (1.0 + p * ax)
    poly = t * (a1 + t * (a2 + t * (a3 + t * (a4 + t * a5))))
    e = 1.0 - poly * jnp.exp(-ax * ax)
    return jnp.where(x < 0, -e, e)


def _gelu(x):
    # exact (erf-based) GELU, matches torch nn.GELU(approximate='none')
    return 0.5 * x * (1.0 + _erf(x * 0.7071067811865476))


# ------------------------------ Pallas kernels -------------------------------

def _conv3x3_kernel(xp_ref, w_ref, b_ref, y_ref, st_ref):
    """One (batch, row-tile) per grid step.

    xp_ref : ((TH+2)*Wp, Cpi) bf16, flattened halo-padded row tile
    w_ref  : (3*Cpi, 3*Cpo)   bf16, rows = (ky, cin), cols = (kx, cout)
    y_ref  : (TH, W, Cpo)     bf16 conv output (bias added)
    st_ref : (8, Cpo)         f32  rows 0/1 = per-channel sum / sum-of-squares
    """
    th, w_out, cpo = y_ref.shape
    n = xp_ref.shape[0]
    wp = n // (th + 2)
    m = th * wp

    x = xp_ref[...]                                    # ((TH+2)*Wp, Cpi) bf16
    # Three contiguous, 16-row-aligned ky slabs ("true views") merged on K.
    xcat = jnp.concatenate([x[0:m], x[wp:wp + m], x[2 * wp:2 * wp + m]], axis=1)
    # Single MXU matmul: K = 3*Cpi, N = 3*Cpo (kx taps separated on the N axis).
    prod = jnp.dot(xcat, w_ref[...], preferred_element_type=jnp.float32)
    # Combine the three kx taps with XLU rolls; wrapped rows only land in
    # columns >= w_out, which are discarded below.
    acc = prod[:, 0:cpo]
    acc = acc + pltpu.roll(prod[:, cpo:2 * cpo], shift=m - 1, axis=0)
    acc = acc + pltpu.roll(prod[:, 2 * cpo:3 * cpo], shift=m - 2, axis=0)

    y = acc.reshape(th, wp, cpo)[:, :w_out, :] + b_ref[...]
    y_ref[...] = y.astype(y_ref.dtype)

    # Per-channel sum / sum-of-squares for the fused GroupNorm.
    # TODO(synk): single-pass E[x^2]-E[x]^2 variance; acceptable in f32 here.
    s = jnp.sum(jnp.sum(y, axis=0), axis=0, keepdims=True)
    sq = jnp.sum(jnp.sum(y * y, axis=0), axis=0, keepdims=True)
    st_ref[0:1, :] = s
    st_ref[1:2, :] = sq
    st_ref[2:8, :] = jnp.zeros((6, cpo), jnp.float32)


def _apply_kernel(x_ref, a_ref, d_ref, o_ref, *, residual):
    # Fused GroupNorm(affine) + t-modulation (precomputed per-(b,c) scale/shift)
    # + exact GELU (+ optional residual), f32 epilogue math, row-tiled.
    x = x_ref[...].astype(jnp.float32)                 # (TH, W, CP)
    v = a_ref[...] * x + d_ref[...]                    # broadcast (1,1,CP)
    out = v + _gelu(v) if residual else _gelu(v)
    o_ref[...] = out.astype(o_ref.dtype)


def _apply_gdn_kernel(x_ref, a_ref, d_ref, gt_ref, beta_ref, o_ref):
    # Same as _apply_kernel(residual=True), then inverse GDN:
    #   y_c = u_c * sqrt(beta_c + sum_j gamma[c, j] * u_j^2)
    # Norm matmul kept in f32 (review): it is tiny and squared activations
    # have wide dynamic range.
    th, w_out, cp = x_ref.shape
    x = x_ref[...].astype(jnp.float32)
    v = a_ref[...] * x + d_ref[...]
    u = (v + _gelu(v)).reshape(th * w_out, cp)
    norm = jnp.dot(u * u, gt_ref[...],
                   preferred_element_type=jnp.float32) + beta_ref[...]
    o_ref[...] = (u * jnp.sqrt(norm)).reshape(th, w_out, cp).astype(o_ref.dtype)


# ------------------------------ kernel wrappers -------------------------------

def time_projections(t, weights, biases):
    """All 8 nn.Linear time projections as one plain-XLA matmul (review: a
    dedicated Pallas call cost more in launch overhead than this small dot)."""
    sizes = [int(w.shape[0]) for w in weights]
    wcat = jnp.concatenate([jnp.transpose(w) for w in weights], axis=1)  # (T, S)
    bcat = jnp.concatenate(biases)                                       # (S,)
    out = jnp.dot(t, wcat) + bcat[None, :]
    segs, off = [], 0
    for nseg in sizes:
        segs.append(out[:, off:off + nseg])
        off += nseg
    return segs


def conv3x3_stats(x_nhwc, w, b, padding_mode):
    """3x3 stride-1 pad-1 conv on channel-padded NHWC input.
    Returns (B, H, W, CPout) bf16 output and (B, 2, CPout) f32 per-channel
    sum / sum-of-squares over the spatial dims (per batch)."""
    B, H, W, cpi = x_nhwc.shape
    cout, cin = int(w.shape[0]), int(w.shape[1])
    cpo = _rup(cout)

    # weight layout: (3*Cpi, 3*Cpo), rows = (ky, cin), cols = (kx, cout)
    w4 = jnp.transpose(w, (2, 3, 1, 0))                       # (3, 3, cin, cout)
    w4 = jnp.pad(w4, ((0, 0), (0, 0), (0, cpi - cin), (0, cpo - cout)))
    wk = jnp.transpose(w4, (0, 2, 1, 3)).reshape(3 * cpi, 3 * cpo)
    wk = wk.astype(jnp.bfloat16)
    if b is None:
        b = jnp.zeros((cout,), jnp.float32)
    b2 = _pad_last(b.reshape(1, cout).astype(jnp.float32), cpo)

    # Spatial halo pad (wrap for circular convs).  Extra right columns (width
    # rounded to 16 so row strides stay bf16-tile aligned) are never read by
    # valid outputs.
    # TODO(synk): fuse the halo pad into the producing kernel's out index_map
    # instead of this XLA pad (one extra activation read+write per conv).
    mode = "wrap" if padding_mode == "circular" else "constant"
    xp = jnp.pad(x_nhwc, ((0, 0), (1, 1), (1, 1), (0, 0)), mode=mode)
    Wp = _rup(W + 2, 16)
    if Wp > W + 2:
        xp = jnp.pad(xp, ((0, 0), (0, 0), (0, Wp - (W + 2)), (0, 0)))

    TH = _pick_rows(H, W, 4096)
    nT = H // TH
    Lp = (TH + 2) * Wp
    if nT == 1:
        xt = xp.reshape(B, Lp, cpi)
    else:
        # Overlapping row tiles with 2 halo rows each.
        # TODO(synk): replace with a manual halo DMA (pl.ANY + make_async_copy)
        # to avoid duplicating the 2 halo rows per tile in HBM.
        tiles = [xp[:, tt * TH:tt * TH + TH + 2] for tt in range(nT)]
        xt = jnp.concatenate(tiles, axis=1).reshape(B, nT * Lp, cpi)

    flops = 2 * B * nT * (TH * Wp) * (3 * cpi) * (3 * cpo)
    bytes_accessed = (xt.size * 2 + wk.size * 2 + B * H * W * cpo * 2
                      + B * nT * 8 * cpo * 4)

    y, st = pl.pallas_call(
        _conv3x3_kernel,
        grid=(B, nT),
        in_specs=[
            pl.BlockSpec((None, Lp, cpi), lambda bb, tt: (bb, tt, 0)),
            pl.BlockSpec((3 * cpi, 3 * cpo), lambda bb, tt: (0, 0)),
            pl.BlockSpec((1, cpo), lambda bb, tt: (0, 0)),
        ],
        out_specs=(
            pl.BlockSpec((None, TH, W, cpo), lambda bb, tt: (bb, tt, 0, 0)),
            pl.BlockSpec((None, 8, cpo), lambda bb, tt: (bb, tt, 0)),
        ),
        out_shape=(
            jax.ShapeDtypeStruct((B, H, W, cpo), jnp.bfloat16),
            jax.ShapeDtypeStruct((B, nT * 8, cpo), jnp.float32),
        ),
        compiler_params=pltpu.CompilerParams(
            dimension_semantics=("parallel", "parallel"),
            vmem_limit_bytes=_vmem_limit_bytes()),
        cost_estimate=pl.CostEstimate(flops=flops, transcendentals=0,
                                      bytes_accessed=bytes_accessed),
    )(xt, wk, b2)

    st = st.reshape(B, nT, 8, cpo)[:, :, 0:2, :].sum(axis=1)     # (B, 2, cpo)
    return y, st


def apply_modulation(x, a, d, *, residual, gdn=None, out_dtype=jnp.bfloat16):
    """Fused scale/shift + GELU (+ residual) (+ inverse GDN) epilogue kernel,
    row-tiled over (B, n_row_tiles)."""
    B, H, W, cp = x.shape
    TH = _pick_rows(H, W, 8192)
    nT = H // TH
    spec_x = pl.BlockSpec((None, TH, W, cp), lambda bb, tt: (bb, tt, 0, 0))
    spec_c = pl.BlockSpec((None, 1, 1, cp), lambda bb, tt: (bb, 0, 0, 0))
    cparams = pltpu.CompilerParams(dimension_semantics=("parallel", "parallel"),
                                   vmem_limit_bytes=_vmem_limit_bytes())
    if gdn is None:
        return pl.pallas_call(
            functools.partial(_apply_kernel, residual=residual),
            grid=(B, nT),
            in_specs=[spec_x, spec_c, spec_c],
            out_specs=spec_x,
            out_shape=jax.ShapeDtypeStruct((B, H, W, cp), out_dtype),
            compiler_params=cparams,
        )(x, a, d)
    gt, beta = gdn
    return pl.pallas_call(
        _apply_gdn_kernel,
        grid=(B, nT),
        in_specs=[spec_x, spec_c, spec_c,
                  pl.BlockSpec((cp, cp), lambda bb, tt: (0, 0)),
                  pl.BlockSpec((1, cp), lambda bb, tt: (0, 0))],
        out_specs=spec_x,
        out_shape=jax.ShapeDtypeStruct((B, H, W, cp), out_dtype),
        compiler_params=cparams,
    )(x, a, d, gt, beta)


# ------------------------------- small glue ----------------------------------

def compute_groups(channels: int) -> int:
    num_groups = 1
    while channels % 2 == 0:
        channels //= 2
        num_groups *= 2
    return min(num_groups, 8)


def modulation_coeffs(st, c_pre, c_post, groups, hw_post, t_s, t_b, gn_w, gn_b,
                      cp, eps=1e-5):
    """Turn conv-kernel per-channel sums into per-(batch, channel) scale/shift:
       out = a * x + d  ==  t_s * GroupNorm(x) + t_b.
    Handles the pixel-shuffle case (c_pre = c_post * r^2): pre-shuffle channel
    c maps to post-shuffle channel c // r^2, so group sums aggregate
    contiguously."""
    B = st.shape[0]
    s = st[:, 0, :c_pre]
    sq = st[:, 1, :c_pre]
    cpg = c_post // groups
    r2 = c_pre // c_post
    count = cpg * hw_post
    gsum = s.reshape(B, groups, cpg * r2).sum(axis=-1)
    gsq = sq.reshape(B, groups, cpg * r2).sum(axis=-1)
    mean = gsum / count
    var = gsq / count - mean * mean
    rstd = jax.lax.rsqrt(var + eps)
    mean_c = jnp.repeat(mean, cpg, axis=1)
    rstd_c = jnp.repeat(rstd, cpg, axis=1)
    a = t_s * gn_w[None, :] * rstd_c
    d = t_s * (gn_b[None, :] - gn_w[None, :] * mean_c * rstd_c) + t_b
    a = _pad_last(a, cp).reshape(B, 1, 1, cp)
    d = _pad_last(d, cp).reshape(B, 1, 1, cp)
    return a, d


def pixel_shuffle_nhwc(y, c_real, r, cp_out):
    # NHWC equivalent of torch.nn.PixelShuffle on the first c_real channels.
    # TODO(synk): for large channel counts, fuse this into the epilogue
    # kernel's I/O index maps instead of an XLA relayout.
    B, H, W, _ = y.shape
    c_post = c_real // (r * r)
    v = y[..., :c_real].reshape(B, H, W, c_post, r, r)
    v = jnp.transpose(v, (0, 1, 4, 2, 5, 3)).reshape(B, H * r, W * r, c_post)
    return _pad_last(v, cp_out)


# --------------------------- parameters + forward ----------------------------

def init_params(key, in_ch, out_ch, res_ch, time_dim):
    keys = iter(jax.random.split(key, 32))

    def nrm(shape, scale=0.1):
        return scale * jax.random.normal(next(keys), shape, jnp.float32)

    int1 = in_ch  # UpsamplingUNetConv: int_channels = in_channels, out = in_channels
    up = dict(
        conv1_w=nrm((int1, in_ch, 3, 3)), conv1_b=nrm((int1,)),
        conv2_w=nrm((in_ch * 4, int1, 3, 3)), conv2_b=nrm((in_ch * 4,)),  # subpel r=2
        gn1_w=jnp.ones((int1,)), gn1_b=jnp.zeros((int1,)),
        gn2_w=jnp.ones((in_ch,)), gn2_b=jnp.zeros((in_ch,)),
        ts1_w=nrm((int1, time_dim)), ts1_b=nrm((int1,)),
        tb1_w=nrm((int1, time_dim)), tb1_b=nrm((int1,)),
        ts2_w=nrm((in_ch, time_dim)), ts2_b=nrm((in_ch,)),
        tb2_w=nrm((in_ch, time_dim)), tb2_b=nrm((in_ch,)),
    )

    cat_ch = in_ch + res_ch
    int2 = cat_ch // 2
    dn = dict(
        conv1_w=nrm((int2, cat_ch, 3, 3)),            # bias=False, circular pad
        conv2_w=nrm((out_ch, int2, 3, 3)),            # bias=False, circular pad
        gn1_w=jnp.ones((int2,)), gn1_b=jnp.zeros((int2,)),
        gn2_w=jnp.ones((out_ch,)), gn2_b=jnp.zeros((out_ch,)),
        ts1_w=nrm((int2, time_dim)), ts1_b=nrm((int2,)),
        tb1_w=nrm((int2, time_dim)), tb1_b=nrm((int2,)),
        ts2_w=nrm((out_ch, time_dim)), ts2_b=nrm((out_ch,)),
        tb2_w=nrm((out_ch, time_dim)), tb2_b=nrm((out_ch,)),
    )

    gdn = dict(
        gamma=0.1 * jnp.eye(out_ch, dtype=jnp.float32),  # effective post-reparam values
        beta=jnp.ones((out_ch,), jnp.float32),
    )
    return dict(up=up, dn=dn, gdn=gdn)


def upstep_forward(params, x, res_x, t):
    up, dn, g = params["up"], params["dn"], params["gdn"]
    B, in_ch, H, W = x.shape
    int1 = int(up["conv1_w"].shape[0])
    c_up2 = int(up["conv2_w"].shape[0])      # in_ch * 4
    int2 = int(dn["conv1_w"].shape[0])
    out_ch = int(dn["conv2_w"].shape[0])
    cat_ch = in_ch + int(res_x.shape[1])
    H2, W2 = 2 * H, 2 * W

    # ---- all 8 time projections in one XLA matmul ----
    (ts1, tb1, ts2, tb2, ds1, db1, ds2, db2) = time_projections(
        t,
        [up["ts1_w"], up["tb1_w"], up["ts2_w"], up["tb2_w"],
         dn["ts1_w"], dn["tb1_w"], dn["ts2_w"], dn["tb2_w"]],
        [up["ts1_b"], up["tb1_b"], up["ts2_b"], up["tb2_b"],
         dn["ts1_b"], dn["tb1_b"], dn["ts2_b"], dn["tb2_b"]],
    )

    # ---- NCHW -> channel-last, channels padded to lane-dense 128-multiples ----
    xh = _pad_last(jnp.transpose(x, (0, 2, 3, 1)), _rup(in_ch)).astype(jnp.bfloat16)

    # ---- UpsamplingUNetConv (self.conv1) ----
    y1, st1 = conv3x3_stats(xh, up["conv1_w"], up["conv1_b"], "zeros")
    a1, d1 = modulation_coeffs(st1, int1, int1, compute_groups(int1), H * W,
                               ts1, tb1, up["gn1_w"], up["gn1_b"], _rup(int1))
    h = apply_modulation(y1, a1, d1, residual=False)

    y2, st2 = conv3x3_stats(h, up["conv2_w"], up["conv2_b"], "zeros")
    hs = pixel_shuffle_nhwc(y2, c_up2, 2, _rup(in_ch))
    a2, d2 = modulation_coeffs(st2, c_up2, in_ch, compute_groups(in_ch), H2 * W2,
                               ts2, tb2, up["gn2_w"], up["gn2_b"], _rup(in_ch))
    h2 = apply_modulation(hs, a2, d2, residual=True)

    # ---- concat residual along channels (channel-last) ----
    # TODO(synk): fuse the concat into the next conv (two inputs, split-K
    # accumulation) to save one full activation round trip.
    resh = jnp.transpose(res_x, (0, 2, 3, 1)).astype(jnp.bfloat16)
    cat = jnp.concatenate([resh, h2[..., :in_ch]], axis=-1)
    cat = _pad_last(cat, _rup(cat_ch))

    # ---- UNetConv (self.conv2), circular padding, bias-free convs ----
    z1, su1 = conv3x3_stats(cat, dn["conv1_w"], None, "circular")
    e1a, e1d = modulation_coeffs(su1, int2, int2, compute_groups(int2), H2 * W2,
                                 ds1, db1, dn["gn1_w"], dn["gn1_b"], _rup(int2))
    q = apply_modulation(z1, e1a, e1d, residual=False)

    z2, su2 = conv3x3_stats(q, dn["conv2_w"], None, "circular")
    e2a, e2d = modulation_coeffs(su2, out_ch, out_ch, compute_groups(out_ch),
                                 H2 * W2, ds2, db2, dn["gn2_w"], dn["gn2_b"],
                                 _rup(out_ch))

    # ---- inverse GDN fused into the final epilogue kernel (f32 math, bf16
    #      store; cast back to f32 only after the final transpose) ----
    cpo = _rup(out_ch)
    gt = jnp.zeros((cpo, cpo), jnp.float32).at[:out_ch, :out_ch].set(
        jnp.transpose(g["gamma"]))
    beta = _pad_last(g["beta"].reshape(1, out_ch).astype(jnp.float32), cpo)
    out = apply_modulation(z2, e2a, e2d, residual=True, gdn=(gt, beta),
                           out_dtype=jnp.bfloat16)

    return jnp.transpose(out[..., :out_ch], (0, 3, 1, 2)).astype(jnp.float32)


if __name__ == "__main__":
    key = jax.random.PRNGKey(0)
    k_p, k_x, k_r, k_t = jax.random.split(key, 4)

    B, Cin, H, W = 2, 4, 8, 8
    Cout, Cres, T = 4, 4, 32

    params = init_params(k_p, Cin, Cout, Cres, T)
    x = jax.random.normal(k_x, (B, Cin, H, W), jnp.float32)
    res_x = jax.random.normal(k_r, (B, Cres, 2 * H, 2 * W), jnp.float32)
    t = jax.random.normal(k_t, (B, T), jnp.float32)

    out = jax.jit(upstep_forward)(params, x, res_x, t)
    out = jax.block_until_ready(out)
    assert out.shape == (B, Cout, 2 * H, 2 * W)
    assert bool(jnp.all(jnp.isfinite(out)))
    print("KERNEL_OK")
</pallas_src>

<mosaic_0001>
module attributes {stable_mosaic.version = 11 : i64} {
  func.func @_conv3x3_kernel(%arg0: i32, %arg1: i32, %arg2: memref<1x160x128xbf16, #tpu.memory_space<vmem>>, %arg3: memref<384x384xbf16, #tpu.memory_space<vmem>>, %arg4: memref<1x128xf32, #tpu.memory_space<vmem>>, %arg5: memref<1x8x8x128xbf16, #tpu.memory_space<vmem>>, %arg6: memref<1x8x128xf32, #tpu.memory_space<vmem>>) attributes {dimension_semantics = [#tpu.dimension_semantics<parallel>, #tpu.dimension_semantics<parallel>], iteration_bounds = array<i64: 2, 1>, scalar_prefetch = 0 : i64, scratch_operands = 0 : i64, tpu.core_type = #tpu.core_type<tc>, window_params = [{transform_indices = @transform_0, window_bounds = array<i64: 1, 160, 128>}, {pipeline_mode = #tpu.pipeline_mode<synchronous>, transform_indices = @transform_1, window_bounds = array<i64: 384, 384>}, {pipeline_mode = #tpu.pipeline_mode<synchronous>, transform_indices = @transform_2, window_bounds = array<i64: 1, 128>}, {transform_indices = @transform_3, window_bounds = array<i64: 1, 8, 8, 128>}, {transform_indices = @transform_4, window_bounds = array<i64: 1, 8, 128>}]} {
    %c0 = arith.constant 0 : index
    %c0_0 = arith.constant 0 : index
    %c0_1 = arith.constant 0 : index
    %0 = vector.load %arg2[%c0, %c0_0, %c0_1] : memref<1x160x128xbf16, #tpu.memory_space<vmem>>, vector<1x160x128xbf16>
    %1 = vector.shape_cast %0 : vector<1x160x128xbf16> to vector<160x128xbf16>
    %2 = vector.extract_strided_slice %1 {offsets = [0, 0], sizes = [128, 128], strides = [1, 1]} : vector<160x128xbf16> to vector<128x128xbf16>
    %3 = vector.extract_strided_slice %1 {offsets = [16, 0], sizes = [128, 128], strides = [1, 1]} : vector<160x128xbf16> to vector<128x128xbf16>
    %4 = vector.extract_strided_slice %1 {offsets = [32, 0], sizes = [128, 128], strides = [1, 1]} : vector<160x128xbf16> to vector<128x128xbf16>
    %5 = tpu.concatenate %2, %3, %4 in 1 : vector<128x128xbf16>, vector<128x128xbf16>, vector<128x128xbf16> -> vector<128x384xbf16>
    %c0_2 = arith.constant 0 : index
    %c0_3 = arith.constant 0 : index
    %6 = vector.load %arg3[%c0_2, %c0_3] : memref<384x384xbf16, #tpu.memory_space<vmem>>, vector<384x384xbf16>
    %cst = arith.constant dense<0.000000e+00> : vector<128x384xf32>
    %7 = tpu.matmul %5, %6, %cst {dimension_numbers = #tpu.dot_dimension_numbers<[1], [0], [0], [1], [0, 0, 1, 1], [], []>} : vector<128x384xbf16>, vector<384x384xbf16>, vector<128x384xf32> -> vector<128x384xf32>
    %8 = vector.extract_strided_slice %7 {offsets = [0, 0], sizes = [128, 128], strides = [1, 1]} : vector<128x384xf32> to vector<128x128xf32>
    %9 = vector.extract_strided_slice %7 {offsets = [0, 128], sizes = [128, 128], strides = [1, 1]} : vector<128x384xf32> to vector<128x128xf32>
    %c127_i32 = arith.constant 127 : i32
    %10 = tpu.dynamic_rotate %9 by %c127_i32 dim 0 : vector<128x128xf32>, i32 -> vector<128x128xf32>
    %11 = arith.addf %8, %10 : vector<128x128xf32>
    %12 = vector.extract_strided_slice %7 {offsets = [0, 256], sizes = [128, 128], strides = [1, 1]} : vector<128x384xf32> to vector<128x128xf32>
    %c126_i32 = arith.constant 126 : i32
    %13 = tpu.dynamic_rotate %12 by %c126_i32 dim 0 : vector<128x128xf32>, i32 -> vector<128x128xf32>
    %14 = arith.addf %11, %13 : vector<128x128xf32>
    %15 = vector.shape_cast %14 : vector<128x128xf32> to vector<8x16x128xf32>
    %16 = vector.extract_strided_slice %15 {offsets = [0, 0, 0], sizes = [8, 8, 128], strides = [1, 1, 1]} : vector<8x16x128xf32> to vector<8x8x128xf32>
    %c0_4 = arith.constant 0 : index
    %c0_5 = arith.constant 0 : index
    %17 = vector.load %arg4[%c0_4, %c0_5] : memref<1x128xf32, #tpu.memory_space<vmem>>, vector<1x128xf32>
    %18 = vector.shape_cast %17 : vector<1x128xf32> to vector<1x1x128xf32>
    %19 = vector.broadcast %18 : vector<1x1x128xf32> to vector<8x8x128xf32>
    %20 = arith.addf %16, %19 : vector<8x8x128xf32>
    %21 = arith.truncf %20 : vector<8x8x128xf32> to vector<8x8x128xbf16>
    %c0_6 = arith.constant 0 : index
    %c0_7 = arith.constant 0 : index
    %c0_8 = arith.constant 0 : index
    %c0_9 = arith.constant 0 : index
    %22 = vector.load %arg5[%c0_6, %c0_7, %c0_8, %c0_9] : memref<1x8x8x128xbf16, #tpu.memory_space<vmem>>, vector<1x8x8x128xbf16>
    %23 = vector.shape_cast %22 : vector<1x8x8x128xbf16> to vector<8x8x128xbf16>
    %24 = vector.shape_cast %21 : vector<8x8x128xbf16> to vector<1x8x8x128xbf16>
    tpu.vector_store %arg5[%c0_6, %c0_7, %c0_8, %c0_9], %24 {strides = array<i32>} : memref<1x8x8x128xbf16, #tpu.memory_space<vmem>>, vector<1x8x8x128xbf16>,
    %cst_10 = arith.constant dense<0.000000e+00> : vector<8x128xf32>
    %25 = vector.multi_reduction <add>, %20, %cst_10 [0] : vector<8x8x128xf32> to vector<8x128xf32>
    %cst_11 = arith.constant dense<0.000000e+00> : vector<128xf32>
    %26 = vector.multi_reduction <add>, %25, %cst_11 [0] : vector<8x128xf32> to vector<128xf32>
    %27 = vector.shape_cast %26 : vector<128xf32> to vector<1x128xf32>
    %28 = arith.mulf %20, %20 : vector<8x8x128xf32>
    %cst_12 = arith.constant dense<0.000000e+00> : vector<8x128xf32>
    %29 = vector.multi_reduction <add>, %28, %cst_12 [0] : vector<8x8x128xf32> to vector<8x128xf32>
    %cst_13 = arith.constant dense<0.000000e+00> : vector<128xf32>
    %30 = vector.multi_reduction <add>, %29, %cst_13 [0] : vector<8x128xf32> to vector<128xf32>
    %31 = vector.shape_cast %30 : vector<128xf32> to vector<1x128xf32>
    %c0_14 = arith.constant 0 : index
    %c0_15 = arith.constant 0 : index
    %c0_16 = arith.constant 0 : index
    %32 = vector.load %arg6[%c0_14, %c0_15, %c0_16] : memref<1x8x128xf32, #tpu.memory_space<vmem>>, vector<1x1x128xf32>
    %33 = vector.shape_cast %32 : vector<1x1x128xf32> to vector<1x128xf32>
    %34 = vector.shape_cast %27 : vector<1x128xf32> to vector<1x1x128xf32>
    tpu.vector_store %arg6[%c0_14, %c0_15, %c0_16], %34 {strides = array<i32>} : memref<1x8x128xf32, #tpu.memory_space<vmem>>, vector<1x1x128xf32>,
    %c0_17 = arith.constant 0 : index
    %c1 = arith.constant 1 : index
    %c0_18 = arith.constant 0 : index
    %35 = vector.load %arg6[%c0_17, %c1, %c0_18] : memref<1x8x128xf32, #tpu.memory_space<vmem>>, vector<1x1x128xf32>
    %36 = vector.shape_cast %35 : vector<1x1x128xf32> to vector<1x128xf32>
    %37 = vector.shape_cast %31 : vector<1x128xf32> to vector<1x1x128xf32>
    tpu.vector_store %arg6[%c0_17, %c1, %c0_18], %37 {strides = array<i32>} : memref<1x8x128xf32, #tpu.memory_space<vmem>>, vector<1x1x128xf32>,
    %cst_19 = arith.constant 0.000000e+00 : f32
    %38 = vector.broadcast %cst_19 : f32 to vector<6x128xf32>
    %c0_20 = arith.constant 0 : index
    %c2 = arith.constant 2 : index
    %c0_21 = arith.constant 0 : index
    %39 = vector.load %arg6[%c0_20, %c2, %c0_21] : memref<1x8x128xf32, #tpu.memory_space<vmem>>, vector<1x6x128xf32>
    %40 = vector.shape_cast %39 : vector<1x6x128xf32> to vector<6x128xf32>
    %41 = vector.shape_cast %38 : vector<6x128xf32> to vector<1x6x128xf32>
    tpu.vector_store %arg6[%c0_20, %c2, %c0_21], %41 {strides = array<i32>} : memref<1x8x128xf32, #tpu.memory_space<vmem>>, vector<1x6x128xf32>,
    return
  }
  func.func @transform_0(%arg0: i32, %arg1: i32) -> (i32, i32, i32) {
    %c0_i32 = arith.constant 0 : i32
    %c0_i32_0 = arith.constant 0 : i32
    return %arg0, %arg1, %c0_i32 : i32, i32, i32
  }
  func.func @transform_1(%arg0: i32, %arg1: i32) -> (i32, i32) {
    %c0_i32 = arith.constant 0 : i32
    %c0_i32_0 = arith.constant 0 : i32
    %c0_i32_1 = arith.constant 0 : i32
    return %c0_i32, %c0_i32_0 : i32, i32
  }
  func.func @transform_2(%arg0: i32, %arg1: i32) -> (i32, i32) {
    %c0_i32 = arith.constant 0 : i32
    %c0_i32_0 = arith.constant 0 : i32
    %c0_i32_1 = arith.constant 0 : i32
    return %c0_i32, %c0_i32_0 : i32, i32
  }
  func.func @transform_3(%arg0: i32, %arg1: i32) -> (i32, i32, i32, i32) {
    %c0_i32 = arith.constant 0 : i32
    %c0_i32_0 = arith.constant 0 : i32
    %c0_i32_1 = arith.constant 0 : i32
    return %arg0, %arg1, %c0_i32, %c0_i32_0 : i32, i32, i32, i32
  }
  func.func @transform_4(%arg0: i32, %arg1: i32) -> (i32, i32, i32) {
    %c0_i32 = arith.constant 0 : i32
    %c0_i32_0 = arith.constant 0 : i32
    return %arg0, %arg1, %c0_i32 : i32, i32, i32
  }
}

module attributes {stable_mosaic.version = 11 : i64} {
  func.func @_apply_kernel(%arg0: i32, %arg1: i32, %arg2: memref<1x8x8x128xbf16, #tpu.memory_space<vmem>>, %arg3: memref<1x1x1x128xf32, #tpu.memory_space<vmem>>, %arg4: memref<1x1x1x128xf32, #tpu.memory_space<vmem>>, %arg5: memref<1x8x8x128xbf16, #tpu.memory_space<vmem>>) attributes {dimension_semantics = [#tpu.dimension_semantics<parallel>, #tpu.dimension_semantics<parallel>], iteration_bounds = array<i64: 2, 1>, scalar_prefetch = 0 : i64, scratch_operands = 0 : i64, tpu.core_type = #tpu.core_type<tc>, window_params = [{transform_indices = @transform_0, window_bounds = array<i64: 1, 8, 8, 128>}, {transform_indices = @transform_1, window_bounds = array<i64: 1, 1, 1, 128>}, {transform_indices = @transform_2, window_bounds = array<i64: 1, 1, 1, 128>}, {transform_indices = @transform_3, window_bounds = array<i64: 1, 8, 8, 128>}]} {
    %c0 = arith.constant 0 : index
    %c0_0 = arith.constant 0 : index
    %c0_1 = arith.constant 0 : index
    %c0_2 = arith.constant 0 : index
    %0 = vector.load %arg2[%c0, %c0_0, %c0_1, %c0_2] : memref<1x8x8x128xbf16, #tpu.memory_space<vmem>>, vector<1x8x8x128xbf16>
    %1 = vector.shape_cast %0 : vector<1x8x8x128xbf16> to vector<8x8x128xbf16>
    %2 = arith.extf %1 : vector<8x8x128xbf16> to vector<8x8x128xf32>
    %c0_3 = arith.constant 0 : index
    %c0_4 = arith.constant 0 : index
    %c0_5 = arith.constant 0 : index
    %c0_6 = arith.constant 0 : index
    %3 = vector.load %arg3[%c0_3, %c0_4, %c0_5, %c0_6] : memref<1x1x1x128xf32, #tpu.memory_space<vmem>>, vector<1x1x1x128xf32>
    %4 = vector.shape_cast %3 : vector<1x1x1x128xf32> to vector<1x1x128xf32>
    %5 = vector.broadcast %4 : vector<1x1x128xf32> to vector<8x8x128xf32>
    %6 = arith.mulf %5, %2 : vector<8x8x128xf32>
    %c0_7 = arith.constant 0 : index
    %c0_8 = arith.constant 0 : index
    %c0_9 = arith.constant 0 : index
    %c0_10 = arith.constant 0 : index
    %7 = vector.load %arg4[%c0_7, %c0_8, %c0_9, %c0_10] : memref<1x1x1x128xf32, #tpu.memory_space<vmem>>, vector<1x1x1x128xf32>
    %8 = vector.shape_cast %7 : vector<1x1x1x128xf32> to vector<1x1x128xf32>
    %9 = vector.broadcast %8 : vector<1x1x128xf32> to vector<8x8x128xf32>
    %10 = arith.addf %6, %9 : vector<8x8x128xf32>
    %cst = arith.constant 5.000000e-01 : f32
    %11 = vector.broadcast %cst : f32 to vector<8x8x128xf32>
    %12 = arith.mulf %11, %10 : vector<8x8x128xf32>
    %cst_11 = arith.constant 0.707106769 : f32
    %13 = vector.broadcast %cst_11 : f32 to vector<8x8x128xf32>
    %14 = arith.mulf %10, %13 : vector<8x8x128xf32>
    %15 = math.absf %14 : vector<8x8x128xf32>
    %cst_12 = arith.constant 0.327591091 : f32
    %16 = vector.broadcast %cst_12 : f32 to vector<8x8x128xf32>
    %17 = arith.mulf %16, %15 : vector<8x8x128xf32>
    %cst_13 = arith.constant 1.000000e+00 : f32
    %18 = vector.broadcast %cst_13 : f32 to vector<8x8x128xf32>
    %19 = arith.addf %18, %17 : vector<8x8x128xf32>
    %cst_14 = arith.constant 1.000000e+00 : f32
    %20 = vector.broadcast %cst_14 : f32 to vector<8x8x128xf32>
    %21 = arith.divf %20, %19 : vector<8x8x128xf32>
    %cst_15 = arith.constant 1.06140542 : f32
    %22 = vector.broadcast %cst_15 : f32 to vector<8x8x128xf32>
    %23 = arith.mulf %21, %22 : vector<8x8x128xf32>
    %cst_16 = arith.constant -1.45315206 : f32
    %24 = vector.broadcast %cst_16 : f32 to vector<8x8x128xf32>
    %25 = arith.addf %24, %23 : vector<8x8x128xf32>
    %26 = arith.mulf %21, %25 : vector<8x8x128xf32>
    %cst_17 = arith.constant 1.42141378 : f32
    %27 = vector.broadcast %cst_17 : f32 to vector<8x8x128xf32>
    %28 = arith.addf %27, %26 : vector<8x8x128xf32>
    %29 = arith.mulf %21, %28 : vector<8x8x128xf32>
    %cst_18 = arith.constant -0.284496725 : f32
    %30 = vector.broadcast %cst_18 : f32 to vector<8x8x128xf32>
    %31 = arith.addf %30, %29 : vector<8x8x128xf32>
    %32 = arith.mulf %21, %31 : vector<8x8x128xf32>
    %cst_19 = arith.constant 0.254829586 : f32
    %33 = vector.broadcast %cst_19 : f32 to vector<8x8x128xf32>
    %34 = arith.addf %33, %32 : vector<8x8x128xf32>
    %35 = arith.mulf %21, %34 : vector<8x8x128xf32>
    %cst_20 = arith.constant 0.000000e+00 : f32
    %36 = vector.broadcast %cst_20 : f32 to vector<8x8x128xf32>
    %37 = arith.subf %36, %15 : vector<8x8x128xf32>
    %38 = arith.mulf %37, %15 : vector<8x8x128xf32>
    %39 = math.exp %38 : vector<8x8x128xf32>
    %40 = arith.mulf %35, %39 : vector<8x8x128xf32>
    %cst_21 = arith.constant 1.000000e+00 : f32
    %41 = vector.broadcast %cst_21 : f32 to vector<8x8x128xf32>
    %42 = arith.subf %41, %40 : vector<8x8x128xf32>
    %cst_22 = arith.constant 0.000000e+00 : f32
    %43 = vector.broadcast %cst_22 : f32 to vector<8x8x128xf32>
    %44 = arith.cmpf olt, %14, %43 : vector<8x8x128xf32>
    %cst_23 = arith.constant 0.000000e+00 : f32
    %45 = vector.broadcast %cst_23 : f32 to vector<8x8x128xf32>
    %46 = arith.subf %45, %42 : vector<8x8x128xf32>
    %47 = arith.select %44, %46, %42 : vector<8x8x128xi1>, vector<8x8x128xf32>
    %cst_24 = arith.constant 1.000000e+00 : f32
    %48 = vector.broadcast %cst_24 : f32 to vector<8x8x128xf32>
    %49 = arith.addf %48, %47 : vector<8x8x128xf32>
    %50 = arith.mulf %12, %49 : vector<8x8x128xf32>
    %51 = arith.truncf %50 : vector<8x8x128xf32> to vector<8x8x128xbf16>
    %c0_25 = arith.constant 0 : index
    %c0_26 = arith.constant 0 : index
    %c0_27 = arith.constant 0 : index
    %c0_28 = arith.constant 0 : index
    %52 = vector.load %arg5[%c0_25, %c0_26, %c0_27, %c0_28] : memref<1x8x8x128xbf16, #tpu.memory_space<vmem>>, vector<1x8x8x128xbf16>
    %53 = vector.shape_cast %52 : vector<1x8x8x128xbf16> to vector<8x8x128xbf16>
    %54 = vector.shape_cast %51 : vector<8x8x128xbf16> to vector<1x8x8x128xbf16>
    tpu.vector_store %arg5[%c0_25, %c0_26, %c0_27, %c0_28], %54 {strides = array<i32>} : memref<1x8x8x128xbf16, #tpu.memory_space<vmem>>, vector<1x8x8x128xbf16>,
    return
  }
  func.func @transform_0(%arg0: i32, %arg1: i32) -> (i32, i32, i32, i32) {
    %c0_i32 = arith.constant 0 : i32
    %c0_i32_0 = arith.constant 0 : i32
    %c0_i32_1 = arith.constant 0 : i32
    return %arg0, %arg1, %c0_i32, %c0_i32_0 : i32, i32, i32, i32
  }
  func.func @transform_1(%arg0: i32, %arg1: i32) -> (i32, i32, i32, i32) {
    %c0_i32 = arith.constant 0 : i32
    %c0_i32_0 = arith.constant 0 : i32
    %c0_i32_1 = arith.constant 0 : i32
    %c0_i32_2 = arith.constant 0 : i32
    return %arg0, %c0_i32, %c0_i32_0, %c0_i32_1 : i32, i32, i32, i32
  }
  func.func @transform_2(%arg0: i32, %arg1: i32) -> (i32, i32, i32, i32) {
    %c0_i32 = arith.constant 0 : i32
    %c0_i32_0 = arith.constant 0 : i32
    %c0_i32_1 = arith.constant 0 : i32
    %c0_i32_2 = arith.constant 0 : i32
    return %arg0, %c0_i32, %c0_i32_0, %c0_i32_1 : i32, i32, i32, i32
  }
  func.func @transform_3(%arg0: i32, %arg1: i32) -> (i32, i32, i32, i32) {
    %c0_i32 = arith.constant 0 : i32
    %c0_i32_0 = arith.constant 0 : i32
    %c0_i32_1 = arith.constant 0 : i32
    return %arg0, %arg1, %c0_i32, %c0_i32_0 : i32, i32, i32, i32
  }
}

module attributes {stable_mosaic.version = 11 : i64} {
  func.func @_apply_kernel(%arg0: i32, %arg1: i32, %arg2: memref<1x16x16x128xbf16, #tpu.memory_space<vmem>>, %arg3: memref<1x1x1x128xf32, #tpu.memory_space<vmem>>, %arg4: memref<1x1x1x128xf32, #tpu.memory_space<vmem>>, %arg5: memref<1x16x16x128xbf16, #tpu.memory_space<vmem>>) attributes {dimension_semantics = [#tpu.dimension_semantics<parallel>, #tpu.dimension_semantics<parallel>], iteration_bounds = array<i64: 2, 1>, scalar_prefetch = 0 : i64, scratch_operands = 0 : i64, tpu.core_type = #tpu.core_type<tc>, window_params = [{transform_indices = @transform_0, window_bounds = array<i64: 1, 16, 16, 128>}, {transform_indices = @transform_1, window_bounds = array<i64: 1, 1, 1, 128>}, {transform_indices = @transform_2, window_bounds = array<i64: 1, 1, 1, 128>}, {transform_indices = @transform_3, window_bounds = array<i64: 1, 16, 16, 128>}]} {
    %c0 = arith.constant 0 : index
    %c0_0 = arith.constant 0 : index
    %c0_1 = arith.constant 0 : index
    %c0_2 = arith.constant 0 : index
    %0 = vector.load %arg2[%c0, %c0_0, %c0_1, %c0_2] : memref<1x16x16x128xbf16, #tpu.memory_space<vmem>>, vector<1x16x16x128xbf16>
    %1 = vector.shape_cast %0 : vector<1x16x16x128xbf16> to vector<16x16x128xbf16>
    %2 = arith.extf %1 : vector<16x16x128xbf16> to vector<16x16x128xf32>
    %c0_3 = arith.constant 0 : index
    %c0_4 = arith.constant 0 : index
    %c0_5 = arith.constant 0 : index
    %c0_6 = arith.constant 0 : index
    %3 = vector.load %arg3[%c0_3, %c0_4, %c0_5, %c0_6] : memref<1x1x1x128xf32, #tpu.memory_space<vmem>>, vector<1x1x1x128xf32>
    %4 = vector.shape_cast %3 : vector<1x1x1x128xf32> to vector<1x1x128xf32>
    %5 = vector.broadcast %4 : vector<1x1x128xf32> to vector<16x16x128xf32>
    %6 = arith.mulf %5, %2 : vector<16x16x128xf32>
    %c0_7 = arith.constant 0 : index
    %c0_8 = arith.constant 0 : index
    %c0_9 = arith.constant 0 : index
    %c0_10 = arith.constant 0 : index
    %7 = vector.load %arg4[%c0_7, %c0_8, %c0_9, %c0_10] : memref<1x1x1x128xf32, #tpu.memory_space<vmem>>, vector<1x1x1x128xf32>
    %8 = vector.shape_cast %7 : vector<1x1x1x128xf32> to vector<1x1x128xf32>
    %9 = vector.broadcast %8 : vector<1x1x128xf32> to vector<16x16x128xf32>
    %10 = arith.addf %6, %9 : vector<16x16x128xf32>
    %cst = arith.constant 5.000000e-01 : f32
    %11 = vector.broadcast %cst : f32 to vector<16x16x128xf32>
    %12 = arith.mulf %11, %10 : vector<16x16x128xf32>
    %cst_11 = arith.constant 0.707106769 : f32
    %13 = vector.broadcast %cst_11 : f32 to vector<16x16x128xf32>
    %14 = arith.mulf %10, %13 : vector<16x16x128xf32>
    %15 = math.absf %14 : vector<16x16x128xf32>
    %cst_12 = arith.constant 0.327591091 : f32
    %16 = vector.broadcast %cst_12 : f32 to vector<16x16x128xf32>
    %17 = arith.mulf %16, %15 : vector<16x16x128xf32>
    %cst_13 = arith.constant 1.000000e+00 : f32
    %18 = vector.broadcast %cst_13 : f32 to vector<16x16x128xf32>
    %19 = arith.addf %18, %17 : vector<16x16x128xf32>
    %cst_14 = arith.constant 1.000000e+00 : f32
    %20 = vector.broadcast %cst_14 : f32 to vector<16x16x128xf32>
    %21 = arith.divf %20, %19 : vector<16x16x128xf32>
    %cst_15 = arith.constant 1.06140542 : f32
    %22 = vector.broadcast %cst_15 : f32 to vector<16x16x128xf32>
    %23 = arith.mulf %21, %22 : vector<16x16x128xf32>
    %cst_16 = arith.constant -1.45315206 : f32
    %24 = vector.broadcast %cst_16 : f32 to vector<16x16x128xf32>
    %25 = arith.addf %24, %23 : vector<16x16x128xf32>
    %26 = arith.mulf %21, %25 : vector<16x16x128xf32>
    %cst_17 = arith.constant 1.42141378 : f32
    %27 = vector.broadcast %cst_17 : f32 to vector<16x16x128xf32>
    %28 = arith.addf %27, %26 : vector<16x16x128xf32>
    %29 = arith.mulf %21, %28 : vector<16x16x128xf32>
    %cst_18 = arith.constant -0.284496725 : f32
    %30 = vector.broadcast %cst_18 : f32 to vector<16x16x128xf32>
    %31 = arith.addf %30, %29 : vector<16x16x128xf32>
    %32 = arith.mulf %21, %31 : vector<16x16x128xf32>
    %cst_19 = arith.constant 0.254829586 : f32
    %33 = vector.broadcast %cst_19 : f32 to vector<16x16x128xf32>
    %34 = arith.addf %33, %32 : vector<16x16x128xf32>
    %35 = arith.mulf %21, %34 : vector<16x16x128xf32>
    %cst_20 = arith.constant 0.000000e+00 : f32
    %36 = vector.broadcast %cst_20 : f32 to vector<16x16x128xf32>
    %37 = arith.subf %36, %15 : vector<16x16x128xf32>
    %38 = arith.mulf %37, %15 : vector<16x16x128xf32>
    %39 = math.exp %38 : vector<16x16x128xf32>
    %40 = arith.mulf %35, %39 : vector<16x16x128xf32>
    %cst_21 = arith.constant 1.000000e+00 : f32
    %41 = vector.broadcast %cst_21 : f32 to vector<16x16x128xf32>
    %42 = arith.subf %41, %40 : vector<16x16x128xf32>
    %cst_22 = arith.constant 0.000000e+00 : f32
    %43 = vector.broadcast %cst_22 : f32 to vector<16x16x128xf32>
    %44 = arith.cmpf olt, %14, %43 : vector<16x16x128xf32>
    %cst_23 = arith.constant 0.000000e+00 : f32
    %45 = vector.broadcast %cst_23 : f32 to vector<16x16x128xf32>
    %46 = arith.subf %45, %42 : vector<16x16x128xf32>
    %47 = arith.select %44, %46, %42 : vector<16x16x128xi1>, vector<16x16x128xf32>
    %cst_24 = arith.constant 1.000000e+00 : f32
    %48 = vector.broadcast %cst_24 : f32 to vector<16x16x128xf32>
    %49 = arith.addf %48, %47 : vector<16x16x128xf32>
    %50 = arith.mulf %12, %49 : vector<16x16x128xf32>
    %51 = arith.addf %10, %50 : vector<16x16x128xf32>
    %52 = arith.truncf %51 : vector<16x16x128xf32> to vector<16x16x128xbf16>
    %c0_25 = arith.constant 0 : index
    %c0_26 = arith.constant 0 : index
    %c0_27 = arith.constant 0 : index
    %c0_28 = arith.constant 0 : index
    %53 = vector.load %arg5[%c0_25, %c0_26, %c0_27, %c0_28] : memref<1x16x16x128xbf16, #tpu.memory_space<vmem>>, vector<1x16x16x128xbf16>
    %54 = vector.shape_cast %53 : vector<1x16x16x128xbf16> to vector<16x16x128xbf16>
    %55 = vector.shape_cast %52 : vector<16x16x128xbf16> to vector<1x16x16x128xbf16>
    tpu.vector_store %arg5[%c0_25, %c0_26, %c0_27, %c0_28], %55 {strides = array<i32>} : memref<1x16x16x128xbf16, #tpu.memory_space<vmem>>, vector<1x16x16x128xbf16>,
    return
  }
  func.func @transform_0(%arg0: i32, %arg1: i32) -> (i32, i32, i32, i32) {
    %c0_i32 = arith.constant 0 : i32
    %c0_i32_0 = arith.constant 0 : i32
    %c0_i32_1 = arith.constant 0 : i32
    return %arg0, %arg1, %c0_i32, %c0_i32_0 : i32, i32, i32, i32
  }
  func.func @transform_1(%arg0: i32, %arg1: i32) -> (i32, i32, i32, i32) {
    %c0_i32 = arith.constant 0 : i32
    %c0_i32_0 = arith.constant 0 : i32
    %c0_i32_1 = arith.constant 0 : i32
    %c0_i32_2 = arith.constant 0 : i32
    return %arg0, %c0_i32, %c0_i32_0, %c0_i32_1 : i32, i32, i32, i32
  }
  func.func @transform_2(%arg0: i32, %arg1: i32) -> (i32, i32, i32, i32) {
    %c0_i32 = arith.constant 0 : i32
    %c0_i32_0 = arith.constant 0 : i32
    %c0_i32_1 = arith.constant 0 : i32
    %c0_i32_2 = arith.constant 0 : i32
    return %arg0, %c0_i32, %c0_i32_0, %c0_i32_1 : i32, i32, i32, i32
  }
  func.func @transform_3(%arg0: i32, %arg1: i32) -> (i32, i32, i32, i32) {
    %c0_i32 = arith.constant 0 : i32
    %c0_i32_0 = arith.constant 0 : i32
    %c0_i32_1 = arith.constant 0 : i32
    return %arg0, %arg1, %c0_i32, %c0_i32_0 : i32, i32, i32, i32
  }
}

module attributes {stable_mosaic.version = 11 : i64} {
  func.func @_conv3x3_kernel(%arg0: i32, %arg1: i32, %arg2: memref<1x576x128xbf16, #tpu.memory_space<vmem>>, %arg3: memref<384x384xbf16, #tpu.memory_space<vmem>>, %arg4: memref<1x128xf32, #tpu.memory_space<vmem>>, %arg5: memref<1x16x16x128xbf16, #tpu.memory_space<vmem>>, %arg6: memref<1x8x128xf32, #tpu.memory_space<vmem>>) attributes {dimension_semantics = [#tpu.dimension_semantics<parallel>, #tpu.dimension_semantics<parallel>], iteration_bounds = array<i64: 2, 1>, scalar_prefetch = 0 : i64, scratch_operands = 0 : i64, tpu.core_type = #tpu.core_type<tc>, window_params = [{transform_indices = @transform_0, window_bounds = array<i64: 1, 576, 128>}, {pipeline_mode = #tpu.pipeline_mode<synchronous>, transform_indices = @transform_1, window_bounds = array<i64: 384, 384>}, {pipeline_mode = #tpu.pipeline_mode<synchronous>, transform_indices = @transform_2, window_bounds = array<i64: 1, 128>}, {transform_indices = @transform_3, window_bounds = array<i64: 1, 16, 16, 128>}, {transform_indices = @transform_4, window_bounds = array<i64: 1, 8, 128>}]} {
    %c0 = arith.constant 0 : index
    %c0_0 = arith.constant 0 : index
    %c0_1 = arith.constant 0 : index
    %0 = vector.load %arg2[%c0, %c0_0, %c0_1] : memref<1x576x128xbf16, #tpu.memory_space<vmem>>, vector<1x576x128xbf16>
    %1 = vector.shape_cast %0 : vector<1x576x128xbf16> to vector<576x128xbf16>
    %2 = vector.extract_strided_slice %1 {offsets = [0, 0], sizes = [512, 128], strides = [1, 1]} : vector<576x128xbf16> to vector<512x128xbf16>
    %3 = vector.extract_strided_slice %1 {offsets = [32, 0], sizes = [512, 128], strides = [1, 1]} : vector<576x128xbf16> to vector<512x128xbf16>
    %4 = vector.extract_strided_slice %1 {offsets = [64, 0], sizes = [512, 128], strides = [1, 1]} : vector<576x128xbf16> to vector<512x128xbf16>
    %5 = tpu.concatenate %2, %3, %4 in 1 : vector<512x128xbf16>, vector<512x128xbf16>, vector<512x128xbf16> -> vector<512x384xbf16>
    %c0_2 = arith.constant 0 : index
    %c0_3 = arith.constant 0 : index
    %6 = vector.load %arg3[%c0_2, %c0_3] : memref<384x384xbf16, #tpu.memory_space<vmem>>, vector<384x384xbf16>
    %cst = arith.constant dense<0.000000e+00> : vector<512x384xf32>
    %7 = tpu.matmul %5, %6, %cst {dimension_numbers = #tpu.dot_dimension_numbers<[1], [0], [0], [1], [0, 0, 1, 1], [], []>} : vector<512x384xbf16>, vector<384x384xbf16>, vector<512x384xf32> -> vector<512x384xf32>
    %8 = vector.extract_strided_slice %7 {offsets = [0, 0], sizes = [512, 128], strides = [1, 1]} : vector<512x384xf32> to vector<512x128xf32>
    %9 = vector.extract_strided_slice %7 {offsets = [0, 128], sizes = [512, 128], strides = [1, 1]} : vector<512x384xf32> to vector<512x128xf32>
    %c511_i32 = arith.constant 511 : i32
    %10 = tpu.dynamic_rotate %9 by %c511_i32 dim 0 : vector<512x128xf32>, i32 -> vector<512x128xf32>
    %11 = arith.addf %8, %10 : vector<512x128xf32>
    %12 = vector.extract_strided_slice %7 {offsets = [0, 256], sizes = [512, 128], strides = [1, 1]} : vector<512x384xf32> to vector<512x128xf32>
    %c510_i32 = arith.constant 510 : i32
    %13 = tpu.dynamic_rotate %12 by %c510_i32 dim 0 : vector<512x128xf32>, i32 -> vector<512x128xf32>
    %14 = arith.addf %11, %13 : vector<512x128xf32>
    %15 = vector.shape_cast %14 : vector<512x128xf32> to vector<16x32x128xf32>
    %16 = vector.extract_strided_slice %15 {offsets = [0, 0, 0], sizes = [16, 16, 128], strides = [1, 1, 1]} : vector<16x32x128xf32> to vector<16x16x128xf32>
    %c0_4 = arith.constant 0 : index
    %c0_5 = arith.constant 0 : index
    %17 = vector.load %arg4[%c0_4, %c0_5] : memref<1x128xf32, #tpu.memory_space<vmem>>, vector<1x128xf32>
    %18 = vector.shape_cast %17 : vector<1x128xf32> to vector<1x1x128xf32>
    %19 = vector.broadcast %18 : vector<1x1x128xf32> to vector<16x16x128xf32>
    %20 = arith.addf %16, %19 : vector<16x16x128xf32>
    %21 = arith.truncf %20 : vector<16x16x128xf32> to vector<16x16x128xbf16>
    %c0_6 = arith.constant 0 : index
    %c0_7 = arith.constant 0 : index
    %c0_8 = arith.constant 0 : index
    %c0_9 = arith.constant 0 : index
    %22 = vector.load %arg5[%c0_6, %c0_7, %c0_8, %c0_9] : memref<1x16x16x128xbf16, #tpu.memory_space<vmem>>, vector<1x16x16x128xbf16>
    %23 = vector.shape_cast %22 : vector<1x16x16x128xbf16> to vector<16x16x128xbf16>
    %24 = vector.shape_cast %21 : vector<16x16x128xbf16> to vector<1x16x16x128xbf16>
    tpu.vector_store %arg5[%c0_6, %c0_7, %c0_8, %c0_9], %24 {strides = array<i32>} : memref<1x16x16x128xbf16, #tpu.memory_space<vmem>>, vector<1x16x16x128xbf16>,
    %cst_10 = arith.constant dense<0.000000e+00> : vector<16x128xf32>
    %25 = vector.multi_reduction <add>, %20, %cst_10 [0] : vector<16x16x128xf32> to vector<16x128xf32>
    %cst_11 = arith.constant dense<0.000000e+00> : vector<128xf32>
    %26 = vector.multi_reduction <add>, %25, %cst_11 [0] : vector<16x128xf32> to vector<128xf32>
    %27 = vector.shape_cast %26 : vector<128xf32> to vector<1x128xf32>
    %28 = arith.mulf %20, %20 : vector<16x16x128xf32>
    %cst_12 = arith.constant dense<0.000000e+00> : vector<16x128xf32>
    %29 = vector.multi_reduction <add>, %28, %cst_12 [0] : vector<16x16x128xf32> to vector<16x128xf32>
    %cst_13 = arith.constant dense<0.000000e+00> : vector<128xf32>
    %30 = vector.multi_reduction <add>, %29, %cst_13 [0] : vector<16x128xf32> to vector<128xf32>
    %31 = vector.shape_cast %30 : vector<128xf32> to vector<1x128xf32>
    %c0_14 = arith.constant 0 : index
    %c0_15 = arith.constant 0 : index
    %c0_16 = arith.constant 0 : index
    %32 = vector.load %arg6[%c0_14, %c0_15, %c0_16] : memref<1x8x128xf32, #tpu.memory_space<vmem>>, vector<1x1x128xf32>
    %33 = vector.shape_cast %32 : vector<1x1x128xf32> to vector<1x128xf32>
    %34 = vector.shape_cast %27 : vector<1x128xf32> to vector<1x1x128xf32>
    tpu.vector_store %arg6[%c0_14, %c0_15, %c0_16], %34 {strides = array<i32>} : memref<1x8x128xf32, #tpu.memory_space<vmem>>, vector<1x1x128xf32>,
    %c0_17 = arith.constant 0 : index
    %c1 = arith.constant 1 : index
    %c0_18 = arith.constant 0 : index
    %35 = vector.load %arg6[%c0_17, %c1, %c0_18] : memref<1x8x128xf32, #tpu.memory_space<vmem>>, vector<1x1x128xf32>
    %36 = vector.shape_cast %35 : vector<1x1x128xf32> to vector<1x128xf32>
    %37 = vector.shape_cast %31 : vector<1x128xf32> to vector<1x1x128xf32>
    tpu.vector_store %arg6[%c0_17, %c1, %c0_18], %37 {strides = array<i32>} : memref<1x8x128xf32, #tpu.memory_space<vmem>>, vector<1x1x128xf32>,
    %cst_19 = arith.constant 0.000000e+00 : f32
    %38 = vector.broadcast %cst_19 : f32 to vector<6x128xf32>
    %c0_20 = arith.constant 0 : index
    %c2 = arith.constant 2 : index
    %c0_21 = arith.constant 0 : index
    %39 = vector.load %arg6[%c0_20, %c2, %c0_21] : memref<1x8x128xf32, #tpu.memory_space<vmem>>, vector<1x6x128xf32>
    %40 = vector.shape_cast %39 : vector<1x6x128xf32> to vector<6x128xf32>
    %41 = vector.shape_cast %38 : vector<6x128xf32> to vector<1x6x128xf32>
    tpu.vector_store %arg6[%c0_20, %c2, %c0_21], %41 {strides = array<i32>} : memref<1x8x128xf32, #tpu.memory_space<vmem>>, vector<1x6x128xf32>,
    return
  }
  func.func @transform_0(%arg0: i32, %arg1: i32) -> (i32, i32, i32) {
    %c0_i32 = arith.constant 0 : i32
    %c0_i32_0 = arith.constant 0 : i32
    return %arg0, %arg1, %c0_i32 : i32, i32, i32
  }
  func.func @transform_1(%arg0: i32, %arg1: i32) -> (i32, i32) {
    %c0_i32 = arith.constant 0 : i32
    %c0_i32_0 = arith.constant 0 : i32
    %c0_i32_1 = arith.constant 0 : i32
    return %c0_i32, %c0_i32_0 : i32, i32
  }
  func.func @transform_2(%arg0: i32, %arg1: i32) -> (i32, i32) {
    %c0_i32 = arith.constant 0 : i32
    %c0_i32_0 = arith.constant 0 : i32
    %c0_i32_1 = arith.constant 0 : i32
    return %c0_i32, %c0_i32_0 : i32, i32
  }
  func.func @transform_3(%arg0: i32, %arg1: i32) -> (i32, i32, i32, i32) {
    %c0_i32 = arith.constant 0 : i32
    %c0_i32_0 = arith.constant 0 : i32
    %c0_i32_1 = arith.constant 0 : i32
    return %arg0, %arg1, %c0_i32, %c0_i32_0 : i32, i32, i32, i32
  }
  func.func @transform_4(%arg0: i32, %arg1: i32) -> (i32, i32, i32) {
    %c0_i32 = arith.constant 0 : i32
    %c0_i32_0 = arith.constant 0 : i32
    return %arg0, %arg1, %c0_i32 : i32, i32, i32
  }
}

module attributes {stable_mosaic.version = 11 : i64} {
  func.func @_apply_kernel(%arg0: i32, %arg1: i32, %arg2: memref<1x16x16x128xbf16, #tpu.memory_space<vmem>>, %arg3: memref<1x1x1x128xf32, #tpu.memory_space<vmem>>, %arg4: memref<1x1x1x128xf32, #tpu.memory_space<vmem>>, %arg5: memref<1x16x16x128xbf16, #tpu.memory_space<vmem>>) attributes {dimension_semantics = [#tpu.dimension_semantics<parallel>, #tpu.dimension_semantics<parallel>], iteration_bounds = array<i64: 2, 1>, scalar_prefetch = 0 : i64, scratch_operands = 0 : i64, tpu.core_type = #tpu.core_type<tc>, window_params = [{transform_indices = @transform_0, window_bounds = array<i64: 1, 16, 16, 128>}, {transform_indices = @transform_1, window_bounds = array<i64: 1, 1, 1, 128>}, {transform_indices = @transform_2, window_bounds = array<i64: 1, 1, 1, 128>}, {transform_indices = @transform_3, window_bounds = array<i64: 1, 16, 16, 128>}]} {
    %c0 = arith.constant 0 : index
    %c0_0 = arith.constant 0 : index
    %c0_1 = arith.constant 0 : index
    %c0_2 = arith.constant 0 : index
    %0 = vector.load %arg2[%c0, %c0_0, %c0_1, %c0_2] : memref<1x16x16x128xbf16, #tpu.memory_space<vmem>>, vector<1x16x16x128xbf16>
    %1 = vector.shape_cast %0 : vector<1x16x16x128xbf16> to vector<16x16x128xbf16>
    %2 = arith.extf %1 : vector<16x16x128xbf16> to vector<16x16x128xf32>
    %c0_3 = arith.constant 0 : index
    %c0_4 = arith.constant 0 : index
    %c0_5 = arith.constant 0 : index
    %c0_6 = arith.constant 0 : index
    %3 = vector.load %arg3[%c0_3, %c0_4, %c0_5, %c0_6] : memref<1x1x1x128xf32, #tpu.memory_space<vmem>>, vector<1x1x1x128xf32>
    %4 = vector.shape_cast %3 : vector<1x1x1x128xf32> to vector<1x1x128xf32>
    %5 = vector.broadcast %4 : vector<1x1x128xf32> to vector<16x16x128xf32>
    %6 = arith.mulf %5, %2 : vector<16x16x128xf32>
    %c0_7 = arith.constant 0 : index
    %c0_8 = arith.constant 0 : index
    %c0_9 = arith.constant 0 : index
    %c0_10 = arith.constant 0 : index
    %7 = vector.load %arg4[%c0_7, %c0_8, %c0_9, %c0_10] : memref<1x1x1x128xf32, #tpu.memory_space<vmem>>, vector<1x1x1x128xf32>
    %8 = vector.shape_cast %7 : vector<1x1x1x128xf32> to vector<1x1x128xf32>
    %9 = vector.broadcast %8 : vector<1x1x128xf32> to vector<16x16x128xf32>
    %10 = arith.addf %6, %9 : vector<16x16x128xf32>
    %cst = arith.constant 5.000000e-01 : f32
    %11 = vector.broadcast %cst : f32 to vector<16x16x128xf32>
    %12 = arith.mulf %11, %10 : vector<16x16x128xf32>
    %cst_11 = arith.constant 0.707106769 : f32
    %13 = vector.broadcast %cst_11 : f32 to vector<16x16x128xf32>
    %14 = arith.mulf %10, %13 : vector<16x16x128xf32>
    %15 = math.absf %14 : vector<16x16x128xf32>
    %cst_12 = arith.constant 0.327591091 : f32
    %16 = vector.broadcast %cst_12 : f32 to vector<16x16x128xf32>
    %17 = arith.mulf %16, %15 : vector<16x16x128xf32>
    %cst_13 = arith.constant 1.000000e+00 : f32
    %18 = vector.broadcast %cst_13 : f32 to vector<16x16x128xf32>
    %19 = arith.addf %18, %17 : vector<16x16x128xf32>
    %cst_14 = arith.constant 1.000000e+00 : f32
    %20 = vector.broadcast %cst_14 : f32 to vector<16x16x128xf32>
    %21 = arith.divf %20, %19 : vector<16x16x128xf32>
    %cst_15 = arith.constant 1.06140542 : f32
    %22 = vector.broadcast %cst_15 : f32 to vector<16x16x128xf32>
    %23 = arith.mulf %21, %22 : vector<16x16x128xf32>
    %cst_16 = arith.constant -1.45315206 : f32
    %24 = vector.broadcast %cst_16 : f32 to vector<16x16x128xf32>
    %25 = arith.addf %24, %23 : vector<16x16x128xf32>
    %26 = arith.mulf %21, %25 : vector<16x16x128xf32>
    %cst_17 = arith.constant 1.42141378 : f32
    %27 = vector.broadcast %cst_17 : f32 to vector<16x16x128xf32>
    %28 = arith.addf %27, %26 : vector<16x16x128xf32>
    %29 = arith.mulf %21, %28 : vector<16x16x128xf32>
    %cst_18 = arith.constant -0.284496725 : f32
    %30 = vector.broadcast %cst_18 : f32 to vector<16x16x128xf32>
    %31 = arith.addf %30, %29 : vector<16x16x128xf32>
    %32 = arith.mulf %21, %31 : vector<16x16x128xf32>
    %cst_19 = arith.constant 0.254829586 : f32
    %33 = vector.broadcast %cst_19 : f32 to vector<16x16x128xf32>
    %34 = arith.addf %33, %32 : vector<16x16x128xf32>
    %35 = arith.mulf %21, %34 : vector<16x16x128xf32>
    %cst_20 = arith.constant 0.000000e+00 : f32
    %36 = vector.broadcast %cst_20 : f32 to vector<16x16x128xf32>
    %37 = arith.subf %36, %15 : vector<16x16x128xf32>
    %38 = arith.mulf %37, %15 : vector<16x16x128xf32>
    %39 = math.exp %38 : vector<16x16x128xf32>
    %40 = arith.mulf %35, %39 : vector<16x16x128xf32>
    %cst_21 = arith.constant 1.000000e+00 : f32
    %41 = vector.broadcast %cst_21 : f32 to vector<16x16x128xf32>
    %42 = arith.subf %41, %40 : vector<16x16x128xf32>
    %cst_22 = arith.constant 0.000000e+00 : f32
    %43 = vector.broadcast %cst_22 : f32 to vector<16x16x128xf32>
    %44 = arith.cmpf olt, %14, %43 : vector<16x16x128xf32>
    %cst_23 = arith.constant 0.000000e+00 : f32
    %45 = vector.broadcast %cst_23 : f32 to vector<16x16x128xf32>
    %46 = arith.subf %45, %42 : vector<16x16x128xf32>
    %47 = arith.select %44, %46, %42 : vector<16x16x128xi1>, vector<16x16x128xf32>
    %cst_24 = arith.constant 1.000000e+00 : f32
    %48 = vector.broadcast %cst_24 : f32 to vector<16x16x128xf32>
    %49 = arith.addf %48, %47 : vector<16x16x128xf32>
    %50 = arith.mulf %12, %49 : vector<16x16x128xf32>
    %51 = arith.truncf %50 : vector<16x16x128xf32> to vector<16x16x128xbf16>
    %c0_25 = arith.constant 0 : index
    %c0_26 = arith.constant 0 : index
    %c0_27 = arith.constant 0 : index
    %c0_28 = arith.constant 0 : index
    %52 = vector.load %arg5[%c0_25, %c0_26, %c0_27, %c0_28] : memref<1x16x16x128xbf16, #tpu.memory_space<vmem>>, vector<1x16x16x128xbf16>
    %53 = vector.shape_cast %52 : vector<1x16x16x128xbf16> to vector<16x16x128xbf16>
    %54 = vector.shape_cast %51 : vector<16x16x128xbf16> to vector<1x16x16x128xbf16>
    tpu.vector_store %arg5[%c0_25, %c0_26, %c0_27, %c0_28], %54 {strides = array<i32>} : memref<1x16x16x128xbf16, #tpu.memory_space<vmem>>, vector<1x16x16x128xbf16>,
    return
  }
  func.func @transform_0(%arg0: i32, %arg1: i32) -> (i32, i32, i32, i32) {
    %c0_i32 = arith.constant 0 : i32
    %c0_i32_0 = arith.constant 0 : i32
    %c0_i32_1 = arith.constant 0 : i32
    return %arg0, %arg1, %c0_i32, %c0_i32_0 : i32, i32, i32, i32
  }
  func.func @transform_1(%arg0: i32, %arg1: i32) -> (i32, i32, i32, i32) {
    %c0_i32 = arith.constant 0 : i32
    %c0_i32_0 = arith.constant 0 : i32
    %c0_i32_1 = arith.constant 0 : i32
    %c0_i32_2 = arith.constant 0 : i32
    return %arg0, %c0_i32, %c0_i32_0, %c0_i32_1 : i32, i32, i32, i32
  }
  func.func @transform_2(%arg0: i32, %arg1: i32) -> (i32, i32, i32, i32) {
    %c0_i32 = arith.constant 0 : i32
    %c0_i32_0 = arith.constant 0 : i32
    %c0_i32_1 = arith.constant 0 : i32
    %c0_i32_2 = arith.constant 0 : i32
    return %arg0, %c0_i32, %c0_i32_0, %c0_i32_1 : i32, i32, i32, i32
  }
  func.func @transform_3(%arg0: i32, %arg1: i32) -> (i32, i32, i32, i32) {
    %c0_i32 = arith.constant 0 : i32
    %c0_i32_0 = arith.constant 0 : i32
    %c0_i32_1 = arith.constant 0 : i32
    return %arg0, %arg1, %c0_i32, %c0_i32_0 : i32, i32, i32, i32
  }
}

module attributes {stable_mosaic.version = 11 : i64} {
  func.func @_apply_gdn_kernel(%arg0: i32, %arg1: i32, %arg2: memref<1x16x16x128xbf16, #tpu.memory_space<vmem>>, %arg3: memref<1x1x1x128xf32, #tpu.memory_space<vmem>>, %arg4: memref<1x1x1x128xf32, #tpu.memory_space<vmem>>, %arg5: memref<128x128xf32, #tpu.memory_space<vmem>>, %arg6: memref<1x128xf32, #tpu.memory_space<vmem>>, %arg7: memref<1x16x16x128xbf16, #tpu.memory_space<vmem>>) attributes {dimension_semantics = [#tpu.dimension_semantics<parallel>, #tpu.dimension_semantics<parallel>], iteration_bounds = array<i64: 2, 1>, scalar_prefetch = 0 : i64, scratch_operands = 0 : i64, tpu.core_type = #tpu.core_type<tc>, window_params = [{transform_indices = @transform_0, window_bounds = array<i64: 1, 16, 16, 128>}, {transform_indices = @transform_1, window_bounds = array<i64: 1, 1, 1, 128>}, {transform_indices = @transform_2, window_bounds = array<i64: 1, 1, 1, 128>}, {pipeline_mode = #tpu.pipeline_mode<synchronous>, transform_indices = @transform_3, window_bounds = array<i64: 128, 128>}, {pipeline_mode = #tpu.pipeline_mode<synchronous>, transform_indices = @transform_4, window_bounds = array<i64: 1, 128>}, {transform_indices = @transform_5, window_bounds = array<i64: 1, 16, 16, 128>}]} {
    %c0 = arith.constant 0 : index
    %c0_0 = arith.constant 0 : index
    %c0_1 = arith.constant 0 : index
    %c0_2 = arith.constant 0 : index
    %0 = vector.load %arg2[%c0, %c0_0, %c0_1, %c0_2] : memref<1x16x16x128xbf16, #tpu.memory_space<vmem>>, vector<1x16x16x128xbf16>
    %1 = vector.shape_cast %0 : vector<1x16x16x128xbf16> to vector<16x16x128xbf16>
    %2 = arith.extf %1 : vector<16x16x128xbf16> to vector<16x16x128xf32>
    %c0_3 = arith.constant 0 : index
    %c0_4 = arith.constant 0 : index
    %c0_5 = arith.constant 0 : index
    %c0_6 = arith.constant 0 : index
    %3 = vector.load %arg3[%c0_3, %c0_4, %c0_5, %c0_6] : memref<1x1x1x128xf32, #tpu.memory_space<vmem>>, vector<1x1x1x128xf32>
    %4 = vector.shape_cast %3 : vector<1x1x1x128xf32> to vector<1x1x128xf32>
    %5 = vector.broadcast %4 : vector<1x1x128xf32> to vector<16x16x128xf32>
    %6 = arith.mulf %5, %2 : vector<16x16x128xf32>
    %c0_7 = arith.constant 0 : index
    %c0_8 = arith.constant 0 : index
    %c0_9 = arith.constant 0 : index
    %c0_10 = arith.constant 0 : index
    %7 = vector.load %arg4[%c0_7, %c0_8, %c0_9, %c0_10] : memref<1x1x1x128xf32, #tpu.memory_space<vmem>>, vector<1x1x1x128xf32>
    %8 = vector.shape_cast %7 : vector<1x1x1x128xf32> to vector<1x1x128xf32>
    %9 = vector.broadcast %8 : vector<1x1x128xf32> to vector<16x16x128xf32>
    %10 = arith.addf %6, %9 : vector<16x16x128xf32>
    %cst = arith.constant 5.000000e-01 : f32
    %11 = vector.broadcast %cst : f32 to vector<16x16x128xf32>
    %12 = arith.mulf %11, %10 : vector<16x16x128xf32>
    %cst_11 = arith.constant 0.707106769 : f32
    %13 = vector.broadcast %cst_11 : f32 to vector<16x16x128xf32>
    %14 = arith.mulf %10, %13 : vector<16x16x128xf32>
    %15 = math.absf %14 : vector<16x16x128xf32>
    %cst_12 = arith.constant 0.327591091 : f32
    %16 = vector.broadcast %cst_12 : f32 to vector<16x16x128xf32>
    %17 = arith.mulf %16, %15 : vector<16x16x128xf32>
    %cst_13 = arith.constant 1.000000e+00 : f32
    %18 = vector.broadcast %cst_13 : f32 to vector<16x16x128xf32>
    %19 = arith.addf %18, %17 : vector<16x16x128xf32>
    %cst_14 = arith.constant 1.000000e+00 : f32
    %20 = vector.broadcast %cst_14 : f32 to vector<16x16x128xf32>
    %21 = arith.divf %20, %19 : vector<16x16x128xf32>
    %cst_15 = arith.constant 1.06140542 : f32
    %22 = vector.broadcast %cst_15 : f32 to vector<16x16x128xf32>
    %23 = arith.mulf %21, %22 : vector<16x16x128xf32>
    %cst_16 = arith.constant -1.45315206 : f32
    %24 = vector.broadcast %cst_16 : f32 to vector<16x16x128xf32>
    %25 = arith.addf %24, %23 : vector<16x16x128xf32>
    %26 = arith.mulf %21, %25 : vector<16x16x128xf32>
    %cst_17 = arith.constant 1.42141378 : f32
    %27 = vector.broadcast %cst_17 : f32 to vector<16x16x128xf32>
    %28 = arith.addf %27, %26 : vector<16x16x128xf32>
    %29 = arith.mulf %21, %28 : vector<16x16x128xf32>
    %cst_18 = arith.constant -0.284496725 : f32
    %30 = vector.broadcast %cst_18 : f32 to vector<16x16x128xf32>
    %31 = arith.addf %30, %29 : vector<16x16x128xf32>
    %32 = arith.mulf %21, %31 : vector<16x16x128xf32>
    %cst_19 = arith.constant 0.254829586 : f32
    %33 = vector.broadcast %cst_19 : f32 to vector<16x16x128xf32>
    %34 = arith.addf %33, %32 : vector<16x16x128xf32>
    %35 = arith.mulf %21, %34 : vector<16x16x128xf32>
    %cst_20 = arith.constant 0.000000e+00 : f32
    %36 = vector.broadcast %cst_20 : f32 to vector<16x16x128xf32>
    %37 = arith.subf %36, %15 : vector<16x16x128xf32>
    %38 = arith.mulf %37, %15 : vector<16x16x128xf32>
    %39 = math.exp %38 : vector<16x16x128xf32>
    %40 = arith.mulf %35, %39 : vector<16x16x128xf32>
    %cst_21 = arith.constant 1.000000e+00 : f32
    %41 = vector.broadcast %cst_21 : f32 to vector<16x16x128xf32>
    %42 = arith.subf %41, %40 : vector<16x16x128xf32>
    %cst_22 = arith.constant 0.000000e+00 : f32
    %43 = vector.broadcast %cst_22 : f32 to vector<16x16x128xf32>
    %44 = arith.cmpf olt, %14, %43 : vector<16x16x128xf32>
    %cst_23 = arith.constant 0.000000e+00 : f32
    %45 = vector.broadcast %cst_23 : f32 to vector<16x16x128xf32>
    %46 = arith.subf %45, %42 : vector<16x16x128xf32>
    %47 = arith.select %44, %46, %42 : vector<16x16x128xi1>, vector<16x16x128xf32>
    %cst_24 = arith.constant 1.000000e+00 : f32
    %48 = vector.broadcast %cst_24 : f32 to vector<16x16x128xf32>
    %49 = arith.addf %48, %47 : vector<16x16x128xf32>
    %50 = arith.mulf %12, %49 : vector<16x16x128xf32>
    %51 = arith.addf %10, %50 : vector<16x16x128xf32>
    %52 = vector.shape_cast %51 : vector<16x16x128xf32> to vector<256x128xf32>
    %53 = arith.mulf %52, %52 : vector<256x128xf32>
    %c0_25 = arith.constant 0 : index
    %c0_26 = arith.constant 0 : index
    %54 = vector.load %arg5[%c0_25, %c0_26] : memref<128x128xf32, #tpu.memory_space<vmem>>, vector<128x128xf32>
    %cst_27 = arith.constant dense<0.000000e+00> : vector<256x128xf32>
    %55 = tpu.matmul %53, %54, %cst_27 {dimension_numbers = #tpu.dot_dimension_numbers<[1], [0], [0], [1], [0, 0, 1, 1], [], []>} : vector<256x128xf32>, vector<128x128xf32>, vector<256x128xf32> -> vector<256x128xf32>
    %c0_28 = arith.constant 0 : index
    %c0_29 = arith.constant 0 : index
    %56 = vector.load %arg6[%c0_28, %c0_29] : memref<1x128xf32, #tpu.memory_space<vmem>>, vector<1x128xf32>
    %57 = vector.broadcast %56 : vector<1x128xf32> to vector<256x128xf32>
    %58 = arith.addf %55, %57 : vector<256x128xf32>
    %59 = math.sqrt %58 : vector<256x128xf32>
    %60 = arith.mulf %52, %59 : vector<256x128xf32>
    %61 = vector.shape_cast %60 : vector<256x128xf32> to vector<16x16x128xf32>
    %62 = arith.truncf %61 : vector<16x16x128xf32> to vector<16x16x128xbf16>
    %c0_30 = arith.constant 0 : index
    %c0_31 = arith.constant 0 : index
    %c0_32 = arith.constant 0 : index
    %c0_33 = arith.constant 0 : index
    %63 = vector.load %arg7[%c0_30, %c0_31, %c0_32, %c0_33] : memref<1x16x16x128xbf16, #tpu.memory_space<vmem>>, vector<1x16x16x128xbf16>
    %64 = vector.shape_cast %63 : vector<1x16x16x128xbf16> to vector<16x16x128xbf16>
    %65 = vector.shape_cast %62 : vector<16x16x128xbf16> to vector<1x16x16x128xbf16>
    tpu.vector_store %arg7[%c0_30, %c0_31, %c0_32, %c0_33], %65 {strides = array<i32>} : memref<1x16x16x128xbf16, #tpu.memory_space<vmem>>, vector<1x16x16x128xbf16>,
    return
  }
  func.func @transform_0(%arg0: i32, %arg1: i32) -> (i32, i32, i32, i32) {
    %c0_i32 = arith.constant 0 : i32
    %c0_i32_0 = arith.constant 0 : i32
    %c0_i32_1 = arith.constant 0 : i32
    return %arg0, %arg1, %c0_i32, %c0_i32_0 : i32, i32, i32, i32
  }
  func.func @transform_1(%arg0: i32, %arg1: i32) -> (i32, i32, i32, i32) {
    %c0_i32 = arith.constant 0 : i32
    %c0_i32_0 = arith.constant 0 : i32
    %c0_i32_1 = arith.constant 0 : i32
    %c0_i32_2 = arith.constant 0 : i32
    return %arg0, %c0_i32, %c0_i32_0, %c0_i32_1 : i32, i32, i32, i32
  }
  func.func @transform_2(%arg0: i32, %arg1: i32) -> (i32, i32, i32, i32) {
    %c0_i32 = arith.constant 0 : i32
    %c0_i32_0 = arith.constant 0 : i32
    %c0_i32_1 = arith.constant 0 : i32
    %c0_i32_2 = arith.constant 0 : i32
    return %arg0, %c0_i32, %c0_i32_0, %c0_i32_1 : i32, i32, i32, i32
  }
  func.func @transform_3(%arg0: i32, %arg1: i32) -> (i32, i32) {
    %c0_i32 = arith.constant 0 : i32
    %c0_i32_0 = arith.constant 0 : i32
    %c0_i32_1 = arith.constant 0 : i32
    return %c0_i32, %c0_i32_0 : i32, i32
  }
  func.func @transform_4(%arg0: i32, %arg1: i32) -> (i32, i32) {
    %c0_i32 = arith.constant 0 : i32
    %c0_i32_0 = arith.constant 0 : i32
    %c0_i32_1 = arith.constant 0 : i32
    return %c0_i32, %c0_i32_0 : i32, i32
  }
  func.func @transform_5(%arg0: i32, %arg1: i32) -> (i32, i32, i32, i32) {
    %c0_i32 = arith.constant 0 : i32
    %c0_i32_0 = arith.constant 0 : i32
    %c0_i32_1 = arith.constant 0 : i32
    return %arg0, %arg1, %c0_i32, %c0_i32_0 : i32, i32, i32, i32
  }
}

</mosaic_0001>

<bundles_post_ra>
// kernel: upstep_forward.9
= control target key start
LH: loop header
LB: loop body
LE: loop exit
PB: predicated region body
PF: predicated region fallthrough
CT: control target
= control target key end

     0   :  { %s778_s12 = smov 0   ;;  %s780_s13 = smov 0   ;;  %s960_s0 = inlined_call_operand.vmem [shape: bf16[2,8,8,128], index: 0, kind: input, shape index: {}]   ;;  %s961_s1 = inlined_call_operand.vmem [shape: f32[2,1,1,128], index: 1, kind: input, shape index: {}]   ;;  %s962_s2 = inlined_call_operand.vmem [shape: f32[2,1,1,128], index: 2, kind: input, shape index: {}]   ;;  %s963_s3 = inlined_call_operand.vmem [shape: bf16[2,8,8,128], index: 3, kind: output, shape index: {}]  }
   0x1   :  { %s782_s14 = smov 0  }
   0x2 LB: > { %s25_s15 = sadd.s32 1, %s752_s13  ;;  %p625_p0 = scmp.ge.s32.totalorder %s756_s14, 1  ;;  %s756_s14 = sphi %s782_s14, %s13_s14   ;;  %s752_s13 = sphi %s780_s13, %s965_s13   ;;  %s748_s12 = sphi %s778_s12, %s964_s12  }
   0x3   : > { %p27_p1 = scmp.ge.s32.totalorder %s25_s15, 2  ;;  %p174_p2 = scmp.lt.s32.totalorder %s756_s14, 3 }
   0x5   : > { %s967_s15 = smov (%p27_p1, %s25_s15), 0  ;;  %p175_p3 = pnand %p625_p0, %p174_p2 }
   0x6   : > { %p213_p4 = scmp.lt.s32.totalorder (!%p175_p3), %s748_s12, 1 }
   0x7   : > { %178 = sbr.rel (%p175_p3) target bundleno = 88 (0x58), region = 32 }
   0xe   : > { %s969_s12 = smov (!%p213_p4, %s748_s12), 1 }
   0xf   : > { %s634_s16 = sshll.u32 %s969_s12, 5  ;;  %s224_s19 = scalar_lea.vmem %s961_s1, %s969_s12 }
  0x10   : > { %s220_s22 = scalar_lea.vmem %s960_s0, %s634_s16  ;;  %s227_s25 = scalar_lea.vmem %s962_s2, %s969_s12  ;;  %v630_v2 = vld [vmem:[%s224_s19] ss:$0 sm:$0xff] }
  0x11   : > { %v637_v0 = vld [vmem:[%s220_s22] sm:$0xff]   ;;  %v672_v1 = vld [vmem:[%s220_s22 + $0x8] sm:$0xff]   ;;  %v673_v7 = vld [vmem:[%s220_s22 + $0x10] sm:$0xff]   ;;  %s931_s28 = scalar_lea.vmem %s963_s3, %s634_s16 }
  0x12   : > { %v638_v3 = vunpack.c.l.bf16 %v637_v0  ;;  %v639_v4 = vunpack.c.h.bf16 %v637_v0  ;;  %v642_v5 = vunpack.c.l.bf16 %v672_v1  ;;  %v643_v6 = vunpack.c.h.bf16 %v672_v1  ;;  %v631_v8 = vld [vmem:[%s227_s25] ss:$0 sm:$0xff]  ;;  %v674_v9 = vld [vmem:[%s220_s22 + $0x18] sm:$0xff]  }
  0x13   : > { %v646_v14 = vunpack.c.l.bf16 %v673_v7  ;;  %v647_v15 = vunpack.c.h.bf16 %v673_v7  ;;  %v650_v20 = vunpack.c.l.bf16 %v674_v9  ;;  %v651_v21 = vunpack.c.h.bf16 %v674_v9 }
  0x14   : > { %v261_v10 = vmul.f32 %v638_v3, %v630_v2  ;;  %v262_v11 = vmul.f32 %v639_v4, %v630_v2  ;;  %v263_v12 = vmul.f32 %v642_v5, %v630_v2  ;;  %v264_v13 = vmul.f32 %v643_v6, %v630_v2 }
  0x15   : > { %v265_v28 = vmul.f32 %v646_v14, %v630_v2  ;;  %v266_v29 = vmul.f32 %v647_v15, %v630_v2  ;;  %v267_v32 = vmul.f32 %v650_v20, %v630_v2  ;;  %v268_v33 = vmul.f32 %v651_v21, %v630_v2 }
  0x16   : > { %v276_v16 = vadd.f32 %v631_v8, %v261_v10  ;;  %v277_v17 = vadd.f32 %v631_v8, %v262_v11  ;;  %v278_v18 = vadd.f32 %v631_v8, %v263_v12  ;;  %v812_v19 = vadd.f32 %v631_v8, %v264_v13 }
  0x17   : > { %v827_v40 = vadd.f32 %v631_v8, %v265_v28  ;;  %v829_v41 = vadd.f32 %v631_v8, %v266_v29  ;;  %v831_v42 = vadd.f32 %v631_v8, %v267_v32  ;;  %v833_v43 = vadd.f32 %v631_v8, %v268_v33 }
  0x18   : > { %v814_v22 = vmul.f32 0.70710677, %v276_v16  ;;  %v816_v23 = vmul.f32 0.70710677, %v277_v17  ;;  %v818_v24 = vmul.f32 0.70710677, %v278_v18 }
  0x19   : > { %v821_v25 = vmul.f32 0.70710677, %v812_v19  ;;  %v836_v46 = vmul.f32 0.70710677, %v827_v40  ;;  %v839_v47 = vmul.f32 0.70710677, %v829_v41 }
  0x1a   : > { %v300_v26 = vand.u32 2147483647, %v814_v22  ;;  %v301_v27 = vand.u32 2147483647, %v816_v23  ;;  %v302_v30 = vand.u32 2147483647, %v818_v24 }
  0x1b   : > { %v303_v31 = vand.u32 2147483647, %v821_v25  ;;  %v842_v49 = vmul.f32 0.70710677, %v831_v42  ;;  %v845_v50 = vmul.f32 0.70710677, %v833_v43 }
  0x1c   : > { %v308_v34 = vmul.f32 0.3275911, %v300_v26  ;;  %v309_v35 = vmul.f32 0.3275911, %v301_v27  ;;  %v310_v36 = vmul.f32 0.3275911, %v302_v30 }
  0x1d   : > { %v311_v37 = vmul.f32 0.3275911, %v303_v31  ;;  %v412_v48 = vsub.f32 0.0, %v300_v26  ;;  %v413_v51 = vsub.f32 0.0, %v301_v27  ;;  %v304_v52 = vand.u32 2147483647, %v836_v46 }
  0x1e   : > { %v316_v38 = vadd.f32 1.0, %v308_v34  ;;  %v317_v39 = vadd.f32 1.0, %v309_v35  ;;  %v318_v44 = vadd.f32 1.0, %v310_v36  ;;  %v305_v53 = vand.u32 2147483647, %v839_v47 }
  0x1f   : > { %v319_v45 = vadd.f32 1.0, %v311_v37  ;;  %v414_v54 = vsub.f32 0.0, %v302_v30  ;;  %v306_v55 = vand.u32 2147483647, %v842_v49  ;;  %v307_v56 = vand.u32 2147483647, %v845_v50 }
  0x20   : > { %702 = vrcp.f32 %v316_v38  ;;  %v415_v57 = vsub.f32 0.0, %v303_v31  ;;  %v312_v58 = vmul.f32 0.3275911, %v304_v52  ;;  %v313_v59 = vmul.f32 0.3275911, %v305_v53 }
  0x21   : > { %704 = vrcp.f32 %v317_v39  ;;  %v851_v60 = vmul.f32 0.5, %v276_v16  ;;  %v314_v61 = vmul.f32 0.3275911, %v306_v55  ;;  %v315_v62 = vmul.f32 0.3275911, %v307_v56 }
  0x22   : > { %706 = vrcp.f32 %v318_v44  ;;  %v853_v63 = vmul.f32 0.5, %v277_v17  ;;  %v420_v0 = vmul.f32 %v412_v48, %v300_v26  ;;  %v320_v1 = vadd.f32 1.0, %v312_v58 }
  0x23   : > { %708 = vrcp.f32 %v319_v45  ;;  %v321_v2 = vadd.f32 1.0, %v313_v59  ;;  %v421_v3 = vmul.f32 %v413_v51, %v301_v27  ;;  %v855_v4 = vmul.f32 0.5, %v278_v18 }
  0x24   : > { %v422_v5 = vmul.f32 %v414_v54, %v302_v30  ;;  %v416_v6 = vsub.f32 0.0, %v304_v52  ;;  %v423_v8 = vmul.f32 %v415_v57, %v303_v31  ;;  %710 = vrcp.f32 %v320_v1 }
  0x25   : > { %v417_v9 = vsub.f32 0.0, %v305_v53  ;;  %v322_v10 = vadd.f32 1.0, %v314_v61  ;;  %712 = vrcp.f32 %v321_v2  ;;  %v323_v13 = vadd.f32 1.0, %v315_v62 }
  0x26   : > { %v418_v14 = vsub.f32 0.0, %v306_v55  ;;  %v428_v16 = vmul.f32 1.442695, %v420_v0  ;;  %v864_v17 = vmul.f32 0.5, %v812_v19  ;;  %v419_v18 = vsub.f32 0.0, %v307_v56 }
  0x27   : > { %v430_v21 = vmul.f32 1.442695, %v421_v3  ;;  %v432_v26 = vmul.f32 1.442695, %v422_v5  ;;  %v424_v27 = vmul.f32 %v416_v6, %v304_v52  ;;  %v434_v30 = vmul.f32 1.442695, %v423_v8 }
  0x28   : > { %v425_v31 = vmul.f32 %v417_v9, %v305_v53  ;;  %714 = vrcp.f32 %v322_v10  ;;  %v426_v19 = vmul.f32 %v418_v14, %v306_v55  ;;  %v427_v37 = vmul.f32 %v419_v18, %v307_v56 }
  0x29   : > { %716 = vrcp.f32 %v323_v13  ;;  %v436_v44 = vmul.f32 1.442695, %v424_v27  ;;  %vm460_vm0 = vcmp.lt.f32.partialorder %v814_v22, 0.0  ;;  %vm461_vm1 = vcmp.lt.f32.partialorder %v816_v23, 0.0 }
  0x2a   : > { %v857_v7 = vpop.eup %702  ;;  %718 = vpow2.f32 %v428_v16  ;;  %v438_v51 = vmul.f32 1.442695, %v425_v31  ;;  %v440_v54 = vmul.f32 1.442695, %v426_v19  ;;  %v442_v56 = vmul.f32 1.442695, %v427_v37 }
  0x2b   : > { %v859_v11 = vpop.eup %704  ;;  %v340_v12 = vmul.f32 1.0614054, %v857_v7  ;;  %720 = vpow2.f32 %v430_v21  ;;  %vm462_vm2 = vcmp.lt.f32.partialorder %v818_v24, 0.0  ;;  %vm463_vm3 = vcmp.lt.f32.partialorder %v821_v25, 0.0 }
  0x2c   : > { %v341_v15 = vmul.f32 1.0614054, %v859_v11  ;;  %v866_v28 = vpop.eup %706  ;;  %722 = vpow2.f32 %v432_v26  ;;  %vm464_vm4 = vcmp.lt.f32.partialorder %v836_v46, 0.0  ;;  %vm465_vm5 = vcmp.lt.f32.partialorder %v839_v47, 0.0 }
  0x2d   : > { %v348_v20 = vadd.f32 -1.4531521, %v340_v12  ;;  %v868_v32 = vpop.eup %708  ;;  %v342_v34 = vmul.f32 1.0614054, %v866_v28  ;;  %724 = vpow2.f32 %v434_v30  ;;  %vm466_vm6 = vcmp.lt.f32.partialorder %v842_v49, 0.0 }
  0x2e   : > { %v349_v29 = vadd.f32 -1.4531521, %v341_v15  ;;  %v343_v36 = vmul.f32 1.0614054, %v868_v32  ;;  %v876_v55 = vpop.eup %710  ;;  %726 = vpow2.f32 %v436_v44  ;;  %vm467_vm7 = vcmp.lt.f32.partialorder %v845_v50, 0.0 }
  0x2f   : > { %v356_v33 = vmul.f32 %v857_v7, %v348_v20  ;;  %v350_v39 = vadd.f32 -1.4531521, %v342_v34  ;;  %v880_v59 = vpop.eup %712  ;;  %v344_v0 = vmul.f32 1.0614054, %v876_v55  ;;  %728 = vpow2.f32 %v438_v51 }
  0x30   : > { %v357_v35 = vmul.f32 %v859_v11, %v349_v29  ;;  %v351_v48 = vadd.f32 -1.4531521, %v343_v36  ;;  %v345_v3 = vmul.f32 1.0614054, %v880_v59  ;;  %730 = vpow2.f32 %v440_v54 }
  0x31   : > { %v364_v38 = vadd.f32 1.4214138, %v356_v33  ;;  %v358_v53 = vmul.f32 %v866_v28, %v350_v39  ;;  %v352_v8 = vadd.f32 -1.4531521, %v344_v0  ;;  %732 = vpow2.f32 %v442_v56 }
  0x32   : > { %v365_v45 = vadd.f32 1.4214138, %v357_v35  ;;  %v359_v58 = vmul.f32 %v868_v32, %v351_v48  ;;  %v886_v9 = vpop.eup %714  ;;  %v353_v13 = vadd.f32 -1.4531521, %v345_v3 }
  0x33   : > { %v372_v52 = vmul.f32 %v857_v7, %v364_v38  ;;  %v366_v62 = vadd.f32 1.4214138, %v358_v53  ;;  %v891_v14 = vpop.eup %716  ;;  %v360_v18 = vmul.f32 %v876_v55, %v352_v8  ;;  %v346_v20 = vmul.f32 1.0614054, %v886_v9 }
  0x34   : > { %v373_v57 = vmul.f32 %v859_v11, %v365_v45  ;;  %v367_v2 = vadd.f32 1.4214138, %v359_v58  ;;  %v719_v21 = vpop.eup %718  ;;  %v361_v29 = vmul.f32 %v880_v59, %v353_v13  ;;  %v347_v30 = vmul.f32 1.0614054, %v891_v14 }
  0x35   : > { %v380_v61 = vadd.f32 -0.28449672, %v372_v52  ;;  %v374_v6 = vmul.f32 %v866_v28, %v366_v62  ;;  %v721_v31 = vpop.eup %720  ;;  %v368_v19 = vadd.f32 1.4214138, %v360_v18  ;;  %v354_v35 = vadd.f32 -1.4531521, %v346_v20 }
  0x36   : > { %v381_v1 = vadd.f32 -0.28449672, %v373_v57  ;;  %v375_v12 = vmul.f32 %v868_v32, %v367_v2  ;;  %v369_v38 = vadd.f32 1.4214138, %v361_v29  ;;  %v355_v39 = vadd.f32 -1.4531521, %v347_v30  ;;  %v723_v44 = vpop.eup %722 }
  0x37   : > { %v388_v5 = vmul.f32 %v857_v7, %v380_v61  ;;  %v382_v16 = vadd.f32 -0.28449672, %v374_v6  ;;  %v376_v51 = vmul.f32 %v876_v55, %v368_v19  ;;  %v725_v52 = vpop.eup %724 }
  0x38   : > { %v389_v10 = vmul.f32 %v859_v11, %v381_v1  ;;  %v383_v27 = vadd.f32 -0.28449672, %v375_v12  ;;  %v363_v57 = vmul.f32 %v891_v14, %v355_v39  ;;  %v727_v58 = vpop.eup %726 }
  0x39   : > { %v396_v15 = vadd.f32 0.2548296, %v388_v5  ;;  %v390_v34 = vmul.f32 %v866_v28, %v382_v16  ;;  %v384_v62 = vadd.f32 -0.28449672, %v376_v51  ;;  %v729_v1 = vpop.eup %728 }
  0x3a   : > { %v397_v26 = vadd.f32 0.2548296, %v389_v10  ;;  %v391_v37 = vmul.f32 %v868_v32, %v383_v27  ;;  %v371_v6 = vadd.f32 1.4214138, %v363_v57  ;;  %v731_v8 = vpop.eup %730 }
  0x3b   : > { %v404_v33 = vmul.f32 %v857_v7, %v396_v15  ;;  %v398_v48 = vadd.f32 0.2548296, %v390_v34  ;;  %v362_v7 = vmul.f32 %v886_v9, %v354_v35  ;;  %v392_v13 = vmul.f32 %v876_v55, %v384_v62  ;;  %v733_v16 = vpop.eup %732 }
  0x3c   : > { %v405_v36 = vmul.f32 %v859_v11, %v397_v26  ;;  %v399_v54 = vadd.f32 0.2548296, %v391_v37  ;;  %v377_v11 = vmul.f32 %v880_v59, %v369_v38 }
  0x3d   : > { %v444_v45 = vmul.f32 %v719_v21, %v404_v33  ;;  %v406_v61 = vmul.f32 %v866_v28, %v398_v48  ;;  %v370_v0 = vadd.f32 1.4214138, %v362_v7  ;;  %v379_v21 = vmul.f32 %v891_v14, %v371_v6 }
  0x3e   : > { %v445_v53 = vmul.f32 %v721_v31, %v405_v36  ;;  %v407_v3 = vmul.f32 %v868_v32, %v399_v54  ;;  %v385_v5 = vadd.f32 -0.28449672, %v377_v11  ;;  %v400_v27 = vadd.f32 0.2548296, %v392_v13 }
  0x3f   : > { %v452_v56 = vsub.f32 1.0, %v444_v45  ;;  %v446_v12 = vmul.f32 %v723_v44, %v406_v61  ;;  %v378_v15 = vmul.f32 %v886_v9, %v370_v0  ;;  %v387_v37 = vadd.f32 -0.28449672, %v379_v21 }
  0x40   : > { %v453_v2 = vsub.f32 1.0, %v445_v53  ;;  %v447_v20 = vmul.f32 %v725_v52, %v407_v3  ;;  %v393_v28 = vmul.f32 %v880_v59, %v385_v5  ;;  %v408_v36 = vmul.f32 %v876_v55, %v400_v27 }
  0x41   : > { %v468_v10 = vsub.f32 0.0, %v452_v56  ;;  %v454_v32 = vsub.f32 1.0, %v446_v12  ;;  %v386_v29 = vadd.f32 -0.28449672, %v378_v15  ;;  %v395_v51 = vmul.f32 %v891_v14, %v387_v37 }
  0x42   : > { %v469_v18 = vsub.f32 0.0, %v453_v2  ;;  %v455_v33 = vsub.f32 1.0, %v447_v20  ;;  %v401_v34 = vadd.f32 0.2548296, %v393_v28  ;;  %v448_v48 = vmul.f32 %v727_v58, %v408_v36 }
  0x43   : > { %v476_v26 = vsel %vm460_vm0, %v468_v10, %v452_v56  ;;  %v470_v35 = vsub.f32 0.0, %v454_v32  ;;  %v394_v44 = vmul.f32 %v886_v9, %v386_v29  ;;  %v403_v53 = vadd.f32 0.2548296, %v395_v51 }
  0x44   : > { %v477_v30 = vsel %vm461_vm1, %v469_v18, %v453_v2  ;;  %v484_v31 = vadd.f32 1.0, %v476_v26  ;;  %v471_v39 = vsub.f32 0.0, %v455_v33  ;;  %v409_v22 = vmul.f32 %v880_v59, %v401_v34 }
  0x45   : > { %v485_v19 = vadd.f32 1.0, %v477_v30  ;;  %v478_v23 = vsel %vm462_vm2, %v470_v35, %v454_v32  ;;  %v402_v7 = vadd.f32 0.2548296, %v394_v44  ;;  %v456_v24 = vsub.f32 1.0, %v448_v48 }
  0x46   : > { %v492_v38 = vmul.f32 %v484_v31, %v851_v60  ;;  %v479_v60 = vsel %vm463_vm3, %v471_v39, %v455_v33  ;;  %v486_v55 = vadd.f32 1.0, %v478_v23  ;;  %v449_v59 = vmul.f32 %v729_v1, %v409_v22 }
  0x47   : > { %v493_v45 = vmul.f32 %v485_v19, %v853_v63  ;;  %v487_v52 = vadd.f32 1.0, %v479_v60  ;;  %v410_v57 = vmul.f32 %v886_v9, %v402_v7  ;;  %v472_v58 = vsub.f32 0.0, %v456_v24 }
  0x48   : > { %v494_v54 = vmul.f32 %v486_v55, %v855_v4  ;;  %v457_v11 = vsub.f32 1.0, %v449_v59  ;;  %v411_v56 = vmul.f32 %v891_v14, %v403_v53  ;;  %v288_v61 = vmul.f32 0.5, %v827_v40 }
  0x49   : > { %v655_v63 = vpack.c.bf16 %v493_v45, %v492_v38  ;;  %v495_v25 = vmul.f32 %v487_v52, %v864_v17  ;;  %v450_v0 = vmul.f32 %v731_v8, %v410_v57  ;;  %v289_v4 = vmul.f32 0.5, %v829_v41 }
  0x4a   : > { %v473_v62 = vsub.f32 0.0, %v457_v11  ;;  %v480_v2 = vsel %vm464_vm4, %v472_v58, %v456_v24  ;;  %v451_v46 = vmul.f32 %v733_v16, %v411_v56  ;;  %v290_v8 = vmul.f32 0.5, %v831_v42 }
  0x4b   : > { %656 = vst [vmem:[%s931_s28] sm:$0xff] %v655_v63   ;;  %v660_v1 = vpack.c.bf16 %v495_v25, %v494_v54  ;;  %v488_v9 = vadd.f32 1.0, %v480_v2  ;;  %v458_v5 = vsub.f32 1.0, %v450_v0  ;;  %v291_v10 = vmul.f32 0.5, %v833_v43 }
  0x4c   : > { %v481_v3 = vsel %vm465_vm5, %v473_v62, %v457_v11  ;;  %v459_v6 = vsub.f32 1.0, %v451_v46 }
  0x4d   : > { %675 = vst [vmem:[%s931_s28 + $0x8] sm:$0xff] %v660_v1   ;;  %v489_v17 = vadd.f32 1.0, %v481_v3  ;;  %v496_v47 = vmul.f32 %v488_v9, %v288_v61  ;;  %v474_v40 = vsub.f32 0.0, %v458_v5 }
  0x4e   : > { %v475_v41 = vsub.f32 0.0, %v459_v6 }
  0x4f   : > { %v497_v14 = vmul.f32 %v489_v17, %v289_v4  ;;  %v482_v12 = vsel %vm466_vm6, %v474_v40, %v458_v5 }
  0x50   : > { %v483_v15 = vsel %vm467_vm7, %v475_v41, %v459_v6  ;;  %v490_v16 = vadd.f32 1.0, %v482_v12 }
  0x51   : > { %v665_v13 = vpack.c.bf16 %v497_v14, %v496_v47  ;;  %v491_v18 = vadd.f32 1.0, %v483_v15 }
  0x52   : > { %v498_v20 = vmul.f32 %v490_v16, %v290_v8 }
  0x53   : > { %676 = vst [vmem:[%s931_s28 + $0x10] sm:$0xff] %v665_v13   ;;  %v499_v28 = vmul.f32 %v491_v18, %v291_v10 }
  0x55   : > { %v670_v49 = vpack.c.bf16 %v499_v28, %v498_v20 }
  0x57   : > { %677 = vst [vmem:[%s931_s28 + $0x18] sm:$0xff] %v670_v49  }
  0x58 PF: > { %s13_s14 = sadd.s32 1, %s756_s14   ;;  %s964_s12 = smov %s752_s13 }
  0x59   : > { %p10_p5 = scmp.ge.s32.totalorder %s13_s14, 4   ;;  %s965_s13 = smov %s967_s15 }
  0x5b   :  { %12 = sbr.rel (!%p10_p5) target bundleno = 2 (0x2), region = 68 }

// kernel: upstep_forward.8
= control target key start
LH: loop header
LB: loop body
LE: loop exit
PB: predicated region body
PF: predicated region fallthrough
CT: control target
= control target key end

     0   :  { %s1899_s15 = smov 0   ;;  %s1901_s16 = smov 0   ;;  %s2355_s0 = inlined_call_operand.vmem [shape: bf16[2,160,128], index: 0, kind: input, shape index: {}]   ;;  %s2356_s1 = inlined_call_operand.vmem [shape: bf16[384,384], index: 1, kind: input, shape index: {}]   ;;  %s2357_s2 = inlined_call_operand.vmem [shape: f32[1,128], index: 2, kind: input, shape index: {}]   ;;  %s2358_s3 = inlined_call_operand.vmem [shape: bf16[2,8,8,128], index: 3, kind: output, shape index: {0}]   ;;  %s2359_s4 = inlined_call_operand.vmem [shape: f32[2,8,128], index: 4, kind: output, shape index: {1}]  }
   0x1   :  { %s1903_s17 = smov 0  }
   0x2 LB: > { %s27_s18 = sadd.s32 1, %s1866_s16  ;;  %p1489_p0 = scmp.ge.s32.totalorder %s1870_s17, 1  ;;  %s1870_s17 = sphi %s1903_s17, %s15_s17   ;;  %s1866_s16 = sphi %s1901_s16, %s2361_s16   ;;  %s1862_s15 = sphi %s1899_s15, %s2360_s15  }
   0x3   : > { %p29_p1 = scmp.ge.s32.totalorder %s27_s18, 2  ;;  %p188_p2 = scmp.lt.s32.totalorder %s1870_s17, 3 }
   0x5   : > { %s2363_s18 = smov (%p29_p1, %s27_s18), 0  ;;  %p189_p3 = pnand %p1489_p0, %p188_p2 }
   0x6   : > { %v1742_v0 = vld [vmem:[%s2356_s1 + $0x4] ss:$12 sps:$4 sm:$0xff] (!%p189_p3)   ;;  %v1872_v2 = vmov (!%p189_p3), 0   ;;  %v1746_v3 = vld [vmem:[%s2356_s1] ss:$12 sps:$4 sm:$0xff] (!%p189_p3)   ;;  %p230_p4 = scmp.lt.s32.totalorder (!%p189_p3), %s1862_s15, 1 }
   0x7   : > { %192 = sbr.rel (%p189_p3) target bundleno = 403 (0x193), region = 32  ;;  %v1744_v1 = vld [vmem:[%s2356_s1 + $0x184] ss:$12 sps:$4 sm:$0xff] (!%p189_p3)   ;;  %954 = vmatprep.mubr.bf16.mxu1 (!%p189_p3), %v1872_v2  ;;  %817 = vmatprep.subr.bf16.mxu0 (!%p189_p3), %v1742_v0  ;;  %v1747_v4 = vld [vmem:[%s2356_s1 + $0x180] ss:$12 sps:$4 sm:$0xff] (!%p189_p3)  }
   0x8   : > { %922 = vmatprep.subr.bf16.mxu1 (!%p189_p3), %v1744_v1  ;;  %v1748_v5 = vld [vmem:[%s2356_s1 + $0x1c] ss:$12 sps:$4 sm:$0xff] (!%p189_p3)   ;;  %818 = vmatpush1.bf16.msra.mxu0 (!%p189_p3), %v1746_v3  ;;  %v1752_v7 = vld [vmem:[%s2356_s1 + $0x18] ss:$12 sps:$4 sm:$0xff] (!%p189_p3)   ;;  %v1754_v9 = vld [vmem:[%s2356_s1 + $0x34] ss:$12 sps:$4 sm:$0xff] (!%p189_p3)  }
   0x9   : > { %923 = vmatpush1.bf16.msra.mxu1 (!%p189_p3), %v1747_v4  ;;  %v1750_v6 = vld [vmem:[%s2356_s1 + $0x19c] ss:$12 sps:$4 sm:$0xff] (!%p189_p3)   ;;  %819 = vmatprep.subr.bf16.mxu0 (!%p189_p3), %v1748_v5  ;;  %v1753_v8 = vld [vmem:[%s2356_s1 + $0x198] ss:$12 sps:$4 sm:$0xff] (!%p189_p3)   ;;  %v1756_v10 = vld [vmem:[%s2356_s1 + $0x1b4] ss:$12 sps:$4 sm:$0xff] (!%p189_p3)  }
   0xa   : > { %924 = vmatprep.subr.bf16.mxu1 (!%p189_p3), %v1750_v6  ;;  %v1758_v11 = vld [vmem:[%s2356_s1 + $0x30] ss:$12 sps:$4 sm:$0xff] (!%p189_p3)   ;;  %v1760_v13 = vld [vmem:[%s2356_s1 + $0x4c] ss:$12 sps:$4 sm:$0xff] (!%p189_p3)   ;;  %v1764_v15 = vld [vmem:[%s2356_s1 + $0x48] ss:$12 sps:$4 sm:$0xff] (!%p189_p3)  }
   0xb   : > { %v1759_v12 = vld [vmem:[%s2356_s1 + $0x1b0] ss:$12 sps:$4 sm:$0xff] (!%p189_p3)   ;;  %v1762_v14 = vld [vmem:[%s2356_s1 + $0x1cc] ss:$12 sps:$4 sm:$0xff] (!%p189_p3)   ;;  %v1765_v16 = vld [vmem:[%s2356_s1 + $0x1c8] ss:$12 sps:$4 sm:$0xff] (!%p189_p3)  }
   0xc   : > { %820 = vmatpush1.bf16.msra.mxu0 (!%p189_p3), %v1752_v7  ;;  %v1766_v17 = vld [vmem:[%s2356_s1 + $0x64] ss:$12 sps:$4 sm:$0xff] (!%p189_p3)   ;;  %v1770_v19 = vld [vmem:[%s2356_s1 + $0x60] ss:$12 sps:$4 sm:$0xff] (!%p189_p3)   ;;  %v1772_v21 = vld [vmem:[%s2356_s1 + $0x7c] ss:$12 sps:$4 sm:$0xff] (!%p189_p3)  }
   0xd   : > { %925 = vmatpush1.bf16.msra.mxu1 (!%p189_p3), %v1753_v8  ;;  %821 = vmatprep.subr.bf16.mxu0 (!%p189_p3), %v1754_v9  ;;  %v1768_v18 = vld [vmem:[%s2356_s1 + $0x1e4] ss:$12 sps:$4 sm:$0xff] (!%p189_p3)   ;;  %v1771_v20 = vld [vmem:[%s2356_s1 + $0x1e0] ss:$12 sps:$4 sm:$0xff] (!%p189_p3)   ;;  %v1774_v22 = vld [vmem:[%s2356_s1 + $0x1fc] ss:$12 sps:$4 sm:$0xff] (!%p189_p3)  }
   0xe   : > { %926 = vmatprep.subr.bf16.mxu1 %v1756_v10  ;;  %s2365_s15 = smov (!%p230_p4, %s1862_s15), 1  ;;  %v1776_v23 = vld [vmem:[%s2356_s1 + $0x78] ss:$12 sps:$4 sm:$0xff]   ;;  %v1778_v25 = vld [vmem:[%s2356_s1 + $0x94] ss:$12 sps:$4 sm:$0xff]  }
   0xf   : > { %s1715_s19 = smul.u32 80, %s2365_s15  ;;  %v1777_v24 = vld [vmem:[%s2356_s1 + $0x1f8] ss:$12 sps:$4 sm:$0xff]   ;;  %v1780_v26 = vld [vmem:[%s2356_s1 + $0x214] ss:$12 sps:$4 sm:$0xff]   ;;  %s1579_s22 = sshll.u32 %s2365_s15, 5 }
  0x10   : > { %822 = vmatpush1.bf16.msra.mxu0 %v1758_v11  ;;  %v1782_v27 = vld [vmem:[%s2356_s1 + $0x90] ss:$12 sps:$4 sm:$0xff]   ;;  %v1784_v29 = vld [vmem:[%s2356_s1 + $0xac] ss:$12 sps:$4 sm:$0xff]   ;;  %v1788_v31 = vld [vmem:[%s2356_s1 + $0xa8] ss:$12 sps:$4 sm:$0xff]  }
  0x11   : > { %927 = vmatpush1.bf16.msra.mxu1 %v1759_v12  ;;  %823 = vmatprep.subr.bf16.mxu0 %v1760_v13  ;;  %s2006_s30 = scalar_lea.vmem %s2355_s0, %s1715_s19  ;;  %v1783_v28 = vld [vmem:[%s2356_s1 + $0x210] ss:$12 sps:$4 sm:$0xff]   ;;  %v1786_v30 = vld [vmem:[%s2356_s1 + $0x22c] ss:$12 sps:$4 sm:$0xff]   ;;  %v1789_v32 = vld [vmem:[%s2356_s1 + $0x228] ss:$12 sps:$4 sm:$0xff]  }
  0x12   : > { %928 = vmatprep.subr.bf16.mxu1 %v1762_v14  ;;  %v1790_v33 = vld [vmem:[%s2356_s1 + $0xc4] ss:$12 sps:$4 sm:$0xff]   ;;  %v1793_v34 = vld [vmem:[%s2356_s1 + $0xc8] ss:$12 sps:$4 sm:$0xff]   ;;  %v1794_v36 = vld [vmem:[%s2356_s1 + $0xc0] ss:$12 sps:$4 sm:$0xff]  }
  0x13   : > { %v2033_v35 = vld [vmem:[%s2006_s30 + $0x10] sm:$0xff]   ;;  %v1796_v38 = vld [vmem:[%s2356_s1 + $0xdc] ss:$12 sps:$4 sm:$0xff]   ;;  %v1802_v39 = vld [vmem:[%s2356_s1 + $0xe0] ss:$12 sps:$4 sm:$0xff]  }
  0x14   : > { %824 = vmatpush1.bf16.msra.mxu0 %v1764_v15  ;;  %v1795_v37 = vld [vmem:[%s2356_s1 + $0x8] ss:$12 sps:$4 sm:$0xff]   ;;  %v1798_v40 = vld [vmem:[%s2356_s1 + $0xd8] ss:$12 sps:$4 sm:$0xff]   ;;  %v1804_v42 = vld [vmem:[%s2356_s1 + $0x20] ss:$12 sps:$4 sm:$0xff]  }
  0x15   : > { %929 = vmatpush1.bf16.msra.mxu1 %v1765_v16  ;;  %825 = vmatprep.subr.bf16.mxu0 %v1766_v17  ;;  %v1799_v41 = vld [vmem:[%s2356_s1 + $0xf4] ss:$12 sps:$4 sm:$0xff]   ;;  %v1811_v43 = vld [vmem:[%s2356_s1 + $0xf8] ss:$12 sps:$4 sm:$0xff]   ;;  %v1803_v45 = vld [vmem:[%s2356_s1 + $0xf0] ss:$12 sps:$4 sm:$0xff]  }
  0x16   : > { %930 = vmatprep.subr.bf16.mxu1 %v1768_v18  ;;  %v2062_v44 = vld [vmem:[%s2006_s30 + $0x18] sm:$0xff]   ;;  %v1807_v49 = vld [vmem:[%s2356_s1 + $0x108] ss:$12 sps:$4 sm:$0xff]   ;;  %v1808_v50 = vld [vmem:[%s2356_s1 + $0x124] ss:$12 sps:$4 sm:$0xff]  }
  0x17   : > { %v1805_v46 = vld [vmem:[%s2356_s1 + $0x10c] ss:$12 sps:$4 sm:$0xff]   ;;  %v1820_v48 = vld [vmem:[%s2356_s1 + $0x110] ss:$12 sps:$4 sm:$0xff]   ;;  %v2088_v52 = vld [vmem:[%s2006_s30 + $0x20] sm:$0xff]  }
  0x18   : > { %826 = vmatpush1.bf16.msra.mxu0 %v1770_v19  ;;  %v1813_v47 = vld [vmem:[%s2356_s1 + $0x38] ss:$12 sps:$4 sm:$0xff]   ;;  %v2085_v51 = vld [vmem:[%s2006_s30 + $0x8] sm:$0xff]   ;;  %v1822_v53 = vld [vmem:[%s2356_s1 + $0x50] ss:$12 sps:$4 sm:$0xff]  }
  0x19   : > { %931 = vmatpush1.bf16.msra.mxu1 %v1771_v20  ;;  %827 = vmatprep.subr.bf16.mxu0 %v1772_v21  ;;  %v1812_v54 = vld [vmem:[%s2356_s1 + $0x120] ss:$12 sps:$4 sm:$0xff]   ;;  %v1829_v55 = vld [vmem:[%s2356_s1 + $0x128] ss:$12 sps:$4 sm:$0xff]   ;;  %v1816_v58 = vld [vmem:[%s2356_s1 + $0x138] ss:$12 sps:$4 sm:$0xff]  }
  0x1a   : > { %932 = vmatprep.subr.bf16.mxu1 %v1774_v22  ;;  %849 = vmatprep.mubr.bf16.mxu0 %v2085_v51  ;;  %v1814_v56 = vld [vmem:[%s2356_s1 + $0x13c] ss:$12 sps:$4 sm:$0xff]   ;;  %v1833_v59 = vld [vmem:[%s2356_s1 + $0x140] ss:$12 sps:$4 sm:$0xff]   ;;  %v1837_v0 = vld [vmem:[%s2356_s1 + $0x158] ss:$12 sps:$4 sm:$0xff]  }
  0x1b   : > { %v1831_v57 = vld [vmem:[%s2356_s1 + $0x68] ss:$12 sps:$4 sm:$0xff]   ;;  %v1835_v62 = vld [vmem:[%s2356_s1 + $0x80] ss:$12 sps:$4 sm:$0xff]   ;;  %v1821_v63 = vld [vmem:[%s2356_s1 + $0x150] ss:$12 sps:$4 sm:$0xff]  }
  0x1c   : > { %828 = vmatpush1.bf16.msra.mxu0 %v1776_v23  ;;  %v1817_v60 = vld [vmem:[%s2356_s1 + $0x154] ss:$12 sps:$4 sm:$0xff]   ;;  %v2118_v61 = vld [vmem:[%s2006_s30 + $0x28] sm:$0xff]   ;;  %v1839_v3 = vld [vmem:[%s2356_s1 + $0x98] ss:$12 sps:$4 sm:$0xff]  }
  0x1d   : > { %933 = vmatpush1.bf16.msra.mxu1 %v1777_v24  ;;  %829 = vmatprep.subr.bf16.mxu0 %v1778_v25  ;;  %v1823_v1 = vld [vmem:[%s2356_s1 + $0x16c] ss:$12 sps:$4 sm:$0xff]   ;;  %v1825_v4 = vld [vmem:[%s2356_s1 + $0x168] ss:$12 sps:$4 sm:$0xff]   ;;  %v1841_v5 = vld [vmem:[%s2356_s1 + $0x170] ss:$12 sps:$4 sm:$0xff]  }
  0x1e   : > { %934 = vmatprep.subr.bf16.mxu1 %v1780_v26  ;;  %v1830_v6 = vld [vmem:[%s2356_s1 + $0x188] ss:$12 sps:$4 sm:$0xff]   ;;  %v1843_v7 = vld [vmem:[%s2356_s1 + $0xb0] ss:$12 sps:$4 sm:$0xff]   ;;  %v1827_v8 = vld [vmem:[%s2006_s30] sm:$0xff]  }
  0x1f   : > { %v2151_v9 = vld [vmem:[%s2006_s30 + $0x30] sm:$0xff]   ;;  %v1834_v10 = vld [vmem:[%s2356_s1 + $0x1a0] ss:$12 sps:$4 sm:$0xff]   ;;  %v1838_v11 = vld [vmem:[%s2356_s1 + $0x1b8] ss:$12 sps:$4 sm:$0xff]  }
  0x20   : > { %830 = vmatpush1.bf16.msra.mxu0 %v1782_v27  ;;  %v1832_v12 = vld [vmem:[%s2006_s30 + $0x38] sm:$0xff]   ;;  %v1844_v14 = vld [vmem:[%s2356_s1 + $0x1e8] ss:$12 sps:$4 sm:$0xff]   ;;  %v1836_v15 = vld [vmem:[%s2006_s30 + $0x40] sm:$0xff]  }
  0x21   : > { %935 = vmatpush1.bf16.msra.mxu1 %v1783_v28  ;;  %831 = vmatprep.subr.bf16.mxu0 %v1784_v29  ;;  %v1842_v13 = vld [vmem:[%s2356_s1 + $0x1d0] ss:$12 sps:$4 sm:$0xff]   ;;  %v1845_v16 = vld [vmem:[%s2356_s1 + $0x200] ss:$12 sps:$4 sm:$0xff]   ;;  %v1846_v17 = vld [vmem:[%s2356_s1 + $0x218] ss:$12 sps:$4 sm:$0xff]  }
  0x22   : > { %936 = vmatprep.subr.bf16.mxu1 %v1786_v30  ;;  %v1840_v18 = vld [vmem:[%s2006_s30 + $0x48] sm:$0xff]   ;;  %v1847_v19 = vld [vmem:[%s2356_s1 + $0x230] ss:$12 sps:$4 sm:$0xff]   ;;  %s1493_s30 = sshll.u32 %s2365_s15, 3  ;;  %s2313_s15 = scalar_lea.vmem %s2358_s3, %s1579_s22 }
  0x23   : > { %s2213_s19 = scalar_lea.vmem %s2359_s4, %s1493_s30 }
  0x24   : > { %832 = vmatpush1.bf16.msra.mxu0 %v1788_v31 }
  0x25   : > { %937 = vmatpush1.bf16.msra.mxu1 %v1789_v32  ;;  %833 = vmatprep.subr.bf16.mxu0 %v1790_v33  ;;  %v1873_v32 = vmov 0.0  }
  0x26   : > { %1603 = vmatprep.subr.bf16.mxu1 %v1793_v34  ;;  %1356 = vst [vmem:[%s2213_s19 + $0x2] sm:$0x3f] %v1873_v32 }
  0x28   : > { %955 = vmatmul.mubr.bf16.vlgmr.msra.gmra.mrb[0].mxu1 %v2033_v35  ;;  %834 = vmatpush1.bf16.msra.mxu0 %v1794_v36  ;;  %v1237_v36 = vlaneseq }
  0x29   : > { %1604 = vmatpush3.bf16.msra.mxu1 %v1795_v37  ;;  %835 = vmatprep.subr.bf16.mxu0 %v1796_v38 }
  0x2a   : > { %963 = vmatprep.mubr.bf16.mxu1 %v1872_v2  ;;  %1605 = vmatprep.subr.bf16.mxu1 %v1802_v39 }
  0x2c   : > { %836 = vmatpush1.bf16.msra.mxu0 %v1798_v40 }
  0x2d   : > { %1606 = vmatpush3.bf16.msra.mxu1 %v1804_v42  ;;  %837 = vmatprep.subr.bf16.mxu0 %v1799_v41  ;;  %v2220_v42 = vshrl.u32 %v1237_v36, 7 }
  0x2e   : > { %1607 = vmatprep.subr.bf16.mxu1 %v1811_v43 }
  0x2f   : > { %vm1239_vm0 = vcmp.lt.s32.totalorder %v2220_v42, 7  ;;  %vm1272_vm1 = vcmp.lt.s32.totalorder %v2220_v42, 6 }
  0x30   : > { %964 = vmatmul.mubr.bf16.gmra.mrb[4].mxu1 %v2062_v44  ;;  %838 = vmatpush1.bf16.msra.mxu0 %v1803_v45 }
  0x31   : > { %972 = vmatprep.mubr.bf16.mxu1 %v1872_v2  ;;  %839 = vmatprep.subr.bf16.mxu0 %v1805_v46 }
  0x32   : > { %1608 = vmatpush3.bf16.msra.mxu1 %v1813_v47 }
  0x33   : > { %1609 = vmatprep.subr.bf16.mxu1 %v1820_v48 }
  0x34   : > { %840 = vmatpush1.bf16.msra.mxu0 %v1807_v49 }
  0x35   : > { %841 = vmatprep.subr.bf16.mxu0 %v1808_v50 }
  0x36   : > { %1610 = vmatpush3.bf16.msra.mxu1 %v1822_v53 }
  0x37   : > { %1611 = vmatprep.subr.bf16.mxu1 %v1829_v55 }
  0x38   : > { %973 = vmatmul.mubr.bf16.gmra.mrb[8].mxu1 %v2088_v52  ;;  %842 = vmatpush1.bf16.msra.mxu0 %v1812_v54 }
  0x39   : > { %981 = vmatprep.mubr.bf16.mxu1 %v1872_v2  ;;  %843 = vmatprep.subr.bf16.mxu0 %v1814_v56 }
  0x3a   : > { %1612 = vmatpush3.bf16.msra.mxu1 %v1831_v57 }
  0x3b   : > { %1613 = vmatprep.subr.bf16.mxu1 %v1833_v59 }
  0x3c   : > { %844 = vmatpush1.bf16.msra.mxu0 %v1816_v58 }
  0x3d   : > { %845 = vmatprep.subr.bf16.mxu0 %v1817_v60 }
  0x3e   : > { %1614 = vmatpush3.bf16.msra.mxu1 %v1835_v62 }
  0x3f   : > { %1615 = vmatprep.subr.bf16.mxu1 %v1837_v0 }
  0x40   : > { %982 = vmatmul.mubr.bf16.gmra.mrb[12].mxu1 %v2118_v61  ;;  %846 = vmatpush1.bf16.msra.mxu0 %v1821_v63 }
  0x41   : > { %990 = vmatprep.mubr.bf16.mxu1 %v1872_v2  ;;  %847 = vmatprep.subr.bf16.mxu0 %v1823_v1 }
  0x42   : > { %1616 = vmatpush3.bf16.msra.mxu1 %v1839_v3 }
  0x43   : > { %1617 = vmatprep.subr.bf16.mxu1 %v1841_v5 }
  0x44   : > { %848 = vmatpush1.bf16.msra.mxu0 %v1825_v4 }
  0x45   : > { %1683 = vmatprep.subr.bf16.mxu0 %v1830_v6 }
  0x46   : > { %1618 = vmatpush3.bf16.msra.mxu1 %v1843_v7 }
  0x47   : > { %850 = vmatmul.mubr.bf16.vlgmr.msra.gmra.mrb[0].mxu0 %v1827_v8 }
  0x48   : > { %991 = vmatmul.mubr.bf16.gmra.mrb[16].mxu1 %v2151_v9  ;;  %1684 = vmatpush3.bf16.msra.mxu0 %v1830_v6 }
  0x49   : > { %858 = vmatprep.mubr.bf16.mxu0 %v2033_v35  ;;  %999 = vmatprep.mubr.bf16.mxu1 %v1872_v2 }
  0x4a   : > { %1685 = vmatprep.subr.bf16.mxu0 %v1834_v10 }
  0x4c   : > { %1686 = vmatpush3.bf16.msra.mxu0 %v1834_v10 }
  0x4d   : > { %1687 = vmatprep.subr.bf16.mxu0 %v1838_v11 }
  0x4f   : > { %859 = vmatmul.mubr.bf16.gmra.mrb[4].mxu0 %v2085_v51 }
  0x50   : > { %1000 = vmatmul.mubr.bf16.gmra.mrb[20].mxu1 %v1832_v12  ;;  %867 = vmatprep.mubr.bf16.mxu0 %v2062_v44 }
  0x51   : > { %1008 = vmatprep.mubr.bf16.mxu1 %v1872_v2  ;;  %1688 = vmatpush3.bf16.msra.mxu0 %v1838_v11 }
  0x52   : > { %1689 = vmatprep.subr.bf16.mxu0 %v1842_v13 }
  0x55   : > { %1690 = vmatpush3.bf16.msra.mxu0 %v1842_v13 }
  0x56   : > { %1691 = vmatprep.subr.bf16.mxu0 %v1844_v14 }
  0x57   : > { %868 = vmatmul.mubr.bf16.gmra.mrb[8].mxu0 %v2033_v35 }
  0x58   : > { %1009 = vmatmul.mubr.bf16.gmra.mrb[24].mxu1 %v1836_v15  ;;  %876 = vmatprep.mubr.bf16.mxu0 %v2088_v52 }
  0x59   : > { %1017 = vmatprep.mubr.bf16.mxu1 %v1872_v2  ;;  %1692 = vmatpush3.bf16.msra.mxu0 %v1844_v14 }
  0x5a   : > { %1693 = vmatprep.subr.bf16.mxu0 %v1845_v16 }
  0x5d   : > { %1694 = vmatpush3.bf16.msra.mxu0 %v1845_v16 }
  0x5e   : > { %1695 = vmatprep.subr.bf16.mxu0 %v1846_v17 }
  0x5f   : > { %877 = vmatmul.mubr.bf16.gmra.mrb[12].mxu0 %v2062_v44 }
  0x60   : > { %1018 = vmatmul.mubr.bf16.gmra.mrb[28].mxu1 %v1840_v18  ;;  %885 = vmatprep.mubr.bf16.mxu0 %v2118_v61 }
  0x61   : > { %1059 = vmatprep.mubr.bf16.mxu1 %v2085_v51  ;;  %1696 = vmatpush3.bf16.msra.mxu0 %v1846_v17 }
  0x62   : > { %1697 = vmatprep.subr.bf16.mxu0 %v1847_v19 }
  0x65   : > { %1698 = vmatpush3.bf16.msra.mxu0 %v1847_v19 }
  0x67   : > { %886 = vmatmul.mubr.bf16.gmra.mrb[16].mxu0 %v2088_v52 }
  0x68   : > { %1060 = vmatmul.mubr.bf16.vlgmr.msra.gmra.mrb[32].mxu1 %v1827_v8  ;;  %894 = vmatprep.mubr.bf16.mxu0 %v2151_v9 }
  0x69   : > { %1067 = vmatprep.mubr.bf16.mxu1 %v2033_v35 }
  0x6f   : > { %895 = vmatmul.mubr.bf16.gmra.mrb[20].mxu0 %v2118_v61 }
  0x70   : > { %1068 = vmatmul.mubr.bf16.gmra.mrb[36].mxu1 %v2085_v51  ;;  %903 = vmatprep.mubr.bf16.mxu0 %v1832_v12 }
  0x71   : > { %1075 = vmatprep.mubr.bf16.mxu1 %v2062_v44 }
  0x77   : > { %904 = vmatmul.mubr.bf16.gmra.mrb[24].mxu0 %v2151_v9 }
  0x78   : > { %1076 = vmatmul.mubr.bf16.gmra.mrb[40].mxu1 %v2033_v35  ;;  %912 = vmatprep.mubr.bf16.mxu0 %v1836_v15 }
  0x79   : > { %1083 = vmatprep.mubr.bf16.mxu1 %v2088_v52 }
  0x7f   : > { %913 = vmatmul.mubr.bf16.gmra.mrb[28].mxu0 %v1832_v12 }
  0x80   : > { %1084 = vmatmul.mubr.bf16.gmra.mrb[44].mxu1 %v2062_v44  ;;  %1699 = vmatprep.mubr.bf16.mxu0 %v2033_v35 }
  0x81   : > { %1091 = vmatprep.mubr.bf16.mxu1 %v2118_v61 }
  0x87   : > { %1700 = vmatmul.mubr.bf16.vlgmr.msra.gmra.mrb[32].mxu0 %v2062_v44 }
  0x88   : > { %1092 = vmatmul.mubr.bf16.gmra.mrb[48].mxu1 %v2088_v52  ;;  %1703 = vmatprep.mubr.bf16.mxu0 %v2088_v52 }
  0x89   : > { %1099 = vmatprep.mubr.bf16.mxu1 %v2151_v9 }
  0x8f   : > { %1704 = vmatmul.mubr.bf16.gmra.mrb[36].mxu0 %v2118_v61 }
  0x90   : > { %1100 = vmatmul.mubr.bf16.gmra.mrb[52].mxu1 %v2118_v61  ;;  %1707 = vmatprep.mubr.bf16.mxu0 %v2151_v9 }
  0x91   : > { %1107 = vmatprep.mubr.bf16.mxu1 %v1832_v12 }
  0x97   : > { %1708 = vmatmul.mubr.bf16.gmra.mrb[40].mxu0 %v1832_v12 }
  0x98   : > { %1108 = vmatmul.mubr.bf16.gmra.mrb[56].mxu1 %v2151_v9  ;;  %1711 = vmatprep.mubr.bf16.mxu0 %v1836_v15 }
  0x99   : > { %1115 = vmatprep.mubr.bf16.mxu1 %v1836_v15 }
  0x9f   : > { %1712 = vmatmul.mubr.bf16.gmra.mrb[44].mxu0 %v1840_v18 }
  0xa0   : > { %1116 = vmatmul.mubr.bf16.gmra.mrb[60].mxu1 %v1832_v12 }
  0xfb   : > { %v956_v2 = vpop.f32.mrb[0].mxu1 }
  0xfc   : > { %v958_v20 = vpop.f32.mrb[1].mxu1 }
  0xfd   : > { %v960_v21 = vpop.f32.mrb[2].mxu1 }
  0xfe   : > { %v961_v22 = vpop.f32.mrb[3].mxu1 }
 0x103   : > { %v965_v23 = vpop.f32.mrb[4].mxu1 }
 0x104   : > { %v967_v24 = vpop.f32.mrb[5].mxu1 }
 0x105   : > { %v969_v25 = vpop.f32.mrb[6].mxu1 }
 0x106   : > { %v970_v26 = vpop.f32.mrb[7].mxu1 }
 0x10b   : > { %v974_v27 = vpop.f32.mrb[8].mxu1 }
 0x10c   : > { %v976_v28 = vpop.f32.mrb[9].mxu1 }
 0x10d   : > { %v978_v29 = vpop.f32.mrb[10].mxu1 }
 0x10e   : > { %v979_v30 = vpop.f32.mrb[11].mxu1 }
 0x113   : > { %v983_v31 = vpop.f32.mrb[12].mxu1 }
 0x114   : > { %v985_v33 = vpop.f32.mrb[13].mxu1 }
 0x115   : > { %v987_v34 = vpop.f32.mrb[14].mxu1 }
 0x116   : > { %v988_v35 = vpop.f32.mrb[15].mxu1 }
 0x11a   : > { %v851_v37 = vpop.f32.mrb[0].mxu0 }
 0x11b   : > { %v2216_v38 = vpop.f32.mrb[16].mxu1  ;;  %v957_v39 = vadd.f32 %v956_v2, %v851_v37  ;;  %v853_v40 = vpop.f32.mrb[1].mxu0 }
 0x11c   : > { %v2218_v41 = vpop.f32.mrb[17].mxu1  ;;  %v959_v43 = vadd.f32 %v958_v20, %v853_v40  ;;  %v855_v44 = vpop.f32.mrb[2].mxu0 }
 0x11d   : > { %v996_v45 = vpop.f32.mrb[18].mxu1  ;;  %v856_v46 = vpop.f32.mrb[3].mxu0 }
 0x11e   : > { %v2222_v47 = vpop.f32.mrb[19].mxu1  ;;  %v962_v48 = vadd.f32 %v961_v22, %v856_v46  ;;  %v1221_v49 = vrot.slane %v959_v43, 1 }
 0x120   : > { %v1222_v50 = vrot.slane %v962_v48, 1 }
 0x122   : > { %v1247_v51 = vsel %vm1239_vm0, %v1221_v49, %v1222_v50  ;;  %v860_v52 = vpop.f32.mrb[4].mxu0 }
 0x123   : > { %v2227_v53 = vpop.f32.mrb[20].mxu1  ;;  %v2229_v54 = vadd.f32 %v1247_v51, %v957_v39  ;;  %v966_v55 = vadd.f32 %v965_v23, %v860_v52  ;;  %v862_v56 = vpop.f32.mrb[5].mxu0 }
 0x124   : > { %v2231_v57 = vpop.f32.mrb[21].mxu1  ;;  %v968_v58 = vadd.f32 %v967_v24, %v862_v56  ;;  %v864_v59 = vpop.f32.mrb[6].mxu0 }
 0x125   : > { %v1005_v60 = vpop.f32.mrb[22].mxu1  ;;  %v865_v61 = vpop.f32.mrb[7].mxu0 }
 0x126   : > { %v2233_v62 = vpop.f32.mrb[23].mxu1  ;;  %v971_v63 = vadd.f32 %v970_v26, %v865_v61  ;;  %v1223_v0 = vrot.slane %v968_v58, 1 }
 0x128   : > { %v1224_v1 = vrot.slane %v971_v63, 1 }
 0x12a   : > { %v1246_v3 = vsel %vm1239_vm0, %v1223_v0, %v1224_v1  ;;  %v869_v4 = vpop.f32.mrb[8].mxu0 }
 0x12b   : > { %v2237_v5 = vpop.f32.mrb[24].mxu1  ;;  %v2239_v6 = vadd.f32 %v1246_v3, %v966_v55  ;;  %v975_v7 = vadd.f32 %v974_v27, %v869_v4  ;;  %v871_v8 = vpop.f32.mrb[9].mxu0 }
 0x12c   : > { %v2241_v9 = vpop.f32.mrb[25].mxu1  ;;  %v977_v10 = vadd.f32 %v976_v28, %v871_v8  ;;  %v873_v11 = vpop.f32.mrb[10].mxu0 }
 0x12d   : > { %v1014_v12 = vpop.f32.mrb[26].mxu1  ;;  %v874_v13 = vpop.f32.mrb[11].mxu0 }
 0x12e   : > { %v2243_v14 = vpop.f32.mrb[27].mxu1  ;;  %v980_v15 = vadd.f32 %v979_v30, %v874_v13  ;;  %v1225_v16 = vrot.slane %v977_v10, 1 }
 0x130   : > { %v1226_v17 = vrot.slane %v980_v15, 1 }
 0x132   : > { %v1245_v18 = vsel %vm1239_vm0, %v1225_v16, %v1226_v17  ;;  %v878_v19 = vpop.f32.mrb[12].mxu0 }
 0x133   : > { %v2247_v2 = vpop.f32.mrb[28].mxu1  ;;  %v2249_v20 = vadd.f32 %v1245_v18, %v975_v7  ;;  %v984_v21 = vadd.f32 %v983_v31, %v878_v19  ;;  %v880_v22 = vpop.f32.mrb[13].mxu0 }
 0x134   : > { %v2251_v23 = vpop.f32.mrb[29].mxu1  ;;  %v986_v24 = vadd.f32 %v985_v33, %v880_v22  ;;  %v882_v25 = vpop.f32.mrb[14].mxu0 }
 0x135   : > { %v1023_v26 = vpop.f32.mrb[30].mxu1  ;;  %v883_v27 = vpop.f32.mrb[15].mxu0 }
 0x136   : > { %v2253_v28 = vpop.f32.mrb[31].mxu1  ;;  %v989_v29 = vadd.f32 %v988_v35, %v883_v27  ;;  %v1227_v30 = vrot.slane %v986_v24, 1 }
 0x138   : > { %v1228_v32 = vrot.slane %v989_v29, 1 }
 0x13a   : > { %v1244_v34 = vsel %vm1239_vm0, %v1227_v30, %v1228_v32  ;;  %v887_v36 = vpop.f32.mrb[16].mxu0 }
 0x13b   : > { %v1619_v37 = vpop.f32.mrb[32].mxu1  ;;  %v2257_v39 = vadd.f32 %v1244_v34, %v984_v21  ;;  %v993_v31 = vadd.f32 %v2216_v38, %v887_v36  ;;  %v889_v40 = vpop.f32.mrb[17].mxu0 }
 0x13c   : > { %v1620_v43 = vpop.f32.mrb[33].mxu1  ;;  %v995_v33 = vadd.f32 %v2218_v41, %v889_v40  ;;  %v891_v45 = vpop.f32.mrb[18].mxu0 }
 0x13d   : > { %v2261_v44 = vadd.f32 %v1620_v43, %v1619_v37  ;;  %v1622_v46 = vpop.f32.mrb[34].mxu1  ;;  %v892_v35 = vpop.f32.mrb[19].mxu0 }
 0x13e   : > { %v1623_v48 = vpop.f32.mrb[35].mxu1  ;;  %v998_v49 = vadd.f32 %v2222_v47, %v892_v35  ;;  %v1229_v51 = vrot.slane %v995_v33, 1 }
 0x13f   : > { %v2264_v50 = vadd.f32 %v1623_v48, %v1622_v46 }
 0x140   : > { %v1230_v52 = vrot.slane %v998_v49, 1 }
 0x142   : > { %v1243_v55 = vsel %vm1239_vm0, %v1229_v51, %v1230_v52  ;;  %v896_v38 = vpop.f32.mrb[20].mxu0 }
 0x143   : > { %v1625_v56 = vpop.f32.mrb[36].mxu1  ;;  %v2268_v58 = vadd.f32 %v1243_v55, %v993_v31  ;;  %v1002_v41 = vadd.f32 %v2227_v53, %v896_v38  ;;  %v898_v59 = vpop.f32.mrb[21].mxu0 }
 0x144   : > { %v1626_v60 = vpop.f32.mrb[37].mxu1  ;;  %v1004_v61 = vadd.f32 %v2231_v57, %v898_v59  ;;  %v900_v0 = vpop.f32.mrb[22].mxu0 }
 0x145   : > { %v1627_v63 = vadd.f32 %v1626_v60, %v1625_v56  ;;  %v1628_v47 = vpop.f32.mrb[38].mxu1  ;;  %v901_v1 = vpop.f32.mrb[23].mxu0 }
 0x146   : > { %v1629_v3 = vpop.f32.mrb[39].mxu1  ;;  %v1007_v4 = vadd.f32 %v2233_v62, %v901_v1  ;;  %v1231_v8 = vrot.slane %v1004_v61, 1 }
 0x147   : > { %v1630_v7 = vadd.f32 %v1629_v3, %v1628_v47 }
 0x148   : > { %v1232_v10 = vrot.slane %v1007_v4, 1 }
 0x14a   : > { %v1242_v11 = vsel %vm1239_vm0, %v1231_v8, %v1232_v10  ;;  %v905_v12 = vpop.f32.mrb[24].mxu0 }
 0x14b   : > { %v1631_v13 = vpop.f32.mrb[40].mxu1  ;;  %v2275_v53 = vadd.f32 %v1242_v11, %v1002_v41  ;;  %v1011_v15 = vadd.f32 %v2237_v5, %v905_v12  ;;  %v907_v57 = vpop.f32.mrb[25].mxu0 }
 0x14c   : > { %v1632_v16 = vpop.f32.mrb[41].mxu1  ;;  %v1013_v17 = vadd.f32 %v2241_v9, %v907_v57  ;;  %v909_v19 = vpop.f32.mrb[26].mxu0 }
 0x14d   : > { %v1633_v18 = vadd.f32 %v1632_v16, %v1631_v13  ;;  %v1634_v21 = vpop.f32.mrb[42].mxu1  ;;  %v910_v62 = vpop.f32.mrb[27].mxu0 }
 0x14e   : > { %v1635_v22 = vpop.f32.mrb[43].mxu1  ;;  %v1016_v24 = vadd.f32 %v2243_v14, %v910_v62  ;;  %v1233_v26 = vrot.slane %v1013_v17, 1 }
 0x14f   : > { %v2280_v25 = vadd.f32 %v1635_v22, %v1634_v21 }
 0x150   : > { %v1234_v27 = vrot.slane %v1016_v24, 1 }
 0x152   : > { %v1241_v29 = vsel %vm1239_vm0, %v1233_v26, %v1234_v27  ;;  %v914_v30 = vpop.f32.mrb[28].mxu0 }
 0x153   : > { %v1637_v5 = vpop.f32.mrb[44].mxu1  ;;  %v2284_v32 = vadd.f32 %v1241_v29, %v1011_v15  ;;  %v1020_v9 = vadd.f32 %v2247_v2, %v914_v30  ;;  %v916_v34 = vpop.f32.mrb[29].mxu0 }
 0x154   : > { %v1638_v36 = vpop.f32.mrb[45].mxu1  ;;  %v1022_v37 = vadd.f32 %v2251_v23, %v916_v34  ;;  %v918_v40 = vpop.f32.mrb[30].mxu0 }
 0x155   : > { %v1639_v31 = vadd.f32 %v1638_v36, %v1637_v5  ;;  %v1640_v14 = vpop.f32.mrb[46].mxu1  ;;  %v919_v43 = vpop.f32.mrb[31].mxu0 }
 0x156   : > { %v1641_v33 = vpop.f32.mrb[47].mxu1  ;;  %v1025_v45 = vadd.f32 %v2253_v28, %v919_v43  ;;  %v1235_v35 = vrot.slane %v1022_v37, 1 }
 0x157   : > { %v1642_v46 = vadd.f32 %v1641_v33, %v1640_v14 }
 0x158   : > { %v1236_v48 = vrot.slane %v1025_v45, 1 }
 0x15a   : > { %v1240_v49 = vsel %vm1239_vm0, %v1235_v35, %v1236_v48  ;;  %v1701_v52 = vpop.f32.mrb[32].mxu0 }
 0x15b   : > { %v1643_v51 = vpop.f32.mrb[48].mxu1  ;;  %v2291_v2 = vadd.f32 %v1240_v49, %v1020_v9  ;;  %v1167_v55 = vadd.f32 %v1701_v52, %v1627_v63  ;;  %v1158_v23 = vpop.f32.mrb[33].mxu0 }
 0x15c   : > { %v1644_v38 = vpop.f32.mrb[49].mxu1  ;;  %v1159_v41 = vadd.f32 %v2261_v44, %v1158_v23  ;;  %v1702_v60 = vpop.f32.mrb[34].mxu0  ;;  %v2301_v44 = vld [vmem:[%s2357_s2] ss:$0 sm:$0xff] }
 0x15d   : > { %v1645_v56 = vadd.f32 %v1644_v38, %v1643_v51  ;;  %v1646_v59 = vpop.f32.mrb[50].mxu1  ;;  %v1170_v61 = vadd.f32 %v1702_v60, %v1630_v7  ;;  %v1161_v0 = vpop.f32.mrb[35].mxu0  ;;  %v1258_v3 = vrot.slane %v1167_v55, 2 }
 0x15e   : > { %v1647_v28 = vpop.f32.mrb[51].mxu1  ;;  %v1162_v1 = vadd.f32 %v2264_v50, %v1161_v0  ;;  %v1256_v8 = vrot.slane %v1159_v41, 2 }
 0x15f   : > { %v1648_v47 = vadd.f32 %v1647_v28, %v1646_v59  ;;  %v1259_v4 = vrot.slane %v1170_v61, 2 }
 0x160   : > { %v1257_v63 = vrot.slane %v1162_v1, 2 }
 0x161   : > { %v1279_v10 = vsel %vm1272_vm1, %v1258_v3, %v1259_v4 }
 0x162   : > { %v1282_v7 = vadd.f32 %v1279_v10, %v2239_v6  ;;  %v1280_v11 = vsel %vm1272_vm1, %v1256_v8, %v1257_v63  ;;  %v1705_v13 = vpop.f32.mrb[36].mxu0 }
 0x163   : > { %v1649_v12 = vpop.f32.mrb[52].mxu1  ;;  %v1281_v50 = vadd.f32 %v1280_v11, %v2229_v54  ;;  %v1183_v15 = vadd.f32 %v1705_v13, %v1639_v31  ;;  %v1174_v16 = vpop.f32.mrb[37].mxu0 }
 0x164   : > { %v1650_v57 = vpop.f32.mrb[53].mxu1  ;;  %v1297_v17 = vadd.f32 %v2301_v44, %v1282_v7  ;;  %v1175_v21 = vadd.f32 %v1633_v18, %v1174_v16  ;;  %v1706_v22 = vpop.f32.mrb[38].mxu0 }
 0x165   : > { %v1651_v19 = vadd.f32 %v1650_v57, %v1649_v12  ;;  %v1652_v62 = vpop.f32.mrb[54].mxu1  ;;  %v1296_v24 = vadd.f32 %v2301_v44, %v1281_v50  ;;  %v1186_v6 = vadd.f32 %v1706_v22, %v1642_v46  ;;  %v1177_v27 = vpop.f32.mrb[39].mxu0  ;;  %v1262_v54 = vrot.slane %v1183_v15, 2 }
 0x166   : > { %v1653_v26 = vpop.f32.mrb[55].mxu1  ;;  %v1334_v29 = vmul.f32 %v1297_v17, %v1297_v17  ;;  %v1178_v5 = vadd.f32 %v2280_v25, %v1177_v27  ;;  %v1260_v37 = vrot.slane %v1175_v21, 2 }
 0x167   : > { %v1654_v30 = vadd.f32 %v1653_v26, %v1652_v62  ;;  %v1583_v9 = vpack.c.bf16 %v1297_v17, %v1296_v24  ;;  %v1320_v18 = vadd.f32 %v1297_v17, %v1296_v24  ;;  %v1333_v34 = vmul.f32 %v1296_v24, %v1296_v24 }
 0x168   : > { %v1263_v36 = vrot.slane %v1186_v6, 2  ;;  %v1261_v31 = vrot.slane %v1178_v5, 2 }
 0x169   : > { %1584 = vst [vmem:[%s2313_s15] sm:$0xff] %v1583_v9   ;;  %v1341_v40 = vadd.f32 %v1334_v29, %v1333_v34 }
 0x16a   : > { %v1277_v14 = vsel %vm1272_vm1, %v1262_v54, %v1263_v36  ;;  %v1278_v33 = vsel %vm1272_vm1, %v1260_v37, %v1261_v31  ;;  %v1709_v46 = vpop.f32.mrb[40].mxu0 }
 0x16b   : > { %v1284_v43 = vadd.f32 %v1277_v14, %v2257_v39  ;;  %v1655_v45 = vpop.f32.mrb[56].mxu1  ;;  %v1283_v25 = vadd.f32 %v1278_v33, %v2249_v20  ;;  %v1199_v35 = vadd.f32 %v1709_v46, %v1651_v19  ;;  %v1190_v49 = vpop.f32.mrb[41].mxu0 }
 0x16c   : > { %v1656_v48 = vpop.f32.mrb[57].mxu1  ;;  %v1191_v55 = vadd.f32 %v1645_v56, %v1190_v49  ;;  %v1710_v23 = vpop.f32.mrb[42].mxu0 }
 0x16d   : > { %v1299_v51 = vadd.f32 %v2301_v44, %v1284_v43  ;;  %v1657_v52 = vadd.f32 %v1656_v48, %v1655_v45  ;;  %v1658_v38 = vpop.f32.mrb[58].mxu1  ;;  %v1298_v41 = vadd.f32 %v2301_v44, %v1283_v25  ;;  %v1202_v39 = vadd.f32 %v1710_v23, %v1654_v30  ;;  %v1193_v60 = vpop.f32.mrb[43].mxu0 }
 0x16e   : > { %v1659_v59 = vpop.f32.mrb[59].mxu1  ;;  %v1266_v61 = vrot.slane %v1199_v35, 2  ;;  %v1194_v0 = vadd.f32 %v1648_v47, %v1193_v60  ;;  %v1264_v8 = vrot.slane %v1191_v55, 2 }
 0x16f   : > { %v1660_v28 = vadd.f32 %v1659_v59, %v1658_v38  ;;  %v1588_v1 = vpack.c.bf16 %v1299_v51, %v1298_v41  ;;  %v1321_v20 = vadd.f32 %v1320_v18, %v1298_v41  ;;  %v1335_v3 = vmul.f32 %v1298_v41, %v1298_v41 }
 0x170   : > { %v1267_v4 = vrot.slane %v1202_v39, 2  ;;  %v1265_v63 = vrot.slane %v1194_v0, 2  ;;  %v1336_v10 = vmul.f32 %v1299_v51, %v1299_v51 }
 0x171   : > { %1600 = vst [vmem:[%s2313_s15 + $0x8] sm:$0xff] %v1588_v1   ;;  %v1342_v56 = vadd.f32 %v1341_v40, %v1335_v3  ;;  %v1322_v11 = vadd.f32 %v1321_v20, %v1299_v51 }
 0x172   : > { %v1275_v7 = vsel %vm1272_vm1, %v1266_v61, %v1267_v4  ;;  %v1276_v13 = vsel %vm1272_vm1, %v1264_v8, %v1265_v63  ;;  %v1713_v47 = vpop.f32.mrb[44].mxu0 }
 0x173   : > { %v1286_v12 = vadd.f32 %v1275_v7, %v2275_v53  ;;  %v1661_v50 = vpop.f32.mrb[60].mxu1  ;;  %v1285_v15 = vadd.f32 %v1276_v13, %v2268_v58  ;;  %v1343_v57 = vadd.f32 %v1342_v56, %v1336_v10  ;;  %v1206_v17 = vpop.f32.mrb[45].mxu0 }
 0x174   : > { %v1662_v16 = vpop.f32.mrb[61].mxu1  ;;  %v1207_v62 = vadd.f32 %v1657_v52, %v1206_v17  ;;  %v1714_v24 = vpop.f32.mrb[46].mxu0 }
 0x175   : > { %v1301_v19 = vadd.f32 %v2301_v44, %v1286_v12  ;;  %v1663_v21 = vadd.f32 %v1662_v16, %v1661_v50  ;;  %v1664_v22 = vpop.f32.mrb[62].mxu1  ;;  %v1300_v6 = vadd.f32 %v2301_v44, %v1285_v15  ;;  %v1209_v26 = vpop.f32.mrb[47].mxu0 }
 0x176   : > { %v1665_v53 = vpop.f32.mrb[63].mxu1  ;;  %v1210_v58 = vadd.f32 %v1660_v28, %v1209_v26  ;;  %v1268_v36 = vrot.slane %v1207_v62, 2 }
 0x177   : > { %v1215_v27 = vadd.f32 %v1713_v47, %v1663_v21  ;;  %v1666_v29 = vadd.f32 %v1665_v53, %v1664_v22  ;;  %v1593_v54 = vpack.c.bf16 %v1301_v19, %v1300_v6  ;;  %v1323_v30 = vadd.f32 %v1322_v11, %v1300_v6 }
 0x178   : > { %v1337_v5 = vmul.f32 %v1300_v6, %v1300_v6  ;;  %v1338_v9 = vmul.f32 %v1301_v19, %v1301_v19  ;;  %v1269_v37 = vrot.slane %v1210_v58, 2 }
 0x179   : > { %v1218_v18 = vadd.f32 %v1714_v24, %v1666_v29  ;;  %1601 = vst [vmem:[%s2313_s15 + $0x10] sm:$0xff] %v1593_v54   ;;  %v1324_v31 = vadd.f32 %v1323_v30, %v1301_v19  ;;  %v1270_v40 = vrot.slane %v1215_v27, 2 }
 0x17a   : > { %v1344_v34 = vadd.f32 %v1343_v57, %v1337_v5  ;;  %v1274_v43 = vsel %vm1272_vm1, %v1268_v36, %v1269_v37 }
 0x17b   : > { %v1271_v14 = vrot.slane %v1218_v18, 2  ;;  %v1287_v46 = vadd.f32 %v1274_v43, %v2284_v32 }
 0x17c   : > { %v1345_v33 = vadd.f32 %v1344_v34, %v1338_v9 }
 0x17d   : > { %v1273_v45 = vsel %vm1272_vm1, %v1270_v40, %v1271_v14  ;;  %v1302_v35 = vadd.f32 %v2301_v44, %v1287_v46 }
 0x17e   : > { %v1288_v25 = vadd.f32 %v1273_v45, %v2291_v2 }
 0x17f   : > { %v1325_v49 = vadd.f32 %v1324_v31, %v1302_v35  ;;  %v1339_v51 = vmul.f32 %v1302_v35, %v1302_v35 }
 0x180   : > { %v1303_v48 = vadd.f32 %v2301_v44, %v1288_v25 }
 0x181   : > { %v1346_v23 = vadd.f32 %v1345_v33, %v1339_v51 }
 0x182   : > { %v1340_v52 = vmul.f32 %v1303_v48, %v1303_v48  ;;  %v1598_v55 = vpack.c.bf16 %v1303_v48, %v1302_v35  ;;  %v1326_v38 = vadd.f32 %v1325_v49, %v1303_v48 }
 0x184   : > { %1602 = vst [vmem:[%s2313_s15 + $0x18] sm:$0xff] %v1598_v55   ;;  %v1327_v41 = vrot.slane %v1326_v38, 4  ;;  %v1347_v42 = vadd.f32 %v1346_v23, %v1340_v52 }
 0x186   : > { %v1328_v39 = vadd.f32 %v1327_v41, %v1326_v38  ;;  %v1348_v59 = vrot.slane %v1347_v42, 4 }
 0x188   : > { %v1329_v32 = vrot.slane %v1328_v39, 2  ;;  %v1349_v60 = vadd.f32 %v1348_v59, %v1347_v42 }
 0x18a   : > { %v1330_v2 = vadd.f32 %v1329_v32, %v1328_v39  ;;  %v1350_v61 = vrot.slane %v1349_v60, 2 }
 0x18c   : > { %v1331_v28 = vrot.slane %v1330_v2, 1  ;;  %v1351_v0 = vadd.f32 %v1350_v61, %v1349_v60 }
 0x18e   : > { %v1332_v44 = vadd.f32 %v1331_v28, %v1330_v2  ;;  %v1352_v1 = vrot.slane %v1351_v0, 1 }
 0x190   : > { %v1353_v20 = vadd.f32 %v1352_v1, %v1351_v0  ;;  %1354 = vst [vmem:[%s2213_s19] sm:$0x1] %v1332_v44 }
 0x192   : > { %1355 = vst [vmem:[%s2213_s19 + $0x1] sm:$0x1] %v1353_v20 }
 0x193 PF: > { %s15_s17 = sadd.s32 1, %s1870_s17   ;;  %s2360_s15 = smov %s1866_s16 }
 0x194   : > { %p12_p5 = scmp.ge.s32.totalorder %s15_s17, 4   ;;  %s2361_s16 = smov %s2363_s18 }
 0x196   :  { %14 = sbr.rel (!%p12_p5) target bundleno = 2 (0x2), region = 74 }

// kernel: squeeze.10
= control target key start
LH: loop header
LB: loop body
LE: loop exit
PB: predicated region body
PF: predicated region fallthrough
CT: control target
= control target key end

     0   :  { %s43_s8 = smov 116   ;;  %vm7_vm0 = vcmask 31744   ;;  %s44_s9 = smov 120   ;;  %s64_s0 = inlined_call_operand.vmem [shape: f32[2,16], index: 0, kind: input, shape index: {}]   ;;  %s65_s1 = inlined_call_operand.vmem [shape: f32[2,4,4], index: 1, kind: output, shape index: {}]  }
   0x1   :  { %v4_v0 = vld [vmem:[%s64_s0] sm:$0x3]  ;;  %s42_s0 = smov 124  }
   0x2   :  { %5 = vst [vmem:[#allocation1] sm:$0x3] %v4_v0 }
   0x9   :  { %v9_v1 = vld [vmem:[#allocation1] sm:$0x3]  }
   0xa   :  { %v21_v2 = vld [vmem:[#allocation1] sm:$0x3]   ;;  %10 = vrot.lane.b32.xlu0 %v9_v1, %s42_s0 }
   0xb   :  { %22 = vrot.lane.b32.xlu1 %v21_v2, %s43_s8  ;;  %v6_v3 = vld [vmem:[#allocation1] sm:$0x3]  }
   0xc   :  { %v15_v4 = vld [vmem:[#allocation1] sm:$0x3]   ;;  %8 = vst.msk [vmem:[#allocation0] ss:$8 sm:$0x3] %vm7_vm0, %v6_v3  }
   0xe   :  { %16 = vrot.lane.b32.xlu0 %v15_v4, %s44_s9 }
  0x7c   :  { %v11_v5 = vpop.permute.xlu0 %10  }
  0x7d   :  { %v23_v6 = vpop.permute.xlu1 %22   ;;  %14 = vst.msk [vmem:[#allocation0 + $0x1] ss:$8 sm:$0x3] %vm7_vm0, %v11_v5  }
  0x7e   :  { %26 = vst.msk [vmem:[#allocation0 + $0x3] ss:$8 sm:$0x3] %vm7_vm0, %v23_v6  }
  0x80   :  { %v17_v7 = vpop.permute.xlu0 %16  }
  0x81   :  { %20 = vst.msk [vmem:[#allocation0 + $0x2] ss:$8 sm:$0x3] %vm7_vm0, %v17_v7  }
  0x88   :  { %v30_v8 = vld [vmem:[#allocation0] sm:$0xf]  ;;  %v34_v9 = vld [vmem:[#allocation0 + $0x8] sm:$0xf] }
  0x89   :  { %32 = vst [vmem:[%s65_s1] sm:$0xf] %v30_v8  ;;  %38 = vst [vmem:[%s65_s1 + $0x4] sm:$0xf] %v34_v9 }

// kernel: upstep_forward.11
= control target key start
LH: loop header
LB: loop body
LE: loop exit
PB: predicated region body
PF: predicated region fallthrough
CT: control target
= control target key end

     0   :  { %s2006_s12 = smov 0   ;;  %s2008_s13 = smov 0   ;;  %s2804_s0 = inlined_call_operand.vmem [shape: bf16[2,16,16,128], index: 0, kind: input, shape index: {}]   ;;  %s2805_s1 = inlined_call_operand.vmem [shape: f32[2,1,1,128], index: 1, kind: input, shape index: {}]   ;;  %s2806_s2 = inlined_call_operand.vmem [shape: f32[2,1,1,128], index: 2, kind: input, shape index: {}]   ;;  %s2807_s3 = inlined_call_operand.vmem [shape: bf16[2,16,16,128], index: 3, kind: output, shape index: {}]  }
   0x1   :  { %s2010_s14 = smov 0  }
   0x2 LB: > { %s25_s15 = sadd.s32 1, %s1980_s13  ;;  %p1559_p0 = scmp.ge.s32.totalorder %s1984_s14, 1  ;;  %s1984_s14 = sphi %s2010_s14, %s13_s14   ;;  %s1980_s13 = sphi %s2008_s13, %s2821_s13   ;;  %s1976_s12 = sphi %s2006_s12, %s2820_s12  }
   0x3   : > { %p27_p1 = scmp.ge.s32.totalorder %s25_s15, 2  ;;  %p175_p2 = scmp.lt.s32.totalorder %s1984_s14, 3 }
   0x5   : > { %s2823_s15 = smov (%p27_p1, %s25_s15), 0  ;;  %p176_p3 = pnand %p1559_p0, %p175_p2 }
   0x7   : > { %179 = sbr.rel (%p176_p3) target bundleno = 286 (0x11e), region = 32 }
   0xe   : > { %p216_p4 = scmp.lt.s32.totalorder %s1976_s12, 1 }
  0x10   : > { %s2825_s12 = smov (!%p216_p4, %s1976_s12), 1 }
  0x11   : > { %s1600_s16 = sshll.u32 %s2825_s12, 7  ;;  %s2031_s19 = scalar_lea.vmem %s2805_s1, %s2825_s12 }
  0x12   : > { %s2038_s22 = scalar_lea.vmem %s2804_s0, %s1600_s16  ;;  %s2044_s25 = scalar_lea.vmem %s2806_s2, %s2825_s12  ;;  %v2048_v1 = vld [vmem:[%s2031_s19] ss:$0 sm:$0xff] }
  0x13   : > { %v1635_v0 = vld [vmem:[%s2038_s22] sm:$0xff]   ;;  %v1778_v2 = vld [vmem:[%s2038_s22 + $0x8] sm:$0xff]   ;;  %v1779_v7 = vld [vmem:[%s2038_s22 + $0x10] sm:$0xff]   ;;  %s2266_s28 = scalar_lea.vmem %s2807_s3, %s1600_s16 }
  0x14   : > { %v1636_v3 = vunpack.c.l.bf16 %v1635_v0  ;;  %v1637_v4 = vunpack.c.h.bf16 %v1635_v0  ;;  %v1640_v5 = vunpack.c.l.bf16 %v1778_v2  ;;  %v1641_v6 = vunpack.c.h.bf16 %v1778_v2  ;;  %v1780_v8 = vld [vmem:[%s2038_s22 + $0x18] sm:$0xff]   ;;  %v2054_v9 = vld [vmem:[%s2044_s25] ss:$0 sm:$0xff] }
  0x15   : > { %v1644_v10 = vunpack.c.l.bf16 %v1779_v7  ;;  %v1645_v11 = vunpack.c.h.bf16 %v1779_v7  ;;  %v1648_v16 = vunpack.c.l.bf16 %v1780_v8  ;;  %v1649_v17 = vunpack.c.h.bf16 %v1780_v8 }
  0x16   : > { %v314_v12 = vmul.f32 %v1636_v3, %v2048_v1  ;;  %v315_v13 = vmul.f32 %v1637_v4, %v2048_v1  ;;  %v316_v14 = vmul.f32 %v1640_v5, %v2048_v1  ;;  %v317_v15 = vmul.f32 %v1641_v6, %v2048_v1 }
  0x17   : > { %v318_v22 = vmul.f32 %v1644_v10, %v2048_v1  ;;  %v319_v23 = vmul.f32 %v1645_v11, %v2048_v1  ;;  %v320_v30 = vmul.f32 %v1648_v16, %v2048_v1  ;;  %v321_v31 = vmul.f32 %v1649_v17, %v2048_v1 }
  0x18   : > { %v2061_v18 = vadd.f32 %v2054_v9, %v314_v12  ;;  %v2064_v19 = vadd.f32 %v2054_v9, %v315_v13  ;;  %v2067_v20 = vadd.f32 %v2054_v9, %v316_v14  ;;  %v2070_v21 = vadd.f32 %v2054_v9, %v317_v15 }
  0x19   : > { %v2093_v34 = vadd.f32 %v2054_v9, %v318_v22  ;;  %v2096_v35 = vadd.f32 %v2054_v9, %v319_v23  ;;  %v2099_v49 = vadd.f32 %v2054_v9, %v320_v30  ;;  %v2102_v50 = vadd.f32 %v2054_v9, %v321_v31 }
  0x1a   : > { %v2075_v24 = vmul.f32 0.70710677, %v2061_v18  ;;  %v2078_v25 = vmul.f32 0.70710677, %v2064_v19  ;;  %v2081_v26 = vmul.f32 0.70710677, %v2067_v20 }
  0x1b   : > { %v2084_v27 = vmul.f32 0.70710677, %v2070_v21  ;;  %v2105_v51 = vmul.f32 0.5, %v2061_v18  ;;  %v2108_v54 = vmul.f32 0.5, %v2064_v19  ;;  %v2111_v58 = vmul.f32 0.70710677, %v2093_v34 }
  0x1c   : > { %v449_v28 = vand.u32 2147483647, %v2075_v24  ;;  %v450_v29 = vand.u32 2147483647, %v2078_v25  ;;  %v451_v32 = vand.u32 2147483647, %v2081_v26 }
  0x1d   : > { %v452_v33 = vand.u32 2147483647, %v2084_v27  ;;  %v2114_v59 = vmul.f32 0.70710677, %v2096_v35  ;;  %v2117_v61 = vmul.f32 0.70710677, %v2099_v49 }
  0x1e   : > { %v481_v36 = vmul.f32 0.3275911, %v449_v28  ;;  %v482_v37 = vmul.f32 0.3275911, %v450_v29  ;;  %v897_v38 = vsub.f32 0.0, %v449_v28  ;;  %v898_v39 = vsub.f32 0.0, %v450_v29 }
  0x1f   : > { %v483_v40 = vmul.f32 0.3275911, %v451_v32  ;;  %v484_v41 = vmul.f32 0.3275911, %v452_v33  ;;  %v899_v42 = vsub.f32 0.0, %v451_v32  ;;  %v900_v43 = vsub.f32 0.0, %v452_v33 }
  0x20   : > { %v513_v44 = vadd.f32 1.0, %v481_v36  ;;  %v514_v45 = vadd.f32 1.0, %v482_v37  ;;  %v929_v46 = vmul.f32 %v897_v38, %v449_v28  ;;  %v930_v47 = vmul.f32 %v898_v39, %v450_v29 }
  0x21   : > { %v931_v48 = vmul.f32 %v899_v42, %v451_v32  ;;  %v515_v53 = vadd.f32 1.0, %v483_v40  ;;  %v516_v55 = vadd.f32 1.0, %v484_v41  ;;  %v932_v56 = vmul.f32 %v900_v43, %v452_v33  ;;  %v1781_v32 = vld [vmem:[%s2038_s22 + $0x20] sm:$0xff]  }
  0x22   : > { %1832 = vrcp.f32 %v513_v44  ;;  %v961_v52 = vmul.f32 1.442695, %v929_v46  ;;  %v963_v57 = vmul.f32 1.442695, %v930_v47  ;;  %v2120_v62 = vmul.f32 0.70710677, %v2102_v50 }
  0x23   : > { %1834 = vrcp.f32 %v514_v45  ;;  %v965_v60 = vmul.f32 1.442695, %v931_v48  ;;  %v2123_v63 = vmul.f32 0.5, %v2067_v20  ;;  %v453_v0 = vand.u32 2147483647, %v2111_v58 }
  0x24   : > { %1836 = vpow2.f32 %v961_v52  ;;  %v454_v2 = vand.u32 2147483647, %v2114_v59  ;;  %v967_v3 = vmul.f32 1.442695, %v932_v56  ;;  %v455_v4 = vand.u32 2147483647, %v2117_v61 }
  0x25   : > { %1838 = vrcp.f32 %v515_v53  ;;  %v456_v5 = vand.u32 2147483647, %v2120_v62  ;;  %v485_v6 = vmul.f32 0.3275911, %v453_v0  ;;  %v901_v8 = vsub.f32 0.0, %v453_v0  ;;  %v1782_v53 = vld [vmem:[%s2038_s22 + $0x28] sm:$0xff]  }
  0x26   : > { %1840 = vrcp.f32 %v516_v55  ;;  %v486_v7 = vmul.f32 0.3275911, %v454_v2  ;;  %v902_v10 = vsub.f32 0.0, %v454_v2  ;;  %v487_v11 = vmul.f32 0.3275911, %v455_v4 }
  0x27   : > { %1842 = vpow2.f32 %v963_v57  ;;  %v488_v12 = vmul.f32 0.3275911, %v456_v5  ;;  %v517_v13 = vadd.f32 1.0, %v485_v6  ;;  %v933_v15 = vmul.f32 %v901_v8, %v453_v0 }
  0x28   : > { %1844 = vpow2.f32 %v965_v60  ;;  %v518_v14 = vadd.f32 1.0, %v486_v7  ;;  %v903_v16 = vsub.f32 0.0, %v455_v4  ;;  %v2130_v17 = vmul.f32 0.5, %v2070_v21 }
  0x29   : > { %1846 = vpow2.f32 %v967_v3  ;;  %v934_v22 = vmul.f32 %v902_v10, %v454_v2  ;;  %v904_v23 = vsub.f32 0.0, %v456_v5  ;;  %v969_v29 = vmul.f32 1.442695, %v933_v15 }
  0x2a   : > { %1848 = vrcp.f32 %v517_v13  ;;  %v519_v30 = vadd.f32 1.0, %v487_v11  ;;  %v935_v31 = vmul.f32 %v903_v16, %v455_v4  ;;  %v520_v38 = vadd.f32 1.0, %v488_v12 }
  0x2b   : > { %1850 = vrcp.f32 %v518_v14  ;;  %v971_v37 = vmul.f32 1.442695, %v934_v22  ;;  %v2140_v40 = vmul.f32 0.5, %v2093_v34  ;;  %v936_v41 = vmul.f32 %v904_v23, %v456_v5 }
  0x2c   : > { %v2132_v28 = vpop.eup %1832  ;;  %1852 = vpow2.f32 %v969_v29  ;;  %v2145_v44 = vmul.f32 0.5, %v2096_v35  ;;  %v1652_v45 = vunpack.c.l.bf16 %v1781_v32  ;;  %v973_v48 = vmul.f32 1.442695, %v935_v31 }
  0x2d   : > { %v2135_v33 = vpop.eup %1834  ;;  %v609_v36 = vmul.f32 1.0614054, %v2132_v28  ;;  %1854 = vpow2.f32 %v971_v37  ;;  %v1653_v52 = vunpack.c.h.bf16 %v1781_v32  ;;  %v975_v4 = vmul.f32 1.442695, %v936_v41 }
  0x2e   : > { %v610_v39 = vmul.f32 1.0614054, %v2135_v33  ;;  %v2142_v42 = vpop.eup %1836  ;;  %1856 = vrcp.f32 %v519_v30  ;;  %v322_v60 = vmul.f32 %v1652_v45, %v2048_v1  ;;  %v1656_v11 = vunpack.c.l.bf16 %v1782_v53 }
  0x2f   : > { %v641_v43 = vadd.f32 -1.4531521, %v609_v36  ;;  %v2147_v46 = vpop.eup %1838  ;;  %1858 = vrcp.f32 %v520_v38  ;;  %v323_v5 = vmul.f32 %v1653_v52, %v2048_v1  ;;  %v1657_v15 = vunpack.c.h.bf16 %v1782_v53 }
  0x30   : > { %v642_v47 = vadd.f32 -1.4531521, %v610_v39  ;;  %v2150_v55 = vpop.eup %1840  ;;  %v611_v57 = vmul.f32 1.0614054, %v2147_v46  ;;  %v2163_v10 = vadd.f32 %v2054_v9, %v322_v60  ;;  %1860 = vpow2.f32 %v973_v48 }
  0x31   : > { %v673_v56 = vmul.f32 %v2132_v28, %v641_v43  ;;  %v2155_v0 = vpop.eup %1842  ;;  %v612_v3 = vmul.f32 1.0614054, %v2150_v55  ;;  %v2166_v14 = vadd.f32 %v2054_v9, %v323_v5  ;;  %1862 = vpow2.f32 %v975_v4 }
  0x32   : > { %v674_v2 = vmul.f32 %v2135_v33, %v642_v47  ;;  %v2160_v6 = vpop.eup %1844  ;;  %v643_v8 = vadd.f32 -1.4531521, %v611_v57  ;;  %v2173_v29 = vmul.f32 0.70710677, %v2163_v10  ;;  %v2186_v43 = vmul.f32 %v1656_v11, %v2048_v1 }
  0x33   : > { %v705_v7 = vadd.f32 1.4214138, %v673_v56  ;;  %v644_v13 = vadd.f32 -1.4531521, %v612_v3  ;;  %2814 = vst [vmem:[#allocation2_spill] sm:$0xff] %v2166_v14  ;;  %v2168_v16 = vpop.eup %1846  ;;  %v2192_v53 = vmul.f32 %v1657_v15, %v2048_v1  ;;  %vm1089_vm0 = vcmp.lt.f32.partialorder %v2075_v24, 0.0 }
  0x34   : > { %v706_v12 = vadd.f32 1.4214138, %v674_v2  ;;  %v675_v23 = vmul.f32 %v2147_v46, %v643_v8  ;;  %2815 = vst [vmem:[#allocation3_spill] sm:$0xff] %v2173_v29  ;;  %v2175_v30 = vpop.eup %1848  ;;  %v2180_v36 = vmul.f32 0.70710677, %v2166_v14  ;;  %vm1090_vm1 = vcmp.lt.f32.partialorder %v2078_v25, 0.0 }
  0x35   : > { %v737_v22 = vmul.f32 %v2132_v28, %v705_v7  ;;  %v676_v32 = vmul.f32 %v2150_v55, %v644_v13  ;;  %v2182_v37 = vpop.eup %1850  ;;  %v613_v41 = vmul.f32 1.0614054, %v2175_v30  ;;  %v2199_v3 = vand.u32 2147483647, %v2173_v29 }
  0x36   : > { %v738_v31 = vmul.f32 %v2135_v33, %v706_v12  ;;  %2816 = vst [vmem:[#allocation4_spill] sm:$0xff] %v2180_v36  ;;  %v707_v39 = vadd.f32 1.4214138, %v675_v23  ;;  %v2188_v45 = vpop.eup %1852  ;;  %v614_v52 = vmul.f32 1.0614054, %v2182_v37  ;;  %vm1091_vm2 = vcmp.lt.f32.partialorder %v2081_v26, 0.0 }
  0x37   : > { %v769_v38 = vadd.f32 -0.28449672, %v737_v22  ;;  %v708_v48 = vadd.f32 1.4214138, %v676_v32  ;;  %v2194_v56 = vpop.eup %1854  ;;  %v645_v2 = vadd.f32 -1.4531521, %v613_v41 }
  0x38   : > { %v770_v47 = vadd.f32 -0.28449672, %v738_v31  ;;  %v739_v60 = vmul.f32 %v2147_v46, %v707_v39  ;;  %v2201_v4 = vpop.eup %1856  ;;  %v646_v8 = vadd.f32 -1.4531521, %v614_v52  ;;  %v2207_v11 = vand.u32 2147483647, %v2180_v36 }
  0x39   : > { %v801_v57 = vmul.f32 %v2132_v28, %v769_v38  ;;  %v740_v7 = vmul.f32 %v2150_v55, %v708_v48  ;;  %v2209_v12 = vpop.eup %1858  ;;  %v677_v22 = vmul.f32 %v2175_v30, %v645_v2  ;;  %v615_v23 = vmul.f32 1.0614054, %v2201_v4 }
  0x3a   : > { %v802_v5 = vmul.f32 %v2135_v33, %v770_v47  ;;  %v771_v15 = vadd.f32 -0.28449672, %v739_v60  ;;  %v678_v38 = vmul.f32 %v2182_v37, %v646_v8  ;;  %v616_v39 = vmul.f32 1.0614054, %v2209_v12 }
  0x3b   : > { %v833_v13 = vadd.f32 0.2548296, %v801_v57  ;;  %v772_v32 = vadd.f32 -0.28449672, %v740_v7  ;;  %v709_v48 = vadd.f32 1.4214138, %v677_v22 }
  0x3c   : > { %v834_v31 = vadd.f32 0.2548296, %v802_v5  ;;  %v803_v47 = vmul.f32 %v2147_v46, %v771_v15  ;;  %v647_v52 = vadd.f32 -1.4531521, %v615_v23  ;;  %v710_v2 = vadd.f32 1.4214138, %v678_v38  ;;  %v2221_v5 = vpop.eup %1860 }
  0x3d   : > { %v865_v41 = vmul.f32 %v2132_v28, %v833_v13  ;;  %v804_v60 = vmul.f32 %v2150_v55, %v772_v32  ;;  %v648_v36 = vadd.f32 -1.4531521, %v616_v39  ;;  %vm1092_vm3 = vcmp.lt.f32.partialorder %v2084_v27, 0.0  ;;  %v2227_v15 = vpop.eup %1862 }
  0x3e   : > { %v866_v57 = vmul.f32 %v2135_v33, %v834_v31  ;;  %v835_v8 = vadd.f32 0.2548296, %v803_v47  ;;  %v741_v28 = vmul.f32 %v2175_v30, %v709_v48  ;;  %v679_v13 = vmul.f32 %v2201_v4, %v647_v52 }
  0x3f   : > { %v1025_v7 = vmul.f32 %v2142_v42, %v865_v41  ;;  %v836_v22 = vadd.f32 0.2548296, %v804_v60  ;;  %v742_v23 = vmul.f32 %v2182_v37, %v710_v2  ;;  %v680_v31 = vmul.f32 %v2209_v12, %v648_v36 }
  0x40   : > { %v1026_v33 = vmul.f32 %v2155_v0, %v866_v57  ;;  %v867_v38 = vmul.f32 %v2147_v46, %v835_v8  ;;  %v773_v42 = vadd.f32 -0.28449672, %v741_v28  ;;  %v711_v39 = vadd.f32 1.4214138, %v679_v13 }
  0x41   : > { %v1057_v32 = vsub.f32 1.0, %v1025_v7  ;;  %v868_v47 = vmul.f32 %v2150_v55, %v836_v22  ;;  %v774_v48 = vadd.f32 -0.28449672, %v742_v23  ;;  %v712_v29 = vadd.f32 1.4214138, %v680_v31 }
  0x42   : > { %v1058_v41 = vsub.f32 1.0, %v1026_v33  ;;  %v1027_v14 = vmul.f32 %v2160_v6, %v867_v38  ;;  %v805_v0 = vmul.f32 %v2175_v30, %v773_v42  ;;  %v743_v57 = vmul.f32 %v2201_v4, %v711_v39 }
  0x43   : > { %v1121_v52 = vsub.f32 0.0, %v1057_v32  ;;  %v1028_v36 = vmul.f32 %v2168_v16, %v868_v47  ;;  %v806_v2 = vmul.f32 %v2182_v37, %v774_v48  ;;  %vm1093_vm4 = vcmp.lt.f32.partialorder %v2111_v58, 0.0 }
  0x44   : > { %v1122_v60 = vsub.f32 0.0, %v1058_v41  ;;  %v744_v46 = vmul.f32 %v2209_v12, %v712_v29  ;;  %v1059_v7 = vsub.f32 1.0, %v1027_v14  ;;  %v837_v8 = vadd.f32 0.2548296, %v805_v0 }
  0x45   : > { %v1153_v55 = vsel %vm1089_vm0, %v1121_v52, %v1057_v32  ;;  %vm1094_vm5 = vcmp.lt.f32.partialorder %v2114_v59, 0.0  ;;  %v775_v6 = vadd.f32 -0.28449672, %v743_v57  ;;  %v1060_v33 = vsub.f32 1.0, %v1028_v36 }
  0x46   : > { %v1154_v28 = vsel %vm1090_vm1, %v1122_v60, %v1058_v41  ;;  %v1185_v13 = vadd.f32 1.0, %v1153_v55  ;;  %v838_v16 = vadd.f32 0.2548296, %v806_v2  ;;  %v1123_v23 = vsub.f32 0.0, %v1059_v7 }
  0x47   : > { %v1186_v22 = vadd.f32 1.0, %v1154_v28  ;;  %v869_v31 = vmul.f32 %v2175_v30, %v837_v8  ;;  %v776_v38 = vadd.f32 -0.28449672, %v744_v46  ;;  %v1124_v24 = vsub.f32 0.0, %v1060_v33 }
  0x48   : > { %v1217_v29 = vmul.f32 %v1185_v13, %v2105_v51  ;;  %v870_v14 = vmul.f32 %v2182_v37, %v838_v16  ;;  %v807_v32 = vmul.f32 %v2201_v4, %v775_v6  ;;  %v1155_v25 = vsel %vm1091_vm2, %v1123_v23, %v1059_v7 }
  0x49   : > { %v1218_v42 = vmul.f32 %v1186_v22, %v2108_v54  ;;  %v1029_v39 = vmul.f32 %v2188_v45, %v869_v31  ;;  %v808_v41 = vmul.f32 %v2209_v12, %v776_v38  ;;  %v1156_v51 = vsel %vm1092_vm3, %v1124_v24, %v1060_v33 }
  0x4a   : > { %v1249_v30 = vadd.f32 %v1217_v29, %v2061_v18  ;;  %v1187_v47 = vadd.f32 1.0, %v1155_v25  ;;  %v1030_v48 = vmul.f32 %v2194_v56, %v870_v14  ;;  %vm1095_vm6 = vcmp.lt.f32.partialorder %v2117_v61, 0.0 }
  0x4b   : > { %v1250_v37 = vadd.f32 %v1218_v42, %v2064_v19  ;;  %v1188_v54 = vadd.f32 1.0, %v1156_v51  ;;  %v1061_v52 = vsub.f32 1.0, %v1029_v39  ;;  %v839_v26 = vadd.f32 0.2548296, %v807_v32  ;;  %v1783_v32 = vld [vmem:[%s2038_s22 + $0x30] sm:$0xff]  }
  0x4c   : > { %v1219_v18 = vmul.f32 %v1187_v47, %v2123_v63  ;;  %v1062_v27 = vsub.f32 1.0, %v1030_v48  ;;  %v840_v45 = vadd.f32 0.2548296, %v808_v41  ;;  %v489_v56 = vmul.f32 0.3275911, %v2199_v3 }
  0x4d   : > { %v1701_v0 = vpack.c.bf16 %v1250_v37, %v1249_v30  ;;  %v1220_v57 = vmul.f32 %v1188_v54, %v2130_v17  ;;  %v1125_v19 = vsub.f32 0.0, %v1061_v52  ;;  %v871_v60 = vmul.f32 %v2201_v4, %v839_v26 }
  0x4e   : > { %v1251_v36 = vadd.f32 %v1219_v18, %v2067_v20  ;;  %v1126_v2 = vsub.f32 0.0, %v1062_v27  ;;  %v872_v46 = vmul.f32 %v2209_v12, %v840_v45  ;;  %v490_v55 = vmul.f32 0.3275911, %v2207_v11 }
  0x4f   : > { %1702 = vst [vmem:[%s2266_s28] sm:$0xff] %v1701_v0   ;;  %v1252_v63 = vadd.f32 %v1220_v57, %v2070_v21  ;;  %v1157_v7 = vsel %vm1093_vm4, %v1125_v19, %v1061_v52  ;;  %v1031_v8 = vmul.f32 %v2221_v5, %v871_v60  ;;  %v521_v17 = vadd.f32 1.0, %v489_v56 }
  0x50   : > { %v1158_v4 = vsel %vm1094_vm5, %v1126_v2, %v1062_v27  ;;  %v1189_v6 = vadd.f32 1.0, %v1157_v7  ;;  %v1032_v20 = vmul.f32 %v2227_v15, %v872_v46  ;;  %v522_v28 = vadd.f32 1.0, %v490_v55  ;;  %v1784_v7 = vld [vmem:[%s2038_s22 + $0x38] sm:$0xff]  }
  0x51   : > { %v1706_v12 = vpack.c.bf16 %v1252_v63, %v1251_v36  ;;  %v1190_v13 = vadd.f32 1.0, %v1158_v4  ;;  %v1063_v33 = vsub.f32 1.0, %v1031_v8  ;;  %1864 = vrcp.f32 %v521_v17 }
  0x52   : > { %v1221_v21 = vmul.f32 %v1189_v6, %v2140_v40  ;;  %v1064_v16 = vsub.f32 1.0, %v1032_v20  ;;  %1866 = vrcp.f32 %v522_v28  ;;  %v905_v58 = vsub.f32 0.0, %v2199_v3 }
  0x53   : > { %1793 = vst [vmem:[%s2266_s28 + $0x8] sm:$0xff] %v1706_v12   ;;  %v1222_v5 = vmul.f32 %v1190_v13, %v2145_v44  ;;  %vm1096_vm7 = vcmp.lt.f32.partialorder %v2120_v62, 0.0  ;;  %v1127_v59 = vsub.f32 0.0, %v1063_v33  ;;  %v391_v22 = vmul.f32 0.5, %v2099_v49 }
  0x54   : > { %v1253_v15 = vadd.f32 %v1221_v21, %v2093_v34  ;;  %v1128_v23 = vsub.f32 0.0, %v1064_v16  ;;  %v906_v31 = vsub.f32 0.0, %v2207_v11  ;;  %v392_v38 = vmul.f32 0.5, %v2102_v50 }
  0x55   : > { %v1254_v40 = vadd.f32 %v1222_v5, %v2096_v35  ;;  %v1159_v29 = vsel %vm1095_vm6, %v1127_v59, %v1063_v33  ;;  %v2297_v44 = vadd.f32 %v2054_v9, %v2186_v43  ;;  %v937_v34 = vmul.f32 %v905_v58, %v2199_v3 }
  0x56   : > { %v1160_v62 = vsel %vm1096_vm7, %v1128_v23, %v1064_v16  ;;  %v1191_v24 = vadd.f32 1.0, %v1159_v29  ;;  %v2302_v14 = vadd.f32 %v2054_v9, %v2192_v53  ;;  %v938_v39 = vmul.f32 %v906_v31, %v2207_v11  ;;  %v2817_v16 = vld [vmem:[#allocation2_spill] sm:$0xff] }
  0x57   : > { %v1711_v42 = vpack.c.bf16 %v1254_v40, %v1253_v15  ;;  %v1192_v35 = vadd.f32 1.0, %v1160_v62  ;;  %v2307_v61 = vmul.f32 0.70710677, %v2297_v44  ;;  %v1660_v30 = vunpack.c.l.bf16 %v1783_v32 }
  0x58   : > { %v1223_v25 = vmul.f32 %v1191_v24, %v391_v22  ;;  %v2311_v41 = vmul.f32 0.70710677, %v2302_v14  ;;  %v977_v51 = vmul.f32 1.442695, %v937_v34  ;;  %v1661_v47 = vunpack.c.h.bf16 %v1783_v32 }
  0x59   : > { %1794 = vst [vmem:[%s2266_s28 + $0x10] sm:$0xff] %v1711_v42   ;;  %v1224_v43 = vmul.f32 %v1192_v35, %v392_v38  ;;  %v459_v53 = vand.u32 2147483647, %v2307_v61  ;;  %v326_v54 = vmul.f32 %v1660_v30, %v2048_v1  ;;  %v979_v18 = vmul.f32 1.442695, %v938_v39 }
  0x5a   : > { %v1255_v3 = vadd.f32 %v1223_v25, %v2099_v49  ;;  %v460_v11 = vand.u32 2147483647, %v2311_v41  ;;  %v327_v49 = vmul.f32 %v1661_v47, %v2048_v1  ;;  %1868 = vpow2.f32 %v977_v51  ;;  %v2818_v51 = vld [vmem:[#allocation3_spill] sm:$0xff] }
  0x5b   : > { %v2315_v48 = vpop.eup %1864  ;;  %v1256_v37 = vadd.f32 %v1224_v43, %v2102_v50  ;;  %v491_v27 = vmul.f32 0.3275911, %v459_v53  ;;  %v907_v57 = vsub.f32 0.0, %v459_v53  ;;  %v2326_v60 = vadd.f32 %v2054_v9, %v326_v54  ;;  %v2819_v54 = vld [vmem:[#allocation4_spill] sm:$0xff] }
  0x5c   : > { %v2320_v52 = vpop.eup %1866  ;;  %v617_v26 = vmul.f32 1.0614054, %v2315_v48  ;;  %v492_v0 = vmul.f32 0.3275911, %v460_v11  ;;  %v908_v46 = vsub.f32 0.0, %v460_v11  ;;  %v2330_v55 = vadd.f32 %v2054_v9, %v327_v49 }
  0x5d   : > { %v1716_v45 = vpack.c.bf16 %v1256_v37, %v1255_v3  ;;  %v618_v56 = vmul.f32 1.0614054, %v2320_v52  ;;  %v523_v19 = vadd.f32 1.0, %v491_v27  ;;  %v2335_v8 = vmul.f32 0.5, %v2163_v10 }
  0x5e   : > { %v649_v50 = vadd.f32 -1.4531521, %v617_v26  ;;  %v524_v2 = vadd.f32 1.0, %v492_v0  ;;  %v939_v4 = vmul.f32 %v907_v57, %v459_v53  ;;  %v2339_v20 = vmul.f32 0.70710677, %v2326_v60 }
  0x5f   : > { %1795 = vst [vmem:[%s2266_s28 + $0x18] sm:$0xff] %v1716_v45   ;;  %v650_v36 = vadd.f32 -1.4531521, %v618_v56  ;;  %1870 = vrcp.f32 %v523_v19  ;;  %v2342_v28 = vmul.f32 0.70710677, %v2330_v55  ;;  %v940_v13 = vmul.f32 %v908_v46, %v460_v11 }
  0x60   : > { %v681_v63 = vmul.f32 %v2315_v48, %v649_v50  ;;  %1872 = vrcp.f32 %v524_v2  ;;  %v1664_v33 = vunpack.c.l.bf16 %v1784_v7  ;;  %v1665_v21 = vunpack.c.h.bf16 %v1784_v7 }
  0x61   : > { %v682_v17 = vmul.f32 %v2320_v52, %v650_v36  ;;  %1874 = vpow2.f32 %v979_v18  ;;  %v2345_v58 = vmul.f32 0.5, %v2817_v16  ;;  %v461_v59 = vand.u32 2147483647, %v2339_v20  ;;  %v2386_v36 = vld [vmem:[%s2038_s22 + $0x40] sm:$0xff]  }
  0x62   : > { %v713_v6 = vadd.f32 1.4214138, %v681_v63  ;;  %v462_v15 = vand.u32 2147483647, %v2342_v28  ;;  %v981_v23 = vmul.f32 1.442695, %v939_v4  ;;  %v328_v31 = vmul.f32 %v1664_v33, %v2048_v1 }
  0x63   : > { %v714_v12 = vadd.f32 1.4214138, %v682_v17  ;;  %v329_v40 = vmul.f32 %v1665_v21, %v2048_v1  ;;  %v493_v29 = vmul.f32 0.3275911, %v461_v59  ;;  %v2354_v34 = vmul.f32 0.5, %v2297_v44 }
  0x64   : > { %v745_v5 = vmul.f32 %v2315_v48, %v713_v6  ;;  %v494_v62 = vmul.f32 0.3275911, %v462_v15  ;;  %v983_v32 = vmul.f32 1.442695, %v940_v13  ;;  %v2357_v42 = vadd.f32 %v2054_v9, %v328_v31  ;;  %v1869_v35 = vpop.eup %1868 }
  0x65   : > { %v746_v22 = vmul.f32 %v2320_v52, %v714_v12  ;;  %v525_v39 = vadd.f32 1.0, %v493_v29  ;;  %v2361_v30 = vadd.f32 %v2054_v9, %v329_v40  ;;  %vm1097_vm8 = vcmp.lt.f32.partialorder %v2818_v51, 0.0 }
  0x66   : > { %v777_v38 = vadd.f32 -0.28449672, %v745_v5  ;;  %v526_v43 = vadd.f32 1.0, %v494_v62  ;;  %v2366_v53 = vmul.f32 0.5, %v2302_v14  ;;  %1876 = vpow2.f32 %v981_v23 }
  0x67   : > { %v778_v24 = vadd.f32 -0.28449672, %v746_v22  ;;  %v909_v47 = vsub.f32 0.0, %v461_v59  ;;  %vm1098_vm9 = vcmp.lt.f32.partialorder %v2819_v54, 0.0  ;;  %1878 = vrcp.f32 %v525_v39 }
  0x68   : > { %v809_v25 = vmul.f32 %v2315_v48, %v777_v38  ;;  %v910_v26 = vsub.f32 0.0, %v462_v15  ;;  %v2372_v18 = vmul.f32 0.70710677, %v2357_v42  ;;  %v2378_v56 = vmul.f32 0.5, %v2326_v60 }
  0x69   : > { %v810_v3 = vmul.f32 %v2320_v52, %v778_v24  ;;  %v2368_v37 = vpop.eup %1870  ;;  %1880 = vrcp.f32 %v526_v43  ;;  %v2383_v19 = vmul.f32 0.70710677, %v2361_v30  ;;  %v941_v63 = vmul.f32 %v909_v47, %v461_v59 }
  0x6a   : > { %v841_v11 = vadd.f32 0.2548296, %v809_v25  ;;  %v2374_v27 = vpop.eup %1872  ;;  %v619_v45 = vmul.f32 1.0614054, %v2368_v37  ;;  %1882 = vpow2.f32 %v983_v32  ;;  %v463_v7 = vand.u32 2147483647, %v2372_v18 }
  0x6b   : > { %v842_v49 = vadd.f32 0.2548296, %v810_v3  ;;  %v1875_v0 = vpop.eup %1874  ;;  %v620_v50 = vmul.f32 1.0614054, %v2374_v27  ;;  %v942_v6 = vmul.f32 %v910_v26, %v462_v15  ;;  %v464_v12 = vand.u32 2147483647, %v2383_v19 }
  0x6c   : > { %v873_v57 = vmul.f32 %v2315_v48, %v841_v11  ;;  %v651_v46 = vadd.f32 -1.4531521, %v619_v45  ;;  %v495_v33 = vmul.f32 0.3275911, %v463_v7  ;;  %v1668_v21 = vunpack.c.l.bf16 %v2386_v36 }
  0x6d   : > { %v874_v2 = vmul.f32 %v2320_v52, %v842_v49  ;;  %v652_v4 = vadd.f32 -1.4531521, %v620_v50  ;;  %v496_v23 = vmul.f32 0.3275911, %v464_v12  ;;  %v911_v52 = vsub.f32 0.0, %v463_v7 }
  0x6e   : > { %v1033_v17 = vmul.f32 %v1869_v35, %v873_v57  ;;  %v683_v13 = vmul.f32 %v2368_v37, %v651_v46  ;;  %v985_v40 = vmul.f32 1.442695, %v941_v63  ;;  %v527_v38 = vadd.f32 1.0, %v495_v33 }
  0x6f   : > { %v1034_v48 = vmul.f32 %v1875_v0, %v874_v2  ;;  %v684_v22 = vmul.f32 %v2374_v27, %v652_v4  ;;  %v987_v15 = vmul.f32 1.442695, %v942_v6  ;;  %v528_v24 = vadd.f32 1.0, %v496_v23 }
  0x70   : > { %v1065_v5 = vsub.f32 1.0, %v1033_v17  ;;  %v715_v59 = vadd.f32 1.4214138, %v683_v13  ;;  %v1877_v32 = vpop.eup %1876  ;;  %1884 = vrcp.f32 %v527_v38  ;;  %v912_v39 = vsub.f32 0.0, %v464_v12 }
  0x71   : > { %v1066_v31 = vsub.f32 1.0, %v1034_v48  ;;  %v716_v62 = vadd.f32 1.4214138, %v684_v22  ;;  %v2395_v43 = vpop.eup %1878  ;;  %1886 = vrcp.f32 %v528_v24  ;;  %v943_v11 = vmul.f32 %v911_v52, %v463_v7 }
  0x72   : > { %v1129_v29 = vsub.f32 0.0, %v1065_v5  ;;  %v747_v25 = vmul.f32 %v2368_v37, %v715_v59  ;;  %v621_v57 = vmul.f32 1.0614054, %v2395_v43  ;;  %1888 = vpow2.f32 %v985_v40 }
  0x73   : > { %v1130_v35 = vsub.f32 0.0, %v1066_v31  ;;  %v748_v47 = vmul.f32 %v2374_v27, %v716_v62  ;;  %v2400_v26 = vpop.eup %1880  ;;  %v944_v4 = vmul.f32 %v912_v39, %v464_v12  ;;  %vm1099_vm10 = vcmp.lt.f32.partialorder %v2307_v61, 0.0 }
  0x74   : > { %v1161_v3 = vsel %vm1097_vm8, %v1129_v29, %v1065_v5  ;;  %v779_v0 = vadd.f32 -0.28449672, %v747_v25  ;;  %v1883_v50 = vpop.eup %1882  ;;  %v622_v63 = vmul.f32 1.0614054, %v2400_v26  ;;  %v653_v7 = vadd.f32 -1.4531521, %v621_v57 }
  0x75   : > { %v1162_v49 = vsel %vm1098_vm9, %v1130_v35, %v1066_v31  ;;  %v1193_v45 = vadd.f32 1.0, %v1161_v3  ;;  %v780_v46 = vadd.f32 -0.28449672, %v748_v47  ;;  %1890 = vpow2.f32 %v987_v15 }
  0x76   : > { %v1194_v2 = vadd.f32 1.0, %v1162_v49  ;;  %v811_v17 = vmul.f32 %v2368_v37, %v779_v0  ;;  %v654_v48 = vadd.f32 -1.4531521, %v622_v63  ;;  %vm1100_vm11 = vcmp.lt.f32.partialorder %v2311_v41, 0.0 }
  0x77   : > { %v1225_v51 = vmul.f32 %v1193_v45, %v2335_v8  ;;  %v812_v54 = vmul.f32 %v2374_v27, %v780_v46  ;;  %v685_v5 = vmul.f32 %v2395_v43, %v653_v7  ;;  %v989_v8 = vmul.f32 1.442695, %v943_v11 }
  0x78   : > { %v1226_v6 = vmul.f32 %v1194_v2, %v2345_v58  ;;  %v843_v33 = vadd.f32 0.2548296, %v811_v17  ;;  %v686_v58 = vmul.f32 %v2400_v26, %v654_v48  ;;  %v1669_v12 = vunpack.c.h.bf16 %v2386_v36 }
  0x79   : > { %v1257_v13 = vadd.f32 %v1225_v51, %v2163_v10  ;;  %v844_v23 = vadd.f32 0.2548296, %v812_v54  ;;  %v717_v31 = vadd.f32 1.4214138, %v685_v5  ;;  %v991_v59 = vmul.f32 1.442695, %v944_v4 }
  0x7a   : > { %v1258_v22 = vadd.f32 %v1226_v6, %v2817_v16  ;;  %v875_v52 = vmul.f32 %v2368_v37, %v843_v33  ;;  %v330_v10 = vmul.f32 %v1668_v21, %v2048_v1  ;;  %v718_v29 = vadd.f32 1.4214138, %v686_v58  ;;  %v2421_v16 = vpop.eup %1884  ;;  %v2428_v37 = vld [vmem:[%s2038_s22 + $0x48] sm:$0xff]  }
  0x7b   : > { %v876_v38 = vmul.f32 %v2374_v27, %v844_v23  ;;  %v331_v62 = vmul.f32 %v1669_v12, %v2048_v1  ;;  %v749_v24 = vmul.f32 %v2395_v43, %v717_v31  ;;  %1892 = vpow2.f32 %v989_v8  ;;  %v2430_v35 = vpop.eup %1886 }
  0x7c   : > { %v1721_v40 = vpack.c.bf16 %v1258_v22, %v1257_v13  ;;  %v1035_v15 = vmul.f32 %v1877_v32, %v875_v52  ;;  %v2425_v36 = vadd.f32 %v2054_v9, %v330_v10  ;;  %v750_v27 = vmul.f32 %v2400_v26, %v718_v29  ;;  %v1889_v47 = vpop.eup %1888 }
  0x7d   : > { %v1036_v21 = vmul.f32 %v1883_v50, %v876_v38  ;;  %v623_v25 = vmul.f32 1.0614054, %v2421_v16  ;;  %v2436_v1 = vadd.f32 %v2054_v9, %v331_v62  ;;  %v781_v39 = vadd.f32 -0.28449672, %v749_v24 }
  0x7e   : > { %1796 = vst [vmem:[%s2266_s28 + $0x20] sm:$0xff] %v1721_v40   ;;  %v1067_v32 = vsub.f32 1.0, %v1035_v15  ;;  %v624_v3 = vmul.f32 1.0614054, %v2430_v35  ;;  %1894 = vpow2.f32 %v991_v59  ;;  %v782_v49 = vadd.f32 -0.28449672, %v750_v27 }
  0x7f   : > { %v1068_v11 = vsub.f32 1.0, %v1036_v21  ;;  %v655_v45 = vadd.f32 -1.4531521, %v623_v25  ;;  %v1672_v0 = vunpack.c.l.bf16 %v2428_v37  ;;  %v813_v50 = vmul.f32 %v2395_v43, %v781_v39  ;;  %v1891_v9 = vpop.eup %1890 }
  0x80   : > { %v1131_v57 = vsub.f32 0.0, %v1067_v32  ;;  %v656_v2 = vadd.f32 -1.4531521, %v624_v3  ;;  %v2442_v46 = vmul.f32 0.70710677, %v2425_v36  ;;  %v814_v51 = vmul.f32 %v2400_v26, %v782_v49 }
  0x81   : > { %v1132_v63 = vsub.f32 0.0, %v1068_v11  ;;  %vm1101_vm12 = vcmp.lt.f32.partialorder %v2339_v20, 0.0  ;;  %v687_v17 = vmul.f32 %v2421_v16, %v655_v45  ;;  %v2448_v7 = vmul.f32 0.70710677, %v2436_v1 }
  0x82   : > { %v1163_v4 = vsel %vm1099_vm10, %v1131_v57, %v1067_v32  ;;  %v845_v6 = vadd.f32 0.2548296, %v813_v50  ;;  %vm1102_vm13 = vcmp.lt.f32.partialorder %v2342_v28, 0.0  ;;  %v688_v54 = vmul.f32 %v2430_v35, %v656_v2 }
  0x83   : > { %v465_v48 = vand.u32 2147483647, %v2442_v46  ;;  %v1164_v13 = vsel %vm1100_vm11, %v1132_v63, %v1068_v11  ;;  %v1195_v33 = vadd.f32 1.0, %v1163_v4  ;;  %v846_v5 = vadd.f32 0.2548296, %v814_v51 }
  0x84   : > { %v719_v8 = vadd.f32 1.4214138, %v687_v17  ;;  %v1196_v22 = vadd.f32 1.0, %v1164_v13  ;;  %v877_v23 = vmul.f32 %v2395_v43, %v845_v6  ;;  %v720_v58 = vadd.f32 1.4214138, %v688_v54 }
  0x85   : > { %v466_v61 = vand.u32 2147483647, %v2448_v7  ;;  %v1227_v12 = vmul.f32 %v1195_v33, %v2354_v34  ;;  %v878_v52 = vmul.f32 %v2400_v26, %v846_v5  ;;  %v497_v59 = vmul.f32 0.3275911, %v465_v48  ;;  %v1893_v10 = vpop.eup %1892  ;;  %v2479_v13 = vld [vmem:[%s2031_s19] ss:$0 sm:$0xff] }
  0x86   : > { %v751_v31 = vmul.f32 %v2421_v16, %v719_v8  ;;  %v1228_v41 = vmul.f32 %v1196_v22, %v2366_v53  ;;  %v1037_v40 = vmul.f32 %v1889_v47, %v877_v23  ;;  %v752_v38 = vmul.f32 %v2430_v35, %v720_v58  ;;  %v2488_v23 = vld [vmem:[%s2044_s25] ss:$0 sm:$0xff] }
  0x87   : > { %v498_v29 = vmul.f32 0.3275911, %v466_v61  ;;  %v1259_v62 = vadd.f32 %v1227_v12, %v2297_v44  ;;  %v1038_v43 = vmul.f32 %v1891_v9, %v878_v52  ;;  %v529_v24 = vadd.f32 1.0, %v497_v59 }
  0x88   : > { %v783_v15 = vadd.f32 -0.28449672, %v751_v31  ;;  %v1895_v21 = vpop.eup %1894  ;;  %v1260_v34 = vadd.f32 %v1228_v41, %v2302_v14  ;;  %v1069_v26 = vsub.f32 1.0, %v1037_v40  ;;  %v784_v27 = vadd.f32 -0.28449672, %v752_v38 }
  0x89   : > { %v530_v25 = vadd.f32 1.0, %v498_v29  ;;  %v1070_v32 = vsub.f32 1.0, %v1038_v43  ;;  %1896 = vrcp.f32 %v529_v24  ;;  %v913_v53 = vsub.f32 0.0, %v465_v48 }
  0x8a   : > { %v815_v39 = vmul.f32 %v2421_v16, %v783_v15  ;;  %v1726_v3 = vpack.c.bf16 %v1260_v34, %v1259_v62  ;;  %v1133_v47 = vsub.f32 0.0, %v1069_v26  ;;  %v816_v11 = vmul.f32 %v2430_v35, %v784_v27  ;;  %v1787_v34 = vld [vmem:[%s2038_s22 + $0x50] sm:$0xff]  }
  0x8b   : > { %1898 = vrcp.f32 %v530_v25  ;;  %v1134_v44 = vsub.f32 0.0, %v1070_v32  ;;  %v914_v45 = vsub.f32 0.0, %v466_v61  ;;  %v1673_v14 = vunpack.c.h.bf16 %v2428_v37 }
  0x8c   : > { %v847_v49 = vadd.f32 0.2548296, %v815_v39  ;;  %1797 = vst [vmem:[%s2266_s28 + $0x28] sm:$0xff] %v1726_v3   ;;  %v398_v57 = vmul.f32 0.5, %v2330_v55  ;;  %v1165_v50 = vsel %vm1101_vm12, %v1133_v47, %v1069_v26  ;;  %v848_v2 = vadd.f32 0.2548296, %v816_v11 }
  0x8d   : > { %v1166_v9 = vsel %vm1102_vm13, %v1134_v44, %v1070_v32  ;;  %v1197_v63 = vadd.f32 1.0, %v1165_v50  ;;  %v945_v17 = vmul.f32 %v913_v53, %v465_v48  ;;  %v399_v6 = vmul.f32 0.5, %v2357_v42 }
  0x8e   : > { %v879_v51 = vmul.f32 %v2421_v16, %v847_v49  ;;  %v1198_v4 = vadd.f32 1.0, %v1166_v9  ;;  %v880_v54 = vmul.f32 %v2430_v35, %v848_v2  ;;  %v332_v20 = vmul.f32 %v2479_v13, %v1672_v0 }
  0x8f   : > { %v1229_v33 = vmul.f32 %v1197_v63, %v2378_v56  ;;  %v946_v5 = vmul.f32 %v914_v45, %v466_v61  ;;  %v333_v8 = vmul.f32 %v2479_v13, %v1673_v14  ;;  %v400_v16 = vmul.f32 0.5, %v2361_v30 }
  0x90   : > { %v1039_v28 = vmul.f32 %v1893_v10, %v879_v51  ;;  %v1230_v22 = vmul.f32 %v1198_v4, %v398_v57  ;;  %v1040_v48 = vmul.f32 %v1895_v21, %v880_v54  ;;  %v2491_v35 = vadd.f32 %v2488_v23, %v332_v20  ;;  %v1788_v54 = vld [vmem:[%s2038_s22 + $0x58] sm:$0xff]  }
  0x91   : > { %v1261_v58 = vadd.f32 %v1229_v33, %v2326_v60  ;;  %v993_v12 = vmul.f32 1.442695, %v945_v17  ;;  %v2495_v0 = vadd.f32 %v2488_v23, %v333_v8  ;;  %vm1103_vm14 = vcmp.lt.f32.partialorder %v2372_v18, 0.0 }
  0x92   : > { %v1071_v37 = vsub.f32 1.0, %v1039_v28  ;;  %v1262_v56 = vadd.f32 %v1230_v22, %v2330_v55  ;;  %v1072_v61 = vsub.f32 1.0, %v1040_v48  ;;  %v2500_v52 = vmul.f32 0.70710677, %v2491_v35 }
  0x93   : > { %v2502_v31 = vpop.eup %1896  ;;  %vm1104_vm15 = vcmp.lt.f32.partialorder %v2383_v19, 0.0  ;;  %v995_v60 = vmul.f32 1.442695, %v946_v5  ;;  %v2506_v10 = vmul.f32 0.70710677, %v2495_v0  ;;  %1900 = vpow2.f32 %v993_v12 }
  0x94   : > { %v1135_v59 = vsub.f32 0.0, %v1071_v37  ;;  %v1731_v55 = vpack.c.bf16 %v1262_v56, %v1261_v58  ;;  %v1136_v40 = vsub.f32 0.0, %v1072_v61  ;;  %v625_v18 = vmul.f32 1.0614054, %v2502_v31 }
  0x95   : > { %v2508_v41 = vpop.eup %1898  ;;  %v467_v38 = vand.u32 2147483647, %v2500_v52  ;;  %v468_v19 = vand.u32 2147483647, %v2506_v10  ;;  %1902 = vpow2.f32 %v995_v60  ;;  %v1676_v49 = vunpack.c.l.bf16 %v1787_v34 }
  0x96   : > { %v1167_v29 = vsel %vm1103_vm14, %v1135_v59, %v1071_v37  ;;  %v626_v62 = vmul.f32 1.0614054, %v2508_v41  ;;  %1798 = vst [vmem:[%s2266_s28 + $0x30] sm:$0xff] %v1731_v55   ;;  %v1168_v43 = vsel %vm1104_vm15, %v1136_v40, %v1072_v61  ;;  %v657_v24 = vadd.f32 -1.4531521, %v625_v18 }
  0x97   : > { %v1199_v15 = vadd.f32 1.0, %v1167_v29  ;;  %v499_v21 = vmul.f32 0.3275911, %v467_v38  ;;  %v1200_v26 = vadd.f32 1.0, %v1168_v43  ;;  %v500_v25 = vmul.f32 0.3275911, %v468_v19 }
  0x98   : > { %v658_v27 = vadd.f32 -1.4531521, %v626_v62  ;;  %v689_v39 = vmul.f32 %v2502_v31, %v657_v24  ;;  %v915_v3 = vsub.f32 0.0, %v467_v38  ;;  %v916_v57 = vsub.f32 0.0, %v468_v19 }
  0x99   : > { %v1231_v32 = vmul.f32 %v1199_v15, %v399_v6  ;;  %v531_v53 = vadd.f32 1.0, %v499_v21  ;;  %v1232_v47 = vmul.f32 %v1200_v26, %v400_v16  ;;  %v532_v44 = vadd.f32 1.0, %v500_v25  ;;  %v2561_v21 = vld [vmem:[%s2038_s22 + $0x60] sm:$0xff]  }
  0x9a   : > { %v690_v11 = vmul.f32 %v2508_v41, %v658_v27  ;;  %v721_v14 = vadd.f32 1.4214138, %v689_v39  ;;  %v947_v63 = vmul.f32 %v915_v3, %v467_v38  ;;  %v1677_v51 = vunpack.c.h.bf16 %v1787_v34 }
  0x9b   : > { %v1263_v45 = vadd.f32 %v1231_v32, %v2357_v42  ;;  %1904 = vrcp.f32 %v531_v53  ;;  %v1264_v50 = vadd.f32 %v1232_v47, %v2361_v30  ;;  %v334_v6 = vmul.f32 %v2479_v13, %v1676_v49 }
  0x9c   : > { %v722_v2 = vadd.f32 1.4214138, %v690_v11  ;;  %1906 = vrcp.f32 %v532_v44  ;;  %v753_v9 = vmul.f32 %v2502_v31, %v721_v14  ;;  %v948_v42 = vmul.f32 %v916_v57, %v468_v19 }
  0x9d   : > { %v1736_v17 = vpack.c.bf16 %v1264_v50, %v1263_v45  ;;  %v335_v33 = vmul.f32 %v2479_v13, %v1677_v51  ;;  %v1901_v28 = vpop.eup %1900  ;;  %v2527_v30 = vmul.f32 0.5, %v2425_v36  ;;  %v2530_v5 = vmul.f32 0.5, %v2436_v1 }
  0x9e   : > { %v754_v4 = vmul.f32 %v2508_v41, %v722_v2  ;;  %v785_v20 = vadd.f32 -0.28449672, %v753_v9  ;;  %v2533_v22 = vadd.f32 %v2488_v23, %v334_v6  ;;  %v997_v48 = vmul.f32 1.442695, %v947_v63 }
  0x9f   : > { %1799 = vst [vmem:[%s2266_s28 + $0x38] sm:$0xff] %v1736_v17   ;;  %v2537_v58 = vadd.f32 %v2488_v23, %v335_v33  ;;  %v1680_v37 = vunpack.c.l.bf16 %v1788_v54  ;;  %v1903_v12 = vpop.eup %1902  ;;  %vm1105_vm0 = vcmp.lt.f32.partialorder %v2442_v46, 0.0  ;;  %v1681_v59 = vunpack.c.h.bf16 %v1788_v54 }
  0xa0   : > { %v786_v8 = vadd.f32 -0.28449672, %v754_v4  ;;  %v817_v16 = vmul.f32 %v2502_v31, %v785_v20  ;;  %v2542_v61 = vmul.f32 0.70710677, %v2533_v22  ;;  %vm1106_vm1 = vcmp.lt.f32.partialorder %v2448_v7, 0.0 }
  0xa1   : > { %v999_v55 = vmul.f32 1.442695, %v948_v42  ;;  %v2546_v40 = vmul.f32 0.70710677, %v2537_v58  ;;  %v2549_v38 = vmul.f32 0.5, %v2491_v35  ;;  %v2552_v29 = vmul.f32 0.5, %v2495_v0 }
  0xa2   : > { %v818_v56 = vmul.f32 %v2508_v41, %v786_v8  ;;  %v849_v60 = vadd.f32 0.2548296, %v817_v16  ;;  %v469_v62 = vand.u32 2147483647, %v2542_v61  ;;  %1908 = vpow2.f32 %v997_v48 }
  0xa3   : > { %v470_v15 = vand.u32 2147483647, %v2546_v40  ;;  %v336_v24 = vmul.f32 %v2479_v13, %v1680_v37  ;;  %v337_v32 = vmul.f32 %v2479_v13, %v1681_v59  ;;  %1910 = vpow2.f32 %v999_v55 }
  0xa4   : > { %v850_v18 = vadd.f32 0.2548296, %v818_v56  ;;  %v881_v43 = vmul.f32 %v2502_v31, %v849_v60  ;;  %v501_v25 = vmul.f32 0.3275911, %v469_v62  ;;  %v1684_v44 = vunpack.c.l.bf16 %v2561_v21 }
  0xa5   : > { %v2555_v19 = vpop.eup %1904  ;;  %v502_v31 = vmul.f32 0.3275911, %v470_v15  ;;  %v2575_v2 = vadd.f32 %v2488_v23, %v337_v32  ;;  %v917_v51 = vsub.f32 0.0, %v469_v62  ;;  %v918_v6 = vsub.f32 0.0, %v470_v15 }
  0xa6   : > { %v2563_v34 = vpop.eup %1906  ;;  %v882_v26 = vmul.f32 %v2508_v41, %v850_v18  ;;  %v627_v27 = vmul.f32 1.0614054, %v2555_v19  ;;  %v1041_v39 = vmul.f32 %v1901_v28, %v881_v43  ;;  %v533_v11 = vadd.f32 1.0, %v501_v25 }
  0xa7   : > { %v628_v53 = vmul.f32 1.0614054, %v2563_v34  ;;  %v534_v14 = vadd.f32 1.0, %v502_v31  ;;  %v2571_v41 = vadd.f32 %v2488_v23, %v336_v24  ;;  %v1685_v54 = vunpack.c.h.bf16 %v2561_v21 }
  0xa8   : > { %v1042_v3 = vmul.f32 %v1903_v12, %v882_v26  ;;  %v659_v47 = vadd.f32 -1.4531521, %v627_v27  ;;  %v1073_v49 = vsub.f32 1.0, %v1041_v39  ;;  %1912 = vrcp.f32 %v533_v11 }
  0xa9   : > { %v660_v45 = vadd.f32 -1.4531521, %v628_v53  ;;  %1914 = vrcp.f32 %v534_v14  ;;  %v2582_v33 = vmul.f32 0.5, %v2533_v22  ;;  %v2585_v28 = vmul.f32 0.70710677, %v2571_v41 }
  0xaa   : > { %v1074_v57 = vsub.f32 1.0, %v1042_v3  ;;  %v691_v50 = vmul.f32 %v2555_v19, %v659_v47  ;;  %v1137_v9 = vsub.f32 0.0, %v1073_v49  ;;  %v2591_v37 = vmul.f32 0.70710677, %v2575_v2 }
  0xab   : > { %v692_v63 = vmul.f32 %v2563_v34, %v660_v45  ;;  %v949_v59 = vmul.f32 %v917_v51, %v469_v62  ;;  %v471_v60 = vand.u32 2147483647, %v2585_v28  ;;  %v950_v43 = vmul.f32 %v918_v6, %v470_v15 }
  0xac   : > { %v1138_v17 = vsub.f32 0.0, %v1074_v57  ;;  %v723_v4 = vadd.f32 1.4214138, %v691_v50  ;;  %v1169_v20 = vsel %vm1105_vm0, %v1137_v9, %v1073_v49  ;;  %v1909_v12 = vpop.eup %1908  ;;  %v472_v7 = vand.u32 2147483647, %v2591_v37 }
  0xad   : > { %v724_v42 = vadd.f32 1.4214138, %v692_v63  ;;  %v1201_v16 = vadd.f32 1.0, %v1169_v20  ;;  %v1911_v24 = vpop.eup %1910  ;;  %v503_v27 = vmul.f32 0.3275911, %v471_v60  ;;  %v919_v25 = vsub.f32 0.0, %v471_v60 }
  0xae   : > { %v1170_v8 = vsel %vm1106_vm1, %v1138_v17, %v1074_v57  ;;  %v755_v48 = vmul.f32 %v2555_v19, %v723_v4  ;;  %v504_v53 = vmul.f32 0.3275911, %v472_v7  ;;  %v920_v62 = vsub.f32 0.0, %v472_v7 }
  0xaf   : > { %v1202_v56 = vadd.f32 1.0, %v1170_v8  ;;  %v756_v46 = vmul.f32 %v2563_v34, %v724_v42  ;;  %v1233_v55 = vmul.f32 %v1201_v16, %v2527_v30  ;;  %vm1107_vm2 = vcmp.lt.f32.partialorder %v2500_v52, 0.0 }
  0xb0   : > { %v787_v18 = vadd.f32 -0.28449672, %v755_v48  ;;  %v1001_v15 = vmul.f32 1.442695, %v949_v59  ;;  %v535_v3 = vadd.f32 1.0, %v503_v27  ;;  %vm1108_vm3 = vcmp.lt.f32.partialorder %v2506_v10, 0.0 }
  0xb1   : > { %v1234_v21 = vmul.f32 %v1202_v56, %v2530_v5  ;;  %v788_v26 = vadd.f32 -0.28449672, %v756_v46  ;;  %v1265_v32 = vadd.f32 %v1233_v55, %v2425_v36  ;;  %v536_v11 = vadd.f32 1.0, %v504_v53 }
  0xb2   : > { %v819_v39 = vmul.f32 %v2555_v19, %v787_v18  ;;  %v2603_v47 = vpop.eup %1912  ;;  %v951_v36 = vmul.f32 %v919_v25, %v471_v60  ;;  %v338_v49 = vmul.f32 %v2479_v13, %v1684_v44  ;;  %1916 = vrcp.f32 %v535_v3 }
  0xb3   : > { %v1266_v31 = vadd.f32 %v1234_v21, %v2436_v1  ;;  %v820_v30 = vmul.f32 %v2563_v34, %v788_v26  ;;  %v2607_v45 = vpop.eup %1914  ;;  %v629_v57 = vmul.f32 1.0614054, %v2603_v47  ;;  %1918 = vrcp.f32 %v536_v11 }
  0xb4   : > { %v851_v5 = vadd.f32 0.2548296, %v819_v39  ;;  %v630_v9 = vmul.f32 1.0614054, %v2607_v45  ;;  %v952_v63 = vmul.f32 %v920_v62, %v472_v7  ;;  %v1003_v4 = vmul.f32 1.442695, %v950_v43 }
  0xb5   : > { %v1741_v14 = vpack.c.bf16 %v1266_v31, %v1265_v32  ;;  %v852_v1 = vadd.f32 0.2548296, %v820_v30  ;;  %v661_v17 = vadd.f32 -1.4531521, %v629_v57  ;;  %v339_v44 = vmul.f32 %v2479_v13, %v1685_v54 }
  0xb6   : > { %v883_v50 = vmul.f32 %v2555_v19, %v851_v5  ;;  %v662_v20 = vadd.f32 -1.4531521, %v630_v9  ;;  %1920 = vpow2.f32 %v1001_v15  ;;  %v2616_v42 = vadd.f32 %v2488_v23, %v338_v49 }
  0xb7   : > { %1800 = vst [vmem:[%s2266_s28 + $0x40] sm:$0xff] %v1741_v14   ;;  %v884_v51 = vmul.f32 %v2563_v34, %v852_v1  ;;  %v693_v19 = vmul.f32 %v2603_v47, %v661_v17  ;;  %v1005_v16 = vmul.f32 1.442695, %v951_v36  ;;  %v2620_v48 = vadd.f32 %v2488_v23, %v339_v44 }
  0xb8   : > { %v1043_v6 = vmul.f32 %v1909_v12, %v883_v50  ;;  %v694_v34 = vmul.f32 %v2607_v45, %v662_v20  ;;  %v1007_v46 = vmul.f32 1.442695, %v952_v63  ;;  %v2624_v59 = vmul.f32 0.70710677, %v2616_v42 }
  0xb9   : > { %v1044_v8 = vmul.f32 %v1911_v24, %v884_v51  ;;  %v725_v12 = vadd.f32 1.4214138, %v693_v19  ;;  %1922 = vpow2.f32 %v1003_v4  ;;  %v2627_v60 = vmul.f32 0.70710677, %v2620_v48  ;;  %v1790_v51 = vld [vmem:[%s2038_s22 + $0x68] sm:$0xff]  }
  0xba   : > { %v1075_v56 = vsub.f32 1.0, %v1043_v6  ;;  %v2630_v18 = vmul.f32 0.5, %v2537_v58  ;;  %v726_v43 = vadd.f32 1.4214138, %v694_v34  ;;  %v473_v7 = vand.u32 2147483647, %v2624_v59 }
  0xbb   : > { %v1076_v54 = vsub.f32 1.0, %v1044_v8  ;;  %v757_v21 = vmul.f32 %v2603_v47, %v725_v12  ;;  %1924 = vpow2.f32 %v1005_v16  ;;  %v474_v26 = vand.u32 2147483647, %v2627_v60 }
  0xbc   : > { %v1139_v55 = vsub.f32 0.0, %v1075_v56  ;;  %v758_v25 = vmul.f32 %v2607_v45, %v726_v43  ;;  %v505_v32 = vmul.f32 0.3275911, %v473_v7  ;;  %v921_v39 = vsub.f32 0.0, %v473_v7  ;;  %v2638_v53 = vpop.eup %1916 }
  0xbd   : > { %v1140_v24 = vsub.f32 0.0, %v1076_v54  ;;  %v789_v30 = vadd.f32 -0.28449672, %v757_v21  ;;  %v506_v15 = vmul.f32 0.3275911, %v474_v26  ;;  %v2642_v3 = vpop.eup %1918  ;;  %vm1109_vm4 = vcmp.lt.f32.partialorder %v2542_v61, 0.0 }
  0xbe   : > { %v1171_v27 = vsel %vm1107_vm2, %v1139_v55, %v1075_v56  ;;  %v790_v11 = vadd.f32 -0.28449672, %v758_v25  ;;  %v631_v52 = vmul.f32 1.0614054, %v2638_v53  ;;  %v537_v36 = vadd.f32 1.0, %v505_v32 }
  0xbf   : > { %v1172_v62 = vsel %vm1108_vm3, %v1140_v24, %v1076_v54  ;;  %v1203_v31 = vadd.f32 1.0, %v1171_v27  ;;  %v821_v14 = vmul.f32 %v2603_v47, %v789_v30  ;;  %v632_v1 = vmul.f32 1.0614054, %v2642_v3 }
  0xc0   : > { %v1204_v5 = vadd.f32 1.0, %v1172_v62  ;;  %v538_v57 = vadd.f32 1.0, %v506_v15  ;;  %v1921_v10 = vpop.eup %1920  ;;  %v822_v9 = vmul.f32 %v2607_v45, %v790_v11  ;;  %v663_v63 = vadd.f32 -1.4531521, %v631_v52 }
  0xc1   : > { %v1235_v49 = vmul.f32 %v1203_v31, %v2549_v38  ;;  %1926 = vrcp.f32 %v537_v36  ;;  %v853_v4 = vadd.f32 0.2548296, %v821_v14  ;;  %v664_v44 = vadd.f32 -1.4531521, %v632_v1 }
  0xc2   : > { %v1236_v50 = vmul.f32 %v1204_v5, %v2552_v29  ;;  %1928 = vrcp.f32 %v538_v57  ;;  %v854_v6 = vadd.f32 0.2548296, %v822_v9  ;;  %v695_v20 = vmul.f32 %v2638_v53, %v663_v63 }
  0xc3   : > { %v1267_v17 = vadd.f32 %v1235_v49, %v2491_v35  ;;  %v922_v8 = vsub.f32 0.0, %v474_v26  ;;  %v1923_v29 = vpop.eup %1922  ;;  %v885_v19 = vmul.f32 %v2603_v47, %v853_v4  ;;  %v696_v16 = vmul.f32 %v2642_v3, %v664_v44 }
  0xc4   : > { %v1268_v38 = vadd.f32 %v1236_v50, %v2495_v0  ;;  %v953_v56 = vmul.f32 %v921_v39, %v473_v7  ;;  %v1688_v34 = vunpack.c.l.bf16 %v1790_v51  ;;  %v886_v35 = vmul.f32 %v2607_v45, %v854_v6 }
  0xc5   : > { %v727_v12 = vadd.f32 1.4214138, %v695_v20  ;;  %1930 = vpow2.f32 %v1007_v46  ;;  %v1925_v55 = vpop.eup %1924  ;;  %v1045_v43 = vmul.f32 %v1921_v10, %v885_v19  ;;  %v728_v0 = vadd.f32 1.4214138, %v696_v16 }
  0xc6   : > { %v1746_v54 = vpack.c.bf16 %v1268_v38, %v1267_v17  ;;  %v954_v24 = vmul.f32 %v922_v8, %v474_v26  ;;  %v1689_v21 = vunpack.c.h.bf16 %v1790_v51  ;;  %v1046_v27 = vmul.f32 %v1923_v29, %v886_v35 }
  0xc7   : > { %v759_v25 = vmul.f32 %v2638_v53, %v727_v12  ;;  %v1009_v32 = vmul.f32 1.442695, %v953_v56  ;;  %v340_v47 = vmul.f32 %v2479_v13, %v1688_v34  ;;  %v1077_v62 = vsub.f32 1.0, %v1045_v43 }
  0xc8   : > { %1801 = vst [vmem:[%s2266_s28 + $0x48] sm:$0xff] %v1746_v54   ;;  %vm1110_vm5 = vcmp.lt.f32.partialorder %v2546_v40, 0.0  ;;  %v760_v7 = vmul.f32 %v2642_v3, %v728_v0  ;;  %v341_v45 = vmul.f32 %v2479_v13, %v1689_v21  ;;  %v1078_v46 = vsub.f32 1.0, %v1046_v27 }
  0xc9   : > { %v2665_v39 = vmul.f32 0.5, %v2571_v41  ;;  %v791_v26 = vadd.f32 -0.28449672, %v759_v25  ;;  %v2668_v31 = vadd.f32 %v2488_v23, %v340_v47  ;;  %v1141_v30 = vsub.f32 0.0, %v1077_v62 }
  0xca   : > { %v2671_v15 = vmul.f32 0.5, %v2575_v2  ;;  %v792_v5 = vadd.f32 -0.28449672, %v760_v7  ;;  %v1011_v11 = vmul.f32 1.442695, %v954_v24  ;;  %v1142_v36 = vsub.f32 0.0, %v1078_v46 }
  0xcb   : > { %v2673_v52 = vpop.eup %1926  ;;  %v823_v49 = vmul.f32 %v2638_v53, %v791_v26  ;;  %1932 = vpow2.f32 %v1009_v32  ;;  %v2677_v14 = vadd.f32 %v2488_v23, %v341_v45  ;;  %v1173_v57 = vsel %vm1109_vm4, %v1141_v30, %v1077_v62 }
  0xcc   : > { %v2679_v1 = vpop.eup %1928  ;;  %v824_v10 = vmul.f32 %v2642_v3, %v792_v5  ;;  %vm1111_vm6 = vcmp.lt.f32.partialorder %v2585_v28, 0.0  ;;  %v633_v50 = vmul.f32 1.0614054, %v2673_v52  ;;  %v2687_v9 = vmul.f32 0.70710677, %v2668_v31 }
  0xcd   : > { %v1174_v63 = vsel %vm1110_vm5, %v1142_v36, %v1078_v46  ;;  %v1205_v51 = vadd.f32 1.0, %v1173_v57  ;;  %v855_v17 = vadd.f32 0.2548296, %v823_v49  ;;  %v634_v4 = vmul.f32 1.0614054, %v2679_v1 }
  0xce   : > { %v1206_v44 = vadd.f32 1.0, %v1174_v63  ;;  %v856_v38 = vadd.f32 0.2548296, %v824_v10  ;;  %v665_v61 = vadd.f32 -1.4531521, %v633_v50  ;;  %1934 = vpow2.f32 %v1011_v11 }
  0xcf   : > { %v1931_v6 = vpop.eup %1930  ;;  %v1237_v20 = vmul.f32 %v1205_v51, %v2582_v33  ;;  %v887_v8 = vmul.f32 %v2638_v53, %v855_v17  ;;  %v666_v29 = vadd.f32 -1.4531521, %v634_v4  ;;  %v2695_v19 = vmul.f32 0.70710677, %v2677_v14 }
  0xd0   : > { %v1238_v40 = vmul.f32 %v1206_v44, %v2630_v18  ;;  %v888_v16 = vmul.f32 %v2642_v3, %v856_v38  ;;  %v697_v56 = vmul.f32 %v2673_v52, %v665_v61  ;;  %v475_v34 = vand.u32 2147483647, %v2687_v9  ;;  %v1791_v18 = vld [vmem:[%s2038_s22 + $0x70] sm:$0xff]  }
  0xd1   : > { %v1269_v54 = vadd.f32 %v1237_v20, %v2533_v22  ;;  %v1047_v35 = vmul.f32 %v1925_v55, %v887_v8  ;;  %v698_v33 = vmul.f32 %v2679_v1, %v666_v29  ;;  %v476_v12 = vand.u32 2147483647, %v2695_v19 }
  0xd2   : > { %v1270_v53 = vadd.f32 %v1238_v40, %v2537_v58  ;;  %v1048_v43 = vmul.f32 %v1931_v6, %v888_v16  ;;  %v729_v0 = vadd.f32 1.4214138, %v697_v56  ;;  %v507_v24 = vmul.f32 0.3275911, %v475_v34 }
  0xd3   : > { %v1079_v21 = vsub.f32 1.0, %v1047_v35  ;;  %vm1112_vm7 = vcmp.lt.f32.partialorder %v2591_v37, 0.0  ;;  %v730_v3 = vadd.f32 1.4214138, %v698_v33  ;;  %v508_v27 = vmul.f32 0.3275911, %v476_v12 }
  0xd4   : > { %v1751_v25 = vpack.c.bf16 %v1270_v53, %v1269_v54  ;;  %v1080_v32 = vsub.f32 1.0, %v1048_v43  ;;  %v761_v22 = vmul.f32 %v2673_v52, %v729_v0  ;;  %v539_v55 = vadd.f32 1.0, %v507_v24 }
  0xd5   : > { %v1933_v47 = vpop.eup %1932  ;;  %v1143_v62 = vsub.f32 0.0, %v1079_v21  ;;  %v762_v7 = vmul.f32 %v2679_v1, %v730_v3  ;;  %v540_v58 = vadd.f32 1.0, %v508_v27  ;;  %v923_v45 = vsub.f32 0.0, %v475_v34 }
  0xd6   : > { %1802 = vst [vmem:[%s2266_s28 + $0x50] sm:$0xff] %v1751_v25   ;;  %v1144_v46 = vsub.f32 0.0, %v1080_v32  ;;  %v793_v26 = vadd.f32 -0.28449672, %v761_v22  ;;  %1936 = vrcp.f32 %v539_v55  ;;  %v1692_v30 = vunpack.c.l.bf16 %v1791_v18 }
  0xd7   : > { %v1175_v5 = vsel %vm1111_vm6, %v1143_v62, %v1079_v21  ;;  %v794_v11 = vadd.f32 -0.28449672, %v762_v7  ;;  %1938 = vrcp.f32 %v540_v58  ;;  %v924_v36 = vsub.f32 0.0, %v476_v12 }
  0xd8   : > { %v1935_v49 = vpop.eup %1934  ;;  %v1176_v57 = vsel %vm1112_vm7, %v1144_v46, %v1080_v32  ;;  %v1207_v10 = vadd.f32 1.0, %v1175_v5  ;;  %v825_v50 = vmul.f32 %v2673_v52, %v793_v26  ;;  %v955_v17 = vmul.f32 %v923_v45, %v475_v34 }
  0xd9   : > { %v1208_v63 = vadd.f32 1.0, %v1176_v57  ;;  %v826_v51 = vmul.f32 %v2679_v1, %v794_v11  ;;  %v1693_v28 = vunpack.c.h.bf16 %v1791_v18  ;;  %v956_v6 = vmul.f32 %v924_v36, %v476_v12 }
  0xda   : > { %v1239_v4 = vmul.f32 %v1207_v10, %v2665_v39  ;;  %v857_v44 = vadd.f32 0.2548296, %v825_v50  ;;  %v342_v20 = vmul.f32 %v2479_v13, %v1692_v30  ;;  %v409_v8 = vmul.f32 0.5, %v2616_v42 }
  0xdb   : > { %v1240_v38 = vmul.f32 %v1208_v63, %v2671_v15  ;;  %v858_v61 = vadd.f32 0.2548296, %v826_v51  ;;  %v343_v40 = vmul.f32 %v2479_v13, %v1693_v28  ;;  %v1013_v56 = vmul.f32 1.442695, %v955_v17  ;;  %v1792_v15 = vld [vmem:[%s2038_s22 + $0x78] sm:$0xff]  }
  0xdc   : > { %v1271_v37 = vadd.f32 %v1239_v4, %v2571_v41  ;;  %v889_v29 = vmul.f32 %v2673_v52, %v857_v44  ;;  %v2726_v34 = vadd.f32 %v2488_v23, %v342_v20  ;;  %v410_v54 = vmul.f32 0.5, %v2620_v48 }
  0xdd   : > { %v1272_v16 = vadd.f32 %v1240_v38, %v2575_v2  ;;  %v890_v39 = vmul.f32 %v2679_v1, %v858_v61  ;;  %vm1113_vm8 = vcmp.lt.f32.partialorder %v2624_v59, 0.0  ;;  %v2732_v41 = vadd.f32 %v2488_v23, %v343_v40 }
  0xde   : > { %v1049_v35 = vmul.f32 %v1933_v47, %v889_v29  ;;  %v1015_v12 = vmul.f32 1.442695, %v956_v6  ;;  %v2735_v2 = vmul.f32 0.70710677, %v2726_v34  ;;  %vm1114_vm9 = vcmp.lt.f32.partialorder %v2627_v60, 0.0 }
  0xdf   : > { %v1756_v52 = vpack.c.bf16 %v1272_v16, %v1271_v37  ;;  %v1050_v33 = vmul.f32 %v1935_v49, %v890_v39  ;;  %v2741_v43 = vmul.f32 0.70710677, %v2732_v41  ;;  %v1696_v0 = vunpack.c.l.bf16 %v1792_v15 }
  0xe0   : > { %v2737_v1 = vpop.eup %1936  ;;  %v1081_v53 = vsub.f32 1.0, %v1049_v35  ;;  %1940 = vpow2.f32 %v1013_v56  ;;  %v477_v3 = vand.u32 2147483647, %v2735_v2  ;;  %v1697_v22 = vunpack.c.h.bf16 %v1792_v15 }
  0xe1   : > { %v1939_v24 = vpop.eup %1938  ;;  %1803 = vst [vmem:[%s2266_s28 + $0x58] sm:$0xff] %v1756_v52   ;;  %v1082_v18 = vsub.f32 1.0, %v1050_v33  ;;  %v635_v21 = vmul.f32 1.0614054, %v2737_v1  ;;  %v478_v32 = vand.u32 2147483647, %v2741_v43  ;;  %1942 = vpow2.f32 %v1015_v12 }
  0xe2   : > { %v1145_v27 = vsub.f32 0.0, %v1081_v53  ;;  %v636_v25 = vmul.f32 1.0614054, %v1939_v24  ;;  %v509_v62 = vmul.f32 0.3275911, %v477_v3  ;;  %v344_v46 = vmul.f32 %v2479_v13, %v1696_v0 }
  0xe3   : > { %v1146_v55 = vsub.f32 0.0, %v1082_v18  ;;  %v667_v47 = vadd.f32 -1.4531521, %v635_v21  ;;  %v510_v45 = vmul.f32 0.3275911, %v478_v32  ;;  %v345_v10 = vmul.f32 %v2479_v13, %v1697_v22 }
  0xe4   : > { %v1177_v7 = vsel %vm1113_vm8, %v1145_v27, %v1081_v53  ;;  %v668_v58 = vadd.f32 -1.4531521, %v636_v25  ;;  %v541_v11 = vadd.f32 1.0, %v509_v62  ;;  %v2757_v4 = vadd.f32 %v2488_v23, %v344_v46 }
  0xe5   : > { %v1178_v26 = vsel %vm1114_vm9, %v1146_v55, %v1082_v18  ;;  %v1209_v30 = vadd.f32 1.0, %v1177_v7  ;;  %v699_v5 = vmul.f32 %v2737_v1, %v667_v47  ;;  %v542_v57 = vadd.f32 1.0, %v510_v45 }
  0xe6   : > { %v1210_v36 = vadd.f32 1.0, %v1178_v26  ;;  %v700_v49 = vmul.f32 %v1939_v24, %v668_v58  ;;  %1944 = vrcp.f32 %v541_v11  ;;  %v2761_v38 = vadd.f32 %v2488_v23, %v345_v10 }
  0xe7   : > { %v1241_v50 = vmul.f32 %v1209_v30, %v409_v8  ;;  %v731_v63 = vadd.f32 1.4214138, %v699_v5  ;;  %1946 = vrcp.f32 %v542_v57  ;;  %v925_v6 = vsub.f32 0.0, %v477_v3 }
  0xe8   : > { %v1242_v59 = vmul.f32 %v1210_v36, %v410_v54  ;;  %v732_v51 = vadd.f32 1.4214138, %v700_v49  ;;  %v2764_v20 = vmul.f32 0.70710677, %v2757_v4  ;;  %v926_v8 = vsub.f32 0.0, %v478_v32 }
  0xe9   : > { %v1273_v17 = vadd.f32 %v1241_v50, %v2616_v42  ;;  %v763_v60 = vmul.f32 %v2737_v1, %v731_v63  ;;  %v2767_v29 = vmul.f32 0.70710677, %v2761_v38  ;;  %v957_v15 = vmul.f32 %v925_v6, %v477_v3 }
  0xea   : > { %v1274_v44 = vadd.f32 %v1242_v59, %v2620_v48  ;;  %v764_v28 = vmul.f32 %v1939_v24, %v732_v51  ;;  %v1941_v13 = vpop.eup %1940  ;;  %v479_v48 = vand.u32 2147483647, %v2764_v20  ;;  %v958_v52 = vmul.f32 %v926_v8, %v478_v32 }
  0xeb   : > { %v795_v61 = vadd.f32 -0.28449672, %v763_v60  ;;  %v1943_v40 = vpop.eup %1942  ;;  %v480_v39 = vand.u32 2147483647, %v2767_v29  ;;  %v1017_v47 = vmul.f32 1.442695, %v957_v15 }
  0xec   : > { %v1761_v37 = vpack.c.bf16 %v1274_v44, %v1273_v17  ;;  %v796_v42 = vadd.f32 -0.28449672, %v764_v28  ;;  %v511_v54 = vmul.f32 0.3275911, %v479_v48  ;;  %v1019_v58 = vmul.f32 1.442695, %v958_v52 }
  0xed   : > { %v827_v16 = vmul.f32 %v2737_v1, %v795_v61  ;;  %v512_v33 = vmul.f32 0.3275911, %v480_v39  ;;  %v411_v3 = vmul.f32 0.5, %v2668_v31  ;;  %vm1115_vm10 = vcmp.lt.f32.partialorder %v2687_v9, 0.0 }
  0xee   : > { %1804 = vst [vmem:[%s2266_s28 + $0x60] sm:$0xff] %v1761_v37   ;;  %v828_v23 = vmul.f32 %v1939_v24, %v796_v42  ;;  %v543_v0 = vadd.f32 1.0, %v511_v54  ;;  %vm1116_vm11 = vcmp.lt.f32.partialorder %v2695_v19, 0.0  ;;  %v927_v30 = vsub.f32 0.0, %v479_v48 }
  0xef   : > { %v859_v56 = vadd.f32 0.2548296, %v827_v16  ;;  %v544_v25 = vadd.f32 1.0, %v512_v33  ;;  %v928_v36 = vsub.f32 0.0, %v480_v39  ;;  %v412_v49 = vmul.f32 0.5, %v2677_v14 }
  0xf0   : > { %v860_v35 = vadd.f32 0.2548296, %v828_v23  ;;  %v1945_v12 = vpop.eup %1944  ;;  %1948 = vrcp.f32 %v543_v0  ;;  %v959_v17 = vmul.f32 %v927_v30, %v479_v48  ;;  %vm1117_vm12 = vcmp.lt.f32.partialorder %v2735_v2, 0.0 }
  0xf1   : > { %v891_v53 = vmul.f32 %v2737_v1, %v859_v56  ;;  %v1947_v18 = vpop.eup %1946  ;;  %v637_v27 = vmul.f32 1.0614054, %v1945_v12  ;;  %1950 = vrcp.f32 %v544_v25  ;;  %v960_v44 = vmul.f32 %v928_v36, %v480_v39 }
  0xf2   : > { %v892_v21 = vmul.f32 %v1939_v24, %v860_v35  ;;  %v638_v55 = vmul.f32 1.0614054, %v1947_v18  ;;  %1952 = vpow2.f32 %v1017_v47  ;;  %v1021_v56 = vmul.f32 1.442695, %v959_v17 }
  0xf3   : > { %v1051_v22 = vmul.f32 %v1941_v13, %v891_v53  ;;  %v669_v7 = vadd.f32 -1.4531521, %v637_v27  ;;  %1954 = vpow2.f32 %v1019_v58  ;;  %v1023_v48 = vmul.f32 1.442695, %v960_v44 }
  0xf4   : > { %v1052_v62 = vmul.f32 %v1943_v40, %v892_v21  ;;  %v670_v45 = vadd.f32 -1.4531521, %v638_v55  ;;  %1956 = vpow2.f32 %v1021_v56  ;;  %vm1118_vm13 = vcmp.lt.f32.partialorder %v2741_v43, 0.0 }
  0xf5   : > { %v1083_v32 = vsub.f32 1.0, %v1051_v22  ;;  %v701_v1 = vmul.f32 %v1945_v12, %v669_v7  ;;  %1958 = vpow2.f32 %v1023_v48  ;;  %vm1119_vm14 = vcmp.lt.f32.partialorder %v2764_v20, 0.0 }
  0xf6   : > { %v1084_v46 = vsub.f32 1.0, %v1052_v62  ;;  %v702_v26 = vmul.f32 %v1947_v18, %v670_v45  ;;  %vm1120_vm15 = vcmp.lt.f32.partialorder %v2767_v29, 0.0 }
  0xf7   : > { %v1147_v24 = vsub.f32 0.0, %v1083_v32  ;;  %v733_v11 = vadd.f32 1.4214138, %v701_v1 }
  0xf8   : > { %v1148_v5 = vsub.f32 0.0, %v1084_v46  ;;  %v734_v10 = vadd.f32 1.4214138, %v702_v26 }
  0xf9   : > { %v1179_v57 = vsel %vm1115_vm10, %v1147_v24, %v1083_v32  ;;  %v765_v59 = vmul.f32 %v1945_v12, %v733_v11  ;;  %v413_v32 = vmul.f32 0.5, %v2726_v34 }
  0xfa   : > { %v1180_v50 = vsel %vm1116_vm11, %v1148_v5, %v1084_v46  ;;  %v1211_v63 = vadd.f32 1.0, %v1179_v57  ;;  %v766_v9 = vmul.f32 %v1947_v18, %v734_v10  ;;  %v1949_v28 = vpop.eup %1948  ;;  %v414_v46 = vmul.f32 0.5, %v2732_v41 }
  0xfb   : > { %v1212_v51 = vadd.f32 1.0, %v1180_v50  ;;  %v797_v60 = vadd.f32 -0.28449672, %v765_v59  ;;  %v1951_v6 = vpop.eup %1950  ;;  %v639_v8 = vmul.f32 1.0614054, %v1949_v28 }
  0xfc   : > { %v1243_v19 = vmul.f32 %v1211_v63, %v411_v3  ;;  %v798_v61 = vadd.f32 -0.28449672, %v766_v9  ;;  %v640_v23 = vmul.f32 1.0614054, %v1951_v6  ;;  %v1953_v35 = vpop.eup %1952 }
  0xfd   : > { %v1244_v13 = vmul.f32 %v1212_v51, %v412_v49  ;;  %v829_v42 = vmul.f32 %v1945_v12, %v797_v60  ;;  %v671_v54 = vadd.f32 -1.4531521, %v639_v8  ;;  %v1955_v53 = vpop.eup %1954 }
  0xfe   : > { %v1275_v37 = vadd.f32 %v1243_v19, %v2668_v31  ;;  %v830_v16 = vmul.f32 %v1947_v18, %v798_v61  ;;  %v672_v33 = vadd.f32 -1.4531521, %v640_v23  ;;  %v1957_v2 = vpop.eup %1956  ;;  %v415_v61 = vmul.f32 0.5, %v2757_v4 }
  0xff   : > { %v1276_v40 = vadd.f32 %v1244_v13, %v2677_v14  ;;  %v861_v15 = vadd.f32 0.2548296, %v829_v42  ;;  %v703_v21 = vmul.f32 %v1949_v28, %v671_v54  ;;  %v1959_v43 = vpop.eup %1958 }
 0x100   : > { %v862_v39 = vadd.f32 0.2548296, %v830_v16  ;;  %v704_v27 = vmul.f32 %v1951_v6, %v672_v33 }
 0x101   : > { %v1766_v52 = vpack.c.bf16 %v1276_v40, %v1275_v37  ;;  %v893_v0 = vmul.f32 %v1945_v12, %v861_v15  ;;  %v735_v22 = vadd.f32 1.4214138, %v703_v21 }
 0x102   : > { %v894_v31 = vmul.f32 %v1947_v18, %v862_v39  ;;  %v736_v55 = vadd.f32 1.4214138, %v704_v27 }
 0x103   : > { %1805 = vst [vmem:[%s2266_s28 + $0x68] sm:$0xff] %v1766_v52   ;;  %v1053_v25 = vmul.f32 %v1953_v35, %v893_v0  ;;  %v767_v62 = vmul.f32 %v1949_v28, %v735_v22 }
 0x104   : > { %v1054_v14 = vmul.f32 %v1955_v53, %v894_v31  ;;  %v768_v58 = vmul.f32 %v1951_v6, %v736_v55 }
 0x105   : > { %v1085_v47 = vsub.f32 1.0, %v1053_v25  ;;  %v799_v12 = vadd.f32 -0.28449672, %v767_v62 }
 0x106   : > { %v1086_v7 = vsub.f32 1.0, %v1054_v14  ;;  %v800_v45 = vadd.f32 -0.28449672, %v768_v58 }
 0x107   : > { %v1149_v3 = vsub.f32 0.0, %v1085_v47  ;;  %v831_v24 = vmul.f32 %v1949_v28, %v799_v12 }
 0x108   : > { %v1150_v18 = vsub.f32 0.0, %v1086_v7  ;;  %v832_v5 = vmul.f32 %v1951_v6, %v800_v45 }
 0x109   : > { %v1181_v1 = vsel %vm1117_vm12, %v1149_v3, %v1085_v47  ;;  %v863_v36 = vadd.f32 0.2548296, %v831_v24 }
 0x10a   : > { %v1182_v26 = vsel %vm1118_vm13, %v1150_v18, %v1086_v7  ;;  %v1213_v30 = vadd.f32 1.0, %v1181_v1  ;;  %v864_v57 = vadd.f32 0.2548296, %v832_v5 }
 0x10b   : > { %v1214_v11 = vadd.f32 1.0, %v1182_v26  ;;  %v895_v50 = vmul.f32 %v1949_v28, %v863_v36 }
 0x10c   : > { %v1245_v49 = vmul.f32 %v1213_v30, %v413_v32  ;;  %v896_v59 = vmul.f32 %v1951_v6, %v864_v57 }
 0x10d   : > { %v1246_v10 = vmul.f32 %v1214_v11, %v414_v46  ;;  %v1055_v9 = vmul.f32 %v1957_v2, %v895_v50 }
 0x10e   : > { %v1277_v63 = vadd.f32 %v1245_v49, %v2726_v34  ;;  %v1056_v17 = vmul.f32 %v1959_v43, %v896_v59  ;;  %v416_v34 = vmul.f32 0.5, %v2761_v38 }
 0x10f   : > { %v1278_v51 = vadd.f32 %v1246_v10, %v2732_v41  ;;  %v1087_v60 = vsub.f32 1.0, %v1055_v9 }
 0x110   : > { %v1088_v44 = vsub.f32 1.0, %v1056_v17 }
 0x111   : > { %v1771_v19 = vpack.c.bf16 %v1278_v51, %v1277_v63  ;;  %v1151_v13 = vsub.f32 0.0, %v1087_v60 }
 0x112   : > { %v1152_v28 = vsub.f32 0.0, %v1088_v44 }
 0x113   : > { %1806 = vst [vmem:[%s2266_s28 + $0x70] sm:$0xff] %v1771_v19   ;;  %v1183_v6 = vsel %vm1119_vm14, %v1151_v13, %v1087_v60 }
 0x114   : > { %v1184_v37 = vsel %vm1120_vm15, %v1152_v28, %v1088_v44  ;;  %v1215_v41 = vadd.f32 1.0, %v1183_v6 }
 0x115   : > { %v1216_v42 = vadd.f32 1.0, %v1184_v37 }
 0x116   : > { %v1247_v8 = vmul.f32 %v1215_v41, %v415_v61 }
 0x117   : > { %v1248_v40 = vmul.f32 %v1216_v42, %v416_v34 }
 0x118   : > { %v1279_v16 = vadd.f32 %v1247_v8, %v2757_v4 }
 0x119   : > { %v1280_v20 = vadd.f32 %v1248_v40, %v2761_v38 }
 0x11b   : > { %v1776_v23 = vpack.c.bf16 %v1280_v20, %v1279_v16 }
 0x11d   : > { %1807 = vst [vmem:[%s2266_s28 + $0x78] sm:$0xff] %v1776_v23  }
 0x11e PF: > { %s13_s14 = sadd.s32 1, %s1984_s14   ;;  %s2820_s12 = smov %s1980_s13 }
 0x11f   : > { %p10_p5 = scmp.ge.s32.totalorder %s13_s14, 4   ;;  %s2821_s13 = smov %s2823_s15 }
 0x121   :  { %12 = sbr.rel (!%p10_p5) target bundleno = 2 (0x2), region = 68 }

// kernel: upstep_forward.13
= control target key start
LH: loop header
LB: loop body
LE: loop exit
PB: predicated region body
PF: predicated region fallthrough
CT: control target
= control target key end

     0   :  { %s1974_s12 = smov 0   ;;  %s1976_s13 = smov 0   ;;  %s2718_s0 = inlined_call_operand.vmem [shape: bf16[2,16,16,128], index: 0, kind: input, shape index: {}]   ;;  %s2719_s1 = inlined_call_operand.vmem [shape: f32[2,1,1,128], index: 1, kind: input, shape index: {}]   ;;  %s2720_s2 = inlined_call_operand.vmem [shape: f32[2,1,1,128], index: 2, kind: input, shape index: {}]   ;;  %s2721_s3 = inlined_call_operand.vmem [shape: bf16[2,16,16,128], index: 3, kind: output, shape index: {}]  }
   0x1   :  { %s1978_s14 = smov 0  }
   0x2 LB: > { %s25_s15 = sadd.s32 1, %s1948_s13  ;;  %p1527_p0 = scmp.ge.s32.totalorder %s1952_s14, 1  ;;  %s1952_s14 = sphi %s1978_s14, %s13_s14   ;;  %s1948_s13 = sphi %s1976_s13, %s2723_s13   ;;  %s1944_s12 = sphi %s1974_s12, %s2722_s12  }
   0x3   : > { %p27_p1 = scmp.ge.s32.totalorder %s25_s15, 2  ;;  %p175_p2 = scmp.lt.s32.totalorder %s1952_s14, 3 }
   0x5   : > { %s2725_s15 = smov (%p27_p1, %s25_s15), 0  ;;  %p176_p3 = pnand %p1527_p0, %p175_p2 }
   0x6   : > { %p216_p4 = scmp.lt.s32.totalorder (!%p176_p3), %s1944_s12, 1 }
   0x7   : > { %179 = sbr.rel (%p176_p3) target bundleno = 275 (0x113), region = 32 }
   0xe   : > { %s2727_s12 = smov (!%p216_p4, %s1944_s12), 1 }
   0xf   : > { %s1568_s16 = sshll.u32 %s2727_s12, 7  ;;  %s1999_s19 = scalar_lea.vmem %s2719_s1, %s2727_s12 }
  0x10   : > { %s2006_s22 = scalar_lea.vmem %s2718_s0, %s1568_s16  ;;  %s2012_s25 = scalar_lea.vmem %s2720_s2, %s2727_s12  ;;  %v2016_v1 = vld [vmem:[%s1999_s19] ss:$0 sm:$0xff] }
  0x11   : > { %v1603_v0 = vld [vmem:[%s2006_s22] sm:$0xff]   ;;  %v1746_v2 = vld [vmem:[%s2006_s22 + $0x8] sm:$0xff]   ;;  %v1747_v7 = vld [vmem:[%s2006_s22 + $0x10] sm:$0xff]   ;;  %s2217_s28 = scalar_lea.vmem %s2721_s3, %s1568_s16 }
  0x12   : > { %v1604_v3 = vunpack.c.l.bf16 %v1603_v0  ;;  %v1605_v4 = vunpack.c.h.bf16 %v1603_v0  ;;  %v1608_v5 = vunpack.c.l.bf16 %v1746_v2  ;;  %v1609_v6 = vunpack.c.h.bf16 %v1746_v2  ;;  %v1748_v8 = vld [vmem:[%s2006_s22 + $0x18] sm:$0xff]   ;;  %v2022_v9 = vld [vmem:[%s2012_s25] ss:$0 sm:$0xff] }
  0x13   : > { %v1612_v10 = vunpack.c.l.bf16 %v1747_v7  ;;  %v1613_v11 = vunpack.c.h.bf16 %v1747_v7  ;;  %v1616_v16 = vunpack.c.l.bf16 %v1748_v8  ;;  %v1617_v17 = vunpack.c.h.bf16 %v1748_v8 }
  0x14   : > { %v314_v12 = vmul.f32 %v1604_v3, %v2016_v1  ;;  %v315_v13 = vmul.f32 %v1605_v4, %v2016_v1  ;;  %v316_v14 = vmul.f32 %v1608_v5, %v2016_v1  ;;  %v317_v15 = vmul.f32 %v1609_v6, %v2016_v1 }
  0x15   : > { %v318_v22 = vmul.f32 %v1612_v10, %v2016_v1  ;;  %v319_v23 = vmul.f32 %v1613_v11, %v2016_v1  ;;  %v320_v30 = vmul.f32 %v1616_v16, %v2016_v1  ;;  %v321_v31 = vmul.f32 %v1617_v17, %v2016_v1 }
  0x16   : > { %v353_v18 = vadd.f32 %v2022_v9, %v314_v12  ;;  %v354_v19 = vadd.f32 %v2022_v9, %v315_v13  ;;  %v355_v20 = vadd.f32 %v2022_v9, %v316_v14  ;;  %v2032_v21 = vadd.f32 %v2022_v9, %v317_v15 }
  0x17   : > { %v2052_v34 = vadd.f32 %v2022_v9, %v318_v22  ;;  %v2055_v35 = vadd.f32 %v2022_v9, %v319_v23  ;;  %v2058_v49 = vadd.f32 %v2022_v9, %v320_v30  ;;  %v2061_v50 = vadd.f32 %v2022_v9, %v321_v31 }
  0x18   : > { %v2036_v24 = vmul.f32 0.70710677, %v353_v18  ;;  %v2038_v25 = vmul.f32 0.70710677, %v354_v19  ;;  %v2040_v26 = vmul.f32 0.70710677, %v355_v20 }
  0x19   : > { %v2043_v27 = vmul.f32 0.70710677, %v2032_v21  ;;  %v2063_v51 = vmul.f32 0.5, %v353_v18  ;;  %v2065_v54 = vmul.f32 0.5, %v354_v19  ;;  %v2068_v58 = vmul.f32 0.70710677, %v2052_v34 }
  0x1a   : > { %v449_v28 = vand.u32 2147483647, %v2036_v24  ;;  %v450_v29 = vand.u32 2147483647, %v2038_v25  ;;  %v451_v32 = vand.u32 2147483647, %v2040_v26 }
  0x1b   : > { %v452_v33 = vand.u32 2147483647, %v2043_v27  ;;  %v2071_v59 = vmul.f32 0.70710677, %v2055_v35  ;;  %v2074_v61 = vmul.f32 0.70710677, %v2058_v49 }
  0x1c   : > { %v481_v36 = vmul.f32 0.3275911, %v449_v28  ;;  %v482_v37 = vmul.f32 0.3275911, %v450_v29  ;;  %v897_v38 = vsub.f32 0.0, %v449_v28  ;;  %v898_v39 = vsub.f32 0.0, %v450_v29 }
  0x1d   : > { %v483_v40 = vmul.f32 0.3275911, %v451_v32  ;;  %v484_v41 = vmul.f32 0.3275911, %v452_v33  ;;  %v899_v42 = vsub.f32 0.0, %v451_v32  ;;  %v900_v43 = vsub.f32 0.0, %v452_v33 }
  0x1e   : > { %v513_v44 = vadd.f32 1.0, %v481_v36  ;;  %v514_v45 = vadd.f32 1.0, %v482_v37  ;;  %v929_v46 = vmul.f32 %v897_v38, %v449_v28  ;;  %v930_v47 = vmul.f32 %v898_v39, %v450_v29  ;;  %v1749_v29 = vld [vmem:[%s2006_s22 + $0x20] sm:$0xff]  }
  0x1f   : > { %v931_v48 = vmul.f32 %v899_v42, %v451_v32  ;;  %v515_v53 = vadd.f32 1.0, %v483_v40  ;;  %v516_v55 = vadd.f32 1.0, %v484_v41  ;;  %v932_v56 = vmul.f32 %v900_v43, %v452_v33 }
  0x20   : > { %1800 = vrcp.f32 %v513_v44  ;;  %v961_v52 = vmul.f32 1.442695, %v929_v46  ;;  %v963_v57 = vmul.f32 1.442695, %v930_v47  ;;  %v2077_v62 = vmul.f32 0.70710677, %v2061_v50 }
  0x21   : > { %1802 = vrcp.f32 %v514_v45  ;;  %v965_v60 = vmul.f32 1.442695, %v931_v48  ;;  %v2079_v63 = vmul.f32 0.5, %v355_v20  ;;  %v453_v0 = vand.u32 2147483647, %v2068_v58  ;;  %v1750_v46 = vld [vmem:[%s2006_s22 + $0x28] sm:$0xff]  }
  0x22   : > { %1804 = vpow2.f32 %v961_v52  ;;  %v454_v2 = vand.u32 2147483647, %v2071_v59  ;;  %v967_v3 = vmul.f32 1.442695, %v932_v56  ;;  %v455_v4 = vand.u32 2147483647, %v2074_v61 }
  0x23   : > { %1806 = vrcp.f32 %v515_v53  ;;  %v456_v5 = vand.u32 2147483647, %v2077_v62  ;;  %v485_v6 = vmul.f32 0.3275911, %v453_v0  ;;  %v901_v8 = vsub.f32 0.0, %v453_v0 }
  0x24   : > { %1808 = vrcp.f32 %v516_v55  ;;  %v486_v7 = vmul.f32 0.3275911, %v454_v2  ;;  %v902_v10 = vsub.f32 0.0, %v454_v2  ;;  %v487_v11 = vmul.f32 0.3275911, %v455_v4 }
  0x25   : > { %1810 = vpow2.f32 %v963_v57  ;;  %v488_v12 = vmul.f32 0.3275911, %v456_v5  ;;  %v517_v13 = vadd.f32 1.0, %v485_v6  ;;  %v933_v15 = vmul.f32 %v901_v8, %v453_v0 }
  0x26   : > { %1812 = vpow2.f32 %v965_v60  ;;  %v518_v14 = vadd.f32 1.0, %v486_v7  ;;  %v903_v16 = vsub.f32 0.0, %v455_v4  ;;  %v2086_v17 = vmul.f32 0.5, %v2032_v21 }
  0x27   : > { %1814 = vpow2.f32 %v967_v3  ;;  %v934_v18 = vmul.f32 %v902_v10, %v454_v2  ;;  %v904_v19 = vsub.f32 0.0, %v456_v5  ;;  %v969_v22 = vmul.f32 1.442695, %v933_v15 }
  0x28   : > { %1816 = vrcp.f32 %v517_v13  ;;  %v519_v23 = vadd.f32 1.0, %v487_v11  ;;  %v935_v28 = vmul.f32 %v903_v16, %v455_v4  ;;  %v520_v33 = vadd.f32 1.0, %v488_v12 }
  0x29   : > { %1818 = vrcp.f32 %v518_v14  ;;  %v971_v32 = vmul.f32 1.442695, %v934_v18  ;;  %v2096_v36 = vmul.f32 0.5, %v2052_v34  ;;  %v936_v37 = vmul.f32 %v904_v19, %v456_v5 }
  0x2a   : > { %v2088_v20 = vpop.eup %1800  ;;  %1820 = vpow2.f32 %v969_v22  ;;  %v2101_v40 = vmul.f32 0.5, %v2055_v35  ;;  %v1620_v41 = vunpack.c.l.bf16 %v1749_v29  ;;  %v973_v44 = vmul.f32 1.442695, %v935_v28 }
  0x2b   : > { %v2091_v30 = vpop.eup %1802  ;;  %v609_v31 = vmul.f32 1.0614054, %v2088_v20  ;;  %1822 = vpow2.f32 %v971_v32  ;;  %v1621_v45 = vunpack.c.h.bf16 %v1749_v29  ;;  %v975_v56 = vmul.f32 1.442695, %v936_v37 }
  0x2c   : > { %v610_v21 = vmul.f32 1.0614054, %v2091_v30  ;;  %v2098_v38 = vpop.eup %1804  ;;  %1824 = vrcp.f32 %v519_v23  ;;  %v322_v52 = vmul.f32 %v1620_v41, %v2016_v1  ;;  %v1624_v4 = vunpack.c.l.bf16 %v1750_v46 }
  0x2d   : > { %v641_v39 = vadd.f32 -1.4531521, %v609_v31  ;;  %v2103_v42 = vpop.eup %1806  ;;  %1826 = vrcp.f32 %v520_v33  ;;  %v323_v57 = vmul.f32 %v1621_v45, %v2016_v1  ;;  %v1625_v8 = vunpack.c.h.bf16 %v1750_v46 }
  0x2e   : > { %v642_v43 = vadd.f32 -1.4531521, %v610_v21  ;;  %v2106_v47 = vpop.eup %1808  ;;  %v611_v48 = vmul.f32 1.0614054, %v2103_v42  ;;  %v2119_v3 = vadd.f32 %v2022_v9, %v322_v52  ;;  %1828 = vpow2.f32 %v973_v44 }
  0x2f   : > { %v673_v34 = vmul.f32 %v2088_v20, %v641_v39  ;;  %v2111_v35 = vpop.eup %1810  ;;  %v612_v55 = vmul.f32 1.0614054, %v2106_v47  ;;  %v2122_v7 = vadd.f32 %v2022_v9, %v323_v57  ;;  %1830 = vpow2.f32 %v975_v56 }
  0x30   : > { %v674_v53 = vmul.f32 %v2091_v30, %v642_v43  ;;  %v2116_v60 = vpop.eup %1812  ;;  %v643_v2 = vadd.f32 -1.4531521, %v611_v48  ;;  %v2129_v13 = vmul.f32 0.70710677, %v2119_v3  ;;  %v2142_v29 = vmul.f32 %v1624_v4, %v2016_v1 }
  0x31   : > { %v705_v0 = vadd.f32 1.4214138, %v673_v34  ;;  %v644_v6 = vadd.f32 -1.4531521, %v612_v55  ;;  %v2124_v10 = vpop.eup %1814  ;;  %v2136_v18 = vmul.f32 0.70710677, %v2122_v7  ;;  %v2148_v37 = vmul.f32 %v1625_v8, %v2016_v1 }
  0x32   : > { %v706_v5 = vadd.f32 1.4214138, %v674_v53  ;;  %v675_v12 = vmul.f32 %v2103_v42, %v643_v2  ;;  %v2131_v14 = vpop.eup %1816  ;;  %v2155_v45 = vand.u32 2147483647, %v2129_v13  ;;  %vm1089_vm0 = vcmp.lt.f32.partialorder %v2036_v24, 0.0 }
  0x33   : > { %v737_v11 = vmul.f32 %v2088_v20, %v705_v0  ;;  %v676_v16 = vmul.f32 %v2106_v47, %v644_v6  ;;  %v2138_v19 = vpop.eup %1818  ;;  %v613_v28 = vmul.f32 1.0614054, %v2131_v14  ;;  %v2163_v53 = vand.u32 2147483647, %v2136_v18 }
  0x34   : > { %v738_v15 = vmul.f32 %v2091_v30, %v706_v5  ;;  %v707_v23 = vadd.f32 1.4214138, %v675_v12  ;;  %v2144_v31 = vpop.eup %1820  ;;  %v614_v21 = vmul.f32 1.0614054, %v2138_v19  ;;  %vm1090_vm1 = vcmp.lt.f32.partialorder %v2038_v25, 0.0 }
  0x35   : > { %v769_v22 = vadd.f32 -0.28449672, %v737_v11  ;;  %v708_v33 = vadd.f32 1.4214138, %v676_v16  ;;  %v2150_v39 = vpop.eup %1822  ;;  %v645_v44 = vadd.f32 -1.4531521, %v613_v28 }
  0x36   : > { %v770_v32 = vadd.f32 -0.28449672, %v738_v15  ;;  %v739_v43 = vmul.f32 %v2103_v42, %v707_v23  ;;  %v2157_v46 = vpop.eup %1824  ;;  %v646_v52 = vadd.f32 -1.4531521, %v614_v21  ;;  %vm1091_vm2 = vcmp.lt.f32.partialorder %v2040_v26, 0.0 }
  0x37   : > { %v801_v41 = vmul.f32 %v2088_v20, %v769_v22  ;;  %v740_v48 = vmul.f32 %v2106_v47, %v708_v33  ;;  %v2165_v55 = vpop.eup %1826  ;;  %v677_v0 = vmul.f32 %v2131_v14, %v645_v44  ;;  %v615_v2 = vmul.f32 1.0614054, %v2157_v46 }
  0x38   : > { %v802_v34 = vmul.f32 %v2091_v30, %v770_v32  ;;  %v771_v57 = vadd.f32 -0.28449672, %v739_v43  ;;  %v678_v6 = vmul.f32 %v2138_v19, %v646_v52  ;;  %v616_v8 = vmul.f32 1.0614054, %v2165_v55  ;;  %v2177_v33 = vpop.eup %1828 }
  0x39   : > { %v833_v56 = vadd.f32 0.2548296, %v801_v41  ;;  %v772_v5 = vadd.f32 -0.28449672, %v740_v48  ;;  %v709_v15 = vadd.f32 1.4214138, %v677_v0  ;;  %v2183_v44 = vpop.eup %1830 }
  0x3a   : > { %v834_v4 = vadd.f32 0.2548296, %v802_v34  ;;  %v803_v12 = vmul.f32 %v2103_v42, %v771_v57  ;;  %v647_v16 = vadd.f32 -1.4531521, %v615_v2  ;;  %v710_v28 = vadd.f32 1.4214138, %v678_v6 }
  0x3b   : > { %v865_v11 = vmul.f32 %v2088_v20, %v833_v56  ;;  %v804_v23 = vmul.f32 %v2106_v47, %v772_v5  ;;  %v648_v32 = vadd.f32 -1.4531521, %v616_v8  ;;  %vm1092_vm3 = vcmp.lt.f32.partialorder %v2043_v27, 0.0 }
  0x3c   : > { %v866_v22 = vmul.f32 %v2091_v30, %v834_v4  ;;  %v835_v41 = vadd.f32 0.2548296, %v803_v12  ;;  %v741_v20 = vmul.f32 %v2131_v14, %v709_v15  ;;  %v679_v43 = vmul.f32 %v2157_v46, %v647_v16 }
  0x3d   : > { %v1025_v21 = vmul.f32 %v2098_v38, %v865_v11  ;;  %v836_v34 = vadd.f32 0.2548296, %v804_v23  ;;  %v742_v48 = vmul.f32 %v2138_v19, %v710_v28  ;;  %v680_v52 = vmul.f32 %v2165_v55, %v648_v32 }
  0x3e   : > { %v1026_v30 = vmul.f32 %v2111_v35, %v866_v22  ;;  %v867_v57 = vmul.f32 %v2103_v42, %v835_v41  ;;  %v773_v38 = vadd.f32 -0.28449672, %v741_v20  ;;  %v711_v0 = vadd.f32 1.4214138, %v679_v43 }
  0x3f   : > { %v1057_v56 = vsub.f32 1.0, %v1025_v21  ;;  %v868_v4 = vmul.f32 %v2106_v47, %v836_v34  ;;  %v774_v5 = vadd.f32 -0.28449672, %v742_v48  ;;  %v712_v6 = vadd.f32 1.4214138, %v680_v52 }
  0x40   : > { %v1058_v2 = vsub.f32 1.0, %v1026_v30  ;;  %v1027_v11 = vmul.f32 %v2116_v60, %v867_v57  ;;  %v805_v35 = vmul.f32 %v2131_v14, %v773_v38  ;;  %v743_v12 = vmul.f32 %v2157_v46, %v711_v0 }
  0x41   : > { %v1121_v8 = vsub.f32 0.0, %v1057_v56  ;;  %v1028_v16 = vmul.f32 %v2124_v10, %v868_v4  ;;  %v806_v22 = vmul.f32 %v2138_v19, %v774_v5  ;;  %vm1093_vm4 = vcmp.lt.f32.partialorder %v2068_v58, 0.0 }
  0x42   : > { %v1122_v15 = vsub.f32 0.0, %v1058_v2  ;;  %v744_v42 = vmul.f32 %v2165_v55, %v712_v6  ;;  %v1059_v23 = vsub.f32 1.0, %v1027_v11  ;;  %v837_v28 = vadd.f32 0.2548296, %v805_v35 }
  0x43   : > { %v1153_v47 = vsel %vm1089_vm0, %v1121_v8, %v1057_v56  ;;  %vm1094_vm5 = vcmp.lt.f32.partialorder %v2071_v59, 0.0  ;;  %v775_v60 = vadd.f32 -0.28449672, %v743_v12  ;;  %v1060_v10 = vsub.f32 1.0, %v1028_v16 }
  0x44   : > { %v1154_v32 = vsel %vm1090_vm1, %v1122_v15, %v1058_v2  ;;  %v1185_v21 = vadd.f32 1.0, %v1153_v47  ;;  %v838_v41 = vadd.f32 0.2548296, %v806_v22  ;;  %v1123_v43 = vsub.f32 0.0, %v1059_v23 }
  0x45   : > { %v1186_v20 = vadd.f32 1.0, %v1154_v32  ;;  %v869_v30 = vmul.f32 %v2131_v14, %v837_v28  ;;  %v776_v34 = vadd.f32 -0.28449672, %v744_v42  ;;  %v1124_v48 = vsub.f32 0.0, %v1060_v10 }
  0x46   : > { %v1217_v24 = vmul.f32 %v1185_v21, %v2063_v51  ;;  %v870_v52 = vmul.f32 %v2138_v19, %v838_v41  ;;  %v807_v56 = vmul.f32 %v2157_v46, %v775_v60  ;;  %v1155_v25 = vsel %vm1091_vm2, %v1123_v43, %v1059_v23 }
  0x47   : > { %v1218_v57 = vmul.f32 %v1186_v20, %v2065_v54  ;;  %v1029_v38 = vmul.f32 %v2144_v31, %v869_v30  ;;  %v808_v0 = vmul.f32 %v2165_v55, %v776_v34  ;;  %vm1095_vm6 = vcmp.lt.f32.partialorder %v2074_v61, 0.0 }
  0x48   : > { %v1156_v51 = vsel %vm1092_vm3, %v1124_v48, %v1060_v10  ;;  %v1187_v54 = vadd.f32 1.0, %v1155_v25  ;;  %v1030_v26 = vmul.f32 %v2150_v39, %v870_v52  ;;  %v839_v14 = vadd.f32 0.2548296, %v807_v56 }
  0x49   : > { %v1669_v19 = vpack.c.bf16 %v1218_v57, %v1217_v24  ;;  %v1188_v31 = vadd.f32 1.0, %v1156_v51  ;;  %v1061_v2 = vsub.f32 1.0, %v1029_v38  ;;  %v840_v4 = vadd.f32 0.2548296, %v808_v0 }
  0x4a   : > { %v1219_v5 = vmul.f32 %v1187_v54, %v2079_v63  ;;  %v1062_v6 = vsub.f32 1.0, %v1030_v26  ;;  %v871_v8 = vmul.f32 %v2157_v46, %v839_v14  ;;  %v489_v11 = vmul.f32 0.3275911, %v2155_v45 }
  0x4b   : > { %1670 = vst [vmem:[%s2217_s28] sm:$0xff] %v1669_v19   ;;  %v1220_v27 = vmul.f32 %v1188_v31, %v2086_v17  ;;  %v1125_v35 = vsub.f32 0.0, %v1061_v2  ;;  %v872_v12 = vmul.f32 %v2165_v55, %v840_v4  ;;  %v490_v39 = vmul.f32 0.3275911, %v2163_v53 }
  0x4c   : > { %v1126_v15 = vsub.f32 0.0, %v1062_v6  ;;  %v1031_v16 = vmul.f32 %v2177_v33, %v871_v8  ;;  %v521_v22 = vadd.f32 1.0, %v489_v11  ;;  %v905_v63 = vsub.f32 0.0, %v2155_v45 }
  0x4d   : > { %v1674_v42 = vpack.c.bf16 %v1220_v27, %v1219_v5  ;;  %v1157_v46 = vsel %vm1093_vm4, %v1125_v35, %v1061_v2  ;;  %v1032_v47 = vmul.f32 %v2183_v44, %v872_v12  ;;  %v522_v23 = vadd.f32 1.0, %v490_v39 }
  0x4e   : > { %v1158_v17 = vsel %vm1094_vm5, %v1126_v15, %v1062_v6  ;;  %v1189_v28 = vadd.f32 1.0, %v1157_v46  ;;  %v1063_v55 = vsub.f32 1.0, %v1031_v16  ;;  %1832 = vrcp.f32 %v521_v22 }
  0x4f   : > { %1761 = vst [vmem:[%s2217_s28 + $0x8] sm:$0xff] %v1674_v42   ;;  %v1190_v60 = vadd.f32 1.0, %v1158_v17  ;;  %v1064_v32 = vsub.f32 1.0, %v1032_v47  ;;  %1834 = vrcp.f32 %v522_v23  ;;  %v906_v33 = vsub.f32 0.0, %v2163_v53 }
  0x50   : > { %v1221_v21 = vmul.f32 %v1189_v28, %v2096_v36  ;;  %vm1096_vm7 = vcmp.lt.f32.partialorder %v2077_v62, 0.0  ;;  %v1127_v58 = vsub.f32 0.0, %v1063_v55  ;;  %v937_v44 = vmul.f32 %v905_v63, %v2155_v45 }
  0x51   : > { %v1222_v59 = vmul.f32 %v1190_v60, %v2101_v40  ;;  %v391_v10 = vmul.f32 0.5, %v2058_v49  ;;  %v392_v41 = vmul.f32 0.5, %v2061_v50  ;;  %v1128_v20 = vsub.f32 0.0, %v1064_v32  ;;  %v1751_v50 = vld [vmem:[%s2006_s22 + $0x30] sm:$0xff]  }
  0x52   : > { %v1159_v43 = vsel %vm1095_vm6, %v1127_v58, %v1063_v55  ;;  %v938_v36 = vmul.f32 %v906_v33, %v2163_v53  ;;  %v2249_v62 = vadd.f32 %v2022_v9, %v2142_v29  ;;  %v2253_v45 = vadd.f32 %v2022_v9, %v2148_v37  ;;  %v1752_v29 = vld [vmem:[%s2006_s22 + $0x38] sm:$0xff]  }
  0x53   : > { %v1679_v40 = vpack.c.bf16 %v1222_v59, %v1221_v21  ;;  %v1160_v30 = vsel %vm1096_vm7, %v1128_v20, %v1064_v32  ;;  %v1191_v49 = vadd.f32 1.0, %v1159_v43  ;;  %v977_v34 = vmul.f32 1.442695, %v937_v44 }
  0x54   : > { %v1192_v24 = vadd.f32 1.0, %v1160_v30  ;;  %v2258_v61 = vmul.f32 0.70710677, %v2249_v62  ;;  %v2261_v53 = vmul.f32 0.70710677, %v2253_v45  ;;  %v1628_v56 = vunpack.c.l.bf16 %v1751_v50 }
  0x55   : > { %1762 = vst [vmem:[%s2217_s28 + $0x10] sm:$0xff] %v1679_v40   ;;  %v1223_v48 = vmul.f32 %v1191_v49, %v391_v10  ;;  %v1629_v37 = vunpack.c.h.bf16 %v1751_v50  ;;  %1836 = vpow2.f32 %v977_v34  ;;  %v979_v57 = vmul.f32 1.442695, %v938_v36 }
  0x56   : > { %v1224_v52 = vmul.f32 %v1192_v24, %v392_v41  ;;  %v459_v25 = vand.u32 2147483647, %v2258_v61  ;;  %v460_v38 = vand.u32 2147483647, %v2261_v53  ;;  %v326_v54 = vmul.f32 %v1628_v56, %v2016_v1 }
  0x57   : > { %v327_v26 = vmul.f32 %v1629_v37, %v2016_v1  ;;  %v1632_v14 = vunpack.c.l.bf16 %v1752_v29  ;;  %v1633_v5 = vunpack.c.h.bf16 %v1752_v29  ;;  %1838 = vpow2.f32 %v979_v57 }
  0x58   : > { %v2266_v0 = vpop.eup %1832  ;;  %v1684_v51 = vpack.c.bf16 %v1224_v52, %v1223_v48  ;;  %v491_v2 = vmul.f32 0.3275911, %v459_v25  ;;  %v492_v4 = vmul.f32 0.3275911, %v460_v38  ;;  %v907_v8 = vsub.f32 0.0, %v459_v25 }
  0x59   : > { %v2270_v19 = vpop.eup %1834  ;;  %v617_v31 = vmul.f32 1.0614054, %v2266_v0  ;;  %v908_v11 = vsub.f32 0.0, %v460_v38  ;;  %v2276_v27 = vadd.f32 %v2022_v9, %v326_v54  ;;  %v2279_v15 = vadd.f32 %v2022_v9, %v327_v26 }
  0x5a   : > { %1763 = vst [vmem:[%s2217_s28 + $0x18] sm:$0xff] %v1684_v51   ;;  %v618_v6 = vmul.f32 1.0614054, %v2270_v19  ;;  %v523_v12 = vadd.f32 1.0, %v491_v2  ;;  %v524_v39 = vadd.f32 1.0, %v492_v4  ;;  %v939_v22 = vmul.f32 %v907_v8, %v459_v25 }
  0x5b   : > { %v649_v35 = vadd.f32 -1.4531521, %v617_v31  ;;  %v940_v42 = vmul.f32 %v908_v11, %v460_v38  ;;  %v2283_v46 = vmul.f32 0.70710677, %v2276_v27  ;;  %v328_v23 = vmul.f32 %v1632_v14, %v2016_v1 }
  0x5c   : > { %v650_v16 = vadd.f32 -1.4531521, %v618_v6  ;;  %1840 = vrcp.f32 %v523_v12  ;;  %v2288_v28 = vmul.f32 0.70710677, %v2279_v15  ;;  %v329_v60 = vmul.f32 %v1633_v5, %v2016_v1 }
  0x5d   : > { %v681_v63 = vmul.f32 %v2266_v0, %v649_v35  ;;  %1842 = vrcp.f32 %v524_v39  ;;  %v461_v55 = vand.u32 2147483647, %v2283_v46  ;;  %v981_v33 = vmul.f32 1.442695, %v939_v22 }
  0x5e   : > { %v682_v47 = vmul.f32 %v2270_v19, %v650_v16  ;;  %v983_v44 = vmul.f32 1.442695, %v940_v42  ;;  %v462_v59 = vand.u32 2147483647, %v2288_v28  ;;  %v2296_v43 = vadd.f32 %v2022_v9, %v328_v23 }
  0x5f   : > { %v713_v17 = vadd.f32 1.4214138, %v681_v63  ;;  %v1837_v21 = vpop.eup %1836  ;;  %v493_v10 = vmul.f32 0.3275911, %v461_v55  ;;  %v909_v20 = vsub.f32 0.0, %v461_v55  ;;  %v2299_v36 = vadd.f32 %v2022_v9, %v329_v60 }
  0x60   : > { %v714_v32 = vadd.f32 1.4214138, %v682_v47  ;;  %v2302_v40 = vmul.f32 0.5, %v2119_v3  ;;  %v494_v49 = vmul.f32 0.3275911, %v462_v59  ;;  %v2305_v50 = vmul.f32 0.5, %v2122_v7 }
  0x61   : > { %v745_v58 = vmul.f32 %v2266_v0, %v713_v17  ;;  %v525_v34 = vadd.f32 1.0, %v493_v10  ;;  %1844 = vpow2.f32 %v981_v33  ;;  %v910_v48 = vsub.f32 0.0, %v462_v59  ;;  %v1839_v37 = vpop.eup %1838  ;;  %v1753_v17 = vld [vmem:[%s2006_s22 + $0x40] sm:$0xff]  }
  0x62   : > { %v746_v41 = vmul.f32 %v2270_v19, %v714_v32  ;;  %v526_v52 = vadd.f32 1.0, %v494_v49  ;;  %v941_v56 = vmul.f32 %v909_v20, %v461_v55  ;;  %vm1097_vm8 = vcmp.lt.f32.partialorder %v2129_v13, 0.0 }
  0x63   : > { %v777_v30 = vadd.f32 -0.28449672, %v745_v58  ;;  %1846 = vrcp.f32 %v525_v34  ;;  %v2311_v3 = vmul.f32 0.70710677, %v2296_v43  ;;  %v2314_v7 = vmul.f32 0.70710677, %v2299_v36 }
  0x64   : > { %v778_v24 = vadd.f32 -0.28449672, %v746_v41  ;;  %1848 = vpow2.f32 %v983_v44  ;;  %vm1098_vm9 = vcmp.lt.f32.partialorder %v2136_v18, 0.0  ;;  %v2320_v51 = vmul.f32 0.5, %v2249_v62 }
  0x65   : > { %v809_v29 = vmul.f32 %v2266_v0, %v777_v30  ;;  %v2323_v54 = vmul.f32 0.5, %v2253_v45  ;;  %1850 = vrcp.f32 %v526_v52  ;;  %v942_v2 = vmul.f32 %v910_v48, %v462_v59 }
  0x66   : > { %v810_v57 = vmul.f32 %v2270_v19, %v778_v24  ;;  %v2316_v25 = vpop.eup %1840  ;;  %v463_v4 = vand.u32 2147483647, %v2311_v3  ;;  %v985_v8 = vmul.f32 1.442695, %v941_v56  ;;  %v464_v62 = vand.u32 2147483647, %v2314_v7 }
  0x67   : > { %v841_v38 = vadd.f32 0.2548296, %v809_v29  ;;  %v2325_v26 = vpop.eup %1842  ;;  %v619_v31 = vmul.f32 1.0614054, %v2316_v25  ;;  %v987_v59 = vmul.f32 1.442695, %v942_v2  ;;  %v1636_v20 = vunpack.c.l.bf16 %v1753_v17 }
  0x68   : > { %v842_v14 = vadd.f32 0.2548296, %v810_v57  ;;  %v620_v6 = vmul.f32 1.0614054, %v2325_v26  ;;  %v495_v35 = vmul.f32 0.3275911, %v463_v4 }
  0x69   : > { %v873_v5 = vmul.f32 %v2266_v0, %v841_v38  ;;  %v651_v11 = vadd.f32 -1.4531521, %v619_v31  ;;  %v911_v12 = vsub.f32 0.0, %v463_v4  ;;  %v496_v22 = vmul.f32 0.3275911, %v464_v62 }
  0x6a   : > { %v874_v45 = vmul.f32 %v2270_v19, %v842_v14  ;;  %v652_v16 = vadd.f32 -1.4531521, %v620_v6  ;;  %v912_v63 = vsub.f32 0.0, %v464_v62  ;;  %v527_v23 = vadd.f32 1.0, %v495_v35 }
  0x6b   : > { %v1033_v39 = vmul.f32 %v1837_v21, %v873_v5  ;;  %v683_v47 = vmul.f32 %v2316_v25, %v651_v11  ;;  %v943_v0 = vmul.f32 %v911_v12, %v463_v4  ;;  %v528_v32 = vadd.f32 1.0, %v496_v22  ;;  %v1845_v58 = vpop.eup %1844 }
  0x6c   : > { %v1034_v42 = vmul.f32 %v1839_v37, %v874_v45  ;;  %v684_v60 = vmul.f32 %v2325_v26, %v652_v16  ;;  %v944_v33 = vmul.f32 %v912_v63, %v464_v62  ;;  %1852 = vrcp.f32 %v527_v23 }
  0x6d   : > { %v1065_v55 = vsub.f32 1.0, %v1033_v39  ;;  %v715_v44 = vadd.f32 1.4214138, %v683_v47  ;;  %v2336_v21 = vpop.eup %1846  ;;  %1854 = vrcp.f32 %v528_v32  ;;  %v989_v56 = vmul.f32 1.442695, %v943_v0 }
  0x6e   : > { %v1066_v19 = vsub.f32 1.0, %v1034_v42  ;;  %v716_v41 = vadd.f32 1.4214138, %v684_v60  ;;  %v1849_v30 = vpop.eup %1848  ;;  %v621_v24 = vmul.f32 1.0614054, %v2336_v21  ;;  %1856 = vpow2.f32 %v985_v8  ;;  %v2361_v42 = vld [vmem:[%s2006_s22 + $0x48] sm:$0xff]  }
  0x6f   : > { %v1129_v10 = vsub.f32 0.0, %v1065_v55  ;;  %v747_v34 = vmul.f32 %v2316_v25, %v715_v44  ;;  %v2340_v48 = vpop.eup %1850  ;;  %v991_v37 = vmul.f32 1.442695, %v944_v33  ;;  %1858 = vpow2.f32 %v987_v59 }
  0x70   : > { %v1130_v49 = vsub.f32 0.0, %v1066_v19  ;;  %v748_v52 = vmul.f32 %v2325_v26, %v716_v41  ;;  %v622_v31 = vmul.f32 1.0614054, %v2340_v48  ;;  %v653_v5 = vadd.f32 -1.4531521, %v621_v24 }
  0x71   : > { %v1161_v29 = vsel %vm1097_vm8, %v1129_v10, %v1065_v55  ;;  %v779_v14 = vadd.f32 -0.28449672, %v747_v34  ;;  %v1637_v62 = vunpack.c.h.bf16 %v1753_v17  ;;  %vm1099_vm10 = vcmp.lt.f32.partialorder %v2258_v61, 0.0 }
  0x72   : > { %v1162_v57 = vsel %vm1098_vm9, %v1130_v49, %v1066_v19  ;;  %v1193_v38 = vadd.f32 1.0, %v1161_v29  ;;  %v780_v4 = vadd.f32 -0.28449672, %v748_v52  ;;  %v654_v8 = vadd.f32 -1.4531521, %v622_v31 }
  0x73   : > { %v1194_v2 = vadd.f32 1.0, %v1162_v57  ;;  %v811_v13 = vmul.f32 %v2316_v25, %v779_v14  ;;  %v685_v11 = vmul.f32 %v2336_v21, %v653_v5  ;;  %v330_v35 = vmul.f32 %v1636_v20, %v2016_v1 }
  0x74   : > { %v1225_v6 = vmul.f32 %v1193_v38, %v2302_v40  ;;  %v812_v18 = vmul.f32 %v2325_v26, %v780_v4  ;;  %v686_v39 = vmul.f32 %v2340_v48, %v654_v8  ;;  %1860 = vpow2.f32 %v989_v56 }
  0x75   : > { %v1226_v45 = vmul.f32 %v1194_v2, %v2305_v50  ;;  %v843_v12 = vadd.f32 0.2548296, %v811_v13  ;;  %v331_v40 = vmul.f32 %v1637_v62, %v2016_v1  ;;  %v717_v63 = vadd.f32 1.4214138, %v685_v11 }
  0x76   : > { %v844_v22 = vadd.f32 0.2548296, %v812_v18  ;;  %v2358_v50 = vadd.f32 %v2022_v9, %v330_v35  ;;  %v2363_v47 = vpop.eup %1852  ;;  %vm1100_vm11 = vcmp.lt.f32.partialorder %v2261_v53, 0.0  ;;  %v718_v0 = vadd.f32 1.4214138, %v686_v39 }
  0x77   : > { %v1689_v16 = vpack.c.bf16 %v1226_v45, %v1225_v6  ;;  %v875_v23 = vmul.f32 %v2316_v25, %v843_v12  ;;  %1862 = vpow2.f32 %v991_v37  ;;  %v2367_v17 = vpop.eup %1854  ;;  %v749_v60 = vmul.f32 %v2336_v21, %v717_v63 }
  0x78   : > { %v876_v55 = vmul.f32 %v2325_v26, %v844_v22  ;;  %v623_v32 = vmul.f32 1.0614054, %v2363_v47  ;;  %v2374_v33 = vadd.f32 %v2022_v9, %v331_v40  ;;  %v1857_v19 = vpop.eup %1856  ;;  %v750_v25 = vmul.f32 %v2340_v48, %v718_v0 }
  0x79   : > { %1764 = vst [vmem:[%s2217_s28 + $0x20] sm:$0xff] %v1689_v16   ;;  %v1035_v44 = vmul.f32 %v1845_v58, %v875_v23  ;;  %v624_v59 = vmul.f32 1.0614054, %v2367_v17  ;;  %v1640_v10 = vunpack.c.l.bf16 %v2361_v42  ;;  %v781_v20 = vadd.f32 -0.28449672, %v749_v60  ;;  %v1859_v52 = vpop.eup %1858 }
  0x7a   : > { %v1036_v41 = vmul.f32 %v1849_v30, %v876_v55  ;;  %v655_v49 = vadd.f32 -1.4531521, %v623_v32  ;;  %v2380_v26 = vmul.f32 0.70710677, %v2358_v50  ;;  %v782_v24 = vadd.f32 -0.28449672, %v750_v25 }
  0x7b   : > { %v1067_v34 = vsub.f32 1.0, %v1035_v44  ;;  %v656_v29 = vadd.f32 -1.4531521, %v624_v59  ;;  %v1641_v9 = vunpack.c.h.bf16 %v2361_v42  ;;  %v813_v58 = vmul.f32 %v2336_v21, %v781_v20 }
  0x7c   : > { %v1068_v56 = vsub.f32 1.0, %v1036_v41  ;;  %v687_v37 = vmul.f32 %v2363_v47, %v655_v49  ;;  %v2386_v57 = vmul.f32 0.70710677, %v2374_v33  ;;  %v814_v38 = vmul.f32 %v2340_v48, %v782_v24 }
  0x7d   : > { %v1131_v30 = vsub.f32 0.0, %v1067_v34  ;;  %vm1101_vm12 = vcmp.lt.f32.partialorder %v2283_v46, 0.0  ;;  %v688_v14 = vmul.f32 %v2367_v17, %v656_v29  ;;  %v465_v31 = vand.u32 2147483647, %v2380_v26  ;;  %v2422_v46 = vld [vmem:[%s2012_s25] ss:$0 sm:$0xff] }
  0x7e   : > { %v1132_v2 = vsub.f32 0.0, %v1068_v56  ;;  %v845_v4 = vadd.f32 0.2548296, %v813_v58  ;;  %vm1102_vm13 = vcmp.lt.f32.partialorder %v2288_v28, 0.0  ;;  %v719_v5 = vadd.f32 1.4214138, %v687_v37  ;;  %v1861_v13 = vpop.eup %1860 }
  0x7f   : > { %v332_v6 = vmul.f32 %v1640_v10, %v2016_v1  ;;  %v1163_v8 = vsel %vm1099_vm10, %v1131_v30, %v1067_v34  ;;  %v846_v62 = vadd.f32 0.2548296, %v814_v38  ;;  %v720_v45 = vadd.f32 1.4214138, %v688_v14  ;;  %v2414_v58 = vld [vmem:[%s1999_s19] ss:$0 sm:$0xff] }
  0x80   : > { %v466_v18 = vand.u32 2147483647, %v2386_v57  ;;  %v1164_v11 = vsel %vm1100_vm11, %v1132_v2, %v1068_v56  ;;  %v1195_v35 = vadd.f32 1.0, %v1163_v8  ;;  %v877_v12 = vmul.f32 %v2336_v21, %v845_v4  ;;  %v1755_v28 = vld [vmem:[%s2006_s22 + $0x50] sm:$0xff]  }
  0x81   : > { %v751_v39 = vmul.f32 %v2363_v47, %v719_v5  ;;  %v1863_v40 = vpop.eup %1862  ;;  %v1196_v16 = vadd.f32 1.0, %v1164_v11  ;;  %v878_v1 = vmul.f32 %v2340_v48, %v846_v62  ;;  %v752_v22 = vmul.f32 %v2367_v17, %v720_v45 }
  0x82   : > { %v497_v61 = vmul.f32 0.3275911, %v465_v31  ;;  %v1227_v63 = vmul.f32 %v1195_v35, %v2320_v51  ;;  %v1037_v42 = vmul.f32 %v1857_v19, %v877_v12  ;;  %v498_v0 = vmul.f32 0.3275911, %v466_v18 }
  0x83   : > { %v783_v23 = vadd.f32 -0.28449672, %v751_v39  ;;  %v1228_v53 = vmul.f32 %v1196_v16, %v2323_v54  ;;  %v1038_v55 = vmul.f32 %v1859_v52, %v878_v1  ;;  %v784_v60 = vadd.f32 -0.28449672, %v752_v22 }
  0x84   : > { %v529_v21 = vadd.f32 1.0, %v497_v61  ;;  %v1069_v32 = vsub.f32 1.0, %v1037_v42  ;;  %v530_v25 = vadd.f32 1.0, %v498_v0  ;;  %v913_v59 = vsub.f32 0.0, %v465_v31 }
  0x85   : > { %v815_v44 = vmul.f32 %v2363_v47, %v783_v23  ;;  %v1694_v48 = vpack.c.bf16 %v1228_v53, %v1227_v63  ;;  %v1070_v10 = vsub.f32 1.0, %v1038_v55  ;;  %v816_v41 = vmul.f32 %v2367_v17, %v784_v60 }
  0x86   : > { %1864 = vrcp.f32 %v529_v21  ;;  %v1133_v51 = vsub.f32 0.0, %v1069_v32  ;;  %v914_v20 = vsub.f32 0.0, %v466_v18  ;;  %v397_v54 = vmul.f32 0.5, %v2276_v27 }
  0x87   : > { %v847_v19 = vadd.f32 0.2548296, %v815_v44  ;;  %1866 = vrcp.f32 %v530_v25  ;;  %1765 = vst [vmem:[%s2217_s28 + $0x28] sm:$0xff] %v1694_v48   ;;  %v1134_v49 = vsub.f32 0.0, %v1070_v10  ;;  %v848_v34 = vadd.f32 0.2548296, %v816_v41 }
  0x88   : > { %v945_v24 = vmul.f32 %v913_v59, %v465_v31  ;;  %v398_v29 = vmul.f32 0.5, %v2279_v15  ;;  %v1165_v52 = vsel %vm1101_vm12, %v1133_v51, %v1069_v32  ;;  %v333_v37 = vmul.f32 %v2414_v58, %v1641_v9 }
  0x89   : > { %v879_v56 = vmul.f32 %v2363_v47, %v847_v19  ;;  %v1166_v30 = vsel %vm1102_vm13, %v1134_v49, %v1070_v10  ;;  %v1197_v27 = vadd.f32 1.0, %v1165_v52  ;;  %v399_v38 = vmul.f32 0.5, %v2296_v43 }
  0x8a   : > { %v880_v14 = vmul.f32 %v2367_v17, %v848_v34  ;;  %v1198_v31 = vadd.f32 1.0, %v1166_v30  ;;  %v946_v2 = vmul.f32 %v914_v20, %v466_v18  ;;  %v2425_v47 = vadd.f32 %v2422_v46, %v332_v6 }
  0x8b   : > { %v1039_v15 = vmul.f32 %v1861_v13, %v879_v56  ;;  %v1229_v4 = vmul.f32 %v1197_v27, %v397_v54  ;;  %v993_v8 = vmul.f32 1.442695, %v945_v24  ;;  %v2428_v9 = vadd.f32 %v2422_v46, %v333_v37  ;;  %v1756_v54 = vld [vmem:[%s2006_s22 + $0x58] sm:$0xff]  }
  0x8c   : > { %v1040_v5 = vmul.f32 %v1863_v40, %v880_v14  ;;  %v1230_v62 = vmul.f32 %v1198_v31, %v398_v29  ;;  %v400_v43 = vmul.f32 0.5, %v2299_v36  ;;  %vm1103_vm14 = vcmp.lt.f32.partialorder %v2311_v3, 0.0 }
  0x8d   : > { %v1071_v45 = vsub.f32 1.0, %v1039_v15  ;;  %vm1104_vm15 = vcmp.lt.f32.partialorder %v2314_v7, 0.0  ;;  %v2435_v6 = vmul.f32 0.70710677, %v2425_v47  ;;  %v2438_v13 = vmul.f32 0.70710677, %v2428_v9 }
  0x8e   : > { %v1072_v17 = vsub.f32 1.0, %v1040_v5  ;;  %v1699_v18 = vpack.c.bf16 %v1230_v62, %v1229_v4  ;;  %v995_v35 = vmul.f32 1.442695, %v946_v2  ;;  %v1644_v12 = vunpack.c.l.bf16 %v1755_v28 }
  0x8f   : > { %v1135_v11 = vsub.f32 0.0, %v1071_v45  ;;  %1868 = vpow2.f32 %v993_v8  ;;  %v467_v40 = vand.u32 2147483647, %v2435_v6  ;;  %v468_v16 = vand.u32 2147483647, %v2438_v13 }
  0x90   : > { %v2440_v39 = vpop.eup %1864  ;;  %v1136_v36 = vsub.f32 0.0, %v1072_v17  ;;  %1766 = vst [vmem:[%s2217_s28 + $0x30] sm:$0xff] %v1699_v18   ;;  %v1645_v63 = vunpack.c.h.bf16 %v1755_v28  ;;  %v334_v42 = vmul.f32 %v2414_v58, %v1644_v12  ;;  %1870 = vpow2.f32 %v995_v35  ;;  %v2489_v12 = vld [vmem:[%s2006_s22 + $0x60] sm:$0xff]  }
  0x91   : > { %v2444_v1 = vpop.eup %1866  ;;  %v1167_v22 = vsel %vm1103_vm14, %v1135_v11, %v1071_v45  ;;  %v625_v61 = vmul.f32 1.0614054, %v2440_v39  ;;  %v499_v55 = vmul.f32 0.3275911, %v467_v40  ;;  %v500_v32 = vmul.f32 0.3275911, %v468_v16 }
  0x92   : > { %v1168_v23 = vsel %vm1104_vm15, %v1136_v36, %v1072_v17  ;;  %v1199_v0 = vadd.f32 1.0, %v1167_v22  ;;  %v626_v53 = vmul.f32 1.0614054, %v2444_v1  ;;  %v915_v44 = vsub.f32 0.0, %v467_v40 }
  0x93   : > { %v1200_v60 = vadd.f32 1.0, %v1168_v23  ;;  %v657_v21 = vadd.f32 -1.4531521, %v625_v61  ;;  %v531_v59 = vadd.f32 1.0, %v499_v55  ;;  %v916_v48 = vsub.f32 0.0, %v468_v16 }
  0x94   : > { %v1231_v25 = vmul.f32 %v1199_v0, %v399_v38  ;;  %v658_v3 = vadd.f32 -1.4531521, %v626_v53  ;;  %v532_v7 = vadd.f32 1.0, %v500_v32  ;;  %v947_v19 = vmul.f32 %v915_v44, %v467_v40 }
  0x95   : > { %v1232_v10 = vmul.f32 %v1200_v60, %v400_v43  ;;  %v689_v41 = vmul.f32 %v2440_v39, %v657_v21  ;;  %1872 = vrcp.f32 %v531_v59  ;;  %v335_v20 = vmul.f32 %v2414_v58, %v1645_v63 }
  0x96   : > { %v690_v51 = vmul.f32 %v2444_v1, %v658_v3  ;;  %1874 = vrcp.f32 %v532_v7  ;;  %v948_v29 = vmul.f32 %v916_v48, %v468_v16  ;;  %v373_v52 = vadd.f32 %v2422_v46, %v334_v42 }
  0x97   : > { %v1704_v49 = vpack.c.bf16 %v1232_v10, %v1231_v25  ;;  %v721_v34 = vadd.f32 1.4214138, %v689_v41  ;;  %v2460_v56 = vadd.f32 %v2422_v46, %v335_v20  ;;  %v1648_v30 = vunpack.c.l.bf16 %v1756_v54 }
  0x98   : > { %v722_v24 = vadd.f32 1.4214138, %v690_v51  ;;  %v997_v14 = vmul.f32 1.442695, %v947_v19  ;;  %v1649_v31 = vunpack.c.h.bf16 %v1756_v54  ;;  %v2465_v2 = vmul.f32 0.70710677, %v373_v52 }
  0x99   : > { %1767 = vst [vmem:[%s2217_s28 + $0x38] sm:$0xff] %v1704_v49   ;;  %v753_v37 = vmul.f32 %v2440_v39, %v721_v34  ;;  %v1869_v27 = vpop.eup %1868  ;;  %v2468_v4 = vmul.f32 0.70710677, %v2460_v56  ;;  %v2471_v5 = vmul.f32 0.5, %v2358_v50  ;;  %v999_v28 = vmul.f32 1.442695, %v948_v29 }
  0x9a   : > { %v754_v38 = vmul.f32 %v2444_v1, %v722_v24  ;;  %v336_v62 = vmul.f32 %v2414_v58, %v1648_v30  ;;  %v2475_v43 = vmul.f32 0.5, %v2374_v33  ;;  %v469_v17 = vand.u32 2147483647, %v2465_v2  ;;  %v1871_v33 = vpop.eup %1870 }
  0x9b   : > { %v785_v15 = vadd.f32 -0.28449672, %v753_v37  ;;  %v2480_v18 = vand.u32 2147483647, %v2468_v4  ;;  %vm1105_vm0 = vcmp.lt.f32.partialorder %v2380_v26, 0.0  ;;  %v2485_v50 = vmul.f32 0.5, %v2425_v47 }
  0x9c   : > { %v786_v8 = vadd.f32 -0.28449672, %v754_v38  ;;  %v337_v35 = vmul.f32 %v2414_v58, %v1649_v31  ;;  %vm1106_vm1 = vcmp.lt.f32.partialorder %v2386_v57, 0.0  ;;  %1876 = vpow2.f32 %v997_v14 }
  0x9d   : > { %v817_v45 = vmul.f32 %v2440_v39, %v785_v15  ;;  %v501_v40 = vmul.f32 0.3275911, %v469_v17  ;;  %v502_v16 = vmul.f32 0.3275911, %v2480_v18  ;;  %v2496_v63 = vmul.f32 0.5, %v2428_v9 }
  0x9e   : > { %v818_v11 = vmul.f32 %v2444_v1, %v786_v8  ;;  %1878 = vpow2.f32 %v999_v28  ;;  %v2499_v47 = vadd.f32 %v2422_v46, %v336_v62  ;;  %v2508_v32 = vadd.f32 %v2422_v46, %v337_v35 }
  0x9f   : > { %v849_v36 = vadd.f32 0.2548296, %v817_v45  ;;  %v2493_v22 = vpop.eup %1872  ;;  %v533_v53 = vadd.f32 1.0, %v501_v40  ;;  %v534_v55 = vadd.f32 1.0, %v502_v16  ;;  %v1652_v9 = vunpack.c.l.bf16 %v2489_v12 }
  0xa0   : > { %v850_v61 = vadd.f32 0.2548296, %v818_v11  ;;  %v2501_v42 = vpop.eup %1874  ;;  %v627_v0 = vmul.f32 1.0614054, %v2493_v22  ;;  %v2511_v3 = vmul.f32 0.5, %v373_v52  ;;  %v917_v48 = vsub.f32 0.0, %v469_v17 }
  0xa1   : > { %v881_v23 = vmul.f32 %v2440_v39, %v849_v36  ;;  %v628_v21 = vmul.f32 1.0614054, %v2501_v42  ;;  %1880 = vrcp.f32 %v533_v53  ;;  %v1653_v7 = vunpack.c.h.bf16 %v2489_v12 }
  0xa2   : > { %v882_v60 = vmul.f32 %v2444_v1, %v850_v61  ;;  %v659_v25 = vadd.f32 -1.4531521, %v627_v0  ;;  %1882 = vrcp.f32 %v534_v55  ;;  %v2515_v1 = vmul.f32 0.70710677, %v2499_v47 }
  0xa3   : > { %v1041_v44 = vmul.f32 %v1869_v27, %v881_v23  ;;  %v660_v39 = vadd.f32 -1.4531521, %v628_v21  ;;  %v2520_v20 = vmul.f32 0.70710677, %v2508_v32  ;;  %v338_v54 = vmul.f32 %v2414_v58, %v1652_v9 }
  0xa4   : > { %v1042_v59 = vmul.f32 %v1871_v33, %v882_v60  ;;  %v691_v41 = vmul.f32 %v2493_v22, %v659_v25  ;;  %v918_v24 = vsub.f32 0.0, %v2480_v18  ;;  %v471_v29 = vand.u32 2147483647, %v2515_v1 }
  0xa5   : > { %v1073_v10 = vsub.f32 1.0, %v1041_v44  ;;  %v692_v19 = vmul.f32 %v2501_v42, %v660_v39  ;;  %v949_v30 = vmul.f32 %v917_v48, %v469_v17  ;;  %v472_v27 = vand.u32 2147483647, %v2520_v20 }
  0xa6   : > { %v1074_v51 = vsub.f32 1.0, %v1042_v59  ;;  %v723_v34 = vadd.f32 1.4214138, %v691_v41  ;;  %v1877_v38 = vpop.eup %1876  ;;  %v503_v15 = vmul.f32 0.3275911, %v471_v29  ;;  %v919_v8 = vsub.f32 0.0, %v471_v29 }
  0xa7   : > { %v1137_v49 = vsub.f32 0.0, %v1073_v10  ;;  %v724_v37 = vadd.f32 1.4214138, %v692_v19  ;;  %v504_v35 = vmul.f32 0.3275911, %v472_v27  ;;  %v920_v36 = vsub.f32 0.0, %v472_v27 }
  0xa8   : > { %v1138_v52 = vsub.f32 0.0, %v1074_v51  ;;  %v755_v31 = vmul.f32 %v2493_v22, %v723_v34  ;;  %v1879_v28 = vpop.eup %1878  ;;  %v535_v33 = vadd.f32 1.0, %v503_v15  ;;  %v950_v16 = vmul.f32 %v918_v24, %v2480_v18 }
  0xa9   : > { %v1169_v14 = vsel %vm1105_vm0, %v1137_v49, %v1073_v10  ;;  %v756_v11 = vmul.f32 %v2501_v42, %v724_v37  ;;  %v536_v61 = vadd.f32 1.0, %v504_v35  ;;  %v951_v53 = vmul.f32 %v919_v8, %v471_v29 }
  0xaa   : > { %v1170_v62 = vsel %vm1106_vm1, %v1138_v52, %v1074_v51  ;;  %v1201_v45 = vadd.f32 1.0, %v1169_v14  ;;  %v787_v17 = vadd.f32 -0.28449672, %v755_v31  ;;  %1884 = vrcp.f32 %v535_v33 }
  0xab   : > { %v1202_v12 = vadd.f32 1.0, %v1170_v62  ;;  %v788_v26 = vadd.f32 -0.28449672, %v756_v11  ;;  %v2534_v23 = vpop.eup %1880  ;;  %vm1107_vm2 = vcmp.lt.f32.partialorder %v2435_v6, 0.0  ;;  %1886 = vrcp.f32 %v536_v61 }
  0xac   : > { %v1233_v40 = vmul.f32 %v1201_v45, %v2471_v5  ;;  %v819_v57 = vmul.f32 %v2493_v22, %v787_v17  ;;  %v2538_v55 = vpop.eup %1882  ;;  %v629_v5 = vmul.f32 1.0614054, %v2534_v23  ;;  %v952_v18 = vmul.f32 %v920_v36, %v472_v27 }
  0xad   : > { %v1234_v0 = vmul.f32 %v1202_v12, %v2475_v43  ;;  %v820_v60 = vmul.f32 %v2501_v42, %v788_v26  ;;  %vm1108_vm3 = vcmp.lt.f32.partialorder %v2438_v13, 0.0  ;;  %v630_v43 = vmul.f32 1.0614054, %v2538_v55 }
  0xae   : > { %v851_v9 = vadd.f32 0.2548296, %v819_v57  ;;  %v1001_v44 = vmul.f32 1.442695, %v949_v30  ;;  %v661_v59 = vadd.f32 -1.4531521, %v629_v5  ;;  %v339_v51 = vmul.f32 %v2414_v58, %v1653_v7 }
  0xaf   : > { %v1709_v21 = vpack.c.bf16 %v1234_v0, %v1233_v40  ;;  %v852_v25 = vadd.f32 0.2548296, %v820_v60  ;;  %v1003_v39 = vmul.f32 1.442695, %v950_v16  ;;  %v662_v10 = vadd.f32 -1.4531521, %v630_v43 }
  0xb0   : > { %v883_v48 = vmul.f32 %v2493_v22, %v851_v9  ;;  %v1005_v41 = vmul.f32 1.442695, %v951_v53  ;;  %v693_v49 = vmul.f32 %v2534_v23, %v661_v59  ;;  %v1007_v34 = vmul.f32 1.442695, %v952_v18 }
  0xb1   : > { %1768 = vst [vmem:[%s2217_s28 + $0x40] sm:$0xff] %v1709_v21   ;;  %v884_v19 = vmul.f32 %v2501_v42, %v852_v25  ;;  %v2551_v24 = vadd.f32 %v2422_v46, %v338_v54  ;;  %v694_v52 = vmul.f32 %v2538_v55, %v662_v10  ;;  %1888 = vpow2.f32 %v1001_v44  ;;  %v1758_v42 = vld [vmem:[%s2006_s22 + $0x68] sm:$0xff]  }
  0xb2   : > { %v1043_v29 = vmul.f32 %v1877_v38, %v883_v48  ;;  %v2555_v37 = vadd.f32 %v2422_v46, %v339_v51  ;;  %v725_v30 = vadd.f32 1.4214138, %v693_v49  ;;  %1890 = vpow2.f32 %v1003_v39 }
  0xb3   : > { %v1044_v22 = vmul.f32 %v1879_v28, %v884_v19  ;;  %v2558_v7 = vmul.f32 0.70710677, %v2551_v24  ;;  %v726_v14 = vadd.f32 1.4214138, %v694_v52  ;;  %1892 = vpow2.f32 %v1005_v41 }
  0xb4   : > { %v1075_v27 = vsub.f32 1.0, %v1043_v29  ;;  %v2562_v54 = vmul.f32 0.70710677, %v2555_v37  ;;  %v757_v31 = vmul.f32 %v2534_v23, %v725_v30  ;;  %1894 = vpow2.f32 %v1007_v34  ;;  %v2566_v8 = vpop.eup %1884 }
  0xb5   : > { %v1076_v38 = vsub.f32 1.0, %v1044_v22  ;;  %v473_v15 = vand.u32 2147483647, %v2558_v7  ;;  %v758_v62 = vmul.f32 %v2538_v55, %v726_v14  ;;  %v1656_v11 = vunpack.c.l.bf16 %v1758_v42  ;;  %v2570_v35 = vpop.eup %1886 }
  0xb6   : > { %v1139_v28 = vsub.f32 0.0, %v1075_v27  ;;  %v474_v45 = vand.u32 2147483647, %v2562_v54  ;;  %v789_v17 = vadd.f32 -0.28449672, %v757_v31  ;;  %v1657_v36 = vunpack.c.h.bf16 %v1758_v42 }
  0xb7   : > { %v1140_v12 = vsub.f32 0.0, %v1076_v38  ;;  %v631_v33 = vmul.f32 1.0614054, %v2566_v8  ;;  %v790_v26 = vadd.f32 -0.28449672, %v758_v62  ;;  %v921_v49 = vsub.f32 0.0, %v473_v15 }
  0xb8   : > { %v1171_v40 = vsel %vm1107_vm2, %v1139_v28, %v1075_v27  ;;  %v632_v16 = vmul.f32 1.0614054, %v2570_v35  ;;  %v505_v61 = vmul.f32 0.3275911, %v473_v15  ;;  %v821_v53 = vmul.f32 %v2534_v23, %v789_v17 }
  0xb9   : > { %v1172_v0 = vsel %vm1108_vm3, %v1140_v12, %v1076_v38  ;;  %v1203_v57 = vadd.f32 1.0, %v1171_v40  ;;  %v663_v60 = vadd.f32 -1.4531521, %v631_v33  ;;  %v822_v18 = vmul.f32 %v2538_v55, %v790_v26 }
  0xba   : > { %v1204_v5 = vadd.f32 1.0, %v1172_v0  ;;  %v664_v21 = vadd.f32 -1.4531521, %v632_v16  ;;  %v506_v9 = vmul.f32 0.3275911, %v474_v45  ;;  %v537_v25 = vadd.f32 1.0, %v505_v61 }
  0xbb   : > { %v1235_v43 = vmul.f32 %v1203_v57, %v2485_v50  ;;  %v853_v6 = vadd.f32 0.2548296, %v821_v53  ;;  %v695_v44 = vmul.f32 %v2566_v8, %v663_v60  ;;  %v1889_v59 = vpop.eup %1888  ;;  %v854_v13 = vadd.f32 0.2548296, %v822_v18 }
  0xbc   : > { %v1236_v39 = vmul.f32 %v1204_v5, %v2496_v63  ;;  %v696_v48 = vmul.f32 %v2570_v35, %v664_v21  ;;  %v538_v10 = vadd.f32 1.0, %v506_v9  ;;  %v1891_v41 = vpop.eup %1890  ;;  %1896 = vrcp.f32 %v537_v25 }
  0xbd   : > { %v885_v51 = vmul.f32 %v2534_v23, %v853_v6  ;;  %v727_v19 = vadd.f32 1.4214138, %v695_v44  ;;  %v1893_v34 = vpop.eup %1892  ;;  %v886_v29 = vmul.f32 %v2538_v55, %v854_v13  ;;  %v406_v63 = vmul.f32 0.5, %v2460_v56 }
  0xbe   : > { %v1714_v50 = vpack.c.bf16 %v1236_v39, %v1235_v43  ;;  %v728_v52 = vadd.f32 1.4214138, %v696_v48  ;;  %1898 = vrcp.f32 %v538_v10  ;;  %v1895_v22 = vpop.eup %1894  ;;  %v922_v27 = vsub.f32 0.0, %v474_v45 }
  0xbf   : > { %v1045_v30 = vmul.f32 %v1889_v59, %v885_v51  ;;  %v759_v42 = vmul.f32 %v2566_v8, %v727_v19  ;;  %v1046_v14 = vmul.f32 %v1891_v41, %v886_v29  ;;  %v340_v38 = vmul.f32 %v2414_v58, %v1656_v11  ;;  %v1759_v19 = vld [vmem:[%s2006_s22 + $0x70] sm:$0xff]  }
  0xc0   : > { %1769 = vst [vmem:[%s2217_s28 + $0x48] sm:$0xff] %v1714_v50   ;;  %v760_v23 = vmul.f32 %v2570_v35, %v728_v52  ;;  %v341_v31 = vmul.f32 %v2414_v58, %v1657_v36  ;;  %vm1109_vm4 = vcmp.lt.f32.partialorder %v2465_v2, 0.0  ;;  %v953_v62 = vmul.f32 %v921_v49, %v473_v15 }
  0xc1   : > { %v1077_v28 = vsub.f32 1.0, %v1045_v30  ;;  %v791_v55 = vadd.f32 -0.28449672, %v759_v42  ;;  %v1078_v12 = vsub.f32 1.0, %v1046_v14  ;;  %vm1110_vm5 = vcmp.lt.f32.partialorder %v2468_v4, 0.0 }
  0xc2   : > { %v792_v56 = vadd.f32 -0.28449672, %v760_v23  ;;  %v2595_v17 = vadd.f32 %v2422_v46, %v340_v38  ;;  %v954_v26 = vmul.f32 %v922_v27, %v474_v45  ;;  %v2599_v11 = vadd.f32 %v2422_v46, %v341_v31 }
  0xc3   : > { %v1141_v33 = vsub.f32 0.0, %v1077_v28  ;;  %v823_v40 = vmul.f32 %v2566_v8, %v791_v55  ;;  %v1142_v36 = vsub.f32 0.0, %v1078_v12  ;;  %v407_v16 = vmul.f32 0.5, %v2499_v47 }
  0xc4   : > { %v824_v2 = vmul.f32 %v2570_v35, %v792_v56  ;;  %vm1111_vm6 = vcmp.lt.f32.partialorder %v2515_v1, 0.0  ;;  %vm1112_vm7 = vcmp.lt.f32.partialorder %v2520_v20, 0.0  ;;  %v1009_v0 = vmul.f32 1.442695, %v953_v62 }
  0xc5   : > { %v1173_v15 = vsel %vm1109_vm4, %v1141_v33, %v1077_v28  ;;  %v855_v61 = vadd.f32 0.2548296, %v823_v40  ;;  %v2606_v57 = vmul.f32 0.70710677, %v2595_v17  ;;  %v1174_v45 = vsel %vm1110_vm5, %v1142_v36, %v1078_v12 }
  0xc6   : > { %v1205_v53 = vadd.f32 1.0, %v1173_v15  ;;  %v856_v60 = vadd.f32 0.2548296, %v824_v2  ;;  %v2611_v5 = vmul.f32 0.70710677, %v2599_v11  ;;  %v2613_v47 = vpop.eup %1896  ;;  %v1206_v18 = vadd.f32 1.0, %v1174_v45 }
  0xc7   : > { %v887_v21 = vmul.f32 %v2566_v8, %v855_v61  ;;  %v1011_v9 = vmul.f32 1.442695, %v954_v26  ;;  %v475_v43 = vand.u32 2147483647, %v2606_v57  ;;  %v633_v25 = vmul.f32 1.0614054, %v2613_v47 }
  0xc8   : > { %v2617_v6 = vpop.eup %1898  ;;  %v1237_v44 = vmul.f32 %v1205_v53, %v2511_v3  ;;  %v888_v4 = vmul.f32 %v2570_v35, %v856_v60  ;;  %v476_v59 = vand.u32 2147483647, %v2611_v5  ;;  %v1238_v39 = vmul.f32 %v1206_v18, %v406_v63  ;;  %v1760_v60 = vld [vmem:[%s2006_s22 + $0x78] sm:$0xff]  }
  0xc9   : > { %v1047_v13 = vmul.f32 %v1893_v34, %v887_v21  ;;  %v634_v48 = vmul.f32 1.0614054, %v2617_v6  ;;  %v507_v8 = vmul.f32 0.3275911, %v475_v43  ;;  %v665_v41 = vadd.f32 -1.4531521, %v633_v25 }
  0xca   : > { %v1048_v10 = vmul.f32 %v1895_v22, %v888_v4  ;;  %1900 = vpow2.f32 %v1009_v0  ;;  %v508_v51 = vmul.f32 0.3275911, %v476_v59  ;;  %v1719_v49 = vpack.c.bf16 %v1238_v39, %v1237_v44 }
  0xcb   : > { %v1079_v50 = vsub.f32 1.0, %v1047_v13  ;;  %v666_v3 = vadd.f32 -1.4531521, %v634_v48  ;;  %v539_v29 = vadd.f32 1.0, %v507_v8  ;;  %v697_v52 = vmul.f32 %v2613_v47, %v665_v41 }
  0xcc   : > { %v1080_v35 = vsub.f32 1.0, %v1048_v10  ;;  %1902 = vpow2.f32 %v1011_v9  ;;  %v540_v30 = vadd.f32 1.0, %v508_v51  ;;  %1770 = vst [vmem:[%s2217_s28 + $0x50] sm:$0xff] %v1719_v49   ;;  %v1660_v42 = vunpack.c.l.bf16 %v1759_v19 }
  0xcd   : > { %v1143_v34 = vsub.f32 0.0, %v1079_v50  ;;  %v698_v63 = vmul.f32 %v2617_v6, %v666_v3  ;;  %1904 = vrcp.f32 %v539_v29  ;;  %v729_v27 = vadd.f32 1.4214138, %v697_v52 }
  0xce   : > { %v1144_v22 = vsub.f32 0.0, %v1080_v35  ;;  %1906 = vrcp.f32 %v540_v30  ;;  %v923_v14 = vsub.f32 0.0, %v475_v43  ;;  %v408_v23 = vmul.f32 0.5, %v2508_v32 }
  0xcf   : > { %v1175_v38 = vsel %vm1111_vm6, %v1143_v34, %v1079_v50  ;;  %v730_v31 = vadd.f32 1.4214138, %v698_v63  ;;  %v761_v62 = vmul.f32 %v2613_v47, %v729_v27  ;;  %v924_v33 = vsub.f32 0.0, %v476_v59 }
  0xd0   : > { %v1176_v28 = vsel %vm1112_vm7, %v1144_v22, %v1080_v35  ;;  %v1207_v55 = vadd.f32 1.0, %v1175_v38  ;;  %v1661_v40 = vunpack.c.h.bf16 %v1759_v19  ;;  %v955_v2 = vmul.f32 %v923_v14, %v475_v43 }
  0xd1   : > { %v1208_v12 = vadd.f32 1.0, %v1176_v28  ;;  %v762_v56 = vmul.f32 %v2617_v6, %v730_v31  ;;  %v793_v36 = vadd.f32 -0.28449672, %v761_v62  ;;  %v342_v32 = vmul.f32 %v2414_v58, %v1660_v42 }
  0xd2   : > { %v1239_v26 = vmul.f32 %v1207_v55, %v407_v16  ;;  %v343_v20 = vmul.f32 %v2414_v58, %v1661_v40  ;;  %v409_v0 = vmul.f32 0.5, %v2551_v24  ;;  %v956_v21 = vmul.f32 %v924_v33, %v476_v59 }
  0xd3   : > { %v1240_v1 = vmul.f32 %v1208_v12, %v408_v23  ;;  %v794_v15 = vadd.f32 -0.28449672, %v762_v56  ;;  %v825_v45 = vmul.f32 %v2613_v47, %v793_v36  ;;  %v2640_v53 = vadd.f32 %v2422_v46, %v342_v32 }
  0xd4   : > { %v1901_v61 = vpop.eup %1900  ;;  %v2645_v9 = vadd.f32 %v2422_v46, %v343_v20  ;;  %v1013_v4 = vmul.f32 1.442695, %v955_v2  ;;  %vm1113_vm8 = vcmp.lt.f32.partialorder %v2558_v7, 0.0  ;;  %v1664_v48 = vunpack.c.l.bf16 %v1760_v60 }
  0xd5   : > { %v1724_v18 = vpack.c.bf16 %v1240_v1, %v1239_v26  ;;  %v826_v16 = vmul.f32 %v2617_v6, %v794_v15  ;;  %v857_v44 = vadd.f32 0.2548296, %v825_v45  ;;  %v2648_v25 = vmul.f32 0.70710677, %v2640_v53 }
  0xd6   : > { %v1903_v43 = vpop.eup %1902  ;;  %v2655_v13 = vmul.f32 0.70710677, %v2645_v9  ;;  %v1665_v51 = vunpack.c.h.bf16 %v1760_v60  ;;  %v1015_v50 = vmul.f32 1.442695, %v956_v21  ;;  %1908 = vpow2.f32 %v1013_v4 }
  0xd7   : > { %v2650_v24 = vpop.eup %1904  ;;  %1771 = vst [vmem:[%s2217_s28 + $0x58] sm:$0xff] %v1724_v18   ;;  %v858_v39 = vadd.f32 0.2548296, %v826_v16  ;;  %v889_v8 = vmul.f32 %v2613_v47, %v857_v44  ;;  %v477_v41 = vand.u32 2147483647, %v2648_v25  ;;  %v344_v47 = vmul.f32 %v2414_v58, %v1664_v48 }
  0xd8   : > { %v2657_v59 = vpop.eup %1906  ;;  %v635_v10 = vmul.f32 1.0614054, %v2650_v24  ;;  %v478_v3 = vand.u32 2147483647, %v2655_v13  ;;  %1910 = vpow2.f32 %v1015_v50  ;;  %vm1114_vm9 = vcmp.lt.f32.partialorder %v2562_v54, 0.0 }
  0xd9   : > { %v890_v19 = vmul.f32 %v2617_v6, %v858_v39  ;;  %v636_v49 = vmul.f32 1.0614054, %v2657_v59  ;;  %v1049_v29 = vmul.f32 %v1901_v61, %v889_v8  ;;  %v509_v52 = vmul.f32 0.3275911, %v477_v41 }
  0xda   : > { %v667_v35 = vadd.f32 -1.4531521, %v635_v10  ;;  %v510_v63 = vmul.f32 0.3275911, %v478_v3  ;;  %v345_v6 = vmul.f32 %v2414_v58, %v1665_v51  ;;  %v2671_v12 = vadd.f32 %v2422_v46, %v344_v47 }
  0xdb   : > { %v1050_v30 = vmul.f32 %v1903_v43, %v890_v19  ;;  %v668_v34 = vadd.f32 -1.4531521, %v636_v49  ;;  %v1081_v42 = vsub.f32 1.0, %v1049_v29  ;;  %v541_v27 = vadd.f32 1.0, %v509_v52 }
  0xdc   : > { %v699_v22 = vmul.f32 %v2650_v24, %v667_v35  ;;  %v542_v38 = vadd.f32 1.0, %v510_v63  ;;  %v410_v56 = vmul.f32 0.5, %v2555_v37  ;;  %v2678_v40 = vadd.f32 %v2422_v46, %v345_v6 }
  0xdd   : > { %v1082_v14 = vsub.f32 1.0, %v1050_v30  ;;  %v700_v23 = vmul.f32 %v2657_v59, %v668_v34  ;;  %v1145_v31 = vsub.f32 0.0, %v1081_v42  ;;  %1912 = vrcp.f32 %v541_v27 }
  0xde   : > { %v731_v28 = vadd.f32 1.4214138, %v699_v22  ;;  %1914 = vrcp.f32 %v542_v38  ;;  %v925_v1 = vsub.f32 0.0, %v477_v41  ;;  %v926_v15 = vsub.f32 0.0, %v478_v3 }
  0xdf   : > { %v1146_v55 = vsub.f32 0.0, %v1082_v14  ;;  %v732_v62 = vadd.f32 1.4214138, %v700_v23  ;;  %v1177_v58 = vsel %vm1113_vm8, %v1145_v31, %v1081_v42  ;;  %v2682_v37 = vmul.f32 0.70710677, %v2671_v12 }
  0xe0   : > { %v763_v33 = vmul.f32 %v2650_v24, %v731_v28  ;;  %v1209_v26 = vadd.f32 1.0, %v1177_v58  ;;  %v2685_v7 = vmul.f32 0.70710677, %v2678_v40  ;;  %v1909_v45 = vpop.eup %1908  ;;  %v957_v44 = vmul.f32 %v925_v1, %v477_v41 }
  0xe1   : > { %v1178_v54 = vsel %vm1114_vm9, %v1146_v55, %v1082_v14  ;;  %v764_v36 = vmul.f32 %v2657_v59, %v732_v62  ;;  %v479_v16 = vand.u32 2147483647, %v2682_v37  ;;  %v958_v48 = vmul.f32 %v926_v15, %v478_v3 }
  0xe2   : > { %v1210_v2 = vadd.f32 1.0, %v1178_v54  ;;  %v795_v32 = vadd.f32 -0.28449672, %v763_v33  ;;  %v1241_v20 = vmul.f32 %v1209_v26, %v409_v0  ;;  %v480_v21 = vand.u32 2147483647, %v2685_v7  ;;  %v1911_v4 = vpop.eup %1910 }
  0xe3   : > { %v796_v61 = vadd.f32 -0.28449672, %v764_v36  ;;  %v511_v8 = vmul.f32 0.3275911, %v479_v16  ;;  %v1017_v63 = vmul.f32 1.442695, %v957_v44 }
  0xe4   : > { %v1242_v46 = vmul.f32 %v1210_v2, %v410_v56  ;;  %v827_v60 = vmul.f32 %v2650_v24, %v795_v32  ;;  %v512_v10 = vmul.f32 0.3275911, %v480_v21  ;;  %v1019_v42 = vmul.f32 1.442695, %v958_v48 }
  0xe5   : > { %v828_v18 = vmul.f32 %v2657_v59, %v796_v61  ;;  %v543_v35 = vadd.f32 1.0, %v511_v8  ;;  %v411_v27 = vmul.f32 0.5, %v2595_v17  ;;  %vm1115_vm10 = vcmp.lt.f32.partialorder %v2606_v57, 0.0 }
  0xe6   : > { %v1729_v43 = vpack.c.bf16 %v1242_v46, %v1241_v20  ;;  %v859_v0 = vadd.f32 0.2548296, %v827_v60  ;;  %v544_v52 = vadd.f32 1.0, %v512_v10  ;;  %vm1116_vm11 = vcmp.lt.f32.partialorder %v2611_v5, 0.0 }
  0xe7   : > { %v860_v39 = vadd.f32 0.2548296, %v828_v18  ;;  %v1913_v51 = vpop.eup %1912  ;;  %1916 = vrcp.f32 %v543_v35  ;;  %v927_v31 = vsub.f32 0.0, %v479_v16  ;;  %v412_v28 = vmul.f32 0.5, %v2599_v11 }
  0xe8   : > { %1772 = vst [vmem:[%s2217_s28 + $0x60] sm:$0xff] %v1729_v43   ;;  %v891_v19 = vmul.f32 %v2650_v24, %v859_v0  ;;  %v1915_v49 = vpop.eup %1914  ;;  %v637_v29 = vmul.f32 1.0614054, %v1913_v51  ;;  %1918 = vrcp.f32 %v544_v52  ;;  %v928_v56 = vsub.f32 0.0, %v480_v21 }
  0xe9   : > { %v892_v50 = vmul.f32 %v2657_v59, %v860_v39  ;;  %v638_v34 = vmul.f32 1.0614054, %v1915_v49  ;;  %1920 = vpow2.f32 %v1017_v63  ;;  %v959_v36 = vmul.f32 %v927_v31, %v479_v16 }
  0xea   : > { %v1051_v30 = vmul.f32 %v1909_v45, %v891_v19  ;;  %v669_v41 = vadd.f32 -1.4531521, %v637_v29  ;;  %1922 = vpow2.f32 %v1019_v42  ;;  %v960_v1 = vmul.f32 %v928_v56, %v480_v21 }
  0xeb   : > { %v1052_v47 = vmul.f32 %v1911_v4, %v892_v50  ;;  %v670_v22 = vadd.f32 -1.4531521, %v638_v34  ;;  %v1021_v43 = vmul.f32 1.442695, %v959_v36  ;;  %vm1117_vm12 = vcmp.lt.f32.partialorder %v2648_v25, 0.0 }
  0xec   : > { %v1083_v3 = vsub.f32 1.0, %v1051_v30  ;;  %v701_v24 = vmul.f32 %v1913_v51, %v669_v41  ;;  %v1023_v39 = vmul.f32 1.442695, %v960_v1  ;;  %vm1118_vm13 = vcmp.lt.f32.partialorder %v2655_v13, 0.0 }
  0xed   : > { %v1084_v6 = vsub.f32 1.0, %v1052_v47  ;;  %v702_v14 = vmul.f32 %v1915_v49, %v670_v22  ;;  %1924 = vpow2.f32 %v1021_v43  ;;  %vm1119_vm14 = vcmp.lt.f32.partialorder %v2682_v37, 0.0 }
  0xee   : > { %v1147_v59 = vsub.f32 0.0, %v1083_v3  ;;  %v733_v38 = vadd.f32 1.4214138, %v701_v24  ;;  %1926 = vpow2.f32 %v1023_v39  ;;  %vm1120_vm15 = vcmp.lt.f32.partialorder %v2685_v7, 0.0 }
  0xef   : > { %v1148_v23 = vsub.f32 0.0, %v1084_v6  ;;  %v734_v62 = vadd.f32 1.4214138, %v702_v14 }
  0xf0   : > { %v1179_v55 = vsel %vm1115_vm10, %v1147_v59, %v1083_v3  ;;  %v765_v33 = vmul.f32 %v1913_v51, %v733_v38  ;;  %v414_v3 = vmul.f32 0.5, %v2645_v9 }
  0xf1   : > { %v1180_v58 = vsel %vm1116_vm11, %v1148_v23, %v1084_v6  ;;  %v1211_v17 = vadd.f32 1.0, %v1179_v55  ;;  %v766_v57 = vmul.f32 %v1915_v49, %v734_v62  ;;  %v1917_v15 = vpop.eup %1916 }
  0xf2   : > { %v1212_v54 = vadd.f32 1.0, %v1180_v58  ;;  %v797_v5 = vadd.f32 -0.28449672, %v765_v33  ;;  %v1919_v61 = vpop.eup %1918  ;;  %v639_v46 = vmul.f32 1.0614054, %v1917_v15 }
  0xf3   : > { %v1243_v26 = vmul.f32 %v1211_v17, %v411_v27  ;;  %v798_v32 = vadd.f32 -0.28449672, %v766_v57  ;;  %v640_v18 = vmul.f32 1.0614054, %v1919_v61  ;;  %v1921_v0 = vpop.eup %1920  ;;  %v415_v57 = vmul.f32 0.5, %v2671_v12 }
  0xf4   : > { %v1244_v2 = vmul.f32 %v1212_v54, %v412_v28  ;;  %v829_v20 = vmul.f32 %v1913_v51, %v797_v5  ;;  %v671_v4 = vadd.f32 -1.4531521, %v639_v46  ;;  %v1923_v48 = vpop.eup %1922  ;;  %v416_v5 = vmul.f32 0.5, %v2678_v40 }
  0xf5   : > { %v830_v11 = vmul.f32 %v1915_v49, %v798_v32  ;;  %v672_v16 = vadd.f32 -1.4531521, %v640_v18 }
  0xf6   : > { %v1734_v45 = vpack.c.bf16 %v1244_v2, %v1243_v26  ;;  %v861_v60 = vadd.f32 0.2548296, %v829_v20  ;;  %v703_v19 = vmul.f32 %v1917_v15, %v671_v4 }
  0xf7   : > { %v862_v44 = vadd.f32 0.2548296, %v830_v11  ;;  %v704_v50 = vmul.f32 %v1919_v61, %v672_v16  ;;  %v1925_v31 = vpop.eup %1924 }
  0xf8   : > { %1773 = vst [vmem:[%s2217_s28 + $0x68] sm:$0xff] %v1734_v45   ;;  %v893_v8 = vmul.f32 %v1913_v51, %v861_v60  ;;  %v735_v35 = vadd.f32 1.4214138, %v703_v19  ;;  %v413_v51 = vmul.f32 0.5, %v2640_v53  ;;  %v1927_v55 = vpop.eup %1926 }
  0xf9   : > { %v894_v10 = vmul.f32 %v1915_v49, %v862_v44  ;;  %v736_v30 = vadd.f32 1.4214138, %v704_v50 }
  0xfa   : > { %v1053_v21 = vmul.f32 %v1921_v0, %v893_v8  ;;  %v767_v63 = vmul.f32 %v1917_v15, %v735_v35 }
  0xfb   : > { %v1054_v29 = vmul.f32 %v1923_v48, %v894_v10  ;;  %v768_v41 = vmul.f32 %v1919_v61, %v736_v30 }
  0xfc   : > { %v1085_v52 = vsub.f32 1.0, %v1053_v21  ;;  %v799_v42 = vadd.f32 -0.28449672, %v767_v63 }
  0xfd   : > { %v1086_v34 = vsub.f32 1.0, %v1054_v29  ;;  %v800_v27 = vadd.f32 -0.28449672, %v768_v41 }
  0xfe   : > { %v1149_v47 = vsub.f32 0.0, %v1085_v52  ;;  %v831_v59 = vmul.f32 %v1917_v15, %v799_v42 }
  0xff   : > { %v1150_v49 = vsub.f32 0.0, %v1086_v34  ;;  %v832_v23 = vmul.f32 %v1919_v61, %v800_v27 }
 0x100   : > { %v1181_v22 = vsel %vm1117_vm12, %v1149_v47, %v1085_v52  ;;  %v863_v38 = vadd.f32 0.2548296, %v831_v59 }
 0x101   : > { %v1182_v6 = vsel %vm1118_vm13, %v1150_v49, %v1086_v34  ;;  %v1213_v24 = vadd.f32 1.0, %v1181_v22  ;;  %v864_v28 = vadd.f32 0.2548296, %v832_v23 }
 0x102   : > { %v1214_v14 = vadd.f32 1.0, %v1182_v6  ;;  %v895_v62 = vmul.f32 %v1917_v15, %v863_v38 }
 0x103   : > { %v1245_v25 = vmul.f32 %v1213_v24, %v413_v51  ;;  %v896_v56 = vmul.f32 %v1919_v61, %v864_v28 }
 0x104   : > { %v1246_v13 = vmul.f32 %v1214_v14, %v414_v3  ;;  %v1055_v58 = vmul.f32 %v1925_v31, %v895_v62 }
 0x105   : > { %v1056_v9 = vmul.f32 %v1927_v55, %v896_v56 }
 0x106   : > { %v1739_v53 = vpack.c.bf16 %v1246_v13, %v1245_v25  ;;  %v1087_v17 = vsub.f32 1.0, %v1055_v58 }
 0x107   : > { %v1088_v33 = vsub.f32 1.0, %v1056_v9 }
 0x108   : > { %1774 = vst [vmem:[%s2217_s28 + $0x70] sm:$0xff] %v1739_v53   ;;  %v1151_v54 = vsub.f32 0.0, %v1087_v17 }
 0x109   : > { %v1152_v26 = vsub.f32 0.0, %v1088_v33 }
 0x10a   : > { %v1183_v36 = vsel %vm1119_vm14, %v1151_v54, %v1087_v17 }
 0x10b   : > { %v1184_v2 = vsel %vm1120_vm15, %v1152_v26, %v1088_v33  ;;  %v1215_v32 = vadd.f32 1.0, %v1183_v36 }
 0x10c   : > { %v1216_v1 = vadd.f32 1.0, %v1184_v2 }
 0x10d   : > { %v1247_v15 = vmul.f32 %v1215_v32, %v415_v57 }
 0x10e   : > { %v1248_v20 = vmul.f32 %v1216_v1, %v416_v5 }
 0x110   : > { %v1744_v61 = vpack.c.bf16 %v1248_v20, %v1247_v15 }
 0x112   : > { %1775 = vst [vmem:[%s2217_s28 + $0x78] sm:$0xff] %v1744_v61  }
 0x113 PF: > { %s13_s14 = sadd.s32 1, %s1952_s14   ;;  %s2722_s12 = smov %s1948_s13 }
 0x114   : > { %p10_p5 = scmp.ge.s32.totalorder %s13_s14, 4   ;;  %s2723_s13 = smov %s2725_s15 }
 0x116   :  { %12 = sbr.rel (!%p10_p5) target bundleno = 2 (0x2), region = 68 }

// kernel: upstep_forward.12
= control target key start
LH: loop header
LB: loop body
LE: loop exit
PB: predicated region body
PF: predicated region fallthrough
CT: control target
= control target key end

     0   :  { %s3596_s15 = smov 0   ;;  %s3598_s16 = smov 0   ;;  %s4799_s0 = inlined_call_operand.vmem [shape: bf16[2,576,128], index: 0, kind: input, shape index: {}]   ;;  %s4800_s1 = inlined_call_operand.vmem [shape: bf16[384,384], index: 1, kind: input, shape index: {}]   ;;  %s4801_s2 = inlined_call_operand.vmem [shape: f32[1,128], index: 2, kind: input, shape index: {}]   ;;  %s4802_s3 = inlined_call_operand.vmem [shape: bf16[2,16,16,128], index: 3, kind: output, shape index: {0}]   ;;  %s4803_s4 = inlined_call_operand.vmem [shape: f32[2,8,128], index: 4, kind: output, shape index: {1}]  }
   0x1   :  { %s3600_s17 = smov 0  }
   0x2 LB: > { %s27_s18 = sadd.s32 1, %s3563_s16  ;;  %p2857_p0 = scmp.ge.s32.totalorder %s3567_s17, 1  ;;  %s3567_s17 = sphi %s3600_s17, %s15_s17   ;;  %s3563_s16 = sphi %s3598_s16, %s4860_s16   ;;  %s3559_s15 = sphi %s3596_s15, %s4859_s15  }
   0x3   : > { %p29_p1 = scmp.ge.s32.totalorder %s27_s18, 2  ;;  %p188_p2 = scmp.lt.s32.totalorder %s3567_s17, 3 }
   0x5   : > { %s4862_s18 = smov (%p29_p1, %s27_s18), 0  ;;  %p189_p3 = pnand %p2857_p0, %p188_p2 }
   0x7   : > { %192 = sbr.rel (%p189_p3) target bundleno = 755 (0x2f3), region = 32 }
   0xe   : > { %v3409_v0 = vld [vmem:[%s4800_s1 + $0x4] ss:$12 sps:$4 sm:$0xff]   ;;  %v4804_v2 = vmov 0   ;;  %v3413_v3 = vld [vmem:[%s4800_s1] ss:$12 sps:$4 sm:$0xff]   ;;  %p231_p4 = scmp.lt.s32.totalorder %s3559_s15, 1 }
   0xf   : > { %v3622_v1 = vld [vmem:[%s4800_s1 + $0x184] ss:$12 sps:$4 sm:$0xff]   ;;  %1551 = vmatprep.mubr.bf16.mxu1 %v4804_v2  ;;  %1027 = vmatprep.subr.bf16.mxu0 %v3409_v0  ;;  %v3631_v4 = vld [vmem:[%s4800_s1 + $0x180] ss:$12 sps:$4 sm:$0xff]   ;;  %v3415_v5 = vld [vmem:[%s4800_s1 + $0x1c] ss:$12 sps:$4 sm:$0xff]  }
  0x10   : > { %3253 = vmatprep.subr.bf16.mxu1 %v3622_v1  ;;  %1028 = vmatpush1.bf16.msra.mxu0 %v3413_v3  ;;  %v3641_v6 = vld [vmem:[%s4800_s1 + $0x19c] ss:$12 sps:$4 sm:$0xff]   ;;  %v3419_v7 = vld [vmem:[%s4800_s1 + $0x18] ss:$12 sps:$4 sm:$0xff]   ;;  %v3421_v9 = vld [vmem:[%s4800_s1 + $0x34] ss:$12 sps:$4 sm:$0xff]  }
  0x11   : > { %3261 = vmatpush1.bf16.msra.mxu1 %v3631_v4  ;;  %1029 = vmatprep.subr.bf16.mxu0 %v3415_v5  ;;  %v3649_v8 = vld [vmem:[%s4800_s1 + $0x198] ss:$12 sps:$4 sm:$0xff]   ;;  %v3658_v10 = vld [vmem:[%s4800_s1 + $0x1b4] ss:$12 sps:$4 sm:$0xff]   ;;  %v3425_v11 = vld [vmem:[%s4800_s1 + $0x30] ss:$12 sps:$4 sm:$0xff]  }
  0x12   : > { %3254 = vmatprep.subr.bf16.mxu1 %v3641_v6  ;;  %v3666_v12 = vld [vmem:[%s4800_s1 + $0x1b0] ss:$12 sps:$4 sm:$0xff]   ;;  %v3427_v13 = vld [vmem:[%s4800_s1 + $0x4c] ss:$12 sps:$4 sm:$0xff]   ;;  %v3431_v15 = vld [vmem:[%s4800_s1 + $0x48] ss:$12 sps:$4 sm:$0xff]  }
  0x13   : > { %v3676_v14 = vld [vmem:[%s4800_s1 + $0x1cc] ss:$12 sps:$4 sm:$0xff]   ;;  %v3686_v16 = vld [vmem:[%s4800_s1 + $0x1c8] ss:$12 sps:$4 sm:$0xff]   ;;  %v3433_v17 = vld [vmem:[%s4800_s1 + $0x64] ss:$12 sps:$4 sm:$0xff]  }
  0x14   : > { %1030 = vmatpush1.bf16.msra.mxu0 %v3419_v7  ;;  %v3695_v18 = vld [vmem:[%s4800_s1 + $0x1e4] ss:$12 sps:$4 sm:$0xff]   ;;  %s4864_s15 = smov (!%p231_p4, %s3559_s15), 1  ;;  %v3437_v19 = vld [vmem:[%s4800_s1 + $0x60] ss:$12 sps:$4 sm:$0xff]  }
  0x15   : > { %3262 = vmatpush1.bf16.msra.mxu1 %v3649_v8  ;;  %1031 = vmatprep.subr.bf16.mxu0 %v3421_v9  ;;  %v3706_v20 = vld [vmem:[%s4800_s1 + $0x1e0] ss:$12 sps:$4 sm:$0xff]   ;;  %v3439_v21 = vld [vmem:[%s4800_s1 + $0x7c] ss:$12 sps:$4 sm:$0xff]   ;;  %s3382_s19 = smul.u32 288, %s4864_s15  ;;  %s3005_s14 = sshll.u32 %s4864_s15, 7 }
  0x16   : > { %3255 = vmatprep.subr.bf16.mxu1 %v3658_v10  ;;  %v3716_v22 = vld [vmem:[%s4800_s1 + $0x1fc] ss:$12 sps:$4 sm:$0xff]   ;;  %v3443_v23 = vld [vmem:[%s4800_s1 + $0x78] ss:$12 sps:$4 sm:$0xff]   ;;  %v3445_v25 = vld [vmem:[%s4800_s1 + $0x94] ss:$12 sps:$4 sm:$0xff]   ;;  %s4519_s21 = scalar_lea.vmem %s4802_s3, %s3005_s14 }
  0x17   : > { %v3726_v24 = vld [vmem:[%s4800_s1 + $0x1f8] ss:$12 sps:$4 sm:$0xff]   ;;  %v3735_v26 = vld [vmem:[%s4800_s1 + $0x214] ss:$12 sps:$4 sm:$0xff]   ;;  %s3740_s30 = scalar_lea.vmem %s4799_s0, %s3382_s19  ;;  %v3449_v27 = vld [vmem:[%s4800_s1 + $0x90] ss:$12 sps:$4 sm:$0xff]  }
  0x18   : > { %1032 = vmatpush1.bf16.msra.mxu0 %v3425_v11  ;;  %v3749_v28 = vld [vmem:[%s4800_s1 + $0x210] ss:$12 sps:$4 sm:$0xff]   ;;  %v3451_v29 = vld [vmem:[%s4800_s1 + $0xac] ss:$12 sps:$4 sm:$0xff]   ;;  %v3455_v31 = vld [vmem:[%s4800_s1 + $0xa8] ss:$12 sps:$4 sm:$0xff]  }
  0x19   : > { %3263 = vmatpush1.bf16.msra.mxu1 %v3666_v12  ;;  %1033 = vmatprep.subr.bf16.mxu0 %v3427_v13  ;;  %v3758_v30 = vld [vmem:[%s4800_s1 + $0x22c] ss:$12 sps:$4 sm:$0xff]   ;;  %v3767_v32 = vld [vmem:[%s4800_s1 + $0x228] ss:$12 sps:$4 sm:$0xff]   ;;  %v3457_v33 = vld [vmem:[%s4800_s1 + $0xc4] ss:$12 sps:$4 sm:$0xff]  }
  0x1a   : > { %3256 = vmatprep.subr.bf16.mxu1 %v3676_v14  ;;  %v3774_v34 = vld [vmem:[%s3740_s30 + $0xd0] sm:$0xff]   ;;  %v3460_v35 = vld [vmem:[%s4800_s1 + $0xc0] ss:$12 sps:$4 sm:$0xff]   ;;  %v3461_v36 = vld [vmem:[%s4800_s1 + $0xdc] ss:$12 sps:$4 sm:$0xff]   ;;  %s2861_s22 = sshll.u32 %s4864_s15, 3 }
  0x1b   : > { %v3468_v37 = vld [vmem:[%s4800_s1 + $0x8] ss:$12 sps:$4 sm:$0xff]   ;;  %v3463_v38 = vld [vmem:[%s4800_s1 + $0xd8] ss:$12 sps:$4 sm:$0xff]   ;;  %v3472_v40 = vld [vmem:[%s4800_s1 + $0x20] ss:$12 sps:$4 sm:$0xff]   ;;  %s4565_s25 = scalar_lea.vmem %s4803_s4, %s2861_s22 }
  0x1c   : > { %1034 = vmatpush1.bf16.msra.mxu0 %v3431_v15  ;;  %v3464_v39 = vld [vmem:[%s4800_s1 + $0xf4] ss:$12 sps:$4 sm:$0xff]   ;;  %v3799_v41 = vld [vmem:[%s3740_s30 + $0xd8] sm:$0xff]   ;;  %v3473_v47 = vld [vmem:[%s4800_s1 + $0x124] ss:$12 sps:$4 sm:$0xff]  }
  0x1d   : > { %3264 = vmatpush1.bf16.msra.mxu1 %v3686_v16  ;;  %1035 = vmatprep.subr.bf16.mxu0 %v3433_v17  ;;  %v3467_v42 = vld [vmem:[%s4800_s1 + $0xf0] ss:$12 sps:$4 sm:$0xff]   ;;  %v3469_v43 = vld [vmem:[%s4800_s1 + $0x10c] ss:$12 sps:$4 sm:$0xff]   ;;  %v3471_v46 = vld [vmem:[%s4800_s1 + $0x108] ss:$12 sps:$4 sm:$0xff]  }
  0x1e   : > { %3257 = vmatprep.subr.bf16.mxu1 %v3695_v18  ;;  %v3477_v44 = vld [vmem:[%s4800_s1 + $0x38] ss:$12 sps:$4 sm:$0xff]   ;;  %v3812_v45 = vld [vmem:[%s3740_s30 + $0x10] sm:$0xff]   ;;  %v3476_v50 = vld [vmem:[%s4800_s1 + $0x120] ss:$12 sps:$4 sm:$0xff]  }
  0x1f   : > { %1059 = vmatprep.mubr.bf16.mxu0 %v3812_v45  ;;  %v3484_v48 = vld [vmem:[%s4800_s1 + $0x50] ss:$12 sps:$4 sm:$0xff]   ;;  %v3828_v49 = vld [vmem:[%s3740_s30 + $0xe0] sm:$0xff]   ;;  %v3489_v52 = vld [vmem:[%s4800_s1 + $0x68] ss:$12 sps:$4 sm:$0xff]  }
  0x20   : > { %1036 = vmatpush1.bf16.msra.mxu0 %v3437_v19  ;;  %v3478_v51 = vld [vmem:[%s4800_s1 + $0x13c] ss:$12 sps:$4 sm:$0xff]   ;;  %v3480_v53 = vld [vmem:[%s4800_s1 + $0x138] ss:$12 sps:$4 sm:$0xff]   ;;  %v3481_v54 = vld [vmem:[%s4800_s1 + $0x154] ss:$12 sps:$4 sm:$0xff]  }
  0x21   : > { %3265 = vmatpush1.bf16.msra.mxu1 %v3706_v20  ;;  %1037 = vmatprep.subr.bf16.mxu0 %v3439_v21  ;;  %v3493_v55 = vld [vmem:[%s4800_s1 + $0x80] ss:$12 sps:$4 sm:$0xff]   ;;  %v3485_v57 = vld [vmem:[%s4800_s1 + $0x150] ss:$12 sps:$4 sm:$0xff]   ;;  %v3495_v59 = vld [vmem:[%s4800_s1 + $0x98] ss:$12 sps:$4 sm:$0xff]  }
  0x22   : > { %3258 = vmatprep.subr.bf16.mxu1 %v3716_v22  ;;  %v3853_v56 = vld [vmem:[%s3740_s30 + $0xe8] sm:$0xff]   ;;  %v3498_v61 = vld [vmem:[%s4800_s1 + $0xb0] ss:$12 sps:$4 sm:$0xff]   ;;  %v3875_v62 = vld [vmem:[%s3740_s30] sm:$0xff]  }
  0x23   : > { %v3486_v58 = vld [vmem:[%s4800_s1 + $0x16c] ss:$12 sps:$4 sm:$0xff]   ;;  %v3488_v60 = vld [vmem:[%s4800_s1 + $0x168] ss:$12 sps:$4 sm:$0xff]   ;;  %v3906_v9 = vld [vmem:[%s3740_s30 + $0x20] sm:$0xff]  }
  0x24   : > { %1038 = vmatpush1.bf16.msra.mxu0 %v3443_v23  ;;  %v3879_v63 = vld [vmem:[%s3740_s30 + $0xf0] sm:$0xff]   ;;  %v3882_v0 = vld [vmem:[%s3740_s30 + $0x18] sm:$0xff]   ;;  %v3898_v5 = vld [vmem:[%s3740_s30 + $0x8] sm:$0xff]  }
  0x25   : > { %3266 = vmatpush1.bf16.msra.mxu1 %v3726_v24  ;;  %1039 = vmatprep.subr.bf16.mxu0 %v3445_v25  ;;  %v3501_v3 = vld [vmem:[%s4800_s1 + $0xc8] ss:$12 sps:$4 sm:$0xff]   ;;  %v3903_v7 = vld [vmem:[%s3740_s30 + $0xf8] sm:$0xff]   ;;  %v3986_v21 = vld [vmem:[%s3740_s30 + $0x40] sm:$0xff]  }
  0x26   : > { %3259 = vmatprep.subr.bf16.mxu1 %v3735_v26  ;;  %v3509_v11 = vld [vmem:[%s4800_s1 + $0x128] ss:$12 sps:$4 sm:$0xff]   ;;  %v3513_v15 = vld [vmem:[%s4800_s1 + $0x158] ss:$12 sps:$4 sm:$0xff]   ;;  %v3522_v23 = vld [vmem:[%s4800_s1 + $0x1a0] ss:$12 sps:$4 sm:$0xff]  }
  0x27   : > { %v3944_v13 = vld [vmem:[%s3740_s30 + $0x108] sm:$0xff]   ;;  %v3975_v19 = vld [vmem:[%s3740_s30 + $0x38] sm:$0xff]   ;;  %v4006_v25 = vld [vmem:[%s3740_s30 + $0x50] sm:$0xff]  }
  0x28   : > { %1040 = vmatpush1.bf16.msra.mxu0 %v3449_v27  ;;  %v3517_v17 = vld [vmem:[%s4800_s1 + $0x188] ss:$12 sps:$4 sm:$0xff]  }
  0x29   : > { %3267 = vmatpush1.bf16.msra.mxu1 %v3749_v28  ;;  %1041 = vmatprep.subr.bf16.mxu0 %v3451_v29  ;;  %v3537_v27 = vld [vmem:[%s4800_s1 + $0x1e8] ss:$12 sps:$4 sm:$0xff]   ;;  %v4026_v29 = vld [vmem:[%s3740_s30 + $0x60] sm:$0xff]  }
  0x2a   : > { %3260 = vmatprep.subr.bf16.mxu1 %v3758_v30 }
  0x2c   : > { %1042 = vmatpush1.bf16.msra.mxu0 %v3455_v31  ;;  %v4040_v31 = vld [vmem:[%s3740_s30 + $0x70] sm:$0xff]  }
  0x2d   : > { %3268 = vmatpush1.bf16.msra.mxu1 %v3767_v32  ;;  %1043 = vmatprep.subr.bf16.mxu0 %v3457_v33  ;;  %v4050_v33 = vld [vmem:[%s3740_s30 + $0x78] sm:$0xff]  }
  0x2e   : > { %1637 = vmatprep.subr.bf16.mxu1 %v4804_v2 }
  0x30   : > { %1552 = vmatmul.mubr.bf16.vlgmr.msra.gmra.mrb[0].mxu1 %v3774_v34  ;;  %1044 = vmatpush1.bf16.msra.mxu0 %v3460_v35  ;;  %v4057_v35 = vld [vmem:[%s3740_s30 + $0x80] sm:$0xff]  }
  0x31   : > { %1561 = vmatprep.mubr.bf16.mxu1 %v4804_v2  ;;  %1045 = vmatprep.subr.bf16.mxu0 %v3461_v36  ;;  %v4064_v36 = vld [vmem:[%s3740_s30 + $0x88] sm:$0xff]  }
  0x32   : > { %1638 = vmatpush1.bf16.msra.mxu1 %v3468_v37  ;;  %v4071_v37 = vld [vmem:[%s3740_s30 + $0x90] sm:$0xff]  }
  0x33   : > { %1639 = vmatprep.subr.bf16.mxu1 %v4804_v2 }
  0x34   : > { %1046 = vmatpush1.bf16.msra.mxu0 %v3463_v38  ;;  %v3539_v38 = vld [vmem:[%s4800_s1 + $0x218] ss:$12 sps:$4 sm:$0xff]  }
  0x35   : > { %1047 = vmatprep.subr.bf16.mxu0 %v3464_v39  ;;  %v4081_v39 = vld [vmem:[%s3740_s30 + $0x98] sm:$0xff]  }
  0x36   : > { %1640 = vmatpush1.bf16.msra.mxu1 %v3472_v40  ;;  %v4088_v40 = vld [vmem:[%s3740_s30 + $0xa0] sm:$0xff]  }
  0x37   : > { %1641 = vmatprep.subr.bf16.mxu1 %v4804_v2 }
  0x38   : > { %1562 = vmatmul.mubr.bf16.gmra.mrb[4].mxu1 %v3799_v41  ;;  %1048 = vmatpush1.bf16.msra.mxu0 %v3467_v42  ;;  %v4095_v42 = vld [vmem:[%s3740_s30 + $0xa8] sm:$0xff]  }
  0x39   : > { %1568 = vmatprep.mubr.bf16.mxu1 %v4804_v2  ;;  %1049 = vmatprep.subr.bf16.mxu0 %v3469_v43  ;;  %v4102_v43 = vld [vmem:[%s3740_s30 + $0xb0] sm:$0xff]  }
  0x3a   : > { %1642 = vmatpush1.bf16.msra.mxu1 %v3477_v44  ;;  %v3540_v44 = vld [vmem:[%s4800_s1 + $0x230] ss:$12 sps:$4 sm:$0xff]  }
  0x3b   : > { %1643 = vmatprep.subr.bf16.mxu1 %v4804_v2 }
  0x3c   : > { %1050 = vmatpush1.bf16.msra.mxu0 %v3471_v46  ;;  %v4119_v46 = vld [vmem:[%s3740_s30 + $0xc0] sm:$0xff]  }
  0x3d   : > { %1051 = vmatprep.subr.bf16.mxu0 %v3473_v47  ;;  %v4126_v47 = vld [vmem:[%s3740_s30 + $0xc8] sm:$0xff]  }
  0x3e   : > { %1644 = vmatpush1.bf16.msra.mxu1 %v3484_v48 }
  0x3f   : > { %1645 = vmatprep.subr.bf16.mxu1 %v4804_v2 }
  0x40   : > { %1569 = vmatmul.mubr.bf16.gmra.mrb[8].mxu1 %v3828_v49  ;;  %1052 = vmatpush1.bf16.msra.mxu0 %v3476_v50 }
  0x41   : > { %1578 = vmatprep.mubr.bf16.mxu1 %v4804_v2  ;;  %1053 = vmatprep.subr.bf16.mxu0 %v3478_v51 }
  0x42   : > { %1646 = vmatpush1.bf16.msra.mxu1 %v3489_v52 }
  0x43   : > { %1647 = vmatprep.subr.bf16.mxu1 %v4804_v2 }
  0x44   : > { %1054 = vmatpush1.bf16.msra.mxu0 %v3480_v53 }
  0x45   : > { %1055 = vmatprep.subr.bf16.mxu0 %v3481_v54 }
  0x46   : > { %1648 = vmatpush1.bf16.msra.mxu1 %v3493_v55 }
  0x47   : > { %1649 = vmatprep.subr.bf16.mxu1 %v4804_v2 }
  0x48   : > { %1579 = vmatmul.mubr.bf16.gmra.mrb[12].mxu1 %v3853_v56  ;;  %1056 = vmatpush1.bf16.msra.mxu0 %v3485_v57 }
  0x49   : > { %1585 = vmatprep.mubr.bf16.mxu1 %v4804_v2  ;;  %1057 = vmatprep.subr.bf16.mxu0 %v3486_v58 }
  0x4a   : > { %1650 = vmatpush1.bf16.msra.mxu1 %v3495_v59 }
  0x4b   : > { %1651 = vmatprep.subr.bf16.mxu1 %v4804_v2 }
  0x4c   : > { %1058 = vmatpush1.bf16.msra.mxu0 %v3488_v60 }
  0x4d   : > { %1332 = vmatprep.subr.bf16.mxu0 %v3622_v1  ;;  %v3502_v1 = vld [vmem:[%s4800_s1 + $0xe0] ss:$12 sps:$4 sm:$0xff]  }
  0x4e   : > { %1652 = vmatpush1.bf16.msra.mxu1 %v3498_v61 }
  0x4f   : > { %1653 = vmatprep.subr.bf16.mxu1 %v4804_v2  ;;  %1060 = vmatmul.mubr.bf16.vlgmr.msra.gmra.mrb[0].mxu0 %v3875_v62 }
  0x50   : > { %1586 = vmatmul.mubr.bf16.gmra.mrb[16].mxu1 %v3879_v63  ;;  %1333 = vmatpush1.bf16.msra.mxu0 %v3631_v4  ;;  %v3505_v4 = vld [vmem:[%s4800_s1 + $0xf8] ss:$12 sps:$4 sm:$0xff]  }
  0x51   : > { %1069 = vmatprep.mubr.bf16.mxu0 %v3882_v0  ;;  %1595 = vmatprep.mubr.bf16.mxu1 %v4804_v2 }
  0x52   : > { %1654 = vmatpush1.bf16.msra.mxu1 %v3501_v3  ;;  %1334 = vmatprep.subr.bf16.mxu0 %v3641_v6  ;;  %v3506_v6 = vld [vmem:[%s4800_s1 + $0x110] ss:$12 sps:$4 sm:$0xff]  }
  0x53   : > { %1655 = vmatprep.subr.bf16.mxu1 %v4804_v2 }
  0x54   : > { %1335 = vmatpush1.bf16.msra.mxu0 %v3649_v8  ;;  %v3925_v8 = vld [vmem:[%s3740_s30 + $0x100] sm:$0xff]  }
  0x55   : > { %1336 = vmatprep.subr.bf16.mxu0 %v3658_v10  ;;  %v3928_v10 = vld [vmem:[%s3740_s30 + $0x28] sm:$0xff]  }
  0x56   : > { %1656 = vmatpush1.bf16.msra.mxu1 %v3502_v1 }
  0x57   : > { %1657 = vmatprep.subr.bf16.mxu1 %v4804_v2  ;;  %1070 = vmatmul.mubr.bf16.gmra.mrb[4].mxu0 %v3898_v5 }
  0x58   : > { %1596 = vmatmul.mubr.bf16.gmra.mrb[20].mxu1 %v3903_v7  ;;  %1076 = vmatprep.mubr.bf16.mxu0 %v3906_v9 }
  0x59   : > { %1602 = vmatprep.mubr.bf16.mxu1 %v4804_v2  ;;  %1337 = vmatpush1.bf16.msra.mxu0 %v3666_v12  ;;  %v3510_v12 = vld [vmem:[%s4800_s1 + $0x140] ss:$12 sps:$4 sm:$0xff]  }
  0x5a   : > { %1658 = vmatpush1.bf16.msra.mxu1 %v3505_v4  ;;  %1338 = vmatprep.subr.bf16.mxu0 %v3676_v14  ;;  %v3948_v14 = vld [vmem:[%s3740_s30 + $0x30] sm:$0xff]  }
  0x5b   : > { %1659 = vmatprep.subr.bf16.mxu1 %v4804_v2 }
  0x5d   : > { %1339 = vmatpush1.bf16.msra.mxu0 %v3686_v16  ;;  %v3514_v16 = vld [vmem:[%s4800_s1 + $0x170] ss:$12 sps:$4 sm:$0xff]  }
  0x5e   : > { %1660 = vmatpush1.bf16.msra.mxu1 %v3506_v6  ;;  %1340 = vmatprep.subr.bf16.mxu0 %v3695_v18  ;;  %v3972_v18 = vld [vmem:[%s3740_s30 + $0x110] sm:$0xff]  }
  0x5f   : > { %1661 = vmatprep.subr.bf16.mxu1 %v4804_v2  ;;  %1077 = vmatmul.mubr.bf16.gmra.mrb[8].mxu0 %v3812_v45 }
  0x60   : > { %1603 = vmatmul.mubr.bf16.gmra.mrb[24].mxu1 %v3925_v8  ;;  %1086 = vmatprep.mubr.bf16.mxu0 %v3928_v10 }
  0x61   : > { %1612 = vmatprep.mubr.bf16.mxu1 %v4804_v2  ;;  %1341 = vmatpush1.bf16.msra.mxu0 %v3706_v20  ;;  %v3983_v20 = vld [vmem:[%s3740_s30 + $0x118] sm:$0xff]  }
  0x62   : > { %1662 = vmatpush1.bf16.msra.mxu1 %v3509_v11  ;;  %1342 = vmatprep.subr.bf16.mxu0 %v3716_v22  ;;  %v3993_v22 = vld [vmem:[%s3740_s30 + $0x48] sm:$0xff]  }
  0x63   : > { %1663 = vmatprep.subr.bf16.mxu1 %v4804_v2 }
  0x65   : > { %1343 = vmatpush1.bf16.msra.mxu0 %v3726_v24  ;;  %v3527_v24 = vld [vmem:[%s4800_s1 + $0x1b8] ss:$12 sps:$4 sm:$0xff]  }
  0x66   : > { %1664 = vmatpush1.bf16.msra.mxu1 %v3510_v12  ;;  %1344 = vmatprep.subr.bf16.mxu0 %v3735_v26  ;;  %v3532_v26 = vld [vmem:[%s4800_s1 + $0x1d0] ss:$12 sps:$4 sm:$0xff]  }
  0x67   : > { %1665 = vmatprep.subr.bf16.mxu1 %v4804_v2  ;;  %1087 = vmatmul.mubr.bf16.gmra.mrb[12].mxu0 %v3882_v0 }
  0x68   : > { %1613 = vmatmul.mubr.bf16.gmra.mrb[28].mxu1 %v3944_v13  ;;  %1093 = vmatprep.mubr.bf16.mxu0 %v3948_v14 }
  0x69   : > { %1619 = vmatprep.mubr.bf16.mxu1 %v4804_v2  ;;  %1345 = vmatpush1.bf16.msra.mxu0 %v3749_v28  ;;  %v4019_v28 = vld [vmem:[%s3740_s30 + $0x58] sm:$0xff]  }
  0x6a   : > { %1666 = vmatpush1.bf16.msra.mxu1 %v3513_v15  ;;  %1346 = vmatprep.subr.bf16.mxu0 %v3758_v30  ;;  %v4033_v30 = vld [vmem:[%s3740_s30 + $0x68] sm:$0xff]  }
  0x6b   : > { %1667 = vmatprep.subr.bf16.mxu1 %v4804_v2 }
  0x6d   : > { %1347 = vmatpush1.bf16.msra.mxu0 %v3767_v32  ;;  %v3538_v32 = vld [vmem:[%s4800_s1 + $0x200] ss:$12 sps:$4 sm:$0xff]  }
  0x6e   : > { %1668 = vmatpush1.bf16.msra.mxu1 %v3514_v16 }
  0x6f   : > { %3173 = vmatprep.subr.bf16.mxu1 %v3517_v17  ;;  %1094 = vmatmul.mubr.bf16.gmra.mrb[16].mxu0 %v3906_v9 }
  0x70   : > { %1620 = vmatmul.mubr.bf16.gmra.mrb[32].mxu1 %v3972_v18  ;;  %1103 = vmatprep.mubr.bf16.mxu0 %v3975_v19 }
  0x71   : > { %1629 = vmatprep.mubr.bf16.mxu1 %v4804_v2 }
  0x77   : > { %1104 = vmatmul.mubr.bf16.gmra.mrb[20].mxu0 %v3928_v10 }
  0x78   : > { %1630 = vmatmul.mubr.bf16.gmra.mrb[36].mxu1 %v3983_v20  ;;  %1110 = vmatprep.mubr.bf16.mxu0 %v3986_v21 }
  0x79   : > { %1669 = vmatprep.mubr.bf16.mxu1 %v3812_v45 }
  0x7f   : > { %1111 = vmatmul.mubr.bf16.gmra.mrb[24].mxu0 %v3948_v14 }
  0x80   : > { %1670 = vmatmul.mubr.bf16.vlgmr.msra.gmra.mrb[40].mxu1 %v3875_v62  ;;  %1120 = vmatprep.mubr.bf16.mxu0 %v3993_v22 }
  0x81   : > { %1677 = vmatprep.mubr.bf16.mxu1 %v3882_v0  ;;  %3174 = vmatpush3.bf16.msra.mxu1 %v3517_v17 }
  0x82   : > { %3175 = vmatprep.subr.bf16.mxu1 %v3522_v23 }
  0x85   : > { %3176 = vmatpush3.bf16.msra.mxu1 %v3522_v23 }
  0x86   : > { %3177 = vmatprep.subr.bf16.mxu1 %v3527_v24 }
  0x87   : > { %1121 = vmatmul.mubr.bf16.gmra.mrb[28].mxu0 %v3975_v19 }
  0x88   : > { %1678 = vmatmul.mubr.bf16.gmra.mrb[44].mxu1 %v3898_v5  ;;  %1127 = vmatprep.mubr.bf16.mxu0 %v4006_v25 }
  0x89   : > { %1684 = vmatprep.mubr.bf16.mxu1 %v3906_v9  ;;  %3178 = vmatpush3.bf16.msra.mxu1 %v3527_v24 }
  0x8a   : > { %3179 = vmatprep.subr.bf16.mxu1 %v3532_v26 }
  0x8d   : > { %3180 = vmatpush3.bf16.msra.mxu1 %v3532_v26 }
  0x8e   : > { %3181 = vmatprep.subr.bf16.mxu1 %v3537_v27 }
  0x8f   : > { %1128 = vmatmul.mubr.bf16.gmra.mrb[32].mxu0 %v3986_v21 }
  0x90   : > { %1685 = vmatmul.mubr.bf16.gmra.mrb[48].mxu1 %v3812_v45  ;;  %1137 = vmatprep.mubr.bf16.mxu0 %v4019_v28  ;;  %v4112_v45 = vld [vmem:[%s3740_s30 + $0xb8] sm:$0xff]  }
  0x91   : > { %1692 = vmatprep.mubr.bf16.mxu1 %v3928_v10  ;;  %3182 = vmatpush3.bf16.msra.mxu1 %v3537_v27 }
  0x92   : > { %3183 = vmatprep.subr.bf16.mxu1 %v3538_v32 }
  0x95   : > { %3184 = vmatpush3.bf16.msra.mxu1 %v3538_v32 }
  0x96   : > { %3185 = vmatprep.subr.bf16.mxu1 %v3539_v38 }
  0x97   : > { %1138 = vmatmul.mubr.bf16.gmra.mrb[36].mxu0 %v3993_v22 }
  0x98   : > { %1693 = vmatmul.mubr.bf16.gmra.mrb[52].mxu1 %v3882_v0  ;;  %1144 = vmatprep.mubr.bf16.mxu0 %v4026_v29 }
  0x99   : > { %1699 = vmatprep.mubr.bf16.mxu1 %v3948_v14  ;;  %3186 = vmatpush3.bf16.msra.mxu1 %v3539_v38 }
  0x9a   : > { %3187 = vmatprep.subr.bf16.mxu1 %v3540_v44 }
  0x9d   : > { %3188 = vmatpush3.bf16.msra.mxu1 %v3540_v44 }
  0x9f   : > { %1145 = vmatmul.mubr.bf16.gmra.mrb[40].mxu0 %v4006_v25 }
  0xa0   : > { %1700 = vmatmul.mubr.bf16.gmra.mrb[56].mxu1 %v3906_v9  ;;  %1154 = vmatprep.mubr.bf16.mxu0 %v4033_v30 }
  0xa1   : > { %1707 = vmatprep.mubr.bf16.mxu1 %v3975_v19 }
  0xa7   : > { %1155 = vmatmul.mubr.bf16.gmra.mrb[44].mxu0 %v4019_v28 }
  0xa8   : > { %1708 = vmatmul.mubr.bf16.gmra.mrb[60].mxu1 %v3928_v10  ;;  %1161 = vmatprep.mubr.bf16.mxu0 %v4040_v31 }
  0xa9   : > { %1714 = vmatprep.mubr.bf16.mxu1 %v3986_v21 }
  0xaf   : > { %1162 = vmatmul.mubr.bf16.gmra.mrb[48].mxu0 %v4026_v29 }
  0xb0   : > { %1715 = vmatmul.mubr.bf16.gmra.mrb[64].mxu1 %v3948_v14  ;;  %1171 = vmatprep.mubr.bf16.mxu0 %v4050_v33 }
  0xb1   : > { %1722 = vmatprep.mubr.bf16.mxu1 %v3993_v22 }
  0xb7   : > { %1172 = vmatmul.mubr.bf16.gmra.mrb[52].mxu0 %v4033_v30 }
  0xb8   : > { %1723 = vmatmul.mubr.bf16.gmra.mrb[68].mxu1 %v3975_v19  ;;  %1178 = vmatprep.mubr.bf16.mxu0 %v4057_v35 }
  0xb9   : > { %1729 = vmatprep.mubr.bf16.mxu1 %v4006_v25 }
  0xbf   : > { %1179 = vmatmul.mubr.bf16.gmra.mrb[56].mxu0 %v4040_v31 }
  0xc0   : > { %1730 = vmatmul.mubr.bf16.gmra.mrb[72].mxu1 %v3986_v21  ;;  %1188 = vmatprep.mubr.bf16.mxu0 %v4064_v36 }
  0xc1   : > { %1737 = vmatprep.mubr.bf16.mxu1 %v4019_v28 }
  0xc7   : > { %1189 = vmatmul.mubr.bf16.gmra.mrb[60].mxu0 %v4050_v33 }
  0xc8   : > { %1738 = vmatmul.mubr.bf16.gmra.mrb[76].mxu1 %v3993_v22  ;;  %1195 = vmatprep.mubr.bf16.mxu0 %v4071_v37 }
  0xc9   : > { %1744 = vmatprep.mubr.bf16.mxu1 %v4026_v29 }
  0xcf   : > { %1196 = vmatmul.mubr.bf16.gmra.mrb[64].mxu0 %v4057_v35 }
  0xd0   : > { %1745 = vmatmul.mubr.bf16.gmra.mrb[80].mxu1 %v4006_v25  ;;  %1205 = vmatprep.mubr.bf16.mxu0 %v4081_v39 }
  0xd1   : > { %1752 = vmatprep.mubr.bf16.mxu1 %v4033_v30 }
  0xd7   : > { %1206 = vmatmul.mubr.bf16.gmra.mrb[68].mxu0 %v4064_v36 }
  0xd8   : > { %1753 = vmatmul.mubr.bf16.gmra.mrb[84].mxu1 %v4019_v28  ;;  %1212 = vmatprep.mubr.bf16.mxu0 %v4088_v40 }
  0xd9   : > { %1759 = vmatprep.mubr.bf16.mxu1 %v4040_v31 }
  0xdf   : > { %1213 = vmatmul.mubr.bf16.gmra.mrb[72].mxu0 %v4071_v37 }
  0xe0   : > { %1760 = vmatmul.mubr.bf16.gmra.mrb[88].mxu1 %v4026_v29  ;;  %1222 = vmatprep.mubr.bf16.mxu0 %v4095_v42 }
  0xe1   : > { %1767 = vmatprep.mubr.bf16.mxu1 %v4050_v33 }
  0xe7   : > { %1223 = vmatmul.mubr.bf16.gmra.mrb[76].mxu0 %v4081_v39 }
  0xe8   : > { %1768 = vmatmul.mubr.bf16.gmra.mrb[92].mxu1 %v4033_v30  ;;  %1229 = vmatprep.mubr.bf16.mxu0 %v4102_v43 }
  0xe9   : > { %1774 = vmatprep.mubr.bf16.mxu1 %v4057_v35 }
  0xef   : > { %1230 = vmatmul.mubr.bf16.gmra.mrb[80].mxu0 %v4088_v40 }
  0xf0   : > { %1775 = vmatmul.mubr.bf16.gmra.mrb[96].mxu1 %v4040_v31  ;;  %1239 = vmatprep.mubr.bf16.mxu0 %v4112_v45 }
  0xf1   : > { %1782 = vmatprep.mubr.bf16.mxu1 %v4064_v36 }
  0xf7   : > { %1240 = vmatmul.mubr.bf16.gmra.mrb[84].mxu0 %v4095_v42 }
  0xf8   : > { %1783 = vmatmul.mubr.bf16.gmra.mrb[100].mxu1 %v4050_v33  ;;  %1246 = vmatprep.mubr.bf16.mxu0 %v4119_v46 }
  0xf9   : > { %1789 = vmatprep.mubr.bf16.mxu1 %v4071_v37 }
  0xff   : > { %1247 = vmatmul.mubr.bf16.gmra.mrb[88].mxu0 %v4102_v43 }
 0x100   : > { %1790 = vmatmul.mubr.bf16.gmra.mrb[104].mxu1 %v4057_v35  ;;  %1256 = vmatprep.mubr.bf16.mxu0 %v4126_v47 }
 0x101   : > { %1797 = vmatprep.mubr.bf16.mxu1 %v4081_v39 }
 0x103   : > { %v4132_v48 = vpop.f32.mrb[0].mxu1 }
 0x104   : > { %v4134_v50 = vpop.f32.mrb[1].mxu1 }
 0x105   : > { %v4136_v51 = vpop.f32.mrb[2].mxu1 }
 0x106   : > { %v4138_v52 = vpop.f32.mrb[3].mxu1 }
 0x107   : > { %1257 = vmatmul.mubr.bf16.gmra.mrb[92].mxu0 %v4112_v45 }
 0x108   : > { %1798 = vmatmul.mubr.bf16.gmra.mrb[108].mxu1 %v4064_v36  ;;  %1263 = vmatprep.mubr.bf16.mxu0 %v3774_v34 }
 0x109   : > { %1804 = vmatprep.mubr.bf16.mxu1 %v4088_v40 }
 0x10b   : > { %v1563_v53 = vpop.f32.mrb[4].mxu1 }
 0x10c   : > { %v4144_v54 = vpop.f32.mrb[5].mxu1 }
 0x10d   : > { %v1566_v55 = vpop.f32.mrb[6].mxu1 }
 0x10e   : > { %v1567_v57 = vpop.f32.mrb[7].mxu1 }
 0x10f   : > { %1264 = vmatmul.mubr.bf16.gmra.mrb[96].mxu0 %v4119_v46 }
 0x110   : > { %1805 = vmatmul.mubr.bf16.gmra.mrb[112].mxu1 %v4071_v37  ;;  %1273 = vmatprep.mubr.bf16.mxu0 %v3799_v41 }
 0x111   : > { %1812 = vmatprep.mubr.bf16.mxu1 %v4095_v42 }
 0x113   : > { %v4150_v58 = vpop.f32.mrb[8].mxu1 }
 0x114   : > { %v4152_v59 = vpop.f32.mrb[9].mxu1 }
 0x115   : > { %v4154_v60 = vpop.f32.mrb[10].mxu1 }
 0x116   : > { %v4156_v61 = vpop.f32.mrb[11].mxu1 }
 0x117   : > { %1274 = vmatmul.mubr.bf16.gmra.mrb[100].mxu0 %v4126_v47 }
 0x118   : > { %1813 = vmatmul.mubr.bf16.gmra.mrb[116].mxu1 %v4081_v39  ;;  %1280 = vmatprep.mubr.bf16.mxu0 %v3828_v49 }
 0x119   : > { %1819 = vmatprep.mubr.bf16.mxu1 %v4102_v43 }
 0x11b   : > { %v1580_v62 = vpop.f32.mrb[12].mxu1 }
 0x11c   : > { %v4162_v0 = vpop.f32.mrb[13].mxu1 }
 0x11d   : > { %v1583_v3 = vpop.f32.mrb[14].mxu1 }
 0x11e   : > { %v1584_v1 = vpop.f32.mrb[15].mxu1 }
 0x11f   : > { %1281 = vmatmul.mubr.bf16.gmra.mrb[104].mxu0 %v3774_v34 }
 0x120   : > { %1820 = vmatmul.mubr.bf16.gmra.mrb[120].mxu1 %v4088_v40  ;;  %1290 = vmatprep.mubr.bf16.mxu0 %v3853_v56 }
 0x121   : > { %1827 = vmatprep.mubr.bf16.mxu1 %v4112_v45 }
 0x123   : > { %v4168_v5 = vpop.f32.mrb[16].mxu1 }
 0x124   : > { %v4170_v4 = vpop.f32.mrb[17].mxu1 }
 0x125   : > { %v4172_v6 = vpop.f32.mrb[18].mxu1 }
 0x126   : > { %v4174_v11 = vpop.f32.mrb[19].mxu1 }
 0x127   : > { %1291 = vmatmul.mubr.bf16.gmra.mrb[108].mxu0 %v3799_v41 }
 0x128   : > { %1828 = vmatmul.mubr.bf16.gmra.mrb[124].mxu1 %v4095_v42  ;;  %1297 = vmatprep.mubr.bf16.mxu0 %v3879_v63 }
 0x129   : > { %1834 = vmatprep.mubr.bf16.mxu1 %v4119_v46 }
 0x12b   : > { %v1597_v12 = vpop.f32.mrb[20].mxu1 }
 0x12c   : > { %v4180_v15 = vpop.f32.mrb[21].mxu1 }
 0x12d   : > { %v1600_v16 = vpop.f32.mrb[22].mxu1 }
 0x12e   : > { %v1601_v17 = vpop.f32.mrb[23].mxu1 }
 0x12f   : > { %1298 = vmatmul.mubr.bf16.gmra.mrb[112].mxu0 %v3828_v49 }
 0x130   : > { %1835 = vmatmul.mubr.bf16.gmra.mrb[128].mxu1 %v4102_v43  ;;  %1307 = vmatprep.mubr.bf16.mxu0 %v3903_v7 }
 0x131   : > { %1842 = vmatprep.mubr.bf16.mxu1 %v4126_v47 }
 0x133   : > { %v4186_v23 = vpop.f32.mrb[24].mxu1 }
 0x134   : > { %v4188_v24 = vpop.f32.mrb[25].mxu1 }
 0x135   : > { %v4190_v26 = vpop.f32.mrb[26].mxu1 }
 0x136   : > { %v4192_v27 = vpop.f32.mrb[27].mxu1 }
 0x137   : > { %1308 = vmatmul.mubr.bf16.gmra.mrb[116].mxu0 %v3853_v56 }
 0x138   : > { %1843 = vmatmul.mubr.bf16.gmra.mrb[132].mxu1 %v4112_v45  ;;  %1314 = vmatprep.mubr.bf16.mxu0 %v3925_v8 }
 0x139   : > { %1849 = vmatprep.mubr.bf16.mxu1 %v3774_v34 }
 0x13b   : > { %v1614_v32 = vpop.f32.mrb[28].mxu1 }
 0x13c   : > { %v4198_v38 = vpop.f32.mrb[29].mxu1 }
 0x13d   : > { %v1617_v44 = vpop.f32.mrb[30].mxu1 }
 0x13e   : > { %v1618_v53 = vpop.f32.mrb[31].mxu1 }
 0x13f   : > { %1315 = vmatmul.mubr.bf16.gmra.mrb[120].mxu0 %v3879_v63 }
 0x140   : > { %1850 = vmatmul.mubr.bf16.gmra.mrb[136].mxu1 %v4119_v46  ;;  %1324 = vmatprep.mubr.bf16.mxu0 %v3944_v13 }
 0x141   : > { %1857 = vmatprep.mubr.bf16.mxu1 %v3799_v41 }
 0x143   : > { %v4204_v55 = vpop.f32.mrb[32].mxu1 }
 0x144   : > { %v4206_v57 = vpop.f32.mrb[33].mxu1 }
 0x145   : > { %v4208_v62 = vpop.f32.mrb[34].mxu1 }
 0x146   : > { %v4210_v3 = vpop.f32.mrb[35].mxu1 }
 0x147   : > { %4806 = vst [vmem:[#allocation2_spill] sm:$0xff] %v4210_v3  ;;  %1325 = vmatmul.mubr.bf16.gmra.mrb[124].mxu0 %v3903_v7 }
 0x148   : > { %1858 = vmatmul.mubr.bf16.gmra.mrb[140].mxu1 %v4126_v47  ;;  %1364 = vmatprep.mubr.bf16.mxu0 %v4804_v2 }
 0x149   : > { %1864 = vmatprep.mubr.bf16.mxu1 %v3828_v49 }
 0x14b   : > { %v1631_v1 = vpop.f32.mrb[36].mxu1 }
 0x14c   : > { %v4216_v12 = vpop.f32.mrb[37].mxu1 }
 0x14d   : > { %v1634_v16 = vpop.f32.mrb[38].mxu1 }
 0x14e   : > { %v1635_v17 = vpop.f32.mrb[39].mxu1 }
 0x14f   : > { %1365 = vmatmul.mubr.bf16.vlgmr.msra.gmra.mrb[0].mxu0 %v3906_v9 }
 0x150   : > { %1865 = vmatmul.mubr.bf16.gmra.mrb[144].mxu1 %v3774_v34  ;;  %1374 = vmatprep.mubr.bf16.mxu0 %v4804_v2 }
 0x151   : > { %1872 = vmatprep.mubr.bf16.mxu1 %v3853_v56 }
 0x153   : > { %v4222_v32 = vpop.f32.mrb[40].mxu1 }
 0x154   : > { %v1673_v44 = vpop.f32.mrb[41].mxu1 }
 0x155   : > { %v4224_v53 = vpop.f32.mrb[42].mxu1 }
 0x156   : > { %4807 = vst [vmem:[#allocation3_spill] sm:$0xff] %v4224_v53  ;;  %v1676_v3 = vpop.f32.mrb[43].mxu1 }
 0x157   : > { %1375 = vmatmul.mubr.bf16.gmra.mrb[4].mxu0 %v3928_v10 }
 0x158   : > { %1873 = vmatmul.mubr.bf16.gmra.mrb[148].mxu1 %v3799_v41  ;;  %1381 = vmatprep.mubr.bf16.mxu0 %v4804_v2 }
 0x159   : > { %1879 = vmatprep.mubr.bf16.mxu1 %v3879_v63 }
 0x15b   : > { %v4230_v1 = vpop.f32.mrb[44].mxu1 }
 0x15c   : > { %v1681_v34 = vpop.f32.mrb[45].mxu1 }
 0x15d   : > { %v1682_v16 = vpop.f32.mrb[46].mxu1 }
 0x15e   : > { %v1683_v17 = vpop.f32.mrb[47].mxu1 }
 0x15f   : > { %1382 = vmatmul.mubr.bf16.gmra.mrb[8].mxu0 %v3948_v14 }
 0x160   : > { %1880 = vmatmul.mubr.bf16.gmra.mrb[152].mxu1 %v3828_v49  ;;  %1391 = vmatprep.mubr.bf16.mxu0 %v4804_v2 }
 0x161   : > { %1887 = vmatprep.mubr.bf16.mxu1 %v3903_v7 }
 0x163   : > { %v4236_v3 = vpop.f32.mrb[48].mxu1 }
 0x164   : > { %4808 = vst [vmem:[#allocation4_spill] sm:$0xff] %v4236_v3  ;;  %v1688_v41 = vpop.f32.mrb[49].mxu1 }
 0x165   : > { %v4238_v44 = vpop.f32.mrb[50].mxu1 }
 0x166   : > { %4809 = vst [vmem:[#allocation5_spill] sm:$0xff] %v4238_v44  ;;  %v1691_v53 = vpop.f32.mrb[51].mxu1 }
 0x167   : > { %1392 = vmatmul.mubr.bf16.gmra.mrb[12].mxu0 %v3975_v19 }
 0x168   : > { %1888 = vmatmul.mubr.bf16.gmra.mrb[156].mxu1 %v3853_v56  ;;  %1398 = vmatprep.mubr.bf16.mxu0 %v4804_v2 }
 0x169   : > { %1894 = vmatprep.mubr.bf16.mxu1 %v3925_v8 }
 0x16b   : > { %v4244_v34 = vpop.f32.mrb[52].mxu1 }
 0x16c   : > { %v1696_v49 = vpop.f32.mrb[53].mxu1 }
 0x16d   : > { %v1697_v16 = vpop.f32.mrb[54].mxu1 }
 0x16e   : > { %v1698_v17 = vpop.f32.mrb[55].mxu1 }
 0x16f   : > { %1399 = vmatmul.mubr.bf16.gmra.mrb[16].mxu0 %v3986_v21 }
 0x170   : > { %1895 = vmatmul.mubr.bf16.gmra.mrb[160].mxu1 %v3879_v63  ;;  %1408 = vmatprep.mubr.bf16.mxu0 %v4804_v2 }
 0x171   : > { %1902 = vmatprep.mubr.bf16.mxu1 %v3944_v13 }
 0x173   : > { %v4250_v53 = vpop.f32.mrb[56].mxu1 }
 0x174   : > { %4810 = vst [vmem:[#allocation6_spill] sm:$0xff] %v4250_v53  ;;  %v1703_v56 = vpop.f32.mrb[57].mxu1 }
 0x175   : > { %v4252_v41 = vpop.f32.mrb[58].mxu1 }
 0x176   : > { %4811 = vst [vmem:[#allocation7_spill] sm:$0xff] %v4252_v41  ;;  %v1706_v44 = vpop.f32.mrb[59].mxu1 }
 0x177   : > { %1409 = vmatmul.mubr.bf16.gmra.mrb[20].mxu0 %v3993_v22 }
 0x178   : > { %1903 = vmatmul.mubr.bf16.gmra.mrb[164].mxu1 %v3903_v7  ;;  %1415 = vmatprep.mubr.bf16.mxu0 %v4804_v2 }
 0x179   : > { %3189 = vmatprep.mubr.bf16.mxu1 %v3906_v9 }
 0x17b   : > { %v4258_v49 = vpop.f32.mrb[60].mxu1 }
 0x17c   : > { %v1711_v16 = vpop.f32.mrb[61].mxu1 }
 0x17d   : > { %v1712_v17 = vpop.f32.mrb[62].mxu1 }
 0x17e   : > { %v1713_v3 = vpop.f32.mrb[63].mxu1 }
 0x17f   : > { %1416 = vmatmul.mubr.bf16.gmra.mrb[24].mxu0 %v4006_v25 }
 0x180   : > { %3190 = vmatmul.mubr.bf16.vlgmr.msra.gmra.mrb[168].mxu1 %v3928_v10  ;;  %1425 = vmatprep.mubr.bf16.mxu0 %v4804_v2 }
 0x181   : > { %3193 = vmatprep.mubr.bf16.mxu1 %v3948_v14 }
 0x183   : > { %v4264_v44 = vpop.f32.mrb[64].mxu1 }
 0x184   : > { %v1718_v56 = vpop.f32.mrb[65].mxu1 }
 0x185   : > { %v4266_v41 = vpop.f32.mrb[66].mxu1 }
 0x186   : > { %v1721_v53 = vpop.f32.mrb[67].mxu1 }
 0x187   : > { %1426 = vmatmul.mubr.bf16.gmra.mrb[28].mxu0 %v4019_v28 }
 0x188   : > { %3194 = vmatmul.mubr.bf16.gmra.mrb[172].mxu1 %v3975_v19  ;;  %1432 = vmatprep.mubr.bf16.mxu0 %v4804_v2 }
 0x189   : > { %3197 = vmatprep.mubr.bf16.mxu1 %v3986_v21 }
 0x18b   : > { %v4272_v9 = vpop.f32.mrb[68].mxu1 }
 0x18c   : > { %v1726_v10 = vpop.f32.mrb[69].mxu1 }
 0x18d   : > { %v1727_v3 = vpop.f32.mrb[70].mxu1 }
 0x18e   : > { %v1728_v16 = vpop.f32.mrb[71].mxu1 }
 0x18f   : > { %1433 = vmatmul.mubr.bf16.gmra.mrb[32].mxu0 %v4026_v29 }
 0x190   : > { %3198 = vmatmul.mubr.bf16.gmra.mrb[176].mxu1 %v3993_v22  ;;  %1442 = vmatprep.mubr.bf16.mxu0 %v4804_v2 }
 0x191   : > { %3201 = vmatprep.mubr.bf16.mxu1 %v4006_v25 }
 0x193   : > { %v4278_v14 = vpop.f32.mrb[72].mxu1 }
 0x194   : > { %v1733_v19 = vpop.f32.mrb[73].mxu1 }
 0x195   : > { %v4280_v53 = vpop.f32.mrb[74].mxu1 }
 0x196   : > { %v1736_v17 = vpop.f32.mrb[75].mxu1 }
 0x197   : > { %1443 = vmatmul.mubr.bf16.gmra.mrb[36].mxu0 %v4033_v30 }
 0x198   : > { %3202 = vmatmul.mubr.bf16.gmra.mrb[180].mxu1 %v4019_v28  ;;  %1449 = vmatprep.mubr.bf16.mxu0 %v4804_v2 }
 0x199   : > { %3205 = vmatprep.mubr.bf16.mxu1 %v4026_v29 }
 0x19b   : > { %v4286_v21 = vpop.f32.mrb[76].mxu1 }
 0x19c   : > { %v1741_v22 = vpop.f32.mrb[77].mxu1 }
 0x19d   : > { %v1742_v56 = vpop.f32.mrb[78].mxu1 }
 0x19e   : > { %v1743_v10 = vpop.f32.mrb[79].mxu1 }
 0x19f   : > { %1450 = vmatmul.mubr.bf16.gmra.mrb[40].mxu0 %v4040_v31 }
 0x1a0   : > { %3206 = vmatmul.mubr.bf16.gmra.mrb[184].mxu1 %v4033_v30  ;;  %1459 = vmatprep.mubr.bf16.mxu0 %v4804_v2 }
 0x1a1   : > { %3209 = vmatprep.mubr.bf16.mxu1 %v4040_v31 }
 0x1a3   : > { %v4292_v25 = vpop.f32.mrb[80].mxu1 }
 0x1a4   : > { %v1748_v28 = vpop.f32.mrb[81].mxu1 }
 0x1a5   : > { %v4294_v3 = vpop.f32.mrb[82].mxu1 }
 0x1a6   : > { %v1751_v16 = vpop.f32.mrb[83].mxu1 }
 0x1a7   : > { %1460 = vmatmul.mubr.bf16.gmra.mrb[44].mxu0 %v4050_v33 }
 0x1a8   : > { %3210 = vmatmul.mubr.bf16.gmra.mrb[188].mxu1 %v4050_v33  ;;  %1466 = vmatprep.mubr.bf16.mxu0 %v4804_v2 }
 0x1a9   : > { %3213 = vmatprep.mubr.bf16.mxu1 %v4057_v35 }
 0x1ab   : > { %v4300_v29 = vpop.f32.mrb[84].mxu1 }
 0x1ac   : > { %v1756_v30 = vpop.f32.mrb[85].mxu1 }
 0x1ad   : > { %v1757_v19 = vpop.f32.mrb[86].mxu1 }
 0x1ae   : > { %v1758_v17 = vpop.f32.mrb[87].mxu1 }
 0x1af   : > { %1467 = vmatmul.mubr.bf16.gmra.mrb[48].mxu0 %v4057_v35 }
 0x1b0   : > { %3214 = vmatmul.mubr.bf16.gmra.mrb[192].mxu1 %v4064_v36  ;;  %1476 = vmatprep.mubr.bf16.mxu0 %v4804_v2 }
 0x1b1   : > { %3217 = vmatprep.mubr.bf16.mxu1 %v4071_v37 }
 0x1b3   : > { %v4306_v31 = vpop.f32.mrb[88].mxu1 }
 0x1b4   : > { %v1763_v33 = vpop.f32.mrb[89].mxu1 }
 0x1b5   : > { %v4308_v22 = vpop.f32.mrb[90].mxu1 }
 0x1b6   : > { %4812 = vst [vmem:[#allocation8_spill] sm:$0xff] %v4308_v22  ;;  %v1766_v56 = vpop.f32.mrb[91].mxu1 }
 0x1b7   : > { %1477 = vmatmul.mubr.bf16.gmra.mrb[52].mxu0 %v4064_v36 }
 0x1b8   : > { %3218 = vmatmul.mubr.bf16.gmra.mrb[196].mxu1 %v4081_v39  ;;  %1483 = vmatprep.mubr.bf16.mxu0 %v4804_v2 }
 0x1b9   : > { %3221 = vmatprep.mubr.bf16.mxu1 %v4088_v40 }
 0x1bb   : > { %v4314_v35 = vpop.f32.mrb[92].mxu1 }
 0x1bc   : > { %v1771_v10 = vpop.f32.mrb[93].mxu1 }
 0x1bd   : > { %v1772_v28 = vpop.f32.mrb[94].mxu1 }
 0x1be   : > { %v1773_v16 = vpop.f32.mrb[95].mxu1  ;;  %v2231_v28 = vlaneseq }
 0x1bf   : > { %1484 = vmatmul.mubr.bf16.gmra.mrb[56].mxu0 %v4071_v37  ;;  %v3541_v16 = vld [vmem:[%s3740_s30 + $0xd0] sm:$0xff]  }
 0x1c0   : > { %3222 = vmatmul.mubr.bf16.gmra.mrb[200].mxu1 %v4095_v42  ;;  %1493 = vmatprep.mubr.bf16.mxu0 %v4804_v2 }
 0x1c1   : > { %3225 = vmatprep.mubr.bf16.mxu1 %v4102_v43 }
 0x1c3   : > { %v4320_v36 = vpop.f32.mrb[96].mxu1 }
 0x1c4   : > { %4813 = vst [vmem:[#allocation9_spill] sm:$0xff] %v4320_v36  ;;  %v1778_v30 = vpop.f32.mrb[97].mxu1  ;;  %v4337_v36 = vshrl.u32 %v2231_v28, 7 }
 0x1c5   : > { %v4322_v19 = vpop.f32.mrb[98].mxu1 }
 0x1c6   : > { %4814 = vst [vmem:[#allocation10_spill] sm:$0xff] %v4322_v19  ;;  %v1781_v17 = vpop.f32.mrb[99].mxu1  ;;  %vm2233_vm0 = vcmp.lt.s32.totalorder %v4337_v36, 7  ;;  %vm2346_vm1 = vcmp.lt.s32.totalorder %v4337_v36, 6 }
 0x1c7   : > { %1494 = vmatmul.mubr.bf16.gmra.mrb[60].mxu0 %v4081_v39 }
 0x1c8   : > { %3226 = vmatmul.mubr.bf16.gmra.mrb[204].mxu1 %v4112_v45  ;;  %1500 = vmatprep.mubr.bf16.mxu0 %v4804_v2 }
 0x1c9   : > { %3229 = vmatprep.mubr.bf16.mxu1 %v4119_v46 }
 0x1cb   : > { %v4328_v37 = vpop.f32.mrb[100].mxu1 }
 0x1cc   : > { %4815 = vst [vmem:[#allocation11_spill] sm:$0xff] %v4328_v37  ;;  %v1786_v33 = vpop.f32.mrb[101].mxu1 }
 0x1cd   : > { %v1787_v56 = vpop.f32.mrb[102].mxu1 }
 0x1ce   : > { %v1788_v10 = vpop.f32.mrb[103].mxu1 }
 0x1cf   : > { %1501 = vmatmul.mubr.bf16.gmra.mrb[64].mxu0 %v4088_v40 }
 0x1d0   : > { %3230 = vmatmul.mubr.bf16.gmra.mrb[208].mxu1 %v4126_v47  ;;  %1510 = vmatprep.mubr.bf16.mxu0 %v4804_v2 }
 0x1d1   : > { %3233 = vmatprep.mubr.bf16.mxu1 %v3541_v16 }
 0x1d2   : > { %v1248_v39 = vpop.f32.mrb[88].mxu0 }
 0x1d3   : > { %v4334_v30 = vpop.f32.mrb[104].mxu1  ;;  %v1554_v17 = vadd.f32 %v4132_v48, %v1248_v39  ;;  %v1250_v19 = vpop.f32.mrb[89].mxu0  ;;  %v3542_v48 = vld [vmem:[%s3740_s30 + $0xd8] sm:$0xff]  }
 0x1d4   : > { %4816 = vst [vmem:[#allocation12_spill] sm:$0xff] %v4334_v30  ;;  %v1793_v33 = vpop.f32.mrb[105].mxu1  ;;  %v1556_v40 = vadd.f32 %v4134_v50, %v1250_v19  ;;  %v1252_v56 = vpop.f32.mrb[90].mxu0  ;;  %v3543_v50 = vld [vmem:[%s3740_s30 + $0xe0] sm:$0xff]  }
 0x1d5   : > { %v4340_v10 = vpop.f32.mrb[106].mxu1  ;;  %v1558_v2 = vadd.f32 %v4136_v51, %v1252_v56  ;;  %v1254_v37 = vpop.f32.mrb[91].mxu0  ;;  %v4818_v33 = vmov 0  }
 0x1d6   : > { %4817 = vst [vmem:[#allocation13_spill] sm:$0xff] %v4340_v10  ;;  %v1796_v16 = vpop.f32.mrb[107].mxu1  ;;  %v1560_v22 = vadd.f32 %v4138_v52, %v1254_v37  ;;  %v2216_v28 = vrot.slane %v1556_v40, 1 }
 0x1d7   : > { %1511 = vmatmul.mubr.bf16.gmra.mrb[68].mxu0 %v4095_v42 }
 0x1d8   : > { %3234 = vmatmul.mubr.bf16.gmra.mrb[212].mxu1 %v3542_v48  ;;  %v2217_v39 = vrot.slane %v1560_v22, 1  ;;  %1517 = vmatprep.mubr.bf16.mxu0 %v4818_v33 }
 0x1d9   : > { %3237 = vmatprep.mubr.bf16.mxu1 %v3543_v50  ;;  %v3544_v50 = vld [vmem:[%s3740_s30 + $0xe8] sm:$0xff]  }
 0x1da   : > { %v2243_v51 = vsel %vm2233_vm0, %v2216_v28, %v2217_v39  ;;  %v1258_v19 = vpop.f32.mrb[92].mxu0 }
 0x1db   : > { %v4351_v56 = vpop.f32.mrb[108].mxu1  ;;  %v4353_v52 = vadd.f32 %v2243_v51, %v1554_v17  ;;  %v1259_v37 = vpop.f32.mrb[93].mxu0 }
 0x1dc   : > { %v1801_v16 = vpop.f32.mrb[109].mxu1  ;;  %v1565_v42 = vadd.f32 %v4144_v54, %v1259_v37  ;;  %v1261_v48 = vpop.f32.mrb[94].mxu0 }
 0x1dd   : > { %v1802_v40 = vpop.f32.mrb[110].mxu1  ;;  %v1262_v22 = vpop.f32.mrb[95].mxu0 }
 0x1de   : > { %v1803_v10 = vpop.f32.mrb[111].mxu1  ;;  %v2218_v30 = vrot.slane %v1565_v42, 1 }
 0x1df   : > { %1518 = vmatmul.mubr.bf16.gmra.mrb[72].mxu0 %v4102_v43 }
 0x1e0   : > { %3238 = vmatmul.mubr.bf16.gmra.mrb[216].mxu1 %v3544_v50  ;;  %v2242_v28 = vsel %vm2233_vm0, %v2217_v39, %v2218_v30  ;;  %1527 = vmatprep.mubr.bf16.mxu0 %v4818_v33 }
 0x1e1   : > { %3241 = vmatprep.mubr.bf16.mxu1 %v3879_v63  ;;  %v4362_v17 = vadd.f32 %v2242_v28, %v1558_v2 }
 0x1e2   : > { %v1265_v51 = vpop.f32.mrb[96].mxu0 }
 0x1e3   : > { %v4364_v54 = vpop.f32.mrb[112].mxu1  ;;  %v1571_v19 = vadd.f32 %v4150_v58, %v1265_v51  ;;  %v1267_v10 = vpop.f32.mrb[97].mxu0 }
 0x1e4   : > { %v1808_v37 = vpop.f32.mrb[113].mxu1  ;;  %v1573_v43 = vadd.f32 %v4152_v59, %v1267_v10  ;;  %v1269_v16 = vpop.f32.mrb[98].mxu0 }
 0x1e5   : > { %v4368_v42 = vpop.f32.mrb[114].mxu1  ;;  %v1575_v30 = vadd.f32 %v4154_v60, %v1269_v16  ;;  %v1271_v39 = vpop.f32.mrb[99].mxu0 }
 0x1e6   : > { %v1811_v48 = vpop.f32.mrb[115].mxu1  ;;  %v1577_v63 = vadd.f32 %v4156_v61, %v1271_v39  ;;  %v2219_v2 = vrot.slane %v1573_v43, 1 }
 0x1e7   : > { %1528 = vmatmul.mubr.bf16.gmra.mrb[76].mxu0 %v4112_v45 }
 0x1e8   : > { %3242 = vmatmul.mubr.bf16.gmra.mrb[220].mxu1 %v3903_v7  ;;  %v2220_v40 = vrot.slane %v1577_v63, 1  ;;  %1534 = vmatprep.mubr.bf16.mxu0 %v4818_v33 }
 0x1e9   : > { %3245 = vmatprep.mubr.bf16.mxu1 %v3925_v8 }
 0x1ea   : > { %v2241_v58 = vsel %vm2233_vm0, %v2219_v2, %v2220_v40  ;;  %v1275_v59 = vpop.f32.mrb[100].mxu0 }
 0x1eb   : > { %v4378_v22 = vpop.f32.mrb[116].mxu1  ;;  %v4380_v60 = vadd.f32 %v2241_v58, %v1571_v19  ;;  %v1276_v50 = vpop.f32.mrb[101].mxu0 }
 0x1ec   : > { %v1816_v61 = vpop.f32.mrb[117].mxu1  ;;  %v1582_v45 = vadd.f32 %v4162_v0, %v1276_v50  ;;  %v1278_v28 = vpop.f32.mrb[102].mxu0 }
 0x1ed   : > { %v1817_v7 = vpop.f32.mrb[118].mxu1  ;;  %v1279_v51 = vpop.f32.mrb[103].mxu0 }
 0x1ee   : > { %v1818_v10 = vpop.f32.mrb[119].mxu1  ;;  %v2221_v37 = vrot.slane %v1582_v45, 1 }
 0x1ef   : > { %1535 = vmatmul.mubr.bf16.gmra.mrb[80].mxu0 %v4119_v46 }
 0x1f0   : > { %3246 = vmatmul.mubr.bf16.gmra.mrb[224].mxu1 %v3944_v13  ;;  %v2240_v8 = vsel %vm2233_vm0, %v2220_v40, %v2221_v37  ;;  %1544 = vmatprep.mubr.bf16.mxu0 %v4818_v33 }
 0x1f1   : > { %3249 = vmatprep.mubr.bf16.mxu1 %v3972_v18  ;;  %v4389_v19 = vadd.f32 %v2240_v8, %v1575_v30 }
 0x1f2   : > { %v1282_v43 = vpop.f32.mrb[104].mxu0 }
 0x1f3   : > { %v4391_v0 = vpop.f32.mrb[120].mxu1  ;;  %v1588_v16 = vadd.f32 %v4168_v5, %v1282_v43  ;;  %v1284_v39 = vpop.f32.mrb[105].mxu0 }
 0x1f4   : > { %v1823_v48 = vpop.f32.mrb[121].mxu1  ;;  %v1590_v46 = vadd.f32 %v4170_v4, %v1284_v39  ;;  %v1286_v63 = vpop.f32.mrb[106].mxu0 }
 0x1f5   : > { %v4395_v13 = vpop.f32.mrb[122].mxu1  ;;  %v1592_v2 = vadd.f32 %v4172_v6, %v1286_v63  ;;  %v1288_v40 = vpop.f32.mrb[107].mxu0 }
 0x1f6   : > { %v1826_v33 = vpop.f32.mrb[123].mxu1  ;;  %v1594_v18 = vadd.f32 %v4174_v11, %v1288_v40  ;;  %v2222_v30 = vrot.slane %v1590_v46, 1 }
 0x1f7   : > { %1545 = vmatmul.mubr.bf16.gmra.mrb[84].mxu0 %v4126_v47 }
 0x1f8   : > { %3250 = vmatmul.mubr.bf16.gmra.mrb[228].mxu1 %v3983_v20  ;;  %v2223_v58 = vrot.slane %v1594_v18, 1 }
 0x1fa   : > { %v2239_v5 = vsel %vm2233_vm0, %v2222_v30, %v2223_v58  ;;  %v1292_v59 = vpop.f32.mrb[108].mxu0 }
 0x1fb   : > { %v4403_v4 = vpop.f32.mrb[124].mxu1  ;;  %v4405_v50 = vadd.f32 %v2239_v5, %v1588_v16  ;;  %v1293_v61 = vpop.f32.mrb[109].mxu0 }
 0x1fc   : > { %v1831_v6 = vpop.f32.mrb[125].mxu1  ;;  %v1599_v45 = vadd.f32 %v4180_v15, %v1293_v61  ;;  %v1295_v28 = vpop.f32.mrb[110].mxu0 }
 0x1fd   : > { %4819 = vst [vmem:[#allocation14_spill] sm:$0xff] %v4405_v50  ;;  %v1832_v11 = vpop.f32.mrb[126].mxu1  ;;  %v1296_v7 = vpop.f32.mrb[111].mxu0 }
 0x1fe   : > { %v1833_v47 = vpop.f32.mrb[127].mxu1  ;;  %v2224_v51 = vrot.slane %v1599_v45, 1 }
 0x200   : > { %v2238_v20 = vsel %vm2233_vm0, %v2223_v58, %v2224_v51 }
 0x201   : > { %v4410_v10 = vadd.f32 %v2238_v20, %v1592_v2 }
 0x202   : > { %v1299_v37 = vpop.f32.mrb[112].mxu0 }
 0x203   : > { %4820 = vst [vmem:[#allocation15_spill] sm:$0xff] %v4410_v10  ;;  %v4412_v8 = vpop.f32.mrb[128].mxu1  ;;  %v1605_v43 = vadd.f32 %v4186_v23, %v1299_v37  ;;  %v1301_v16 = vpop.f32.mrb[113].mxu0 }
 0x204   : > { %v1838_v39 = vpop.f32.mrb[129].mxu1  ;;  %v1607_v48 = vadd.f32 %v4188_v24, %v1301_v16  ;;  %v1303_v15 = vpop.f32.mrb[114].mxu0 }
 0x205   : > { %v4416_v46 = vpop.f32.mrb[130].mxu1  ;;  %v1609_v63 = vadd.f32 %v4190_v26, %v1303_v15  ;;  %v1305_v40 = vpop.f32.mrb[115].mxu0 }
 0x206   : > { %v1841_v33 = vpop.f32.mrb[131].mxu1  ;;  %v1611_v18 = vadd.f32 %v4192_v27, %v1305_v40  ;;  %v2225_v2 = vrot.slane %v1607_v48, 1 }
 0x208   : > { %v2226_v30 = vrot.slane %v1611_v18, 1  ;;  %v4823_v18 = vld [vmem:[#allocation2_spill] sm:$0xff] }
 0x20a   : > { %v2237_v58 = vsel %vm2233_vm0, %v2225_v2, %v2226_v30  ;;  %v1309_v5 = vpop.f32.mrb[116].mxu0 }
 0x20b   : > { %v4422_v23 = vpop.f32.mrb[132].mxu1  ;;  %v4424_v59 = vadd.f32 %v2237_v58, %v1605_v43  ;;  %v1310_v24 = vpop.f32.mrb[117].mxu0 }
 0x20c   : > { %v1846_v61 = vpop.f32.mrb[133].mxu1  ;;  %v1616_v6 = vadd.f32 %v4198_v38, %v1310_v24  ;;  %v1312_v45 = vpop.f32.mrb[118].mxu0 }
 0x20d   : > { %4821 = vst [vmem:[#allocation16_spill] sm:$0xff] %v4424_v59  ;;  %v1847_v26 = vpop.f32.mrb[134].mxu1  ;;  %v1313_v28 = vpop.f32.mrb[119].mxu0 }
 0x20e   : > { %v1848_v11 = vpop.f32.mrb[135].mxu1  ;;  %v2227_v7 = vrot.slane %v1616_v6, 1 }
 0x210   : > { %v2236_v27 = vsel %vm2233_vm0, %v2226_v30, %v2227_v7 }
 0x211   : > { %v4429_v47 = vadd.f32 %v2236_v27, %v1609_v63 }
 0x212   : > { %v1316_v51 = vpop.f32.mrb[120].mxu0 }
 0x213   : > { %4822 = vst [vmem:[#allocation17_spill] sm:$0xff] %v4429_v47  ;;  %v4431_v20 = vpop.f32.mrb[136].mxu1  ;;  %v1622_v37 = vadd.f32 %v4204_v55, %v1316_v51  ;;  %v1318_v43 = vpop.f32.mrb[121].mxu0 }
 0x214   : > { %v1853_v16 = vpop.f32.mrb[137].mxu1  ;;  %v1624_v39 = vadd.f32 %v4206_v57, %v1318_v43  ;;  %v1320_v38 = vpop.f32.mrb[122].mxu0 }
 0x215   : > { %v4435_v48 = vpop.f32.mrb[138].mxu1  ;;  %v1626_v15 = vadd.f32 %v4208_v62, %v1320_v38  ;;  %v1322_v40 = vpop.f32.mrb[123].mxu0 }
 0x216   : > { %v1856_v33 = vpop.f32.mrb[139].mxu1  ;;  %v1628_v2 = vadd.f32 %v4823_v18, %v1322_v40  ;;  %v2228_v63 = vrot.slane %v1624_v39, 1 }
 0x218   : > { %v2229_v30 = vrot.slane %v1628_v2, 1 }
 0x21a   : > { %v2235_v58 = vsel %vm2233_vm0, %v2228_v63, %v2229_v30  ;;  %v1326_v5 = vpop.f32.mrb[124].mxu0 }
 0x21b   : > { %v4441_v55 = vpop.f32.mrb[140].mxu1  ;;  %v4443_v24 = vadd.f32 %v2235_v58, %v1622_v37  ;;  %v1327_v57 = vpop.f32.mrb[125].mxu0 }
 0x21c   : > { %v1861_v61 = vpop.f32.mrb[141].mxu1  ;;  %v1633_v6 = vadd.f32 %v4216_v12, %v1327_v57  ;;  %v1329_v45 = vpop.f32.mrb[126].mxu0 }
 0x21d   : > { %4824 = vst [vmem:[#allocation2_spill] sm:$0xff] %v4443_v24  ;;  %v1862_v62 = vpop.f32.mrb[142].mxu1  ;;  %v1330_v26 = vpop.f32.mrb[127].mxu0 }
 0x21e   : > { %v1863_v28 = vpop.f32.mrb[143].mxu1  ;;  %v2230_v11 = vrot.slane %v1633_v6, 1 }
 0x220   : > { %v2234_v7 = vsel %vm2233_vm0, %v2229_v30, %v2230_v11 }
 0x221   : > { %v4448_v27 = vadd.f32 %v2234_v7, %v1626_v15 }
 0x222   : > { %v1366_v51 = vpop.f32.mrb[0].mxu0 }
 0x223   : > { %4825 = vst [vmem:[#allocation18_spill] sm:$0xff] %v4448_v27  ;;  %v4450_v43 = vpop.f32.mrb[144].mxu1  ;;  %v1368_v16 = vpop.f32.mrb[1].mxu0 }
 0x224   : > { %4826 = vst [vmem:[#allocation19_spill] sm:$0xff] %v4450_v43  ;;  %v1868_v37 = vpop.f32.mrb[145].mxu1  ;;  %v1370_v39 = vpop.f32.mrb[2].mxu0  ;;  %v2183_v33 = vrot.slane %v1368_v16, 1 }
 0x225   : > { %v4452_v38 = vpop.f32.mrb[146].mxu1  ;;  %v1372_v40 = vpop.f32.mrb[3].mxu0 }
 0x226   : > { %4827 = vst [vmem:[#allocation20_spill] sm:$0xff] %v4452_v38  ;;  %v1871_v12 = vpop.f32.mrb[147].mxu1  ;;  %v2184_v18 = vrot.slane %v1372_v40, 1 }
 0x228   : > { %v2265_v2 = vsel %vm2233_vm0, %v2183_v33, %v2184_v18 }
 0x229   : > { %v4456_v63 = vadd.f32 %v2265_v2, %v1366_v51 }
 0x22a   : > { %v1376_v30 = vpop.f32.mrb[4].mxu0 }
 0x22b   : > { %v4458_v15 = vpop.f32.mrb[148].mxu1  ;;  %v1377_v58 = vpop.f32.mrb[5].mxu0 }
 0x22c   : > { %v1876_v5 = vpop.f32.mrb[149].mxu1  ;;  %v2185_v57 = vrot.slane %v1377_v58, 1  ;;  %v1379_v61 = vpop.f32.mrb[6].mxu0 }
 0x22d   : > { %v1877_v6 = vpop.f32.mrb[150].mxu1  ;;  %v1380_v45 = vpop.f32.mrb[7].mxu0 }
 0x22e   : > { %v1878_v62 = vpop.f32.mrb[151].mxu1  ;;  %v2264_v26 = vsel %vm2233_vm0, %v2184_v18, %v2185_v57 }
 0x22f   : > { %v4462_v28 = vadd.f32 %v2264_v26, %v1370_v39 }
 0x232   : > { %v1383_v11 = vpop.f32.mrb[8].mxu0 }
 0x233   : > { %v4464_v7 = vpop.f32.mrb[152].mxu1  ;;  %v1385_v51 = vpop.f32.mrb[9].mxu0 }
 0x234   : > { %4828 = vst [vmem:[#allocation21_spill] sm:$0xff] %v4464_v7  ;;  %v1883_v16 = vpop.f32.mrb[153].mxu1  ;;  %v1387_v37 = vpop.f32.mrb[10].mxu0  ;;  %v2186_v2 = vrot.slane %v1385_v51, 1 }
 0x235   : > { %v4466_v40 = vpop.f32.mrb[154].mxu1  ;;  %v1389_v12 = vpop.f32.mrb[11].mxu0 }
 0x236   : > { %4829 = vst [vmem:[#allocation22_spill] sm:$0xff] %v4466_v40  ;;  %v1886_v33 = vpop.f32.mrb[155].mxu1  ;;  %v2187_v30 = vrot.slane %v1389_v12, 1 }
 0x238   : > { %v2263_v58 = vsel %vm2233_vm0, %v2186_v2, %v2187_v30 }
 0x239   : > { %v4470_v5 = vadd.f32 %v2263_v58, %v1383_v11 }
 0x23a   : > { %v1393_v18 = vpop.f32.mrb[12].mxu0 }
 0x23b   : > { %v4472_v39 = vpop.f32.mrb[156].mxu1  ;;  %v1394_v57 = vpop.f32.mrb[13].mxu0 }
 0x23c   : > { %4830 = vst [vmem:[#allocation23_spill] sm:$0xff] %v4472_v39  ;;  %v1891_v61 = vpop.f32.mrb[157].mxu1  ;;  %v2188_v6 = vrot.slane %v1394_v57, 1  ;;  %v1396_v45 = vpop.f32.mrb[14].mxu0 }
 0x23d   : > { %v1892_v62 = vpop.f32.mrb[158].mxu1  ;;  %v1397_v26 = vpop.f32.mrb[15].mxu0 }
 0x23e   : > { %v1893_v16 = vpop.f32.mrb[159].mxu1  ;;  %v2262_v33 = vsel %vm2233_vm0, %v2187_v30, %v2188_v6 }
 0x23f   : > { %v4476_v51 = vadd.f32 %v2262_v33, %v1387_v37 }
 0x242   : > { %v1400_v12 = vpop.f32.mrb[16].mxu0 }
 0x243   : > { %v4478_v24 = vpop.f32.mrb[160].mxu1  ;;  %v1402_v11 = vpop.f32.mrb[17].mxu0 }
 0x244   : > { %4831 = vst [vmem:[#allocation24_spill] sm:$0xff] %v4478_v24  ;;  %v1898_v2 = vpop.f32.mrb[161].mxu1  ;;  %v1404_v58 = vpop.f32.mrb[18].mxu0  ;;  %v2189_v57 = vrot.slane %v1402_v11, 1 }
 0x245   : > { %v4480_v18 = vpop.f32.mrb[162].mxu1  ;;  %v1406_v27 = vpop.f32.mrb[19].mxu0 }
 0x246   : > { %4832 = vst [vmem:[#allocation25_spill] sm:$0xff] %v4480_v18  ;;  %v1901_v61 = vpop.f32.mrb[163].mxu1  ;;  %v2190_v45 = vrot.slane %v1406_v27, 1 }
 0x248   : > { %v2261_v62 = vsel %vm2233_vm0, %v2189_v57, %v2190_v45 }
 0x249   : > { %v4484_v26 = vadd.f32 %v2261_v62, %v1400_v12 }
 0x24a   : > { %v1410_v30 = vpop.f32.mrb[20].mxu0 }
 0x24b   : > { %v4486_v37 = vpop.f32.mrb[164].mxu1  ;;  %v1411_v6 = vpop.f32.mrb[21].mxu0 }
 0x24c   : > { %4833 = vst [vmem:[#allocation26_spill] sm:$0xff] %v4486_v37  ;;  %v1906_v16 = vpop.f32.mrb[165].mxu1  ;;  %v2191_v33 = vrot.slane %v1411_v6, 1  ;;  %v1413_v24 = vpop.f32.mrb[22].mxu0 }
 0x24d   : > { %v1907_v2 = vpop.f32.mrb[166].mxu1  ;;  %v1414_v47 = vpop.f32.mrb[23].mxu0 }
 0x24e   : > { %v1908_v59 = vpop.f32.mrb[167].mxu1  ;;  %v2260_v61 = vsel %vm2233_vm0, %v2190_v45, %v2191_v33  ;;  %v4834_v2 = vld [vmem:[#allocation3_spill] sm:$0xff] }
 0x24f   : > { %v4490_v11 = vadd.f32 %v2260_v61, %v1404_v58 }
 0x252   : > { %v1417_v27 = vpop.f32.mrb[24].mxu0 }
 0x253   : > { %v3191_v18 = vpop.f32.mrb[168].mxu1  ;;  %v1419_v57 = vpop.f32.mrb[25].mxu0 }
 0x254   : > { %v1953_v12 = vadd.f32 %v3191_v18, %v4230_v1  ;;  %v1944_v62 = vpop.f32.mrb[169].mxu1  ;;  %v1421_v37 = vpop.f32.mrb[26].mxu0  ;;  %v2192_v47 = vrot.slane %v1419_v57, 1  ;;  %v4507_v57 = vld [vmem:[%s4801_s2] ss:$0 sm:$0xff] }
 0x255   : > { %v1945_v30 = vadd.f32 %v1944_v62, %v4222_v32  ;;  %v3192_v16 = vpop.f32.mrb[170].mxu1  ;;  %v1423_v6 = vpop.f32.mrb[27].mxu0 }
 0x256   : > { %v1947_v24 = vpop.f32.mrb[171].mxu1  ;;  %v2193_v59 = vrot.slane %v1423_v6, 1  ;;  %v2300_v58 = vrot.slane %v1953_v12, 2 }
 0x257   : > { %v1948_v40 = vadd.f32 %v1947_v24, %v4834_v2  ;;  %v2298_v45 = vrot.slane %v1945_v30, 2 }
 0x258   : > { %v2259_v1 = vsel %vm2233_vm0, %v2192_v47, %v2193_v59  ;;  %v4835_v47 = vld [vmem:[#allocation4_spill] sm:$0xff] }
 0x259   : > { %v2299_v18 = vrot.slane %v1948_v40, 2  ;;  %v4498_v33 = vadd.f32 %v2259_v1, %v1417_v27 }
 0x25a   : > { %v1427_v62 = vpop.f32.mrb[28].mxu0 }
 0x25b   : > { %v2377_v32 = vsel %vm2346_vm1, %v2299_v18, %v2300_v58  ;;  %v2378_v61 = vsel %vm2346_vm1, %v2298_v45, %v2299_v18  ;;  %v3195_v12 = vpop.f32.mrb[172].mxu1  ;;  %v1428_v16 = vpop.f32.mrb[29].mxu0 }
 0x25c   : > { %v2379_v30 = vadd.f32 %v2378_v61, %v4456_v63  ;;  %v2380_v40 = vadd.f32 %v2377_v32, %v4462_v28  ;;  %v1968_v27 = vadd.f32 %v3195_v12, %v4244_v34  ;;  %v1959_v6 = vpop.f32.mrb[173].mxu1  ;;  %v2194_v24 = vrot.slane %v1428_v16, 1  ;;  %v1430_v58 = vpop.f32.mrb[30].mxu0  ;;  %v4836_v63 = vld [vmem:[#allocation5_spill] sm:$0xff] }
 0x25d   : > { %v1960_v2 = vadd.f32 %v1959_v6, %v4835_v47  ;;  %v3196_v45 = vpop.f32.mrb[174].mxu1  ;;  %v1431_v62 = vpop.f32.mrb[31].mxu0 }
 0x25e   : > { %v2418_v1 = vadd.f32 %v4507_v57, %v2379_v30  ;;  %v2419_v18 = vadd.f32 %v4507_v57, %v2380_v40  ;;  %v1962_v7 = vpop.f32.mrb[175].mxu1  ;;  %v2258_v34 = vsel %vm2233_vm0, %v2193_v59, %v2194_v24  ;;  %v2303_v12 = vrot.slane %v1968_v27, 2  ;;  %v4837_v27 = vld [vmem:[#allocation6_spill] sm:$0xff] }
 0x25f   : > { %v1963_v28 = vadd.f32 %v1962_v7, %v4836_v63  ;;  %v4524_v61 = vadd.f32 %v2258_v34, %v1421_v37  ;;  %v2301_v30 = vrot.slane %v1960_v2, 2 }
 0x260   : > { %v3041_v32 = vpack.c.bf16 %v2419_v18, %v2418_v1  ;;  %v2647_v63 = vmul.f32 %v2418_v1, %v2418_v1 }
 0x261   : > { %v2302_v16 = vrot.slane %v1963_v28, 2  ;;  %v2648_v28 = vmul.f32 %v2419_v18, %v2419_v18 }
 0x262   : > { %3042 = vst [vmem:[%s4519_s21] sm:$0xff] %v3041_v32   ;;  %v1434_v47 = vpop.f32.mrb[32].mxu0 }
 0x263   : > { %v2375_v40 = vsel %vm2346_vm1, %v2302_v16, %v2303_v12  ;;  %v2376_v6 = vsel %vm2346_vm1, %v2301_v30, %v2302_v16  ;;  %v3199_v58 = vpop.f32.mrb[176].mxu1  ;;  %v1436_v37 = vpop.f32.mrb[33].mxu0 }
 0x264   : > { %v2381_v45 = vadd.f32 %v2376_v6, %v4470_v5  ;;  %v2382_v59 = vadd.f32 %v2375_v40, %v4476_v51  ;;  %v1983_v7 = vadd.f32 %v3199_v58, %v4258_v49  ;;  %v1974_v24 = vpop.f32.mrb[177].mxu1  ;;  %v1438_v62 = vpop.f32.mrb[34].mxu0  ;;  %v2195_v6 = vrot.slane %v1436_v37, 1  ;;  %v4838_v40 = vld [vmem:[#allocation7_spill] sm:$0xff] }
 0x265   : > { %v1975_v2 = vadd.f32 %v1974_v24, %v4837_v27  ;;  %v3200_v34 = vpop.f32.mrb[178].mxu1  ;;  %v1440_v30 = vpop.f32.mrb[35].mxu0 }
 0x266   : > { %v2420_v32 = vadd.f32 %v4507_v57, %v2381_v45  ;;  %v2421_v12 = vadd.f32 %v4507_v57, %v2382_v59  ;;  %v1977_v16 = vpop.f32.mrb[179].mxu1  ;;  %v2306_v5 = vrot.slane %v1983_v7, 2  ;;  %v2196_v51 = vrot.slane %v1440_v30, 1 }
 0x267   : > { %v1978_v49 = vadd.f32 %v1977_v16, %v4838_v40  ;;  %v2304_v34 = vrot.slane %v1975_v2, 2 }
 0x268   : > { %v3046_v58 = vpack.c.bf16 %v2421_v12, %v2420_v32  ;;  %v2610_v10 = vadd.f32 %v2420_v32, %v2418_v1  ;;  %v2625_v50 = vadd.f32 %v2421_v12, %v2419_v18  ;;  %v2649_v24 = vmul.f32 %v2420_v32, %v2420_v32 }
 0x269   : > { %v2650_v27 = vmul.f32 %v2421_v12, %v2421_v12  ;;  %v2257_v39 = vsel %vm2233_vm0, %v2195_v6, %v2196_v51  ;;  %v2305_v45 = vrot.slane %v1978_v49, 2 }
 0x26a   : > { %3118 = vst [vmem:[%s4519_s21 + $0x8] sm:$0xff] %v3046_v58   ;;  %v2679_v38 = vadd.f32 %v2649_v24, %v2647_v63  ;;  %v4541_v59 = vadd.f32 %v2257_v39, %v1434_v47  ;;  %v1444_v1 = vpop.f32.mrb[36].mxu0 }
 0x26b   : > { %v2694_v43 = vadd.f32 %v2650_v27, %v2648_v28  ;;  %v2373_v7 = vsel %vm2346_vm1, %v2305_v45, %v2306_v5  ;;  %v2374_v37 = vsel %vm2346_vm1, %v2304_v34, %v2305_v45  ;;  %v3203_v18 = vpop.f32.mrb[180].mxu1  ;;  %v1445_v30 = vpop.f32.mrb[37].mxu0 }
 0x26c   : > { %v2383_v32 = vadd.f32 %v2374_v37, %v4484_v26  ;;  %v2384_v2 = vadd.f32 %v2373_v7, %v4490_v11  ;;  %v1998_v12 = vadd.f32 %v3203_v18, %v4272_v9  ;;  %v1989_v16 = vpop.f32.mrb[181].mxu1  ;;  %v2197_v39 = vrot.slane %v1445_v30, 1  ;;  %v1447_v63 = vpop.f32.mrb[38].mxu0 }
 0x26d   : > { %v1990_v47 = vadd.f32 %v1989_v16, %v4264_v44  ;;  %v3204_v28 = vpop.f32.mrb[182].mxu1  ;;  %v1448_v40 = vpop.f32.mrb[39].mxu0 }
 0x26e   : > { %v2422_v5 = vadd.f32 %v4507_v57, %v2383_v32  ;;  %v2423_v6 = vadd.f32 %v4507_v57, %v2384_v2  ;;  %v1992_v49 = vpop.f32.mrb[183].mxu1  ;;  %v2309_v26 = vrot.slane %v1998_v12, 2  ;;  %v2256_v11 = vsel %vm2233_vm0, %v2196_v51, %v2197_v39 }
 0x26f   : > { %v1993_v9 = vadd.f32 %v1992_v49, %v4266_v41  ;;  %v2275_v45 = vadd.f32 %v2256_v11, %v1438_v62  ;;  %v2307_v7 = vrot.slane %v1990_v47, 2  ;;  %v3570_v12 = vmov 0.0  }
 0x270   : > { %v3051_v58 = vpack.c.bf16 %v2423_v6, %v2422_v5  ;;  %v2611_v24 = vadd.f32 %v2610_v10, %v2422_v5  ;;  %v2626_v27 = vadd.f32 %v2625_v50, %v2423_v6  ;;  %v2651_v34 = vmul.f32 %v2422_v5, %v2422_v5  ;;  %2718 = vst [vmem:[%s4565_s25 + $0x2] sm:$0x3f] %v3570_v12 }
 0x271   : > { %v2652_v44 = vmul.f32 %v2423_v6, %v2423_v6  ;;  %v2308_v37 = vrot.slane %v1993_v9, 2 }
 0x272   : > { %3119 = vst [vmem:[%s4519_s21 + $0x10] sm:$0xff] %v3051_v58   ;;  %v2680_v1 = vadd.f32 %v2679_v38, %v2651_v34  ;;  %v1451_v2 = vpop.f32.mrb[40].mxu0 }
 0x273   : > { %v2695_v18 = vadd.f32 %v2694_v43, %v2652_v44  ;;  %v2371_v32 = vsel %vm2346_vm1, %v2308_v37, %v2309_v26  ;;  %v2372_v51 = vsel %vm2346_vm1, %v2307_v7, %v2308_v37  ;;  %v3207_v41 = vpop.f32.mrb[184].mxu1  ;;  %v1453_v38 = vpop.f32.mrb[41].mxu0 }
 0x274   : > { %v2385_v50 = vadd.f32 %v2372_v51, %v4498_v33  ;;  %v2386_v10 = vadd.f32 %v2371_v32, %v4524_v61  ;;  %v2013_v43 = vadd.f32 %v3207_v41, %v4286_v21  ;;  %v2004_v62 = vpop.f32.mrb[185].mxu1  ;;  %v1455_v16 = vpop.f32.mrb[42].mxu0  ;;  %v2198_v6 = vrot.slane %v1453_v38, 1 }
 0x275   : > { %v2005_v30 = vadd.f32 %v2004_v62, %v4278_v14  ;;  %v3208_v39 = vpop.f32.mrb[186].mxu1  ;;  %v1457_v28 = vpop.f32.mrb[43].mxu0 }
 0x276   : > { %v2424_v47 = vadd.f32 %v4507_v57, %v2385_v50  ;;  %v2425_v63 = vadd.f32 %v4507_v57, %v2386_v10  ;;  %v2007_v5 = vpop.f32.mrb[187].mxu1  ;;  %v2312_v33 = vrot.slane %v2013_v43, 2  ;;  %v2199_v61 = vrot.slane %v1457_v28, 1 }
 0x277   : > { %v2008_v21 = vadd.f32 %v2007_v5, %v4280_v53  ;;  %v2310_v14 = vrot.slane %v2005_v30, 2 }
 0x278   : > { %v3056_v40 = vpack.c.bf16 %v2425_v63, %v2424_v47  ;;  %v2612_v49 = vadd.f32 %v2611_v24, %v2424_v47  ;;  %v2627_v26 = vadd.f32 %v2626_v27, %v2425_v63  ;;  %v2653_v11 = vmul.f32 %v2424_v47, %v2424_v47 }
 0x279   : > { %v2654_v9 = vmul.f32 %v2425_v63, %v2425_v63  ;;  %v2255_v58 = vsel %vm2233_vm0, %v2198_v6, %v2199_v61  ;;  %v2311_v34 = vrot.slane %v2008_v21, 2 }
 0x27a   : > { %3120 = vst [vmem:[%s4519_s21 + $0x18] sm:$0xff] %v3056_v40   ;;  %v2681_v44 = vadd.f32 %v2680_v1, %v2653_v11  ;;  %v2276_v7 = vadd.f32 %v2255_v58, %v1451_v2  ;;  %v1461_v51 = vpop.f32.mrb[44].mxu0 }
 0x27b   : > { %v2696_v37 = vadd.f32 %v2695_v18, %v2654_v9  ;;  %v2369_v32 = vsel %vm2346_vm1, %v2311_v34, %v2312_v33  ;;  %v2370_v53 = vsel %vm2346_vm1, %v2310_v14, %v2311_v34  ;;  %v3211_v24 = vpop.f32.mrb[188].mxu1  ;;  %v1462_v10 = vpop.f32.mrb[45].mxu0 }
 0x27c   : > { %v2387_v27 = vadd.f32 %v2370_v53, %v4541_v59  ;;  %v2388_v41 = vadd.f32 %v2369_v32, %v2275_v45  ;;  %v2028_v50 = vadd.f32 %v3211_v24, %v4300_v29  ;;  %v2019_v43 = vpop.f32.mrb[189].mxu1  ;;  %v2200_v38 = vrot.slane %v1462_v10, 1  ;;  %v1464_v2 = vpop.f32.mrb[46].mxu0 }
 0x27d   : > { %v2020_v1 = vadd.f32 %v2019_v43, %v4292_v25  ;;  %v3212_v18 = vpop.f32.mrb[190].mxu1  ;;  %v1465_v30 = vpop.f32.mrb[47].mxu0 }
 0x27e   : > { %v2426_v62 = vadd.f32 %v4507_v57, %v2387_v27  ;;  %v2427_v12 = vadd.f32 %v4507_v57, %v2388_v41  ;;  %v2022_v39 = vpop.f32.mrb[191].mxu1  ;;  %v2315_v47 = vrot.slane %v2028_v50, 2  ;;  %v2254_v59 = vsel %vm2233_vm0, %v2199_v61, %v2200_v38 }
 0x27f   : > { %v2023_v29 = vadd.f32 %v2022_v39, %v4294_v3  ;;  %v2277_v33 = vadd.f32 %v2254_v59, %v1455_v16  ;;  %v2313_v6 = vrot.slane %v2020_v1, 2 }
 0x280   : > { %v3061_v45 = vpack.c.bf16 %v2427_v12, %v2426_v62  ;;  %v2613_v63 = vadd.f32 %v2612_v49, %v2426_v62  ;;  %v2628_v28 = vadd.f32 %v2627_v26, %v2427_v12  ;;  %v2655_v5 = vmul.f32 %v2426_v62, %v2426_v62 }
 0x281   : > { %v2656_v25 = vmul.f32 %v2427_v12, %v2427_v12  ;;  %v2314_v21 = vrot.slane %v2023_v29, 2 }
 0x282   : > { %3121 = vst [vmem:[%s4519_s21 + $0x20] sm:$0xff] %v3061_v45   ;;  %v2682_v40 = vadd.f32 %v2681_v44, %v2655_v5  ;;  %v1468_v61 = vpop.f32.mrb[48].mxu0  ;;  %v4840_v5 = vld [vmem:[#allocation11_spill] sm:$0xff] }
 0x283   : > { %v2697_v11 = vadd.f32 %v2696_v37, %v2656_v25  ;;  %v2367_v9 = vsel %vm2346_vm1, %v2314_v21, %v2315_v47  ;;  %v2368_v14 = vsel %vm2346_vm1, %v2313_v6, %v2314_v21  ;;  %v3215_v58 = vpop.f32.mrb[192].mxu1  ;;  %v1470_v26 = vpop.f32.mrb[49].mxu0 }
 0x284   : > { %v2389_v3 = vadd.f32 %v2368_v14, %v2276_v7  ;;  %v2390_v34 = vadd.f32 %v2367_v9, %v2277_v33  ;;  %v2043_v49 = vadd.f32 %v3215_v58, %v4314_v35  ;;  %v2034_v32 = vpop.f32.mrb[193].mxu1  ;;  %v1472_v53 = vpop.f32.mrb[50].mxu0  ;;  %v2201_v50 = vrot.slane %v1470_v26, 1  ;;  %v4839_v7 = vld [vmem:[#allocation8_spill] sm:$0xff]  ;;  %v4841_v9 = vld [vmem:[#allocation9_spill] sm:$0xff] }
 0x285   : > { %v2035_v16 = vadd.f32 %v2034_v32, %v4306_v31  ;;  %v3216_v51 = vpop.f32.mrb[194].mxu1  ;;  %v1474_v24 = vpop.f32.mrb[51].mxu0 }
 0x286   : > { %v2428_v44 = vadd.f32 %v4507_v57, %v2389_v3  ;;  %v2429_v37 = vadd.f32 %v4507_v57, %v2390_v34  ;;  %v2037_v27 = vpop.f32.mrb[195].mxu1  ;;  %v2318_v41 = vrot.slane %v2043_v49, 2  ;;  %v2202_v10 = vrot.slane %v1474_v24, 1  ;;  %v4842_v49 = vld [vmem:[#allocation10_spill] sm:$0xff] }
 0x287   : > { %v2038_v43 = vadd.f32 %v2037_v27, %v4839_v7  ;;  %v2316_v31 = vrot.slane %v2035_v16, 2 }
 0x288   : > { %v3066_v38 = vpack.c.bf16 %v2429_v37, %v2428_v44  ;;  %v2614_v35 = vadd.f32 %v2613_v63, %v2428_v44  ;;  %v2629_v1 = vadd.f32 %v2628_v28, %v2429_v37  ;;  %v2657_v2 = vmul.f32 %v2428_v44, %v2428_v44 }
 0x289   : > { %v2658_v18 = vmul.f32 %v2429_v37, %v2429_v37  ;;  %v2253_v62 = vsel %vm2233_vm0, %v2201_v50, %v2202_v10  ;;  %v2317_v12 = vrot.slane %v2038_v43, 2 }
 0x28a   : > { %3122 = vst [vmem:[%s4519_s21 + $0x28] sm:$0xff] %v3066_v38   ;;  %v2683_v30 = vadd.f32 %v2682_v40, %v2657_v2  ;;  %v2278_v39 = vadd.f32 %v2253_v62, %v1468_v61  ;;  %v1478_v45 = vpop.f32.mrb[52].mxu0 }
 0x28b   : > { %v2698_v47 = vadd.f32 %v2697_v11, %v2658_v18  ;;  %v2365_v59 = vsel %vm2346_vm1, %v2317_v12, %v2318_v41  ;;  %v2366_v29 = vsel %vm2346_vm1, %v2316_v31, %v2317_v12  ;;  %v3219_v63 = vpop.f32.mrb[196].mxu1  ;;  %v1479_v33 = vpop.f32.mrb[53].mxu0  ;;  %v4843_v18 = vld [vmem:[#allocation12_spill] sm:$0xff] }
 0x28c   : > { %v2391_v28 = vadd.f32 %v2366_v29, %v2278_v39  ;;  %v2058_v25 = vadd.f32 %v3219_v63, %v4840_v5  ;;  %v2049_v6 = vpop.f32.mrb[197].mxu1  ;;  %v2203_v21 = vrot.slane %v1479_v33, 1  ;;  %v1481_v58 = vpop.f32.mrb[54].mxu0  ;;  %v4844_v5 = vld [vmem:[#allocation13_spill] sm:$0xff] }
 0x28d   : > { %v2050_v14 = vadd.f32 %v2049_v6, %v4841_v9  ;;  %v3220_v40 = vpop.f32.mrb[198].mxu1  ;;  %v1482_v61 = vpop.f32.mrb[55].mxu0 }
 0x28e   : > { %v2430_v11 = vadd.f32 %v4507_v57, %v2391_v28  ;;  %v2052_v3 = vpop.f32.mrb[199].mxu1  ;;  %v2252_v34 = vsel %vm2233_vm0, %v2202_v10, %v2203_v21  ;;  %v2321_v44 = vrot.slane %v2058_v25, 2 }
 0x28f   : > { %v2053_v26 = vadd.f32 %v2052_v3, %v4842_v49  ;;  %v2279_v51 = vadd.f32 %v2252_v34, %v1472_v53  ;;  %v2319_v37 = vrot.slane %v2050_v14, 2 }
 0x290   : > { %v2615_v32 = vadd.f32 %v2614_v35, %v2430_v11  ;;  %v2659_v16 = vmul.f32 %v2430_v11, %v2430_v11 }
 0x291   : > { %v2320_v24 = vrot.slane %v2053_v26, 2  ;;  %v2392_v41 = vadd.f32 %v2365_v59, %v2279_v51 }
 0x292   : > { %v2684_v27 = vadd.f32 %v2683_v30, %v2659_v16  ;;  %v1485_v43 = vpop.f32.mrb[56].mxu0 }
 0x293   : > { %v2363_v50 = vsel %vm2346_vm1, %v2320_v24, %v2321_v44  ;;  %v2364_v7 = vsel %vm2346_vm1, %v2319_v37, %v2320_v24  ;;  %v3223_v38 = vpop.f32.mrb[200].mxu1  ;;  %v2431_v10 = vadd.f32 %v4507_v57, %v2392_v41  ;;  %v1487_v2 = vpop.f32.mrb[57].mxu0 }
 0x294   : > { %v2073_v35 = vadd.f32 %v3223_v38, %v4351_v56  ;;  %v2064_v53 = vpop.f32.mrb[201].mxu1  ;;  %v1489_v62 = vpop.f32.mrb[58].mxu0  ;;  %v2204_v63 = vrot.slane %v1487_v2, 1 }
 0x295   : > { %v2065_v31 = vadd.f32 %v2064_v53, %v4843_v18  ;;  %v3224_v12 = vpop.f32.mrb[202].mxu1  ;;  %v3071_v30 = vpack.c.bf16 %v2431_v10, %v2430_v11  ;;  %v2630_v39 = vadd.f32 %v2629_v1, %v2431_v10  ;;  %v2660_v59 = vmul.f32 %v2431_v10, %v2431_v10  ;;  %v1491_v29 = vpop.f32.mrb[59].mxu0 }
 0x296   : > { %v2067_v45 = vpop.f32.mrb[203].mxu1  ;;  %v2205_v28 = vrot.slane %v1491_v29, 1  ;;  %v2324_v6 = vrot.slane %v2073_v35, 2 }
 0x297   : > { %v2068_v25 = vadd.f32 %v2067_v45, %v4844_v5  ;;  %3123 = vst [vmem:[%s4519_s21 + $0x30] sm:$0xff] %v3071_v30   ;;  %v2699_v33 = vadd.f32 %v2698_v47, %v2660_v59  ;;  %v2322_v21 = vrot.slane %v2065_v31, 2 }
 0x298   : > { %v2251_v56 = vsel %vm2233_vm0, %v2204_v63, %v2205_v28 }
 0x299   : > { %v2323_v9 = vrot.slane %v2068_v25, 2  ;;  %v2280_v14 = vadd.f32 %v2251_v56, %v1485_v43 }
 0x29a   : > { %v1495_v40 = vpop.f32.mrb[60].mxu0 }
 0x29b   : > { %v4626_v58 = vsel %vm2346_vm1, %v2323_v9, %v2324_v6  ;;  %v2362_v1 = vsel %vm2346_vm1, %v2322_v21, %v2323_v9  ;;  %v3227_v11 = vpop.f32.mrb[204].mxu1  ;;  %v2393_v61 = vadd.f32 %v2364_v7, %v2280_v14  ;;  %v1496_v47 = vpop.f32.mrb[61].mxu0 }
 0x29c   : > { %v2088_v3 = vadd.f32 %v3227_v11, %v4378_v22  ;;  %v2079_v34 = vpop.f32.mrb[205].mxu1  ;;  %v2206_v49 = vrot.slane %v1496_v47, 1  ;;  %v1498_v16 = vpop.f32.mrb[62].mxu0 }
 0x29d   : > { %v2080_v26 = vadd.f32 %v2079_v34, %v4364_v54  ;;  %v3228_v51 = vpop.f32.mrb[206].mxu1  ;;  %v2432_v44 = vadd.f32 %v4507_v57, %v2393_v61  ;;  %v1499_v37 = vpop.f32.mrb[63].mxu0 }
 0x29e   : > { %v2082_v24 = vpop.f32.mrb[207].mxu1  ;;  %v2250_v41 = vsel %vm2233_vm0, %v2205_v28, %v2206_v49  ;;  %v2327_v22 = vrot.slane %v2088_v3, 2 }
 0x29f   : > { %v2083_v43 = vadd.f32 %v2082_v24, %v4368_v42  ;;  %v2616_v38 = vadd.f32 %v2615_v32, %v2432_v44  ;;  %v2661_v7 = vmul.f32 %v2432_v44, %v2432_v44  ;;  %v2281_v10 = vadd.f32 %v2250_v41, %v1489_v62 }
 0x2a0   : > { %v2325_v35 = vrot.slane %v2080_v26, 2 }
 0x2a1   : > { %v2326_v2 = vrot.slane %v2083_v43, 2  ;;  %v2685_v53 = vadd.f32 %v2684_v27, %v2661_v7  ;;  %v2394_v18 = vadd.f32 %v2363_v50, %v2281_v10 }
 0x2a2   : > { %v1502_v12 = vpop.f32.mrb[64].mxu0 }
 0x2a3   : > { %v4638_v54 = vsel %vm2346_vm1, %v2326_v2, %v2327_v22  ;;  %v4642_v31 = vsel %vm2346_vm1, %v2325_v35, %v2326_v2  ;;  %v3231_v30 = vpop.f32.mrb[208].mxu1  ;;  %v2433_v42 = vadd.f32 %v4507_v57, %v2394_v18  ;;  %v1504_v62 = vpop.f32.mrb[65].mxu0 }
 0x2a4   : > { %v2103_v32 = vadd.f32 %v3231_v30, %v4403_v4  ;;  %v2094_v59 = vpop.f32.mrb[209].mxu1  ;;  %v1506_v50 = vpop.f32.mrb[66].mxu0  ;;  %v2207_v6 = vrot.slane %v1504_v62, 1 }
 0x2a5   : > { %v2095_v27 = vadd.f32 %v2094_v59, %v4391_v0  ;;  %v3232_v29 = vpop.f32.mrb[210].mxu1  ;;  %v3076_v45 = vpack.c.bf16 %v2433_v42, %v2432_v44  ;;  %v2631_v63 = vadd.f32 %v2630_v39, %v2433_v42  ;;  %v2662_v28 = vmul.f32 %v2433_v42, %v2433_v42  ;;  %v1508_v5 = vpop.f32.mrb[67].mxu0 }
 0x2a6   : > { %v2097_v25 = vpop.f32.mrb[211].mxu1  ;;  %v2208_v21 = vrot.slane %v1508_v5, 1  ;;  %v2330_v14 = vrot.slane %v2103_v32, 2 }
 0x2a7   : > { %v2098_v56 = vadd.f32 %v2097_v25, %v4395_v13  ;;  %3124 = vst [vmem:[%s4519_s21 + $0x38] sm:$0xff] %v3076_v45   ;;  %v2700_v9 = vadd.f32 %v2699_v33, %v2662_v28  ;;  %v2328_v40 = vrot.slane %v2095_v27, 2 }
 0x2a8   : > { %v2249_v4 = vsel %vm2233_vm0, %v2207_v6, %v2208_v21 }
 0x2a9   : > { %v2329_v11 = vrot.slane %v2098_v56, 2  ;;  %v2282_v0 = vadd.f32 %v2249_v4, %v1502_v12 }
 0x2aa   : > { %v1512_v3 = vpop.f32.mrb[68].mxu0 }
 0x2ab   : > { %v4653_v61 = vsel %vm2346_vm1, %v2329_v11, %v2330_v14  ;;  %v4657_v39 = vsel %vm2346_vm1, %v2328_v40, %v2329_v11  ;;  %v3235_v47 = vpop.f32.mrb[212].mxu1  ;;  %v2395_v13 = vadd.f32 %v2362_v1, %v2282_v0  ;;  %v1513_v34 = vpop.f32.mrb[69].mxu0 }
 0x2ac   : > { %v2118_v33 = vadd.f32 %v3235_v47, %v4422_v23  ;;  %v2109_v49 = vpop.f32.mrb[213].mxu1  ;;  %v2209_v26 = vrot.slane %v1513_v34, 1  ;;  %v1515_v51 = vpop.f32.mrb[70].mxu0 }
 0x2ad   : > { %v2110_v16 = vadd.f32 %v2109_v49, %v4412_v8  ;;  %v3236_v44 = vpop.f32.mrb[214].mxu1  ;;  %v2434_v37 = vadd.f32 %v4507_v57, %v2395_v13  ;;  %v1516_v24 = vpop.f32.mrb[71].mxu0 }
 0x2ae   : > { %v2112_v41 = vpop.f32.mrb[215].mxu1  ;;  %v2248_v43 = vsel %vm2233_vm0, %v2208_v21, %v2209_v26  ;;  %v2333_v23 = vrot.slane %v2118_v33, 2  ;;  %v4845_v44 = vld [vmem:[#allocation19_spill] sm:$0xff] }
 0x2af   : > { %v2113_v7 = vadd.f32 %v2112_v41, %v4416_v46  ;;  %v2617_v10 = vadd.f32 %v2616_v38, %v2434_v37  ;;  %v2663_v1 = vmul.f32 %v2434_v37, %v2434_v37  ;;  %v2283_v22 = vadd.f32 %v2248_v43, %v1506_v50 }
 0x2b0   : > { %v2331_v35 = vrot.slane %v2110_v16, 2 }
 0x2b1   : > { %v2332_v2 = vrot.slane %v2113_v7, 2  ;;  %v2686_v18 = vadd.f32 %v2685_v53, %v2663_v1  ;;  %v2396_v8 = vadd.f32 %v4626_v58, %v2283_v22 }
 0x2b2   : > { %v1519_v42 = vpop.f32.mrb[72].mxu0 }
 0x2b3   : > { %v2355_v12 = vsel %vm2346_vm1, %v2332_v2, %v2333_v23  ;;  %v2356_v30 = vsel %vm2346_vm1, %v2331_v35, %v2332_v2  ;;  %v3239_v32 = vpop.f32.mrb[216].mxu1  ;;  %v2435_v62 = vadd.f32 %v4507_v57, %v2396_v8  ;;  %v1521_v53 = vpop.f32.mrb[73].mxu0  ;;  %v4846_v35 = vld [vmem:[#allocation20_spill] sm:$0xff] }
 0x2b4   : > { %v2401_v46 = vadd.f32 %v2356_v30, %v4353_v52  ;;  %v2402_v38 = vadd.f32 %v2355_v12, %v4362_v17  ;;  %v2133_v59 = vadd.f32 %v3239_v32, %v4441_v55  ;;  %v2124_v27 = vpop.f32.mrb[217].mxu1  ;;  %v1523_v50 = vpop.f32.mrb[74].mxu0  ;;  %v2210_v55 = vrot.slane %v1521_v53, 1 }
 0x2b5   : > { %v2125_v58 = vadd.f32 %v2124_v27, %v4431_v20  ;;  %v3240_v29 = vpop.f32.mrb[218].mxu1  ;;  %v3081_v45 = vpack.c.bf16 %v2435_v62, %v2434_v37  ;;  %v4675_v28 = vadd.f32 %v2631_v63, %v2435_v62  ;;  %v2664_v5 = vmul.f32 %v2435_v62, %v2435_v62  ;;  %v1525_v52 = vpop.f32.mrb[75].mxu0  ;;  %v4847_v27 = vld [vmem:[#allocation23_spill] sm:$0xff] }
 0x2b6   : > { %v4678_v25 = vadd.f32 %v4507_v57, %v2401_v46  ;;  %v2127_v6 = vpop.f32.mrb[219].mxu1  ;;  %v4681_v17 = vadd.f32 %v4507_v57, %v2402_v38  ;;  %v2211_v21 = vrot.slane %v1525_v52, 1  ;;  %v2336_v40 = vrot.slane %v2133_v59, 2  ;;  %v4848_v29 = vld [vmem:[#allocation14_spill] sm:$0xff]  ;;  %v4850_v52 = vld [vmem:[#allocation21_spill] sm:$0xff] }
 0x2b7   : > { %3125 = vst [vmem:[%s4519_s21 + $0x40] sm:$0xff] %v3081_v45   ;;  %v4684_v56 = vadd.f32 %v2700_v9, %v2664_v5  ;;  %v2128_v20 = vadd.f32 %v2127_v6, %v4435_v48  ;;  %v2334_v4 = vrot.slane %v2125_v58, 2  ;;  %v4849_v45 = vld [vmem:[#allocation15_spill] sm:$0xff] }
 0x2b8   : > { %v3096_v63 = vpack.c.bf16 %v4681_v17, %v4678_v25  ;;  %v2247_v14 = vsel %vm2233_vm0, %v2210_v55, %v2211_v21  ;;  %v2670_v36 = vmul.f32 %v4681_v17, %v4681_v17 }
 0x2b9   : > { %v2284_v11 = vadd.f32 %v2247_v14, %v1519_v42  ;;  %v2335_v0 = vrot.slane %v2128_v20, 2 }
 0x2ba   : > { %3128 = vst [vmem:[%s4519_s21 + $0x58] sm:$0xff] %v3096_v63   ;;  %v1529_v3 = vpop.f32.mrb[76].mxu0 }
 0x2bb   : > { %v3243_v47 = vpop.f32.mrb[220].mxu1  ;;  %v2397_v13 = vadd.f32 %v4642_v31, %v2284_v11  ;;  %v2353_v9 = vsel %vm2346_vm1, %v2335_v0, %v2336_v40  ;;  %v2354_v48 = vsel %vm2346_vm1, %v2334_v4, %v2335_v0  ;;  %v1530_v34 = vpop.f32.mrb[77].mxu0 }
 0x2bc   : > { %v2148_v33 = vadd.f32 %v3243_v47, %v4458_v15  ;;  %v2139_v49 = vpop.f32.mrb[221].mxu1  ;;  %v2403_v26 = vadd.f32 %v2354_v48, %v4380_v60  ;;  %v2404_v16 = vadd.f32 %v2353_v9, %v4389_v19  ;;  %v2212_v51 = vrot.slane %v1530_v34, 1  ;;  %v1532_v24 = vpop.f32.mrb[78].mxu0  ;;  %v4851_v9 = vld [vmem:[#allocation22_spill] sm:$0xff] }
 0x2bd   : > { %v2140_v37 = vadd.f32 %v2139_v49, %v4845_v44  ;;  %v3244_v41 = vpop.f32.mrb[222].mxu1  ;;  %v2436_v31 = vadd.f32 %v4507_v57, %v2397_v13  ;;  %v1533_v43 = vpop.f32.mrb[79].mxu0 }
 0x2be   : > { %v2142_v7 = vpop.f32.mrb[223].mxu1  ;;  %v4703_v1 = vadd.f32 %v4507_v57, %v2403_v26  ;;  %v4706_v15 = vadd.f32 %v4507_v57, %v2404_v16  ;;  %v2246_v60 = vsel %vm2233_vm0, %v2211_v21, %v2212_v51  ;;  %v2339_v12 = vrot.slane %v2148_v33, 2  ;;  %v4852_v41 = vld [vmem:[#allocation26_spill] sm:$0xff] }
 0x2bf   : > { %v4710_v19 = vadd.f32 %v2617_v10, %v2436_v31  ;;  %v2665_v22 = vmul.f32 %v2436_v31, %v2436_v31  ;;  %v2285_v23 = vadd.f32 %v2246_v60, %v1523_v50  ;;  %v2143_v2 = vadd.f32 %v2142_v7, %v4846_v35  ;;  %v4853_v60 = vld [vmem:[#allocation16_spill] sm:$0xff] }
 0x2c0   : > { %v3101_v8 = vpack.c.bf16 %v4706_v15, %v4703_v1  ;;  %v2337_v32 = vrot.slane %v2140_v37, 2 }
 0x2c1   : > { %v4715_v30 = vadd.f32 %v2686_v18, %v2665_v22  ;;  %v2398_v42 = vadd.f32 %v4638_v54, %v2285_v23  ;;  %v2338_v62 = vrot.slane %v2143_v2, 2  ;;  %v4854_v23 = vld [vmem:[#allocation17_spill] sm:$0xff] }
 0x2c2   : > { %3129 = vst [vmem:[%s4519_s21 + $0x60] sm:$0xff] %v3101_v8   ;;  %v1536_v46 = vpop.f32.mrb[80].mxu0  ;;  %v4855_v8 = vld [vmem:[#allocation24_spill] sm:$0xff] }
 0x2c3   : > { %v3247_v38 = vpop.f32.mrb[224].mxu1  ;;  %v2437_v10 = vadd.f32 %v4507_v57, %v2398_v42  ;;  %v2351_v59 = vsel %vm2346_vm1, %v2338_v62, %v2339_v12  ;;  %v2352_v53 = vsel %vm2346_vm1, %v2337_v32, %v2338_v62  ;;  %v1538_v50 = vpop.f32.mrb[81].mxu0 }
 0x2c4   : > { %v2163_v58 = vadd.f32 %v3247_v38, %v4847_v27  ;;  %v2154_v18 = vpop.f32.mrb[225].mxu1  ;;  %v2405_v54 = vadd.f32 %v2352_v53, %v4848_v29  ;;  %v2406_v5 = vadd.f32 %v2351_v59, %v4849_v45  ;;  %v1540_v55 = vpop.f32.mrb[82].mxu0  ;;  %v2213_v3 = vrot.slane %v1538_v50, 1  ;;  %v4856_v50 = vld [vmem:[#allocation25_spill] sm:$0xff] }
 0x2c5   : > { %v2155_v6 = vadd.f32 %v2154_v18, %v4850_v52  ;;  %v3248_v21 = vpop.f32.mrb[226].mxu1  ;;  %v3086_v20 = vpack.c.bf16 %v2437_v10, %v2436_v31  ;;  %v2633_v63 = vadd.f32 %v4675_v28, %v2437_v10  ;;  %v2666_v14 = vmul.f32 %v2437_v10, %v2437_v10  ;;  %v1542_v40 = vpop.f32.mrb[83].mxu0 }
 0x2c6   : > { %v2157_v4 = vpop.f32.mrb[227].mxu1  ;;  %v2444_v11 = vadd.f32 %v4507_v57, %v2405_v54  ;;  %v4731_v0 = vadd.f32 %v4507_v57, %v2406_v5  ;;  %v2214_v47 = vrot.slane %v1542_v40, 1  ;;  %v2342_v34 = vrot.slane %v2163_v58, 2 }
 0x2c7   : > { %3126 = vst [vmem:[%s4519_s21 + $0x48] sm:$0xff] %v3086_v20   ;;  %v4735_v13 = vadd.f32 %v4684_v56, %v2666_v14  ;;  %v2158_v48 = vadd.f32 %v2157_v4, %v4851_v9  ;;  %v2340_v49 = vrot.slane %v2155_v6, 2  ;;  %v2669_v29 = vmul.f32 %v4678_v25, %v4678_v25 }
 0x2c8   : > { %v3106_v33 = vpack.c.bf16 %v4731_v0, %v2444_v11  ;;  %v2245_v28 = vsel %vm2233_vm0, %v2213_v3, %v2214_v47  ;;  %v2671_v20 = vmul.f32 %v4703_v1, %v4703_v1 }
 0x2c9   : > { %v2286_v26 = vadd.f32 %v2245_v28, %v1536_v46  ;;  %v2341_v16 = vrot.slane %v2158_v48, 2 }
 0x2ca   : > { %3130 = vst [vmem:[%s4519_s21 + $0x68] sm:$0xff] %v3106_v33   ;;  %v1546_v51 = vpop.f32.mrb[84].mxu0 }
 0x2cb   : > { %v3251_v44 = vpop.f32.mrb[228].mxu1  ;;  %v2399_v37 = vadd.f32 %v4657_v39, %v2286_v26  ;;  %v2349_v56 = vsel %vm2346_vm1, %v2341_v16, %v2342_v34  ;;  %v2350_v24 = vsel %vm2346_vm1, %v2340_v49, %v2341_v16  ;;  %v1547_v43 = vpop.f32.mrb[85].mxu0  ;;  %v4858_v34 = vld [vmem:[#allocation2_spill] sm:$0xff] }
 0x2cc   : > { %v2178_v31 = vadd.f32 %v3251_v44, %v4852_v41  ;;  %v2169_v7 = vpop.f32.mrb[229].mxu1  ;;  %v2407_v22 = vadd.f32 %v2350_v24, %v4853_v60  ;;  %v2408_v35 = vadd.f32 %v2349_v56, %v4854_v23  ;;  %v2215_v2 = vrot.slane %v1547_v43, 1  ;;  %v1549_v42 = vpop.f32.mrb[86].mxu0 }
 0x2cd   : > { %v2170_v12 = vadd.f32 %v2169_v7, %v4855_v8  ;;  %v3252_v32 = vpop.f32.mrb[230].mxu1  ;;  %v2438_v39 = vadd.f32 %v4507_v57, %v2399_v37  ;;  %v1550_v62 = vpop.f32.mrb[87].mxu0 }
 0x2ce   : > { %v2172_v46 = vpop.f32.mrb[231].mxu1  ;;  %v2446_v38 = vadd.f32 %v4507_v57, %v2407_v22  ;;  %v2447_v10 = vadd.f32 %v4507_v57, %v2408_v35  ;;  %v2244_v59 = vsel %vm2233_vm0, %v2214_v47, %v2215_v2  ;;  %v2345_v45 = vrot.slane %v2178_v31, 2 }
 0x2cf   : > { %v2619_v53 = vadd.f32 %v4710_v19, %v2438_v39  ;;  %v2667_v27 = vmul.f32 %v2438_v39, %v2438_v39  ;;  %v2287_v58 = vadd.f32 %v2244_v59, %v1540_v55  ;;  %v2173_v18 = vadd.f32 %v2172_v46, %v4856_v50 }
 0x2d0   : > { %v3111_v54 = vpack.c.bf16 %v2447_v10, %v2446_v38  ;;  %v2343_v19 = vrot.slane %v2170_v12, 2  ;;  %v2675_v16 = vmul.f32 %v2446_v38, %v2446_v38  ;;  %v2674_v22 = vmul.f32 %v4731_v0, %v4731_v0 }
 0x2d1   : > { %v2620_v5 = vadd.f32 %v2619_v53, %v4678_v25  ;;  %v2688_v52 = vadd.f32 %v4715_v30, %v2667_v27  ;;  %v2400_v6 = vadd.f32 %v4653_v61, %v2287_v58  ;;  %v2344_v21 = vrot.slane %v2173_v18, 2  ;;  %v4857_v61 = vld [vmem:[#allocation18_spill] sm:$0xff] }
 0x2d2   : > { %3131 = vst [vmem:[%s4519_s21 + $0x70] sm:$0xff] %v3111_v54   ;;  %v2673_v25 = vmul.f32 %v2444_v11, %v2444_v11 }
 0x2d3   : > { %v2689_v55 = vadd.f32 %v2688_v52, %v2669_v29  ;;  %v2621_v14 = vadd.f32 %v2620_v5, %v4703_v1  ;;  %v2439_v40 = vadd.f32 %v4507_v57, %v2400_v6  ;;  %v2347_v4 = vsel %vm2346_vm1, %v2344_v21, %v2345_v45 }
 0x2d4   : > { %v2348_v30 = vsel %vm2346_vm1, %v2343_v19, %v2344_v21  ;;  %v2410_v3 = vadd.f32 %v2347_v4, %v4857_v61 }
 0x2d5   : > { %v2622_v47 = vadd.f32 %v2621_v14, %v2444_v11  ;;  %v2690_v9 = vadd.f32 %v2689_v55, %v2671_v20  ;;  %v3091_v48 = vpack.c.bf16 %v2439_v40, %v2438_v39  ;;  %v2634_v33 = vadd.f32 %v2633_v63, %v2439_v40 }
 0x2d6   : > { %v2668_v28 = vmul.f32 %v2439_v40, %v2439_v40  ;;  %v2409_v49 = vadd.f32 %v2348_v30, %v4858_v34  ;;  %v2449_v1 = vadd.f32 %v4507_v57, %v2410_v3  ;;  %v2672_v63 = vmul.f32 %v4706_v15, %v4706_v15 }
 0x2d7   : > { %v2623_v26 = vadd.f32 %v2622_v47, %v2446_v38  ;;  %v2691_v51 = vadd.f32 %v2690_v9, %v2673_v25  ;;  %3127 = vst [vmem:[%s4519_s21 + $0x50] sm:$0xff] %v3091_v48   ;;  %v2635_v44 = vadd.f32 %v2634_v33, %v4681_v17 }
 0x2d8   : > { %v2703_v11 = vadd.f32 %v4735_v13, %v2668_v28  ;;  %v2448_v37 = vadd.f32 %v4507_v57, %v2409_v49  ;;  %v2676_v57 = vmul.f32 %v2447_v10, %v2447_v10  ;;  %v2678_v8 = vmul.f32 %v2449_v1, %v2449_v1 }
 0x2d9   : > { %v2692_v56 = vadd.f32 %v2691_v51, %v2675_v16  ;;  %v2636_v24 = vadd.f32 %v2635_v44, %v4706_v15 }
 0x2da   : > { %v2704_v41 = vadd.f32 %v2703_v11, %v2670_v36  ;;  %v3116_v31 = vpack.c.bf16 %v2449_v1, %v2448_v37  ;;  %v2624_v43 = vadd.f32 %v2623_v26, %v2448_v37  ;;  %v2677_v7 = vmul.f32 %v2448_v37, %v2448_v37 }
 0x2db   : > { %v2637_v60 = vadd.f32 %v2636_v24, %v4731_v0 }
 0x2dc   : > { %v2705_v17 = vadd.f32 %v2704_v41, %v2672_v63  ;;  %3132 = vst [vmem:[%s4519_s21 + $0x78] sm:$0xff] %v3116_v31   ;;  %v2693_v13 = vadd.f32 %v2692_v56, %v2677_v7 }
 0x2dd   : > { %v2638_v23 = vadd.f32 %v2637_v60, %v2447_v10 }
 0x2de   : > { %v2706_v35 = vadd.f32 %v2705_v17, %v2674_v22 }
 0x2df   : > { %v2639_v2 = vadd.f32 %v2638_v23, %v2449_v1 }
 0x2e0   : > { %v2707_v12 = vadd.f32 %v2706_v35, %v2676_v57 }
 0x2e1   : > { %v2640_v15 = vadd.f32 %v2639_v2, %v2624_v43 }
 0x2e2   : > { %v2708_v42 = vadd.f32 %v2707_v12, %v2678_v8 }
 0x2e3   : > { %v2641_v32 = vrot.slane %v2640_v15, 4 }
 0x2e4   : > { %v2709_v39 = vadd.f32 %v2708_v42, %v2693_v13 }
 0x2e5   : > { %v2642_v62 = vadd.f32 %v2641_v32, %v2640_v15 }
 0x2e6   : > { %v2710_v46 = vrot.slane %v2709_v39, 4 }
 0x2e7   : > { %v2643_v38 = vrot.slane %v2642_v62, 2 }
 0x2e8   : > { %v2711_v59 = vadd.f32 %v2710_v46, %v2709_v39 }
 0x2e9   : > { %v2644_v0 = vadd.f32 %v2643_v38, %v2642_v62 }
 0x2ea   : > { %v2712_v53 = vrot.slane %v2711_v59, 2 }
 0x2eb   : > { %v2645_v27 = vrot.slane %v2644_v0, 1 }
 0x2ec   : > { %v2713_v58 = vadd.f32 %v2712_v53, %v2711_v59 }
 0x2ed   : > { %v2646_v50 = vadd.f32 %v2645_v27, %v2644_v0 }
 0x2ee   : > { %v2714_v10 = vrot.slane %v2713_v58, 1 }
 0x2ef   : > { %2716 = vst [vmem:[%s4565_s25] sm:$0x1] %v2646_v50 }
 0x2f0   : > { %v2715_v18 = vadd.f32 %v2714_v10, %v2713_v58 }
 0x2f2   : > { %2717 = vst [vmem:[%s4565_s25 + $0x1] sm:$0x1] %v2715_v18 }
 0x2f3 PF: > { %s15_s17 = sadd.s32 1, %s3567_s17   ;;  %s4859_s15 = smov %s3563_s16 }
 0x2f4   : > { %p12_p5 = scmp.ge.s32.totalorder %s15_s17, 4   ;;  %s4860_s16 = smov %s4862_s18 }
 0x2f6   :  { %14 = sbr.rel (!%p12_p5) target bundleno = 2 (0x2), region = 74 }

// kernel: upstep_forward.15
= control target key start
LH: loop header
LB: loop body
LE: loop exit
PB: predicated region body
PF: predicated region fallthrough
CT: control target
= control target key end

     0   :  { %s2847_s18 = smov 0   ;;  %s2849_s19 = smov 0   ;;  %s3930_s0 = inlined_call_operand.vmem [shape: bf16[2,16,16,128], index: 0, kind: input, shape index: {}]   ;;  %s3931_s1 = inlined_call_operand.vmem [shape: f32[2,1,1,128], index: 1, kind: input, shape index: {}]   ;;  %s3932_s2 = inlined_call_operand.vmem [shape: f32[2,1,1,128], index: 2, kind: input, shape index: {}]   ;;  %s3933_s3 = inlined_call_operand.vmem [shape: f32[128,128], index: 3, kind: input, shape index: {}]   ;;  %s3934_s4 = inlined_call_operand.vmem [shape: f32[1,128], index: 4, kind: input, shape index: {}]   ;;  %s3935_s5 = inlined_call_operand.vmem [shape: bf16[2,16,16,128], index: 5, kind: output, shape index: {}]  }
   0x1   :  { %s2851_s20 = smov 0  }
   0x2 LB: > { %s27_s21 = sadd.s32 1, %s2811_s19  ;;  %p2149_p0 = scmp.ge.s32.totalorder %s2815_s20, 1  ;;  %s2815_s20 = sphi %s2851_s20, %s15_s20   ;;  %s2811_s19 = sphi %s2849_s19, %s3953_s19   ;;  %s2807_s18 = sphi %s2847_s18, %s3952_s18  }
   0x3   : > { %p29_p1 = scmp.ge.s32.totalorder %s27_s21, 2  ;;  %p225_p2 = scmp.lt.s32.totalorder %s2815_s20, 3 }
   0x5   : > { %s3955_s21 = smov (%p29_p1, %s27_s21), 0  ;;  %p226_p3 = pnand %p2149_p0, %p225_p2 }
   0x7   : > { %229 = sbr.rel (%p226_p3) target bundleno = 523 (0x20b), region = 40 }
   0xe   : > { %v1367_v0 = vld [vmem:[%s3933_s3] sm:$0xff]  ;;  %v1368_v1 = vld [vmem:[%s3933_s3 + $0x8] sm:$0xff]  ;;  %v1369_v2 = vld [vmem:[%s3933_s3 + $0x10] sm:$0xff]  ;;  %p270_p4 = scmp.lt.s32.totalorder %s2807_s18, 1 }
   0xf   : > { %v2527_v3 = vpack.c.bf16 %v1368_v1, %v1367_v0  ;;  %v1370_v4 = vld [vmem:[%s3933_s3 + $0x18] sm:$0xff]  ;;  %v1371_v6 = vld [vmem:[%s3933_s3 + $0x20] sm:$0xff]  ;;  %v1372_v7 = vld [vmem:[%s3933_s3 + $0x28] sm:$0xff] }
  0x10   : > { %v2531_v5 = vpack.c.bf16 %v1370_v4, %v1369_v2  ;;  %s3957_s18 = smov (!%p270_p4, %s2807_s18), 1  ;;  %v2535_v8 = vpack.c.bf16 %v1372_v7, %v1371_v6  ;;  %v1373_v9 = vld [vmem:[%s3933_s3 + $0x30] sm:$0xff]  ;;  %v1374_v10 = vld [vmem:[%s3933_s3 + $0x38] sm:$0xff]  ;;  %v1375_v23 = vld [vmem:[%s3933_s3 + $0x40] sm:$0xff] }
  0x11   : > { %2528 = vmatprep.subr.bf16.mxu0 %v2527_v3  ;;  %2559 = vmatprep.subr.bf16.mxu1 %v2527_v3  ;;  %s2191_s9 = sshll.u32 %s3957_s18, 7  ;;  %s2890_s12 = scalar_lea.vmem %s3931_s1, %s3957_s18  ;;  %v2539_v20 = vpack.c.bf16 %v1374_v10, %v1373_v9  ;;  %v1376_v27 = vld [vmem:[%s3933_s3 + $0x48] sm:$0xff]  ;;  %v1377_v28 = vld [vmem:[%s3933_s3 + $0x50] sm:$0xff]  ;;  %v1378_v29 = vld [vmem:[%s3933_s3 + $0x58] sm:$0xff] }
  0x12   : > { %2530 = vmatpush3.bf16.msra.mxu0 %v2527_v3  ;;  %2567 = vmatpush3.bf16.msra.mxu1 %v2527_v3  ;;  %s2903_s23 = scalar_lea.vmem %s3930_s0, %s2191_s9  ;;  %s2909_s26 = scalar_lea.vmem %s3932_s2, %s3957_s18  ;;  %v2913_v12 = vld [vmem:[%s2890_s12] ss:$0 sm:$0xff]  ;;  %v1380_v33 = vld [vmem:[%s3933_s3 + $0x68] sm:$0xff]  ;;  %v1381_v37 = vld [vmem:[%s3933_s3 + $0x70] sm:$0xff]  ;;  %v2543_v42 = vpack.c.bf16 %v1376_v27, %v1375_v23  ;;  %v2547_v43 = vpack.c.bf16 %v1378_v29, %v1377_v28 }
  0x13   : > { %2532 = vmatprep.subr.bf16.mxu0 %v2531_v5  ;;  %2560 = vmatprep.subr.bf16.mxu1 %v2531_v5  ;;  %v2226_v11 = vld [vmem:[%s2903_s23] sm:$0xff]   ;;  %v2369_v18 = vld [vmem:[%s2903_s23 + $0x8] sm:$0xff]   ;;  %v1382_v38 = vld [vmem:[%s3933_s3 + $0x78] sm:$0xff]  ;;  %s3847_s27 = scalar_lea.vmem %s3935_s5, %s2191_s9 }
  0x14   : > { %v2376_v13 = vld [vmem:[%s2903_s23 + $0x40] sm:$0xff]   ;;  %v2227_v14 = vunpack.c.l.bf16 %v2226_v11  ;;  %v2228_v15 = vunpack.c.h.bf16 %v2226_v11  ;;  %v2918_v19 = vld [vmem:[%s2903_s23 + $0x48] sm:$0xff]   ;;  %v2231_v22 = vunpack.c.l.bf16 %v2369_v18  ;;  %v2232_v41 = vunpack.c.h.bf16 %v2369_v18  ;;  %v2992_v58 = vld [vmem:[%s2903_s23 + $0x10] sm:$0xff]  }
  0x15   : > { %v2259_v16 = vunpack.c.l.bf16 %v2376_v13  ;;  %v2260_v17 = vunpack.c.h.bf16 %v2376_v13  ;;  %v2921_v21 = vld [vmem:[%s2909_s26] ss:$0 sm:$0xff]  ;;  %v2263_v31 = vunpack.c.l.bf16 %v2918_v19  ;;  %v2980_v50 = vpack.c.bf16 %v1382_v38, %v1381_v37  ;;  %v2995_v59 = vld [vmem:[%s2903_s23 + $0x50] sm:$0xff]  }
  0x16   : > { %2534 = vmatpush3.bf16.msra.mxu0 %v2531_v5  ;;  %2568 = vmatpush3.bf16.msra.mxu1 %v2531_v5  ;;  %v368_v24 = vmul.f32 %v2227_v14, %v2913_v12  ;;  %v369_v26 = vmul.f32 %v2228_v15, %v2913_v12  ;;  %v1379_v32 = vld [vmem:[%s3933_s3 + $0x60] sm:$0xff]  ;;  %v370_v40 = vmul.f32 %v2231_v22, %v2913_v12  ;;  %v2264_v53 = vunpack.c.h.bf16 %v2918_v19 }
  0x17   : > { %2536 = vmatprep.subr.bf16.mxu0 %v2535_v8  ;;  %2561 = vmatprep.subr.bf16.mxu1 %v2535_v8  ;;  %v384_v25 = vmul.f32 %v2259_v16, %v2913_v12  ;;  %v385_v30 = vmul.f32 %v2260_v17, %v2913_v12  ;;  %v2971_v46 = vpack.c.bf16 %v1380_v33, %v1379_v32  ;;  %v2235_v10 = vunpack.c.l.bf16 %v2992_v58 }
  0x18   : > { %v2947_v34 = vadd.f32 %v2921_v21, %v368_v24  ;;  %v2953_v36 = vadd.f32 %v2921_v21, %v369_v26  ;;  %v386_v49 = vmul.f32 %v2263_v31, %v2913_v12  ;;  %v2988_v56 = vadd.f32 %v2921_v21, %v370_v40 }
  0x19   : > { %v2950_v35 = vadd.f32 %v2921_v21, %v384_v25  ;;  %v2962_v39 = vadd.f32 %v2921_v21, %v385_v30  ;;  %v371_v57 = vmul.f32 %v2232_v41, %v2913_v12  ;;  %v387_v9 = vmul.f32 %v2264_v53, %v2913_v12 }
  0x1a   : > { %2538 = vmatpush3.bf16.msra.mxu0 %v2535_v8  ;;  %2569 = vmatpush3.bf16.msra.mxu1 %v2535_v8  ;;  %v2966_v44 = vmul.f32 0.70710677, %v2947_v34  ;;  %v2974_v47 = vmul.f32 0.70710677, %v2953_v36  ;;  %v2998_v3 = vadd.f32 %v2921_v21, %v386_v49  ;;  %v2267_v11 = vunpack.c.l.bf16 %v2995_v59 }
  0x1b   : > { %2540 = vmatprep.subr.bf16.mxu0 %v2539_v20  ;;  %2562 = vmatprep.subr.bf16.mxu1 %v2539_v20  ;;  %v2969_v45 = vmul.f32 0.70710677, %v2950_v35  ;;  %v2977_v48 = vmul.f32 0.70710677, %v2962_v39  ;;  %v3004_v13 = vmul.f32 0.5, %v2947_v34  ;;  %v3007_v17 = vmul.f32 0.5, %v2950_v35 }
  0x1c   : > { %v503_v51 = vand.u32 2147483647, %v2966_v44  ;;  %v504_v54 = vand.u32 2147483647, %v2974_v47  ;;  %v3010_v18 = vmul.f32 0.70710677, %v2988_v56  ;;  %v3016_v23 = vadd.f32 %v2921_v21, %v371_v57 }
  0x1d   : > { %v519_v52 = vand.u32 2147483647, %v2969_v45  ;;  %v520_v55 = vand.u32 2147483647, %v2977_v48  ;;  %v3013_v22 = vmul.f32 0.70710677, %v2998_v3  ;;  %v3029_v30 = vadd.f32 %v2921_v21, %v387_v9 }
  0x1e   : > { %2542 = vmatpush3.bf16.msra.mxu0 %v2539_v20  ;;  %2570 = vmatpush3.bf16.msra.mxu1 %v2539_v20  ;;  %v535_v60 = vmul.f32 0.3275911, %v503_v51  ;;  %v951_v61 = vsub.f32 0.0, %v503_v51  ;;  %v536_v0 = vmul.f32 0.3275911, %v504_v54  ;;  %v952_v1 = vsub.f32 0.0, %v504_v54 }
  0x1f   : > { %2544 = vmatprep.subr.bf16.mxu0 %v2543_v42  ;;  %2563 = vmatprep.subr.bf16.mxu1 %v2543_v42  ;;  %v551_v62 = vmul.f32 0.3275911, %v519_v52  ;;  %v967_v63 = vsub.f32 0.0, %v519_v52  ;;  %v552_v2 = vmul.f32 0.3275911, %v520_v55  ;;  %v968_v7 = vsub.f32 0.0, %v520_v55 }
  0x20   : > { %v567_v4 = vadd.f32 1.0, %v535_v60  ;;  %v983_v5 = vmul.f32 %v951_v61, %v503_v51  ;;  %v568_v14 = vadd.f32 1.0, %v536_v0  ;;  %v984_v15 = vmul.f32 %v952_v1, %v504_v54 }
  0x21   : > { %v583_v6 = vadd.f32 1.0, %v551_v62  ;;  %v999_v8 = vmul.f32 %v967_v63, %v519_v52  ;;  %v584_v19 = vadd.f32 1.0, %v552_v2  ;;  %v1000_v20 = vmul.f32 %v968_v7, %v520_v55 }
  0x22   : > { %2546 = vmatpush3.bf16.msra.mxu0 %v2543_v42  ;;  %2571 = vmatpush3.bf16.msra.mxu1 %v2543_v42  ;;  %2599 = vrcp.f32 %v567_v4  ;;  %v1015_v16 = vmul.f32 1.442695, %v983_v5  ;;  %v3019_v25 = vmul.f32 0.5, %v2953_v36  ;;  %v3022_v26 = vmul.f32 0.5, %v2962_v39 }
  0x23   : > { %2548 = vmatprep.subr.bf16.mxu0 %v2547_v43  ;;  %2564 = vmatprep.subr.bf16.mxu1 %v2547_v43  ;;  %2601 = vrcp.f32 %v583_v6  ;;  %v1047_v24 = vmul.f32 1.442695, %v999_v8  ;;  %v505_v27 = vand.u32 2147483647, %v3010_v18  ;;  %v1017_v28 = vmul.f32 1.442695, %v984_v15 }
  0x24   : > { %2603 = vrcp.f32 %v568_v14  ;;  %v521_v29 = vand.u32 2147483647, %v3013_v22  ;;  %v3032_v33 = vmul.f32 0.70710677, %v3016_v23  ;;  %v1049_v37 = vmul.f32 1.442695, %v1000_v20 }
  0x25   : > { %2605 = vpow2.f32 %v1015_v16  ;;  %v537_v31 = vmul.f32 0.3275911, %v505_v27  ;;  %v953_v32 = vsub.f32 0.0, %v505_v27  ;;  %v3040_v52 = vmul.f32 0.70710677, %v3029_v30 }
  0x26   : > { %2550 = vmatpush3.bf16.msra.mxu0 %v2547_v43  ;;  %2572 = vmatpush3.bf16.msra.mxu1 %v2547_v43  ;;  %2607 = vrcp.f32 %v584_v19  ;;  %v553_v38 = vmul.f32 0.3275911, %v521_v29  ;;  %v969_v40 = vsub.f32 0.0, %v521_v29  ;;  %v506_v43 = vand.u32 2147483647, %v3032_v33 }
  0x27   : > { %2552 = vmatprep.subr.bf16.mxu0 %v2971_v46  ;;  %2565 = vmatprep.subr.bf16.mxu1 %v2971_v46  ;;  %2609 = vpow2.f32 %v1047_v24  ;;  %v569_v41 = vadd.f32 1.0, %v537_v31  ;;  %v985_v42 = vmul.f32 %v953_v32, %v505_v27  ;;  %v3045_v57 = vmul.f32 0.5, %v2988_v56 }
  0x28   : > { %2611 = vpow2.f32 %v1017_v28  ;;  %v585_v49 = vadd.f32 1.0, %v553_v38  ;;  %v1001_v51 = vmul.f32 %v969_v40, %v521_v29  ;;  %v538_v54 = vmul.f32 0.3275911, %v506_v43 }
  0x29   : > { %2613 = vrcp.f32 %v569_v41  ;;  %v1019_v53 = vmul.f32 1.442695, %v985_v42  ;;  %v954_v55 = vsub.f32 0.0, %v506_v43  ;;  %v3048_v60 = vmul.f32 0.5, %v2998_v3 }
  0x2a   : > { %2554 = vmatpush3.bf16.msra.mxu0 %v2971_v46  ;;  %2573 = vmatpush3.bf16.msra.mxu1 %v2971_v46  ;;  %2615 = vrcp.f32 %v585_v49  ;;  %v522_v61 = vand.u32 2147483647, %v3040_v52  ;;  %v570_v0 = vadd.f32 1.0, %v538_v54  ;;  %v1051_v7 = vmul.f32 1.442695, %v1001_v51 }
  0x2b   : > { %2556 = vmatprep.subr.bf16.mxu0 %v2980_v50  ;;  %2566 = vmatprep.subr.bf16.mxu1 %v2980_v50  ;;  %2617 = vpow2.f32 %v1049_v37  ;;  %v986_v1 = vmul.f32 %v954_v55, %v506_v43  ;;  %v372_v8 = vmul.f32 %v2235_v10, %v2913_v12  ;;  %v388_v28 = vmul.f32 %v2267_v11, %v2913_v12 }
  0x2c   : > { %v3042_v46 = vpop.eup %2599  ;;  %2619 = vpow2.f32 %v1019_v53  ;;  %v554_v4 = vmul.f32 0.3275911, %v522_v61  ;;  %v970_v5 = vsub.f32 0.0, %v522_v61  ;;  %v3076_v31 = vmul.f32 0.5, %v3016_v23 }
  0x2d   : > { %v3051_v62 = vpop.eup %2601  ;;  %v663_v63 = vmul.f32 1.0614054, %v3042_v46  ;;  %2621 = vrcp.f32 %v570_v0  ;;  %v1021_v14 = vmul.f32 1.442695, %v986_v1  ;;  %v3067_v27 = vadd.f32 %v2921_v21, %v372_v8 }
  0x2e   : > { %2558 = vmatpush3.bf16.msra.mxu0 %v2980_v50  ;;  %2574 = vmatpush3.bf16.msra.mxu1 %v2980_v50  ;;  %v679_v2 = vmul.f32 1.0614054, %v3051_v62  ;;  %v3060_v9 = vpop.eup %2603  ;;  %v586_v15 = vadd.f32 1.0, %v554_v4  ;;  %v1002_v16 = vmul.f32 %v970_v5, %v522_v61  ;;  %v2236_v49 = vunpack.c.h.bf16 %v2992_v58 }
  0x2f   : > { %v695_v6 = vadd.f32 -1.4531521, %v663_v63  ;;  %v3062_v19 = vpop.eup %2605  ;;  %v664_v24 = vmul.f32 1.0614054, %v3060_v9  ;;  %3942 = vst [vmem:[#allocation2_spill] sm:$0xff] %v3067_v27  ;;  %v3092_v61 = vadd.f32 %v2921_v21, %v388_v28  ;;  %vm1143_vm0 = vcmp.lt.f32.partialorder %v2966_v44, 0.0 }
  0x30   : > { %v711_v50 = vadd.f32 -1.4531521, %v679_v2  ;;  %v3072_v10 = vpop.eup %2607  ;;  %2623 = vrcp.f32 %v586_v15  ;;  %v1053_v32 = vmul.f32 1.442695, %v1002_v16  ;;  %v3084_v11 = vmul.f32 0.70710677, %v3067_v27 }
  0x31   : > { %v727_v20 = vmul.f32 %v3042_v46, %v695_v6  ;;  %v3078_v37 = vpop.eup %2609  ;;  %v696_v40 = vadd.f32 -1.4531521, %v664_v24  ;;  %v680_v41 = vmul.f32 1.0614054, %v3072_v10  ;;  %2625 = vpow2.f32 %v1051_v7 }
  0x32   : > { %v743_v29 = vmul.f32 %v3051_v62, %v711_v50  ;;  %v3081_v42 = vpop.eup %2611  ;;  %2627 = vpow2.f32 %v1021_v14  ;;  %v3099_v2 = vand.u32 2147483647, %v3084_v11  ;;  %v3109_v16 = vmul.f32 %v2236_v49, %v2913_v12 }
  0x33   : > { %v759_v38 = vadd.f32 1.4214138, %v727_v20  ;;  %v3087_v51 = vpop.eup %2613  ;;  %v728_v54 = vmul.f32 %v3060_v9, %v696_v40  ;;  %v712_v55 = vadd.f32 -1.4531521, %v680_v41  ;;  %2629 = vpow2.f32 %v1053_v32 }
  0x34   : > { %v775_v43 = vadd.f32 1.4214138, %v743_v29  ;;  %v3094_v63 = vpop.eup %2615  ;;  %v665_v1 = vmul.f32 1.0614054, %v3087_v51  ;;  %v539_v15 = vmul.f32 0.3275911, %v3099_v2 }
  0x35   : > { %v791_v53 = vmul.f32 %v3042_v46, %v759_v38  ;;  %v3101_v58 = vpop.eup %2617  ;;  %v760_v5 = vadd.f32 1.4214138, %v728_v54  ;;  %v744_v6 = vmul.f32 %v3072_v10, %v712_v55  ;;  %v681_v7 = vmul.f32 1.0614054, %v3094_v63 }
  0x36   : > { %v807_v0 = vmul.f32 %v3051_v62, %v775_v43  ;;  %v3105_v8 = vpop.eup %2619  ;;  %v697_v14 = vadd.f32 -1.4531521, %v665_v1  ;;  %v571_v43 = vadd.f32 1.0, %v539_v15  ;;  %vm1159_vm1 = vcmp.lt.f32.partialorder %v2969_v45, 0.0 }
  0x37   : > { %v823_v4 = vadd.f32 -0.28449672, %v791_v53  ;;  %v3111_v20 = vpop.eup %2621  ;;  %v792_v28 = vmul.f32 %v3060_v9, %v760_v5  ;;  %v776_v29 = vadd.f32 1.4214138, %v744_v6  ;;  %v713_v32 = vadd.f32 -1.4531521, %v681_v7 }
  0x38   : > { %v839_v50 = vadd.f32 -0.28449672, %v807_v0  ;;  %v729_v40 = vmul.f32 %v3087_v51, %v697_v14  ;;  %v666_v41 = vmul.f32 1.0614054, %v3111_v20  ;;  %2631 = vrcp.f32 %v571_v43 }
  0x39   : > { %v855_v24 = vmul.f32 %v3042_v46, %v823_v4  ;;  %v824_v49 = vadd.f32 -0.28449672, %v792_v28  ;;  %v808_v54 = vmul.f32 %v3072_v10, %v776_v29  ;;  %v745_v55 = vmul.f32 %v3094_v63, %v713_v32 }
  0x3a   : > { %v871_v38 = vmul.f32 %v3051_v62, %v839_v50  ;;  %v3122_v0 = vpop.eup %2623  ;;  %v761_v4 = vadd.f32 1.4214138, %v729_v40  ;;  %v698_v5 = vadd.f32 -1.4531521, %v666_v41  ;;  %vm1144_vm2 = vcmp.lt.f32.partialorder %v2974_v47, 0.0 }
  0x3b   : > { %v887_v53 = vadd.f32 0.2548296, %v855_v24  ;;  %v2626_v6 = vpop.eup %2625  ;;  %v856_v50 = vmul.f32 %v3060_v9, %v824_v49  ;;  %v840_v14 = vadd.f32 -0.28449672, %v808_v54  ;;  %v777_v15 = vadd.f32 1.4214138, %v745_v55 }
  0x3c   : > { %v903_v1 = vadd.f32 0.2548296, %v871_v38  ;;  %v3126_v24 = vpop.eup %2627  ;;  %v793_v29 = vmul.f32 %v3087_v51, %v761_v4  ;;  %v730_v32 = vmul.f32 %v3111_v20, %v698_v5  ;;  %v682_v38 = vmul.f32 1.0614054, %v3122_v0 }
  0x3d   : > { %v919_v7 = vmul.f32 %v3042_v46, %v887_v53  ;;  %v888_v41 = vadd.f32 0.2548296, %v856_v50  ;;  %v872_v46 = vmul.f32 %v3072_v10, %v840_v14  ;;  %v809_v43 = vmul.f32 %v3094_v63, %v777_v15  ;;  %v3136_v53 = vpop.eup %2629 }
  0x3e   : > { %v935_v28 = vmul.f32 %v3051_v62, %v903_v1  ;;  %vm1160_vm3 = vcmp.lt.f32.partialorder %v2977_v48, 0.0  ;;  %v825_v62 = vadd.f32 -0.28449672, %v793_v29  ;;  %v762_v54 = vadd.f32 1.4214138, %v730_v32 }
  0x3f   : > { %v1079_v40 = vmul.f32 %v3062_v19, %v919_v7  ;;  %v714_v55 = vadd.f32 -1.4531521, %v682_v38  ;;  %v920_v4 = vmul.f32 %v3060_v9, %v888_v41  ;;  %v904_v5 = vadd.f32 0.2548296, %v872_v46 }
  0x40   : > { %v1095_v49 = vmul.f32 %v3078_v37, %v935_v28  ;;  %v841_v27 = vadd.f32 -0.28449672, %v809_v43  ;;  %v857_v7 = vmul.f32 %v3087_v51, %v825_v62  ;;  %v794_v50 = vmul.f32 %v3111_v20, %v762_v54 }
  0x41   : > { %v1111_v1 = vsub.f32 1.0, %v1079_v40  ;;  %v746_v14 = vmul.f32 %v3122_v0, %v714_v55  ;;  %v1080_v37 = vmul.f32 %v3081_v42, %v920_v4  ;;  %v936_v28 = vmul.f32 %v3072_v10, %v904_v5 }
  0x42   : > { %v1127_v19 = vsub.f32 1.0, %v1095_v49  ;;  %vm1145_vm4 = vcmp.lt.f32.partialorder %v3010_v18, 0.0  ;;  %v873_v29 = vmul.f32 %v3094_v63, %v841_v27  ;;  %v889_v9 = vadd.f32 0.2548296, %v857_v7  ;;  %v3153_v49 = vpop.eup %2631 }
  0x43   : > { %v1175_v15 = vsub.f32 0.0, %v1111_v1  ;;  %vm1161_vm5 = vcmp.lt.f32.partialorder %v3013_v22, 0.0  ;;  %v826_v38 = vadd.f32 -0.28449672, %v794_v50  ;;  %v955_v40 = vsub.f32 0.0, %v3099_v2 }
  0x44   : > { %v1191_v32 = vsub.f32 0.0, %v1127_v19  ;;  %v1112_v46 = vsub.f32 1.0, %v1080_v37  ;;  %v1096_v43 = vmul.f32 %v3101_v58, %v936_v28  ;;  %v905_v42 = vadd.f32 0.2548296, %v873_v29 }
  0x45   : > { %v1207_v41 = vsel %vm1143_vm0, %v1175_v15, %v1111_v1  ;;  %v921_v62 = vmul.f32 %v3087_v51, %v889_v9  ;;  %v858_v54 = vmul.f32 %v3111_v20, %v826_v38  ;;  %vm1146_vm6 = vcmp.lt.f32.partialorder %v3032_v33, 0.0 }
  0x46   : > { %v1239_v10 = vadd.f32 1.0, %v1207_v41  ;;  %v1223_v27 = vsel %vm1159_vm1, %v1191_v32, %v1127_v19  ;;  %v1176_v4 = vsub.f32 0.0, %v1112_v46  ;;  %v1128_v5 = vsub.f32 1.0, %v1096_v43 }
  0x47   : > { %v1255_v55 = vadd.f32 1.0, %v1223_v27  ;;  %v937_v44 = vmul.f32 %v3094_v63, %v905_v42  ;;  %v1081_v58 = vmul.f32 %v3105_v8, %v921_v62  ;;  %v890_v7 = vadd.f32 0.2548296, %v858_v54 }
  0x48   : > { %v1271_v1 = vmul.f32 %v1239_v10, %v3004_v13  ;;  %v778_v50 = vadd.f32 1.4214138, %v746_v14  ;;  %v1208_v51 = vsel %vm1144_vm2, %v1176_v4, %v1112_v46  ;;  %v1192_v19 = vsub.f32 0.0, %v1128_v5 }
  0x49   : > { %v1287_v45 = vmul.f32 %v1255_v55, %v3007_v17  ;;  %v1097_v15 = vmul.f32 %v2626_v6, %v937_v44  ;;  %v1240_v28 = vadd.f32 1.0, %v1208_v51  ;;  %v1113_v63 = vsub.f32 1.0, %v1081_v58  ;;  %v3220_v51 = vld [vmem:[%s2903_s23 + $0x18] sm:$0xff]  }
  0x4a   : > { %v3167_v37 = vadd.f32 %v1271_v1, %v2947_v34  ;;  %v922_v13 = vmul.f32 %v3111_v20, %v890_v7  ;;  %v1224_v14 = vsel %vm1160_vm3, %v1192_v19, %v1128_v5  ;;  %v810_v17 = vmul.f32 %v3122_v0, %v778_v50 }
  0x4b   : > { %v3171_v8 = vadd.f32 %v1287_v45, %v2950_v35  ;;  %v1129_v29 = vsub.f32 1.0, %v1097_v15  ;;  %v1272_v6 = vmul.f32 %v1240_v28, %v3019_v25  ;;  %v1256_v34 = vadd.f32 1.0, %v1224_v14 }
  0x4c   : > { %v1335_v47 = vmul.f32 %v3167_v37, %v3167_v37  ;;  %v1177_v32 = vsub.f32 0.0, %v1113_v63  ;;  %v1082_v35 = vmul.f32 %v3126_v24, %v922_v13  ;;  %v842_v38 = vadd.f32 -0.28449672, %v810_v17 }
  0x4d   : > { %v1351_v9 = vmul.f32 %v3171_v8, %v3171_v8  ;;  %v1193_v20 = vsub.f32 0.0, %v1129_v29  ;;  %v3183_v48 = vadd.f32 %v1272_v6, %v2953_v36  ;;  %v1288_v41 = vmul.f32 %v1256_v34, %v3022_v26 }
  0x4e   : > { %2479 = vmatprep.mubr.f32.mxu0 %v1335_v47  ;;  %v1209_v46 = vsel %vm1145_vm4, %v1177_v32, %v1113_v63  ;;  %v667_v25 = vmul.f32 1.0614054, %v3153_v49  ;;  %v1114_v10 = vsub.f32 1.0, %v1082_v35  ;;  %v874_v24 = vmul.f32 %v3122_v0, %v842_v38 }
  0x4f   : > { %2503 = vmatprep.mubr.f32.mxu1 %v1351_v9  ;;  %v1241_v43 = vadd.f32 1.0, %v1209_v46  ;;  %v1225_v42 = vsel %vm1161_vm5, %v1193_v20, %v1129_v29  ;;  %v1336_v27 = vmul.f32 %v3183_v48, %v3183_v48  ;;  %v3195_v36 = vadd.f32 %v1288_v41, %v2962_v39 }
  0x50   : > { %v1257_v26 = vadd.f32 1.0, %v1225_v42  ;;  %v699_v62 = vadd.f32 -1.4531521, %v667_v25  ;;  %v1178_v54 = vsub.f32 0.0, %v1114_v10  ;;  %v906_v55 = vadd.f32 0.2548296, %v874_v24 }
  0x51   : > { %v1273_v18 = vmul.f32 %v1241_v43, %v3045_v57  ;;  %v987_v4 = vmul.f32 %v955_v40, %v3099_v2  ;;  %2480 = vmatmul.mubr.f32.vlgmr.msra.gmra.mrb[0].mxu0 %v1336_v27  ;;  %v1352_v22 = vmul.f32 %v3195_v36, %v3195_v36  ;;  %v3204_v39 = vmul.f32 0.70710677, %v3092_v61 }
  0x52   : > { %v1289_v5 = vmul.f32 %v1257_v26, %v3048_v60  ;;  %v731_v44 = vmul.f32 %v3153_v49, %v699_v62  ;;  %v1210_v57 = vsel %vm1146_vm6, %v1178_v54, %v1114_v10  ;;  %v938_v2 = vmul.f32 %v3122_v0, %v906_v55 }
  0x53   : > { %v3207_v1 = vadd.f32 %v1273_v18, %v2988_v56  ;;  %v1023_v40 = vmul.f32 1.442695, %v987_v4  ;;  %2504 = vmatmul.mubr.f32.vlgmr.msra.gmra.mrb[0].mxu1 %v1352_v22  ;;  %v1242_v7 = vadd.f32 1.0, %v1210_v57  ;;  %v523_v50 = vand.u32 2147483647, %v3204_v39 }
  0x54   : > { %v3213_v58 = vadd.f32 %v1289_v5, %v2998_v3  ;;  %v763_v60 = vadd.f32 1.4214138, %v731_v44  ;;  %v1098_v56 = vmul.f32 %v3136_v53, %v938_v2  ;;  %vm1162_vm7 = vcmp.lt.f32.partialorder %v3040_v52, 0.0 }
  0x55   : > { %v1337_v45 = vmul.f32 %v3207_v1, %v3207_v1  ;;  %2633 = vpow2.f32 %v1023_v40  ;;  %v1274_v0 = vmul.f32 %v1242_v7, %v3076_v31  ;;  %v555_v19 = vmul.f32 0.3275911, %v523_v50 }
  0x56   : > { %v1353_v33 = vmul.f32 %v3213_v58, %v3213_v58  ;;  %v795_v3 = vmul.f32 %v3153_v49, %v763_v60  ;;  %v1130_v15 = vsub.f32 1.0, %v1098_v56  ;;  %v3229_v28 = vadd.f32 %v2921_v21, %v3109_v16 }
  0x57   : > { %2482 = vmatprep.mubr.f32.mxu0 %v1337_v45  ;;  %v2268_v53 = vunpack.c.h.bf16 %v2995_v59  ;;  %v3233_v63 = vadd.f32 %v1274_v0, %v3016_v23  ;;  %v587_v31 = vadd.f32 1.0, %v555_v19  ;;  %v2239_v14 = vunpack.c.l.bf16 %v3220_v51  ;;  %v3245_v23 = vld [vmem:[%s2903_s23 + $0x58] sm:$0xff]   ;;  %v3943_v45 = vld [vmem:[#allocation2_spill] sm:$0xff] }
  0x58   : > { %2506 = vmatprep.mubr.f32.mxu1 %v1353_v33  ;;  %v827_v13 = vadd.f32 -0.28449672, %v795_v3  ;;  %v458_v29 = vmul.f32 0.5, %v3029_v30  ;;  %v1194_v17 = vsub.f32 0.0, %v1130_v15  ;;  %v3238_v47 = vmul.f32 0.70710677, %v3229_v28 }
  0x59   : > { %v1338_v16 = vmul.f32 %v3233_v63, %v3233_v63  ;;  %2635 = vrcp.f32 %v587_v31  ;;  %v389_v59 = vmul.f32 %v2268_v53, %v2913_v12  ;;  %v971_v32 = vsub.f32 0.0, %v523_v50 }
  0x5a   : > { %v859_v6 = vmul.f32 %v3153_v49, %v827_v13  ;;  %v1226_v34 = vsel %vm1162_vm7, %v1194_v17, %v1130_v15  ;;  %v508_v9 = vand.u32 2147483647, %v3238_v47  ;;  %v374_v41 = vmul.f32 %v2239_v14, %v2913_v12 }
  0x5b   : > { %2483 = vmatmul.mubr.f32.gmra.mrb[2].mxu0 %v1338_v16  ;;  %v1258_v20 = vadd.f32 1.0, %v1226_v34  ;;  %v3251_v38 = vadd.f32 %v2921_v21, %v389_v59  ;;  %v2271_v25 = vunpack.c.l.bf16 %v3245_v23  ;;  %v1003_v54 = vmul.f32 %v971_v32, %v523_v50  ;;  %v3295_v34 = vld [vmem:[%s2903_s23 + $0x20] sm:$0xff]  }
  0x5c   : > { %v891_v35 = vadd.f32 0.2548296, %v859_v6  ;;  %v540_v46 = vmul.f32 0.3275911, %v508_v9  ;;  %v3260_v27 = vadd.f32 %v2921_v21, %v374_v41  ;;  %vm1147_vm8 = vcmp.lt.f32.partialorder %v3084_v11, 0.0 }
  0x5d   : > { %v1290_v43 = vmul.f32 %v1258_v20, %v458_v29  ;;  %v3257_v52 = vmul.f32 0.70710677, %v3251_v38  ;;  %v390_v26 = vmul.f32 %v2271_v25, %v2913_v12  ;;  %v956_v44 = vsub.f32 0.0, %v508_v9 }
  0x5e   : > { %v923_v42 = vmul.f32 %v3153_v49, %v891_v35  ;;  %v572_v24 = vadd.f32 1.0, %v540_v46  ;;  %v3268_v49 = vmul.f32 0.70710677, %v3260_v27  ;;  %v1055_v7 = vmul.f32 1.442695, %v1003_v54 }
  0x5f   : > { %v2634_v10 = vpop.eup %2633  ;;  %v3264_v62 = vadd.f32 %v1290_v43, %v3029_v30  ;;  %v524_v55 = vand.u32 2147483647, %v3257_v52  ;;  %v3275_v30 = vadd.f32 %v2921_v21, %v390_v26  ;;  %v2240_v50 = vunpack.c.h.bf16 %v3220_v51 }
  0x60   : > { %v1083_v18 = vmul.f32 %v2634_v10, %v923_v42  ;;  %2637 = vrcp.f32 %v572_v24  ;;  %v509_v57 = vand.u32 2147483647, %v3268_v49  ;;  %v443_v56 = vmul.f32 0.5, %v3943_v45 }
  0x61   : > { %v1354_v4 = vmul.f32 %v3264_v62, %v3264_v62  ;;  %v556_v5 = vmul.f32 0.3275911, %v524_v55  ;;  %v972_v0 = vsub.f32 0.0, %v524_v55  ;;  %v3283_v19 = vmul.f32 0.5, %v3092_v61 }
  0x62   : > { %v1115_v22 = vsub.f32 1.0, %v1083_v18  ;;  %v541_v11 = vmul.f32 0.3275911, %v509_v57  ;;  %v3286_v15 = vmul.f32 0.70710677, %v3275_v30  ;;  %v988_v31 = vmul.f32 %v956_v44, %v508_v9 }
  0x63   : > { %v3277_v2 = vpop.eup %2635  ;;  %2507 = vmatmul.mubr.f32.gmra.mrb[2].mxu1 %v1354_v4  ;;  %v588_v60 = vadd.f32 1.0, %v556_v5  ;;  %v3289_v51 = vmul.f32 0.5, %v3229_v28  ;;  %v375_v17 = vmul.f32 %v2240_v50, %v2913_v12  ;;  %v1004_v59 = vmul.f32 %v972_v0, %v524_v55 }
  0x64   : > { %v1179_v40 = vsub.f32 0.0, %v1115_v22  ;;  %v683_v33 = vmul.f32 1.0614054, %v3277_v2  ;;  %v573_v14 = vadd.f32 1.0, %v541_v11  ;;  %v525_v29 = vand.u32 2147483647, %v3286_v15 }
  0x65   : > { %2639 = vrcp.f32 %v588_v60  ;;  %v957_v32 = vsub.f32 0.0, %v509_v57  ;;  %v3298_v9 = vadd.f32 %v2921_v21, %v375_v17  ;;  %v2272_v35 = vunpack.c.h.bf16 %v3245_v23 }
  0x66   : > { %v1211_v3 = vsel %vm1147_vm8, %v1179_v40, %v1115_v22  ;;  %v715_v13 = vadd.f32 -1.4531521, %v683_v33  ;;  %2641 = vpow2.f32 %v1055_v7  ;;  %v557_v20 = vmul.f32 0.3275911, %v525_v29 }
  0x67   : > { %v1243_v53 = vadd.f32 1.0, %v1211_v3  ;;  %2643 = vrcp.f32 %v573_v14  ;;  %v1025_v43 = vmul.f32 1.442695, %v988_v31  ;;  %v3307_v42 = vmul.f32 0.5, %v3251_v38 }
  0x68   : > { %v747_v6 = vmul.f32 %v3277_v2, %v715_v13  ;;  %v3311_v24 = vmul.f32 0.5, %v3260_v27  ;;  %v589_v26 = vadd.f32 1.0, %v557_v20  ;;  %v2243_v18 = vunpack.c.l.bf16 %v3295_v34 }
  0x69   : > { %v1275_v16 = vmul.f32 %v1243_v53, %v443_v56  ;;  %v3318_v55 = vmul.f32 0.70710677, %v3298_v9  ;;  %v391_v4 = vmul.f32 %v2272_v35, %v2913_v12  ;;  %v1057_v5 = vmul.f32 1.442695, %v1004_v59 }
  0x6a   : > { %v3301_v41 = vpop.eup %2637  ;;  %v779_v25 = vadd.f32 1.4214138, %v747_v6  ;;  %v989_v44 = vmul.f32 %v957_v32, %v509_v57  ;;  %2645 = vrcp.f32 %v589_v26  ;;  %v973_v7 = vsub.f32 0.0, %v525_v29  ;;  %v3347_v26 = vld [vmem:[%s2903_s23 + $0x60] sm:$0xff]  }
  0x6b   : > { %v3304_v46 = vadd.f32 %v1275_v16, %v3943_v45  ;;  %v668_v10 = vmul.f32 1.0614054, %v3301_v41  ;;  %v510_v60 = vand.u32 2147483647, %v3318_v55  ;;  %v3323_v50 = vadd.f32 %v2921_v21, %v391_v4 }
  0x6c   : > { %v811_v54 = vmul.f32 %v3277_v2, %v779_v25  ;;  %2647 = vpow2.f32 %v1025_v43  ;;  %v3329_v33 = vmul.f32 0.5, %v3275_v30  ;;  %v376_v0 = vmul.f32 %v2243_v18, %v2913_v12 }
  0x6d   : > { %v1339_v23 = vmul.f32 %v3304_v46, %v3304_v46  ;;  %v700_v22 = vadd.f32 -1.4531521, %v668_v10  ;;  %v542_v3 = vmul.f32 0.3275911, %v510_v60  ;;  %v958_v53 = vsub.f32 0.0, %v510_v60 }
  0x6e   : > { %v843_v40 = vadd.f32 -0.28449672, %v811_v54  ;;  %vm1163_vm9 = vcmp.lt.f32.partialorder %v3204_v39, 0.0  ;;  %2649 = vpow2.f32 %v1057_v5  ;;  %v1027_v14 = vmul.f32 1.442695, %v989_v44 }
  0x6f   : > { %2485 = vmatprep.mubr.f32.mxu0 %v1339_v23  ;;  %v3325_v45 = vpop.eup %2639  ;;  %v732_v56 = vmul.f32 %v3301_v41, %v700_v22  ;;  %v3336_v17 = vmul.f32 0.70710677, %v3323_v50  ;;  %v1005_v32 = vmul.f32 %v973_v7, %v525_v29  ;;  %v574_v20 = vadd.f32 1.0, %v542_v3 }
  0x70   : > { %v875_v57 = vmul.f32 %v3277_v2, %v843_v40  ;;  %v684_v11 = vmul.f32 1.0614054, %v3325_v45  ;;  %v2642_v13 = vpop.eup %2641  ;;  %v3344_v10 = vadd.f32 %v2921_v21, %v376_v0  ;;  %v990_v54 = vmul.f32 %v958_v53, %v510_v60 }
  0x71   : > { %v764_v31 = vadd.f32 1.4214138, %v732_v56  ;;  %v3338_v16 = vpop.eup %2643  ;;  %v526_v43 = vand.u32 2147483647, %v3336_v17  ;;  %2651 = vrcp.f32 %v574_v20  ;;  %v1059_v40 = vmul.f32 1.442695, %v1005_v32 }
  0x72   : > { %v907_v6 = vadd.f32 0.2548296, %v875_v57  ;;  %v716_v59 = vadd.f32 -1.4531521, %v684_v11  ;;  %v669_v25 = vmul.f32 1.0614054, %v3338_v16  ;;  %2653 = vpow2.f32 %v1027_v14 }
  0x73   : > { %v796_v35 = vmul.f32 %v3301_v41, %v764_v31  ;;  %v558_v22 = vmul.f32 0.3275911, %v526_v43  ;;  %v2275_v7 = vunpack.c.l.bf16 %v3347_v26  ;;  %v3357_v57 = vmul.f32 0.70710677, %v3344_v10 }
  0x74   : > { %v939_v18 = vmul.f32 %v3277_v2, %v907_v6  ;;  %v748_v23 = vmul.f32 %v3325_v45, %v716_v59  ;;  %v701_v29 = vadd.f32 -1.4531521, %v669_v25  ;;  %v3352_v56 = vpop.eup %2645  ;;  %vm1148_vm10 = vcmp.lt.f32.partialorder %v3238_v47, 0.0 }
  0x75   : > { %v828_v4 = vadd.f32 -0.28449672, %v796_v35  ;;  %v590_v2 = vadd.f32 1.0, %v558_v22  ;;  %v685_v3 = vmul.f32 1.0614054, %v3352_v56  ;;  %v974_v35 = vsub.f32 0.0, %v526_v43 }
  0x76   : > { %v1099_v5 = vmul.f32 %v2642_v13, %v939_v18  ;;  %v780_v44 = vadd.f32 1.4214138, %v748_v23  ;;  %v733_v0 = vmul.f32 %v3338_v16, %v701_v29  ;;  %v1029_v53 = vmul.f32 1.442695, %v990_v54  ;;  %v2648_v13 = vpop.eup %2647 }
  0x77   : > { %v860_v21 = vmul.f32 %v3301_v41, %v828_v4  ;;  %2655 = vrcp.f32 %v590_v2  ;;  %v511_v6 = vand.u32 2147483647, %v3357_v57  ;;  %v717_v20 = vadd.f32 -1.4531521, %v685_v3 }
  0x78   : > { %v1131_v60 = vsub.f32 1.0, %v1099_v5  ;;  %v812_v11 = vmul.f32 %v3325_v45, %v780_v44  ;;  %v765_v14 = vadd.f32 1.4214138, %v733_v0  ;;  %v2650_v25 = vpop.eup %2649  ;;  %2657 = vpow2.f32 %v1059_v40 }
  0x79   : > { %v892_v31 = vadd.f32 0.2548296, %v860_v21  ;;  %v543_v4 = vmul.f32 0.3275911, %v511_v6  ;;  %v749_v22 = vmul.f32 %v3352_v56, %v717_v20  ;;  %v392_v5 = vmul.f32 %v2275_v7, %v2913_v12 }
  0x7a   : > { %v1195_v59 = vsub.f32 0.0, %v1131_v60  ;;  %v844_v32 = vadd.f32 -0.28449672, %v812_v11  ;;  %v797_v23 = vmul.f32 %v3338_v16, %v765_v14  ;;  %vm1164_vm11 = vcmp.lt.f32.partialorder %v3257_v52, 0.0 }
  0x7b   : > { %v924_v18 = vmul.f32 %v3301_v41, %v892_v31  ;;  %2659 = vpow2.f32 %v1029_v53  ;;  %v3371_v41 = vpop.eup %2651  ;;  %v781_v40 = vadd.f32 1.4214138, %v749_v22  ;;  %v1006_v11 = vmul.f32 %v974_v35, %v526_v43 }
  0x7c   : > { %v1227_v54 = vsel %vm1163_vm9, %v1195_v59, %v1131_v60  ;;  %v876_v29 = vmul.f32 %v3325_v45, %v844_v32  ;;  %v829_v0 = vadd.f32 -0.28449672, %v797_v23  ;;  %v575_v3 = vadd.f32 1.0, %v543_v4  ;;  %v2654_v39 = vpop.eup %2653  ;;  %v3383_v23 = vld [vmem:[%s2909_s26] ss:$0 sm:$0xff] }
  0x7d   : > { %v1259_v44 = vadd.f32 1.0, %v1227_v54  ;;  %v1084_v21 = vmul.f32 %v2648_v13, %v924_v18  ;;  %v670_v12 = vmul.f32 1.0614054, %v3371_v41  ;;  %vm1149_vm12 = vcmp.lt.f32.partialorder %v3268_v49, 0.0 }
  0x7e   : > { %v908_v2 = vadd.f32 0.2548296, %v876_v29  ;;  %v861_v14 = vmul.f32 %v3338_v16, %v829_v0  ;;  %v813_v53 = vmul.f32 %v3352_v56, %v781_v40  ;;  %2661 = vrcp.f32 %v575_v3 }
  0x7f   : > { %v1291_v60 = vmul.f32 %v1259_v44, %v3283_v19  ;;  %v1116_v31 = vsub.f32 1.0, %v1084_v21  ;;  %v959_v13 = vsub.f32 0.0, %v511_v6  ;;  %v702_v19 = vadd.f32 -1.4531521, %v670_v12 }
  0x80   : > { %v940_v7 = vmul.f32 %v3325_v45, %v908_v2  ;;  %v893_v32 = vadd.f32 0.2548296, %v861_v14  ;;  %v845_v35 = vadd.f32 -0.28449672, %v813_v53  ;;  %v1061_v18 = vmul.f32 1.442695, %v1006_v11 }
  0x81   : > { %v3380_v43 = vadd.f32 %v1291_v60, %v3092_v61  ;;  %v1180_v59 = vsub.f32 0.0, %v1116_v31  ;;  %v3386_v4 = vadd.f32 %v3383_v23, %v392_v5  ;;  %v3388_v45 = vpop.eup %2655  ;;  %v734_v22 = vmul.f32 %v3371_v41, %v702_v19 }
  0x82   : > { %v1100_v20 = vmul.f32 %v2650_v25, %v940_v7  ;;  %v925_v29 = vmul.f32 %v3338_v16, %v893_v32  ;;  %v877_v21 = vmul.f32 %v3352_v56, %v845_v35  ;;  %v686_v0 = vmul.f32 1.0614054, %v3388_v45  ;;  %v2658_v5 = vpop.eup %2657 }
  0x83   : > { %v1355_v54 = vmul.f32 %v3380_v43, %v3380_v43  ;;  %v1212_v61 = vsel %vm1148_vm10, %v1180_v59, %v1116_v31  ;;  %vm1165_vm13 = vcmp.lt.f32.partialorder %v3286_v15, 0.0  ;;  %v766_v40 = vadd.f32 1.4214138, %v734_v22 }
  0x84   : > { %v1244_v25 = vadd.f32 1.0, %v1212_v61  ;;  %v1132_v44 = vsub.f32 1.0, %v1100_v20  ;;  %v1085_v2 = vmul.f32 %v2654_v39, %v925_v29  ;;  %v991_v11 = vmul.f32 %v959_v13, %v511_v6 }
  0x85   : > { %2509 = vmatprep.mubr.f32.mxu1 %v1355_v54  ;;  %v3400_v47 = vmul.f32 0.70710677, %v3386_v4  ;;  %v909_v60 = vadd.f32 0.2548296, %v877_v21  ;;  %v718_v31 = vadd.f32 -1.4531521, %v686_v0  ;;  %v2660_v14 = vpop.eup %2659  ;;  %v798_v7 = vmul.f32 %v3371_v41, %v766_v40 }
  0x86   : > { %v1276_v16 = vmul.f32 %v1244_v25, %v3289_v51  ;;  %v1196_v3 = vsub.f32 0.0, %v1132_v44  ;;  %v1117_v12 = vsub.f32 1.0, %v1085_v2  ;;  %2663 = vpow2.f32 %v1061_v18 }
  0x87   : > { %v527_v53 = vand.u32 2147483647, %v3400_v47  ;;  %v941_v13 = vmul.f32 %v3352_v56, %v909_v60  ;;  %v750_v51 = vmul.f32 %v3388_v45, %v718_v31  ;;  %v830_v19 = vadd.f32 -0.28449672, %v798_v7 }
  0x88   : > { %v3406_v39 = vadd.f32 %v1276_v16, %v3229_v28  ;;  %v1228_v6 = vsel %vm1164_vm11, %v1196_v3, %v1132_v44  ;;  %v1181_v32 = vsub.f32 0.0, %v1117_v12  ;;  %v3412_v35 = vpop.eup %2661  ;;  %v1031_v28 = vmul.f32 1.442695, %v991_v11 }
  0x89   : > { %v1260_v59 = vadd.f32 1.0, %v1228_v6  ;;  %v559_v20 = vmul.f32 0.3275911, %v527_v53  ;;  %v1101_v54 = vmul.f32 %v2658_v5, %v941_v13  ;;  %v782_v61 = vadd.f32 1.4214138, %v750_v51  ;;  %v3438_v6 = vld [vmem:[%s2903_s23 + $0x28] sm:$0xff]  }
  0x8a   : > { %v1340_v18 = vmul.f32 %v3406_v39, %v3406_v39  ;;  %v1213_v52 = vsel %vm1149_vm12, %v1181_v32, %v1117_v12  ;;  %v862_v56 = vmul.f32 %v3371_v41, %v830_v19  ;;  %v671_v22 = vmul.f32 1.0614054, %v3412_v35 }
  0x8b   : > { %v1292_v29 = vmul.f32 %v1260_v59, %v3307_v42  ;;  %v1245_v25 = vadd.f32 1.0, %v1213_v52  ;;  %v1133_v44 = vsub.f32 1.0, %v1101_v54  ;;  %v814_v21 = vmul.f32 %v3388_v45, %v782_v61 }
  0x8c   : > { %2486 = vmatmul.mubr.f32.gmra.mrb[4].mxu0 %v1340_v18  ;;  %v591_v0 = vadd.f32 1.0, %v559_v20  ;;  %v894_v5 = vadd.f32 0.2548296, %v862_v56  ;;  %v703_v40 = vadd.f32 -1.4531521, %v671_v22  ;;  %v975_v42 = vsub.f32 0.0, %v527_v53 }
  0x8d   : > { %v3423_v2 = vadd.f32 %v1292_v29, %v3251_v38  ;;  %v1277_v49 = vmul.f32 %v1245_v25, %v3311_v24  ;;  %v1197_v11 = vsub.f32 0.0, %v1133_v44  ;;  %v846_v16 = vadd.f32 -0.28449672, %v814_v21  ;;  %v3443_v20 = vld [vmem:[%s2890_s12] ss:$0 sm:$0xff] }
  0x8e   : > { %2665 = vrcp.f32 %v591_v0  ;;  %v926_v60 = vmul.f32 %v3371_v41, %v894_v5  ;;  %v735_v31 = vmul.f32 %v3412_v35, %v703_v40  ;;  %v2244_v7 = vunpack.c.h.bf16 %v3295_v34 }
  0x8f   : > { %v1356_v3 = vmul.f32 %v3423_v2, %v3423_v2  ;;  %2667 = vpow2.f32 %v1031_v28  ;;  %v3431_v38 = vadd.f32 %v1277_v49, %v3260_v27  ;;  %v1229_v12 = vsel %vm1165_vm13, %v1197_v11, %v1133_v44 }
  0x90   : > { %v878_v24 = vmul.f32 %v3388_v45, %v846_v16  ;;  %v2664_v13 = vpop.eup %2663  ;;  %v1261_v51 = vadd.f32 1.0, %v1229_v12  ;;  %v1086_v41 = vmul.f32 %v2660_v14, %v926_v60  ;;  %v767_v59 = vadd.f32 1.4214138, %v735_v31 }
  0x91   : > { %2510 = vmatmul.mubr.f32.gmra.mrb[4].mxu1 %v1356_v3  ;;  %v1007_v32 = vmul.f32 %v975_v42, %v527_v53  ;;  %v1341_v19 = vmul.f32 %v3431_v38, %v3431_v38  ;;  %v377_v15 = vmul.f32 %v3443_v20, %v2244_v7  ;;  %v2276_v18 = vunpack.c.h.bf16 %v3347_v26 }
  0x92   : > { %v910_v27 = vadd.f32 0.2548296, %v878_v24  ;;  %v1293_v34 = vmul.f32 %v1261_v51, %v3329_v33  ;;  %v1118_v54 = vsub.f32 1.0, %v1086_v41  ;;  %v799_v61 = vmul.f32 %v3412_v35, %v767_v59  ;;  %v2381_v59 = vld [vmem:[%s2903_s23 + $0x68] sm:$0xff]  }
  0x93   : > { %v2247_v28 = vunpack.c.l.bf16 %v3438_v6  ;;  %2488 = vmatprep.mubr.f32.mxu0 %v1341_v19  ;;  %vm1150_vm14 = vcmp.lt.f32.partialorder %v3318_v55, 0.0  ;;  %v3453_v53 = vadd.f32 %v3383_v23, %v377_v15  ;;  %v393_v29 = vmul.f32 %v3443_v20, %v2276_v18 }
  0x94   : > { %v942_v14 = vmul.f32 %v3388_v45, %v910_v27  ;;  %v3457_v52 = vadd.f32 %v1293_v34, %v3275_v30  ;;  %v1182_v26 = vsub.f32 0.0, %v1118_v54  ;;  %v831_v33 = vadd.f32 -0.28449672, %v799_v61 }
  0x95   : > { %v378_v56 = vmul.f32 %v3443_v20, %v2247_v28  ;;  %v446_v22 = vmul.f32 0.5, %v3298_v9  ;;  %v1063_v44 = vmul.f32 1.442695, %v1007_v32  ;;  %v3462_v55 = vmul.f32 0.70710677, %v3453_v53 }
  0x96   : > { %3944 = vst [vmem:[#allocation2_spill] sm:$0xff] %v3457_v52  ;;  %v1102_v25 = vmul.f32 %v2664_v13, %v942_v14  ;;  %v1357_v45 = vmul.f32 %v3457_v52, %v3457_v52  ;;  %v1214_v21 = vsel %vm1150_vm14, %v1182_v26, %v1118_v54  ;;  %v863_v0 = vmul.f32 %v3412_v35, %v831_v33 }
  0x97   : > { %v3468_v30 = vadd.f32 %v3383_v23, %v393_v29  ;;  %v1246_v40 = vadd.f32 1.0, %v1214_v21  ;;  %v512_v49 = vand.u32 2147483647, %v3462_v55  ;;  %v3474_v11 = vadd.f32 %v3383_v23, %v378_v56 }
  0x98   : > { %v3470_v5 = vpop.eup %2665  ;;  %v1134_v42 = vsub.f32 1.0, %v1102_v25  ;;  %2512 = vmatprep.mubr.f32.mxu1 %v1357_v45  ;;  %vm1166_vm15 = vcmp.lt.f32.partialorder %v3336_v17, 0.0  ;;  %v895_v3 = vadd.f32 0.2548296, %v863_v0  ;;  %v462_v12 = vmul.f32 0.5, %v3323_v50 }
  0x99   : > { %v2668_v16 = vpop.eup %2667  ;;  %v687_v60 = vmul.f32 1.0614054, %v3470_v5  ;;  %v1278_v31 = vmul.f32 %v1246_v40, %v446_v22  ;;  %v544_v7 = vmul.f32 0.3275911, %v512_v49  ;;  %2669 = vpow2.f32 %v1063_v44 }
  0x9a   : > { %v1198_v24 = vsub.f32 0.0, %v1134_v42  ;;  %v927_v13 = vmul.f32 %v3412_v35, %v895_v3  ;;  %v3481_v41 = vmul.f32 0.70710677, %v3468_v30  ;;  %v3488_v27 = vmul.f32 0.70710677, %v3474_v11 }
  0x9b   : > { %v719_v51 = vadd.f32 -1.4531521, %v687_v60  ;;  %v3485_v32 = vadd.f32 %v1278_v31, %v3298_v9  ;;  %v576_v19 = vadd.f32 1.0, %v544_v7  ;;  %v2279_v61 = vunpack.c.l.bf16 %v2381_v59 }
  0x9c   : > { %v1230_v17 = vsel %vm1166_vm15, %v1198_v24, %v1134_v42  ;;  %v1087_v18 = vmul.f32 %v2668_v16, %v927_v13  ;;  %v528_v35 = vand.u32 2147483647, %v3481_v41  ;;  %vm1151_vm0 = vcmp.lt.f32.partialorder %v3357_v57, 0.0 }
  0x9d   : > { %v1262_v15 = vadd.f32 1.0, %v1230_v17  ;;  %v751_v34 = vmul.f32 %v3470_v5, %v719_v51  ;;  %v1342_v54 = vmul.f32 %v3485_v32, %v3485_v32  ;;  %2671 = vrcp.f32 %v576_v19 }
  0x9e   : > { %v1119_v14 = vsub.f32 1.0, %v1087_v18  ;;  %v560_v29 = vmul.f32 0.3275911, %v528_v35  ;;  %v960_v26 = vsub.f32 0.0, %v512_v49  ;;  %v513_v33 = vand.u32 2147483647, %v3488_v27 }
  0x9f   : > { %v1294_v28 = vmul.f32 %v1262_v15, %v462_v12  ;;  %v783_v9 = vadd.f32 1.4214138, %v751_v34  ;;  %2489 = vmatmul.mubr.f32.gmra.mrb[6].mxu0 %v1342_v54  ;;  %v447_v45 = vmul.f32 0.5, %v3344_v10  ;;  %v394_v0 = vmul.f32 %v3443_v20, %v2279_v61 }
  0xa0   : > { %v1183_v22 = vsub.f32 0.0, %v1119_v14  ;;  %v592_v44 = vadd.f32 1.0, %v560_v29  ;;  %v545_v21 = vmul.f32 0.3275911, %v513_v33  ;;  %v992_v3 = vmul.f32 %v960_v26, %v512_v49 }
  0xa1   : > { %v3497_v56 = vadd.f32 %v1294_v28, %v3323_v50  ;;  %v815_v25 = vmul.f32 %v3470_v5, %v783_v9  ;;  %v976_v60 = vsub.f32 0.0, %v528_v35  ;;  %v3506_v24 = vadd.f32 %v3383_v23, %v394_v0  ;;  %v3528_v28 = vld [vmem:[%s2903_s23 + $0x30] sm:$0xff]  }
  0xa2   : > { %v1215_v42 = vsel %vm1151_vm0, %v1183_v22, %v1119_v14  ;;  %2673 = vrcp.f32 %v592_v44  ;;  %v577_v50 = vadd.f32 1.0, %v545_v21  ;;  %v2248_v7 = vunpack.c.h.bf16 %v3438_v6 }
  0xa3   : > { %3945 = vst [vmem:[#allocation3_spill] sm:$0xff] %v3497_v56  ;;  %v1358_v40 = vmul.f32 %v3497_v56, %v3497_v56  ;;  %v847_v57 = vadd.f32 -0.28449672, %v815_v25  ;;  %v1247_v16 = vadd.f32 1.0, %v1215_v42  ;;  %v2670_v31 = vpop.eup %2669  ;;  %v2280_v13 = vunpack.c.h.bf16 %v2381_v59 }
  0xa4   : > { %v463_v17 = vmul.f32 0.5, %v3386_v4  ;;  %vm1167_vm1 = vcmp.lt.f32.partialorder %v3400_v47, 0.0  ;;  %v3512_v49 = vmul.f32 0.5, %v3453_v53  ;;  %v3515_v15 = vmul.f32 0.5, %v3468_v30 }
  0xa5   : > { %2513 = vmatmul.mubr.f32.gmra.mrb[6].mxu1 %v1358_v40  ;;  %v879_v12 = vmul.f32 %v3470_v5, %v847_v57  ;;  %v1279_v51 = vmul.f32 %v1247_v16, %v447_v45  ;;  %2675 = vrcp.f32 %v577_v50  ;;  %v3518_v18 = vmul.f32 0.70710677, %v3506_v24 }
  0xa6   : > { %v1008_v59 = vmul.f32 %v976_v60, %v528_v35  ;;  %v379_v54 = vmul.f32 %v3443_v20, %v2248_v7  ;;  %v395_v61 = vmul.f32 %v3443_v20, %v2280_v13  ;;  %v1033_v29 = vmul.f32 1.442695, %v992_v3 }
  0xa7   : > { %v911_v19 = vadd.f32 0.2548296, %v879_v12  ;;  %v3520_v34 = vpop.eup %2671  ;;  %v3523_v6 = vadd.f32 %v1279_v51, %v3344_v10  ;;  %v529_v26 = vand.u32 2147483647, %v3518_v18  ;;  %v961_v25 = vsub.f32 0.0, %v513_v33 }
  0xa8   : > { %v672_v9 = vmul.f32 1.0614054, %v3520_v34  ;;  %v3536_v10 = vadd.f32 %v3383_v23, %v379_v54  ;;  %v3539_v35 = vadd.f32 %v3383_v23, %v395_v61  ;;  %v1065_v0 = vmul.f32 1.442695, %v1008_v59 }
  0xa9   : > { %3946 = vst [vmem:[#allocation4_spill] sm:$0xff] %v3523_v6  ;;  %v943_v14 = vmul.f32 %v3470_v5, %v911_v19  ;;  %v1343_v22 = vmul.f32 %v3523_v6, %v3523_v6  ;;  %v561_v21 = vmul.f32 0.3275911, %v529_v26  ;;  %v2251_v5 = vunpack.c.l.bf16 %v3528_v28 }
  0xaa   : > { %v704_v45 = vadd.f32 -1.4531521, %v672_v9  ;;  %v3543_v40 = vmul.f32 0.5, %v3474_v11  ;;  %v977_v42 = vsub.f32 0.0, %v529_v26  ;;  %v3546_v57 = vmul.f32 0.70710677, %v3536_v10 }
  0xab   : > { %v1103_v44 = vmul.f32 %v2670_v31, %v943_v14  ;;  %2491 = vmatprep.mubr.f32.mxu0 %v1343_v22  ;;  %v593_v50 = vadd.f32 1.0, %v561_v21  ;;  %v3552_v31 = vmul.f32 0.70710677, %v3539_v35  ;;  %2677 = vpow2.f32 %v1033_v29 }
  0xac   : > { %v3548_v16 = vpop.eup %2673  ;;  %v736_v60 = vmul.f32 %v3520_v34, %v704_v45  ;;  %v993_v7 = vmul.f32 %v961_v25, %v513_v33  ;;  %v514_v13 = vand.u32 2147483647, %v3546_v57  ;;  %v380_v59 = vmul.f32 %v3443_v20, %v2251_v5 }
  0xad   : > { %v1135_v3 = vsub.f32 1.0, %v1103_v44  ;;  %v688_v12 = vmul.f32 1.0614054, %v3548_v16  ;;  %2679 = vrcp.f32 %v593_v50  ;;  %v1009_v61 = vmul.f32 %v977_v42, %v529_v26 }
  0xae   : > { %v768_v19 = vadd.f32 1.4214138, %v736_v60  ;;  %2681 = vpow2.f32 %v1065_v0  ;;  %v546_v14 = vmul.f32 0.3275911, %v514_v13  ;;  %v962_v44 = vsub.f32 0.0, %v514_v13 }
  0xaf   : > { %v1199_v51 = vsub.f32 0.0, %v1135_v3  ;;  %v720_v54 = vadd.f32 -1.4531521, %v688_v12  ;;  %v3557_v9 = vpop.eup %2675  ;;  %v530_v33 = vand.u32 2147483647, %v3552_v31  ;;  %v3566_v42 = vadd.f32 %v3383_v23, %v380_v59 }
  0xb0   : > { %v800_v29 = vmul.f32 %v3520_v34, %v768_v19  ;;  %v673_v21 = vmul.f32 1.0614054, %v3557_v9  ;;  %v578_v5 = vadd.f32 1.0, %v546_v14  ;;  %v1035_v0 = vmul.f32 1.442695, %v993_v7 }
  0xb1   : > { %v1231_v22 = vsel %vm1167_vm1, %v1199_v51, %v1135_v3  ;;  %v752_v45 = vmul.f32 %v3548_v16, %v720_v54  ;;  %v562_v26 = vmul.f32 0.3275911, %v530_v33  ;;  %v1067_v51 = vmul.f32 1.442695, %v1009_v61 }
  0xb2   : > { %v1263_v25 = vadd.f32 1.0, %v1231_v22  ;;  %v832_v60 = vadd.f32 -0.28449672, %v800_v29  ;;  %v705_v3 = vadd.f32 -1.4531521, %v673_v21  ;;  %2683 = vrcp.f32 %v578_v5 }
  0xb3   : > { %v784_v47 = vadd.f32 1.4214138, %v752_v45  ;;  %v994_v19 = vmul.f32 %v962_v44, %v514_v13  ;;  %v594_v22 = vadd.f32 1.0, %v562_v26  ;;  %vm1152_vm2 = vcmp.lt.f32.partialorder %v3462_v55, 0.0  ;;  %v3582_v13 = vld [vmem:[%s2903_s23 + $0x70] sm:$0xff]  }
  0xb4   : > { %v1295_v50 = vmul.f32 %v1263_v25, %v463_v17  ;;  %v864_v12 = vmul.f32 %v3520_v34, %v832_v60  ;;  %v737_v59 = vmul.f32 %v3557_v9, %v705_v3  ;;  %v3576_v17 = vmul.f32 0.5, %v3506_v24 }
  0xb5   : > { %v816_v7 = vmul.f32 %v3548_v16, %v784_v47  ;;  %2685 = vpow2.f32 %v1035_v0  ;;  %v978_v29 = vsub.f32 0.0, %v530_v33  ;;  %v3579_v25 = vmul.f32 0.70710677, %v3566_v42  ;;  %v2678_v61 = vpop.eup %2677 }
  0xb6   : > { %v3570_v54 = vadd.f32 %v1295_v50, %v3386_v4  ;;  %v896_v14 = vadd.f32 0.2548296, %v864_v12  ;;  %v769_v45 = vadd.f32 1.4214138, %v737_v59  ;;  %2687 = vrcp.f32 %v594_v22 }
  0xb7   : > { %v848_v44 = vadd.f32 -0.28449672, %v816_v7  ;;  %v3586_v21 = vpop.eup %2679  ;;  %2689 = vpow2.f32 %v1067_v51  ;;  %v1037_v60 = vmul.f32 1.442695, %v994_v19  ;;  %v515_v0 = vand.u32 2147483647, %v3579_v25 }
  0xb8   : > { %3947 = vst [vmem:[#allocation5_spill] sm:$0xff] %v3570_v54  ;;  %v1359_v4 = vmul.f32 %v3570_v54, %v3570_v54  ;;  %v928_v5 = vmul.f32 %v3520_v34, %v896_v14  ;;  %v2682_v26 = vpop.eup %2681  ;;  %v801_v47 = vmul.f32 %v3557_v9, %v769_v45  ;;  %v689_v3 = vmul.f32 1.0614054, %v3586_v21 }
  0xb9   : > { %v880_v50 = vmul.f32 %v3548_v16, %v848_v44  ;;  %v2283_v12 = vunpack.c.l.bf16 %v3582_v13  ;;  %vm1168_vm3 = vcmp.lt.f32.partialorder %v3481_v41, 0.0  ;;  %v1010_v22 = vmul.f32 %v978_v29, %v530_v33 }
  0xba   : > { %2515 = vmatprep.mubr.f32.mxu1 %v1359_v4  ;;  %v1088_v7 = vmul.f32 %v2678_v61, %v928_v5  ;;  %v547_v59 = vmul.f32 0.3275911, %v515_v0  ;;  %v963_v34 = vsub.f32 0.0, %v515_v0  ;;  %v833_v19 = vadd.f32 -0.28449672, %v801_v47 }
  0xbb   : > { %v912_v51 = vadd.f32 0.2548296, %v880_v50  ;;  %v721_v14 = vadd.f32 -1.4531521, %v689_v3  ;;  %v396_v54 = vmul.f32 %v3443_v20, %v2283_v12  ;;  %2691 = vpow2.f32 %v1037_v60 }
  0xbc   : > { %v1120_v4 = vsub.f32 1.0, %v1088_v7  ;;  %v579_v44 = vadd.f32 1.0, %v547_v59  ;;  %v2252_v45 = vunpack.c.h.bf16 %v3528_v28  ;;  %v3597_v6 = vpop.eup %2683  ;;  %v865_v61 = vmul.f32 %v3557_v9, %v833_v19 }
  0xbd   : > { %v944_v52 = vmul.f32 %v3548_v16, %v912_v51  ;;  %v753_v33 = vmul.f32 %v3586_v21, %v721_v14  ;;  %v3603_v29 = vadd.f32 %v3383_v23, %v396_v54  ;;  %vm1153_vm4 = vcmp.lt.f32.partialorder %v3488_v27, 0.0 }
  0xbe   : > { %v1184_v5 = vsub.f32 0.0, %v1120_v4  ;;  %v674_v50 = vmul.f32 1.0614054, %v3597_v6  ;;  %2693 = vrcp.f32 %v579_v44  ;;  %v995_v60 = vmul.f32 %v963_v34, %v515_v0 }
  0xbf   : > { %v1104_v47 = vmul.f32 %v2682_v26, %v944_v52  ;;  %v897_v28 = vadd.f32 0.2548296, %v865_v61  ;;  %v785_v3 = vadd.f32 1.4214138, %v753_v33  ;;  %v1069_v12 = vmul.f32 1.442695, %v1010_v22  ;;  %v2686_v7 = vpop.eup %2685 }
  0xc0   : > { %v1216_v16 = vsel %vm1152_vm2, %v1184_v5, %v1120_v4  ;;  %v706_v59 = vadd.f32 -1.4531521, %v674_v50  ;;  %v3610_v51 = vmul.f32 0.70710677, %v3603_v29  ;;  %v381_v54 = vmul.f32 %v3443_v20, %v2252_v45  ;;  %v3613_v19 = vpop.eup %2687 }
  0xc1   : > { %v1248_v14 = vadd.f32 1.0, %v1216_v16  ;;  %v1136_v56 = vsub.f32 1.0, %v1104_v47  ;;  %v929_v0 = vmul.f32 %v3557_v9, %v897_v28  ;;  %v817_v52 = vmul.f32 %v3586_v21, %v785_v3  ;;  %v2690_v26 = vpop.eup %2689 }
  0xc2   : > { %v738_v22 = vmul.f32 %v3597_v6, %v706_v59  ;;  %v690_v55 = vmul.f32 1.0614054, %v3613_v19  ;;  %v1039_v34 = vmul.f32 1.442695, %v995_v60  ;;  %v531_v4 = vand.u32 2147483647, %v3610_v51 }
  0xc3   : > { %v1280_v44 = vmul.f32 %v1248_v14, %v3512_v49  ;;  %v1200_v61 = vsub.f32 0.0, %v1136_v56  ;;  %v1089_v45 = vmul.f32 %v2686_v7, %v929_v0  ;;  %v849_v33 = vadd.f32 -0.28449672, %v817_v52 }
  0xc4   : > { %v770_v5 = vadd.f32 1.4214138, %v738_v22  ;;  %v722_v50 = vadd.f32 -1.4531521, %v690_v55  ;;  %2695 = vpow2.f32 %v1069_v12  ;;  %v563_v47 = vmul.f32 0.3275911, %v531_v4 }
  0xc5   : > { %v3622_v9 = vadd.f32 %v1280_v44, %v3453_v53  ;;  %v1232_v28 = vsel %vm1168_vm3, %v1200_v61, %v1136_v56  ;;  %v1121_v3 = vsub.f32 1.0, %v1089_v45  ;;  %v881_v60 = vmul.f32 %v3586_v21, %v849_v33  ;;  %v2692_v16 = vpop.eup %2691 }
  0xc6   : > { %v1264_v59 = vadd.f32 1.0, %v1232_v28  ;;  %v802_v49 = vmul.f32 %v3597_v6, %v770_v5  ;;  %v754_v7 = vmul.f32 %v3613_v19, %v722_v50  ;;  %v595_v14 = vadd.f32 1.0, %v563_v47 }
  0xc7   : > { %v1344_v12 = vmul.f32 %v3622_v9, %v3622_v9  ;;  %v1185_v0 = vsub.f32 0.0, %v1121_v3  ;;  %v913_v52 = vadd.f32 0.2548296, %v881_v60  ;;  %v3632_v53 = vadd.f32 %v3383_v23, %v381_v54 }
  0xc8   : > { %v3634_v41 = vpop.eup %2693  ;;  %v1296_v56 = vmul.f32 %v1264_v59, %v3515_v15  ;;  %v834_v22 = vadd.f32 -0.28449672, %v802_v49  ;;  %v786_v55 = vadd.f32 1.4214138, %v754_v7  ;;  %2697 = vrcp.f32 %v595_v14 }
  0xc9   : > { %2492 = vmatmul.mubr.f32.gmra.mrb[8].mxu0 %v1344_v12  ;;  %v1217_v44 = vsel %vm1153_vm4, %v1185_v0, %v1121_v3  ;;  %v945_v61 = vmul.f32 %v3586_v21, %v913_v52  ;;  %v675_v45 = vmul.f32 1.0614054, %v3634_v41  ;;  %v979_v33 = vsub.f32 0.0, %v531_v4 }
  0xca   : > { %v3642_v5 = vadd.f32 %v1296_v56, %v3468_v30  ;;  %v1249_v54 = vadd.f32 1.0, %v1217_v44  ;;  %v866_v50 = vmul.f32 %v3597_v6, %v834_v22  ;;  %v818_v15 = vmul.f32 %v3613_v19, %v786_v55 }
  0xcb   : > { %v1105_v47 = vmul.f32 %v2690_v26, %v945_v61  ;;  %vm1169_vm5 = vcmp.lt.f32.partialorder %v3518_v18, 0.0  ;;  %v707_v28 = vadd.f32 -1.4531521, %v675_v45  ;;  %2699 = vpow2.f32 %v1039_v34 }
  0xcc   : > { %v1360_v27 = vmul.f32 %v3642_v5, %v3642_v5  ;;  %v1281_v21 = vmul.f32 %v1249_v54, %v3543_v40  ;;  %v898_v3 = vadd.f32 0.2548296, %v866_v50  ;;  %v850_v60 = vadd.f32 -0.28449672, %v818_v15 }
  0xcd   : > { %v1137_v59 = vsub.f32 1.0, %v1105_v47  ;;  %v739_v30 = vmul.f32 %v3634_v41, %v707_v28  ;;  %v1011_v49 = vmul.f32 %v979_v33, %v531_v4  ;;  %v3652_v7 = vmul.f32 0.70710677, %v3632_v53 }
  0xce   : > { %v2696_v14 = vpop.eup %2695  ;;  %2516 = vmatmul.mubr.f32.gmra.mrb[8].mxu1 %v1360_v27  ;;  %v3655_v26 = vadd.f32 %v1281_v21, %v3474_v11  ;;  %v930_v34 = vmul.f32 %v3597_v6, %v898_v3  ;;  %v882_v12 = vmul.f32 %v3613_v19, %v850_v60  ;;  %v2284_v40 = vunpack.c.h.bf16 %v3582_v13 }
  0xcf   : > { %v1201_v0 = vsub.f32 0.0, %v1137_v59  ;;  %v450_v52 = vmul.f32 0.5, %v3536_v10  ;;  %v771_v56 = vadd.f32 1.4214138, %v739_v30  ;;  %v516_v4 = vand.u32 2147483647, %v3652_v7 }
  0xd0   : > { %v1345_v22 = vmul.f32 %v3655_v26, %v3655_v26  ;;  %v1090_v55 = vmul.f32 %v2692_v16, %v930_v34  ;;  %v914_v44 = vadd.f32 0.2548296, %v882_v12  ;;  %v397_v11 = vmul.f32 %v3443_v20, %v2284_v40 }
  0xd1   : > { %v1233_v6 = vsel %vm1169_vm5, %v1201_v0, %v1137_v59  ;;  %v803_v61 = vmul.f32 %v3634_v41, %v771_v56  ;;  %v1071_v45 = vmul.f32 1.442695, %v1011_v49  ;;  %v548_v13 = vmul.f32 0.3275911, %v516_v4  ;;  %v3689_v56 = vld [vmem:[%s2903_s23 + $0x78] sm:$0xff]  }
  0xd2   : > { %v3668_v33 = vpop.eup %2697  ;;  %2494 = vmatprep.mubr.f32.mxu0 %v1345_v22  ;;  %v1265_v54 = vadd.f32 1.0, %v1233_v6  ;;  %v1122_v50 = vsub.f32 1.0, %v1090_v55  ;;  %v946_v15 = vmul.f32 %v3613_v19, %v914_v44  ;;  %v3672_v47 = vadd.f32 %v3383_v23, %v397_v11 }
  0xd3   : > { %vm1154_vm6 = vcmp.lt.f32.partialorder %v3546_v57, 0.0  ;;  %v835_v16 = vadd.f32 -0.28449672, %v803_v61  ;;  %v691_v18 = vmul.f32 1.0614054, %v3668_v33  ;;  %v580_v28 = vadd.f32 1.0, %v548_v13 }
  0xd4   : > { %v1297_v27 = vmul.f32 %v1265_v54, %v3576_v17  ;;  %v1186_v21 = vsub.f32 0.0, %v1122_v50  ;;  %v466_v3 = vmul.f32 0.5, %v3539_v35  ;;  %v1106_v60 = vmul.f32 %v2696_v14, %v946_v15  ;;  %v2375_v17 = vld [vmem:[%s2903_s23 + $0x38] sm:$0xff]  }
  0xd5   : > { %v2700_v59 = vpop.eup %2699  ;;  %vm1170_vm7 = vcmp.lt.f32.partialorder %v3552_v31, 0.0  ;;  %v867_v19 = vmul.f32 %v3634_v41, %v835_v16  ;;  %v723_v30 = vadd.f32 -1.4531521, %v691_v18  ;;  %2701 = vrcp.f32 %v580_v28 }
  0xd6   : > { %v3681_v57 = vadd.f32 %v1297_v27, %v3506_v24  ;;  %v1218_v49 = vsel %vm1154_vm6, %v1186_v21, %v1122_v50  ;;  %v1138_v34 = vsub.f32 1.0, %v1106_v60  ;;  %v3684_v12 = vmul.f32 0.70710677, %v3672_v47 }
  0xd7   : > { %v1250_v40 = vadd.f32 1.0, %v1218_v49  ;;  %v899_v0 = vadd.f32 0.2548296, %v867_v19  ;;  %v755_v14 = vmul.f32 %v3668_v33, %v723_v30  ;;  %2703 = vpow2.f32 %v1071_v45 }
  0xd8   : > { %v1361_v22 = vmul.f32 %v3681_v57, %v3681_v57  ;;  %v1202_v55 = vsub.f32 0.0, %v1138_v34  ;;  %v964_v44 = vsub.f32 0.0, %v516_v4  ;;  %v532_v24 = vand.u32 2147483647, %v3684_v12 }
  0xd9   : > { %v1282_v11 = vmul.f32 %v1250_v40, %v450_v52  ;;  %v931_v6 = vmul.f32 %v3634_v41, %v899_v0  ;;  %v787_v61 = vadd.f32 1.4214138, %v755_v14  ;;  %v2255_v13 = vunpack.c.l.bf16 %v2375_v17 }
  0xda   : > { %2518 = vmatprep.mubr.f32.mxu1 %v1361_v22  ;;  %v1234_v54 = vsel %vm1170_vm7, %v1202_v55, %v1138_v34  ;;  %v451_v45 = vmul.f32 0.5, %v3566_v42  ;;  %v564_v50 = vmul.f32 0.3275911, %v532_v24  ;;  %v2287_v15 = vunpack.c.l.bf16 %v3689_v56 }
  0xdb   : > { %v3700_v16 = vadd.f32 %v1282_v11, %v3536_v10  ;;  %v1266_v18 = vadd.f32 1.0, %v1234_v54  ;;  %v1091_v28 = vmul.f32 %v2700_v59, %v931_v6  ;;  %v819_v52 = vmul.f32 %v3668_v33, %v787_v61 }
  0xdc   : > { %v996_v27 = vmul.f32 %v964_v44, %v516_v4  ;;  %v596_v41 = vadd.f32 1.0, %v564_v50  ;;  %v382_v21 = vmul.f32 %v3443_v20, %v2255_v13  ;;  %v398_v60 = vmul.f32 %v3443_v20, %v2287_v15 }
  0xdd   : > { %v1346_v31 = vmul.f32 %v3700_v16, %v3700_v16  ;;  %v1298_v19 = vmul.f32 %v1266_v18, %v466_v3  ;;  %v1123_v30 = vsub.f32 1.0, %v1091_v28  ;;  %v851_v49 = vadd.f32 -0.28449672, %v819_v52 }
  0xde   : > { %vm1155_vm8 = vcmp.lt.f32.partialorder %v3579_v25, 0.0  ;;  %2705 = vrcp.f32 %v596_v41  ;;  %v3709_v10 = vadd.f32 %v3383_v23, %v382_v21  ;;  %v3712_v59 = vadd.f32 %v3383_v23, %v398_v60 }
  0xdf   : > { %v3714_v4 = vpop.eup %2701  ;;  %2495 = vmatmul.mubr.f32.gmra.mrb[10].mxu0 %v1346_v31  ;;  %v3717_v34 = vadd.f32 %v1298_v19, %v3539_v35  ;;  %v1187_v40 = vsub.f32 0.0, %v1123_v30  ;;  %v883_v3 = vmul.f32 %v3668_v33, %v851_v49  ;;  %v2256_v0 = vunpack.c.h.bf16 %v2375_v17 }
  0xe0   : > { %v676_v14 = vmul.f32 1.0614054, %v3714_v4  ;;  %v1041_v25 = vmul.f32 1.442695, %v996_v27  ;;  %v3722_v22 = vmul.f32 0.70710677, %v3709_v10  ;;  %v2288_v60 = vunpack.c.h.bf16 %v3689_v56 }
  0xe1   : > { %v2704_v55 = vpop.eup %2703  ;;  %v1362_v44 = vmul.f32 %v3717_v34, %v3717_v34  ;;  %v1219_v11 = vsel %vm1155_vm8, %v1187_v40, %v1123_v30  ;;  %v915_v6 = vadd.f32 0.2548296, %v883_v3  ;;  %v980_v61 = vsub.f32 0.0, %v532_v24 }
  0xe2   : > { %v1251_v13 = vadd.f32 1.0, %v1219_v11  ;;  %v708_v35 = vadd.f32 -1.4531521, %v676_v14  ;;  %v517_v54 = vand.u32 2147483647, %v3722_v22  ;;  %v383_v15 = vmul.f32 %v3443_v20, %v2256_v0 }
  0xe3   : > { %2519 = vmatmul.mubr.f32.gmra.mrb[10].mxu1 %v1362_v44  ;;  %v947_v17 = vmul.f32 %v3668_v33, %v915_v6  ;;  %v3729_v50 = vmul.f32 0.70710677, %v3712_v59  ;;  %2707 = vpow2.f32 %v1041_v25  ;;  %v1012_v41 = vmul.f32 %v980_v61, %v532_v24 }
  0xe4   : > { %v1283_v18 = vmul.f32 %v1251_v13, %v451_v45  ;;  %v740_v28 = vmul.f32 %v3714_v4, %v708_v35  ;;  %v549_v52 = vmul.f32 0.3275911, %v517_v54  ;;  %v3739_v30 = vadd.f32 %v3383_v23, %v383_v15 }
  0xe5   : > { %v1107_v27 = vmul.f32 %v2704_v55, %v947_v17  ;;  %v533_v21 = vand.u32 2147483647, %v3729_v50  ;;  %vm1171_vm9 = vcmp.lt.f32.partialorder %v3610_v51, 0.0  ;;  %v1073_v55 = vmul.f32 1.442695, %v1012_v41 }
  0xe6   : > { %v3736_v31 = vadd.f32 %v1283_v18, %v3566_v42  ;;  %v772_v33 = vadd.f32 1.4214138, %v740_v28  ;;  %v581_v19 = vadd.f32 1.0, %v549_v52  ;;  %v467_v42 = vmul.f32 0.5, %v3603_v29 }
  0xe7   : > { %v1139_v49 = vsub.f32 1.0, %v1107_v27  ;;  %v565_v45 = vmul.f32 0.3275911, %v533_v21  ;;  %v3750_v44 = vmul.f32 0.70710677, %v3739_v30  ;;  %v399_v11 = vmul.f32 %v3443_v20, %v2288_v60 }
  0xe8   : > { %v3741_v40 = vpop.eup %2705  ;;  %v1347_v3 = vmul.f32 %v3736_v31, %v3736_v31  ;;  %v804_v24 = vmul.f32 %v3714_v4, %v772_v33  ;;  %2709 = vrcp.f32 %v581_v19  ;;  %v965_v35 = vsub.f32 0.0, %v517_v54 }
  0xe9   : > { %v1203_v56 = vsub.f32 0.0, %v1139_v49  ;;  %v692_v0 = vmul.f32 1.0614054, %v3741_v40  ;;  %v597_v14 = vadd.f32 1.0, %v565_v45  ;;  %v518_v17 = vand.u32 2147483647, %v3750_v44 }
  0xea   : > { %2497 = vmatprep.mubr.f32.mxu0 %v1347_v3  ;;  %v836_v25 = vadd.f32 -0.28449672, %v804_v24  ;;  %v3757_v18 = vadd.f32 %v3383_v23, %v399_v11  ;;  %v981_v60 = vsub.f32 0.0, %v533_v21  ;;  %v997_v45 = vmul.f32 %v965_v35, %v517_v54 }
  0xeb   : > { %v1235_v6 = vsel %vm1171_vm9, %v1203_v56, %v1139_v49  ;;  %v724_v61 = vadd.f32 -1.4531521, %v692_v0  ;;  %2711 = vrcp.f32 %v597_v14  ;;  %v550_v41 = vmul.f32 0.3275911, %v518_v17 }
  0xec   : > { %v1267_v51 = vadd.f32 1.0, %v1235_v6  ;;  %v868_v13 = vmul.f32 %v3714_v4, %v836_v25  ;;  %2713 = vpow2.f32 %v1073_v55  ;;  %v3760_v33 = vmul.f32 0.70710677, %v3757_v18 }
  0xed   : > { %v756_v15 = vmul.f32 %v3741_v40, %v724_v61  ;;  %v2708_v28 = vpop.eup %2707  ;;  %v582_v3 = vadd.f32 1.0, %v550_v41  ;;  %v1043_v54 = vmul.f32 1.442695, %v997_v45  ;;  %vm1156_vm10 = vcmp.lt.f32.partialorder %v3652_v7, 0.0 }
  0xee   : > { %v1299_v52 = vmul.f32 %v1267_v51, %v467_v42  ;;  %v900_v27 = vadd.f32 0.2548296, %v868_v13  ;;  %v534_v24 = vand.u32 2147483647, %v3760_v33  ;;  %v452_v13 = vmul.f32 0.5, %v3632_v53 }
  0xef   : > { %v788_v20 = vadd.f32 1.4214138, %v756_v15  ;;  %2715 = vrcp.f32 %v582_v3  ;;  %vm1172_vm11 = vcmp.lt.f32.partialorder %v3684_v12, 0.0  ;;  %vm1157_vm12 = vcmp.lt.f32.partialorder %v3722_v22, 0.0 }
  0xf0   : > { %v3763_v19 = vadd.f32 %v1299_v52, %v3603_v29  ;;  %v932_v49 = vmul.f32 %v3714_v4, %v900_v27  ;;  %v1013_v29 = vmul.f32 %v981_v60, %v533_v21  ;;  %v566_v55 = vmul.f32 0.3275911, %v534_v24 }
  0xf1   : > { %v820_v23 = vmul.f32 %v3741_v40, %v788_v20  ;;  %vm1173_vm13 = vcmp.lt.f32.partialorder %v3729_v50, 0.0  ;;  %vm1158_vm14 = vcmp.lt.f32.partialorder %v3750_v44, 0.0  ;;  %vm1174_vm15 = vcmp.lt.f32.partialorder %v3760_v33, 0.0 }
  0xf2   : > { %v3768_v42 = vpop.eup %2709  ;;  %v1363_v56 = vmul.f32 %v3763_v19, %v3763_v19  ;;  %v1092_v0 = vmul.f32 %v2708_v28, %v932_v49  ;;  %v598_v51 = vadd.f32 1.0, %v566_v55  ;;  %v966_v28 = vsub.f32 0.0, %v518_v17 }
  0xf3   : > { %v852_v14 = vadd.f32 -0.28449672, %v820_v23  ;;  %v677_v25 = vmul.f32 1.0614054, %v3768_v42  ;;  %v1075_v27 = vmul.f32 1.442695, %v1013_v29 }
  0xf4   : > { %2521 = vmatprep.mubr.f32.mxu1 %v1363_v56  ;;  %v1124_v4 = vsub.f32 1.0, %v1092_v0  ;;  %2717 = vrcp.f32 %v598_v51  ;;  %v998_v23 = vmul.f32 %v966_v28, %v518_v17  ;;  %v982_v56 = vsub.f32 0.0, %v534_v24 }
  0xf5   : > { %v3773_v11 = vpop.eup %2711  ;;  %v884_v6 = vmul.f32 %v3741_v40, %v852_v14  ;;  %v709_v61 = vadd.f32 -1.4531521, %v677_v25  ;;  %2719 = vpow2.f32 %v1043_v54 }
  0xf6   : > { %v1188_v35 = vsub.f32 0.0, %v1124_v4  ;;  %v693_v15 = vmul.f32 1.0614054, %v3773_v11  ;;  %v2714_v41 = vpop.eup %2713  ;;  %2721 = vpow2.f32 %v1075_v27  ;;  %v1045_v51 = vmul.f32 1.442695, %v998_v23 }
  0xf7   : > { %v916_v52 = vadd.f32 0.2548296, %v884_v6  ;;  %v741_v21 = vmul.f32 %v3768_v42, %v709_v61  ;;  %v1014_v17 = vmul.f32 %v982_v56, %v534_v24 }
  0xf8   : > { %v1220_v20 = vsel %vm1156_vm10, %v1188_v35, %v1124_v4  ;;  %v725_v60 = vadd.f32 -1.4531521, %v693_v15  ;;  %2723 = vpow2.f32 %v1045_v51 }
  0xf9   : > { %v1252_v7 = vadd.f32 1.0, %v1220_v20  ;;  %v948_v49 = vmul.f32 %v3741_v40, %v916_v52  ;;  %v773_v45 = vadd.f32 1.4214138, %v741_v21  ;;  %v2716_v55 = vpop.eup %2715  ;;  %v468_v52 = vmul.f32 0.5, %v3672_v47 }
  0xfa   : > { %v757_v3 = vmul.f32 %v3773_v11, %v725_v60  ;;  %v678_v61 = vmul.f32 1.0614054, %v2716_v55 }
  0xfb   : > { %v1284_v0 = vmul.f32 %v1252_v7, %v452_v13  ;;  %v1108_v14 = vmul.f32 %v2714_v41, %v948_v49  ;;  %v805_v25 = vmul.f32 %v3768_v42, %v773_v45 }
  0xfc   : > { %v789_v29 = vadd.f32 1.4214138, %v757_v3  ;;  %v710_v28 = vadd.f32 -1.4531521, %v678_v61  ;;  %v1077_v3 = vmul.f32 1.442695, %v1014_v17 }
  0xfd   : > { %v3784_v6 = vadd.f32 %v1284_v0, %v3632_v53  ;;  %v1140_v4 = vsub.f32 1.0, %v1108_v14  ;;  %v837_v54 = vadd.f32 -0.28449672, %v805_v25 }
  0xfe   : > { %v821_v40 = vmul.f32 %v3773_v11, %v789_v29  ;;  %v2718_v21 = vpop.eup %2717  ;;  %v742_v20 = vmul.f32 %v2716_v55, %v710_v28  ;;  %2725 = vpow2.f32 %v1077_v3  ;;  %v453_v28 = vmul.f32 0.5, %v3709_v10 }
  0xff   : > { %v1348_v13 = vmul.f32 %v3784_v6, %v3784_v6  ;;  %v1204_v35 = vsub.f32 0.0, %v1140_v4  ;;  %v869_v15 = vmul.f32 %v3768_v42, %v837_v54  ;;  %v2720_v12 = vpop.eup %2719  ;;  %v694_v24 = vmul.f32 1.0614054, %v2718_v21 }
 0x100   : > { %v853_v53 = vadd.f32 -0.28449672, %v821_v40  ;;  %v774_v45 = vadd.f32 1.4214138, %v742_v20  ;;  %v2722_v14 = vpop.eup %2721 }
 0x101   : > { %2498 = vmatmul.mubr.f32.gmra.mrb[12].mxu0 %v1348_v13  ;;  %v1236_v27 = vsel %vm1172_vm11, %v1204_v35, %v1140_v4  ;;  %v901_v41 = vadd.f32 0.2548296, %v869_v15  ;;  %v726_v0 = vadd.f32 -1.4531521, %v694_v24 }
 0x102   : > { %v1268_v60 = vadd.f32 1.0, %v1236_v27  ;;  %v885_v7 = vmul.f32 %v3773_v11, %v853_v53  ;;  %v806_v29 = vmul.f32 %v2716_v55, %v774_v45  ;;  %v2724_v27 = vpop.eup %2723 }
 0x103   : > { %v933_v49 = vmul.f32 %v3768_v42, %v901_v41  ;;  %v758_v61 = vmul.f32 %v2718_v21, %v726_v0 }
 0x104   : > { %v1300_v23 = vmul.f32 %v1268_v60, %v468_v52  ;;  %v917_v56 = vadd.f32 0.2548296, %v885_v7  ;;  %v838_v13 = vadd.f32 -0.28449672, %v806_v29  ;;  %v469_v60 = vmul.f32 0.5, %v3712_v59 }
 0x105   : > { %v1093_v25 = vmul.f32 %v2720_v12, %v933_v49  ;;  %v790_v17 = vadd.f32 1.4214138, %v758_v61  ;;  %v454_v61 = vmul.f32 0.5, %v3739_v30 }
 0x106   : > { %v3795_v4 = vadd.f32 %v1300_v23, %v3672_v47  ;;  %v949_v54 = vmul.f32 %v3773_v11, %v917_v56  ;;  %v870_v15 = vmul.f32 %v2716_v55, %v838_v13 }
 0x107   : > { %v1125_v40 = vsub.f32 1.0, %v1093_v25  ;;  %v822_v52 = vmul.f32 %v2718_v21, %v790_v17 }
 0x108   : > { %v1364_v42 = vmul.f32 %v3795_v4, %v3795_v4  ;;  %v1109_v51 = vmul.f32 %v2722_v14, %v949_v54  ;;  %v902_v11 = vadd.f32 0.2548296, %v870_v15  ;;  %v2726_v0 = vpop.eup %2725 }
 0x109   : > { %v1189_v35 = vsub.f32 0.0, %v1125_v40  ;;  %v854_v12 = vadd.f32 -0.28449672, %v822_v52 }
 0x10a   : > { %2522 = vmatmul.mubr.f32.gmra.mrb[12].mxu1 %v1364_v42  ;;  %v1141_v47 = vsub.f32 1.0, %v1109_v51  ;;  %v934_v22 = vmul.f32 %v2716_v55, %v902_v11 }
 0x10b   : > { %v1221_v53 = vsel %vm1157_vm12, %v1189_v35, %v1125_v40  ;;  %v886_v49 = vmul.f32 %v2718_v21, %v854_v12 }
 0x10c   : > { %v1253_v41 = vadd.f32 1.0, %v1221_v53  ;;  %v1205_v20 = vsub.f32 0.0, %v1141_v47  ;;  %v1094_v3 = vmul.f32 %v2724_v27, %v934_v22  ;;  %v3831_v53 = vld [vmem:[%s3934_s4] ss:$0 sm:$0xff] }
 0x10d   : > { %v918_v56 = vadd.f32 0.2548296, %v886_v49 }
 0x10e   : > { %v1285_v7 = vmul.f32 %v1253_v41, %v453_v28  ;;  %v1237_v24 = vsel %vm1173_vm13, %v1205_v20, %v1141_v47  ;;  %v1126_v50 = vsub.f32 1.0, %v1094_v3 }
 0x10f   : > { %v1269_v45 = vadd.f32 1.0, %v1237_v24  ;;  %v950_v29 = vmul.f32 %v2718_v21, %v918_v56  ;;  %v470_v21 = vmul.f32 0.5, %v3757_v18 }
 0x110   : > { %v3805_v23 = vadd.f32 %v1285_v7, %v3709_v10  ;;  %v1190_v54 = vsub.f32 0.0, %v1126_v50 }
 0x111   : > { %v1301_v14 = vmul.f32 %v1269_v45, %v469_v60  ;;  %v1110_v40 = vmul.f32 %v2726_v0, %v950_v29 }
 0x112   : > { %v1349_v25 = vmul.f32 %v3805_v23, %v3805_v23  ;;  %v1222_v13 = vsel %vm1158_vm14, %v1190_v54, %v1126_v50 }
 0x113   : > { %v3811_v55 = vadd.f32 %v1301_v14, %v3712_v59  ;;  %v1254_v42 = vadd.f32 1.0, %v1222_v13  ;;  %v1142_v51 = vsub.f32 1.0, %v1110_v40 }
 0x114   : > { %2500 = vmatprep.mubr.f32.mxu0 %v1349_v25 }
 0x115   : > { %v1365_v10 = vmul.f32 %v3811_v55, %v3811_v55  ;;  %v1286_v17 = vmul.f32 %v1254_v42, %v454_v61  ;;  %v1206_v44 = vsub.f32 0.0, %v1142_v51 }
 0x117   : > { %2524 = vmatprep.mubr.f32.mxu1 %v1365_v10  ;;  %v3819_v59 = vadd.f32 %v1286_v17, %v3739_v30  ;;  %v1238_v35 = vsel %vm1174_vm15, %v1206_v44, %v1142_v51 }
 0x118   : > { %v1270_v15 = vadd.f32 1.0, %v1238_v35 }
 0x119   : > { %v1350_v28 = vmul.f32 %v3819_v59, %v3819_v59 }
 0x11a   : > { %v1302_v47 = vmul.f32 %v1270_v15, %v470_v21 }
 0x11b   : > { %2501 = vmatmul.mubr.f32.gmra.mrb[14].mxu0 %v1350_v28 }
 0x11c   : > { %v3824_v52 = vadd.f32 %v1302_v47, %v3757_v18 }
 0x11e   : > { %v1366_v33 = vmul.f32 %v3824_v52, %v3824_v52 }
 0x120   : > { %2525 = vmatmul.mubr.f32.gmra.mrb[14].mxu1 %v1366_v33 }
 0x124   : > { %v2481_v30 = vpop.f32.mrb[0].mxu0 }
 0x125   : > { %v1462_v11 = vadd.f32 %v2481_v30, %v3831_v53  ;;  %v1456_v27 = vpop.f32.mrb[1].mxu0 }
 0x126   : > { %v2505_v41 = vpop.f32.mrb[0].mxu1  ;;  %v1457_v20 = vadd.f32 %v3831_v53, %v1456_v27 }
 0x127   : > { %2727 = vrsqrt.f32 %v1462_v11  ;;  %v1536_v12 = vpop.f32.mrb[1].mxu1  ;;  %v1542_v18 = vadd.f32 %v2505_v41, %v3831_v53  ;;  %vm1624_vm0 = vcmp.eq.f32.partialorder %v1462_v11, inf  ;;  %vm1626_vm1 = vcmp.eq.f32.partialorder %v1462_v11, 0.0 }
 0x128   : > { %2729 = vrsqrt.f32 %v1457_v20  ;;  %v1537_v60 = vadd.f32 %v3831_v53, %v1536_v12  ;;  %v1627_v0 = vand.u32 2147483648, %v1462_v11  ;;  %vm1617_vm2 = vcmp.eq.f32.partialorder %v1457_v20, inf }
 0x129   : > { %2731 = vrsqrt.f32 %v1542_v18  ;;  %vm1619_vm3 = vcmp.eq.f32.partialorder %v1457_v20, 0.0  ;;  %vm1736_vm4 = vcmp.eq.f32.partialorder %v1542_v18, inf  ;;  %vm1738_vm5 = vcmp.eq.f32.partialorder %v1542_v18, 0.0 }
 0x12a   : > { %2733 = vrsqrt.f32 %v1537_v60  ;;  %v1620_v29 = vand.u32 2147483648, %v1457_v20  ;;  %v1739_v10 = vand.u32 2147483648, %v1542_v18  ;;  %vm1729_vm6 = vcmp.eq.f32.partialorder %v1537_v60, inf }
 0x12b   : > { %v1732_v15 = vand.u32 2147483648, %v1537_v60  ;;  %vm1731_vm7 = vcmp.eq.f32.partialorder %v1537_v60, 0.0 }
 0x12e   : > { %v2484_v22 = vpop.f32.mrb[2].mxu0 }
 0x12f   : > { %v1472_v7 = vadd.f32 %v2484_v22, %v3831_v53  ;;  %v1466_v24 = vpop.f32.mrb[3].mxu0 }
 0x130   : > { %v1467_v49 = vadd.f32 %v3831_v53, %v1466_v24 }
 0x131   : > { %v2728_v45 = vpop.eup %2727  ;;  %2735 = vrsqrt.f32 %v1472_v7  ;;  %vm1638_vm8 = vcmp.eq.f32.partialorder %v1472_v7, inf  ;;  %v1641_v24 = vand.u32 2147483648, %v1472_v7  ;;  %vm1640_vm9 = vcmp.eq.f32.partialorder %v1472_v7, 0.0 }
 0x132   : > { %v2730_v3 = vpop.eup %2729  ;;  %v1623_v56 = vmul.f32 %v2728_v45, %v1462_v11  ;;  %2737 = vrsqrt.f32 %v1467_v49  ;;  %vm1631_vm10 = vcmp.eq.f32.partialorder %v1467_v49, inf  ;;  %vm1633_vm11 = vcmp.eq.f32.partialorder %v1467_v49, 0.0 }
 0x133   : > { %v1616_v14 = vmul.f32 %v2730_v3, %v1457_v20  ;;  %v2732_v50 = vpop.eup %2731 }
 0x134   : > { %v1625_v25 = vsel %vm1624_vm0, %v1462_v11, %v1623_v56  ;;  %v2734_v54 = vpop.eup %2733  ;;  %v1735_v40 = vmul.f32 %v2732_v50, %v1542_v18 }
 0x135   : > { %v1628_v61 = vsel %vm1626_vm1, %v1627_v0, %v1625_v25  ;;  %v1618_v13 = vsel %vm1617_vm2, %v1457_v20, %v1616_v14  ;;  %v1728_v17 = vmul.f32 %v2734_v54, %v1537_v60 }
 0x136   : > { %v1840_v42 = vmul.f32 %v1628_v61, %v3183_v48  ;;  %v1621_v51 = vsel %vm1619_vm3, %v1620_v29, %v1618_v13  ;;  %v2508_v44 = vpop.f32.mrb[2].mxu1  ;;  %v1737_v21 = vsel %vm1736_vm4, %v1542_v18, %v1735_v40 }
 0x137   : > { %v1839_v35 = vmul.f32 %v1621_v51, %v3167_v37  ;;  %v1552_v28 = vadd.f32 %v2508_v44, %v3831_v53  ;;  %v1546_v47 = vpop.f32.mrb[3].mxu1  ;;  %v1740_v48 = vsel %vm1738_vm5, %v1739_v10, %v1737_v21  ;;  %v1730_v33 = vsel %vm1729_vm6, %v1537_v60, %v1728_v17 }
 0x138   : > { %v1547_v30 = vadd.f32 %v3831_v53, %v1546_v47  ;;  %v1856_v37 = vmul.f32 %v1740_v48, %v3195_v36  ;;  %v1733_v27 = vsel %vm1731_vm7, %v1732_v15, %v1730_v33  ;;  %v1634_v36 = vand.u32 2147483648, %v1467_v49 }
 0x139   : > { %v2292_v11 = vpack.c.bf16 %v1840_v42, %v1839_v35  ;;  %2739 = vrsqrt.f32 %v1552_v28  ;;  %v1855_v41 = vmul.f32 %v1733_v27, %v3171_v8  ;;  %vm1750_vm12 = vcmp.eq.f32.partialorder %v1552_v28, inf }
 0x13a   : > { %2741 = vrsqrt.f32 %v1547_v30  ;;  %v1753_v61 = vand.u32 2147483648, %v1552_v28  ;;  %vm1752_vm13 = vcmp.eq.f32.partialorder %v1552_v28, 0.0  ;;  %vm1743_vm14 = vcmp.eq.f32.partialorder %v1547_v30, inf }
 0x13b   : > { %v2736_v20 = vpop.eup %2735  ;;  %2293 = vst [vmem:[%s3847_s27] sm:$0xff] %v2292_v11   ;;  %v2332_v22 = vpack.c.bf16 %v1856_v37, %v1855_v41  ;;  %v1746_v13 = vand.u32 2147483648, %v1547_v30  ;;  %vm1745_vm15 = vcmp.eq.f32.partialorder %v1547_v30, 0.0 }
 0x13c   : > { %v2738_v12 = vpop.eup %2737  ;;  %v1637_v18 = vmul.f32 %v2736_v20, %v1472_v7 }
 0x13d   : > { %v1630_v45 = vmul.f32 %v2738_v12, %v1467_v49  ;;  %2391 = vst [vmem:[%s3847_s27 + $0x40] sm:$0xff] %v2332_v22  }
 0x13e   : > { %v1639_v60 = vsel %vm1638_vm8, %v1472_v7, %v1637_v18 }
 0x13f   : > { %v1642_v3 = vsel %vm1640_vm9, %v1641_v24, %v1639_v60  ;;  %v1632_v56 = vsel %vm1631_vm10, %v1467_v49, %v1630_v45 }
 0x140   : > { %v1842_v8 = vmul.f32 %v1642_v3, %v3233_v63  ;;  %v1635_v0 = vsel %vm1633_vm11, %v1634_v36, %v1632_v56 }
 0x141   : > { %v1841_v14 = vmul.f32 %v1635_v0, %v3207_v1 }
 0x143   : > { %v2740_v50 = vpop.eup %2739  ;;  %v2297_v25 = vpack.c.bf16 %v1842_v8, %v1841_v14 }
 0x144   : > { %v1749_v29 = vmul.f32 %v2740_v50, %v1552_v28  ;;  %v2742_v54 = vpop.eup %2741 }
 0x145   : > { %2384 = vst [vmem:[%s3847_s27 + $0x8] sm:$0xff] %v2297_v25   ;;  %v1742_v7 = vmul.f32 %v2742_v54, %v1547_v30 }
 0x146   : > { %v1751_v40 = vsel %vm1750_vm12, %v1552_v28, %v1749_v29 }
 0x147   : > { %v1754_v10 = vsel %vm1752_vm13, %v1753_v61, %v1751_v40  ;;  %v1744_v63 = vsel %vm1743_vm14, %v1547_v30, %v1742_v7 }
 0x148   : > { %v1858_v49 = vmul.f32 %v1754_v10, %v3264_v62  ;;  %v1747_v42 = vsel %vm1745_vm15, %v1746_v13, %v1744_v63 }
 0x149   : > { %v1857_v1 = vmul.f32 %v1747_v42, %v3213_v58 }
 0x14b   : > { %v2337_v51 = vpack.c.bf16 %v1858_v49, %v1857_v1 }
 0x14d   : > { %2392 = vst [vmem:[%s3847_s27 + $0x48] sm:$0xff] %v2337_v51  }
 0x15f   : > { %v2487_v17 = vpop.f32.mrb[4].mxu0 }
 0x160   : > { %v1482_v44 = vadd.f32 %v2487_v17, %v3831_v53  ;;  %v1476_v21 = vpop.f32.mrb[5].mxu0 }
 0x161   : > { %v1477_v35 = vadd.f32 %v3831_v53, %v1476_v21 }
 0x162   : > { %2743 = vrsqrt.f32 %v1482_v44  ;;  %vm1652_vm0 = vcmp.eq.f32.partialorder %v1482_v44, inf  ;;  %v1655_v30 = vand.u32 2147483648, %v1482_v44  ;;  %vm1654_vm1 = vcmp.eq.f32.partialorder %v1482_v44, 0.0 }
 0x163   : > { %2745 = vrsqrt.f32 %v1477_v35  ;;  %vm1645_vm2 = vcmp.eq.f32.partialorder %v1477_v35, inf  ;;  %v1648_v27 = vand.u32 2147483648, %v1477_v35  ;;  %vm1647_vm3 = vcmp.eq.f32.partialorder %v1477_v35, 0.0 }
 0x164   : > { %v2511_v15 = vpop.f32.mrb[4].mxu1 }
 0x165   : > { %v1562_v28 = vadd.f32 %v2511_v15, %v3831_v53  ;;  %v1556_v47 = vpop.f32.mrb[5].mxu1 }
 0x166   : > { %v1557_v62 = vadd.f32 %v3831_v53, %v1556_v47 }
 0x167   : > { %2747 = vrsqrt.f32 %v1562_v28  ;;  %vm1764_vm4 = vcmp.eq.f32.partialorder %v1562_v28, inf  ;;  %vm1766_vm5 = vcmp.eq.f32.partialorder %v1562_v28, 0.0  ;;  %v1767_v36 = vand.u32 2147483648, %v1562_v28 }
 0x168   : > { %2749 = vrsqrt.f32 %v1557_v62  ;;  %vm1757_vm6 = vcmp.eq.f32.partialorder %v1557_v62, inf  ;;  %v1760_v14 = vand.u32 2147483648, %v1557_v62  ;;  %vm1759_vm7 = vcmp.eq.f32.partialorder %v1557_v62, 0.0 }
 0x16c   : > { %v2744_v48 = vpop.eup %2743 }
 0x16d   : > { %v2746_v58 = vpop.eup %2745  ;;  %v1651_v33 = vmul.f32 %v2744_v48, %v1482_v44 }
 0x16e   : > { %v1644_v37 = vmul.f32 %v2746_v58, %v1477_v35 }
 0x16f   : > { %v1653_v11 = vsel %vm1652_vm0, %v1482_v44, %v1651_v33 }
 0x170   : > { %v1656_v41 = vsel %vm1654_vm1, %v1655_v30, %v1653_v11  ;;  %v1646_v20 = vsel %vm1645_vm2, %v1477_v35, %v1644_v37 }
 0x171   : > { %v2748_v12 = vpop.eup %2747  ;;  %v1844_v22 = vmul.f32 %v1656_v41, %v3406_v39  ;;  %v1649_v18 = vsel %vm1647_vm3, %v1648_v27, %v1646_v20 }
 0x172   : > { %v2750_v24 = vpop.eup %2749  ;;  %v1763_v45 = vmul.f32 %v2748_v12, %v1562_v28  ;;  %v1843_v60 = vmul.f32 %v1649_v18, %v3304_v46  ;;  %v2490_v56 = vpop.f32.mrb[6].mxu0  ;;  %v3948_v12 = vld [vmem:[#allocation3_spill] sm:$0xff]  ;;  %v3949_v18 = vld [vmem:[#allocation2_spill] sm:$0xff] }
 0x173   : > { %v1756_v3 = vmul.f32 %v2750_v24, %v1557_v62  ;;  %v1492_v50 = vadd.f32 %v2490_v56, %v3831_v53  ;;  %v1486_v25 = vpop.f32.mrb[7].mxu0 }
 0x174   : > { %v1765_v8 = vsel %vm1764_vm4, %v1562_v28, %v1763_v45  ;;  %v2302_v0 = vpack.c.bf16 %v1844_v22, %v1843_v60  ;;  %v1487_v54 = vadd.f32 %v3831_v53, %v1486_v25 }
 0x175   : > { %v1768_v39 = vsel %vm1766_vm5, %v1767_v36, %v1765_v8  ;;  %v1758_v29 = vsel %vm1757_vm6, %v1557_v62, %v1756_v3  ;;  %2751 = vrsqrt.f32 %v1492_v50  ;;  %vm1666_vm8 = vcmp.eq.f32.partialorder %v1492_v50, inf }
 0x176   : > { %v1860_v46 = vmul.f32 %v1768_v39, %v3423_v2  ;;  %2385 = vst [vmem:[%s3847_s27 + $0x10] sm:$0xff] %v2302_v0   ;;  %v1761_v61 = vsel %vm1759_vm7, %v1760_v14, %v1758_v29  ;;  %2753 = vrsqrt.f32 %v1487_v54  ;;  %v1669_v2 = vand.u32 2147483648, %v1492_v50 }
 0x177   : > { %v1859_v40 = vmul.f32 %v1761_v61, %v3380_v43  ;;  %vm1668_vm9 = vcmp.eq.f32.partialorder %v1492_v50, 0.0  ;;  %vm1659_vm10 = vcmp.eq.f32.partialorder %v1487_v54, inf  ;;  %v1662_v43 = vand.u32 2147483648, %v1487_v54 }
 0x178   : > { %v2514_v7 = vpop.f32.mrb[6].mxu1  ;;  %vm1661_vm11 = vcmp.eq.f32.partialorder %v1487_v54, 0.0 }
 0x179   : > { %v2342_v10 = vpack.c.bf16 %v1860_v46, %v1859_v40  ;;  %v1572_v13 = vadd.f32 %v2514_v7, %v3831_v53  ;;  %v1566_v49 = vpop.f32.mrb[7].mxu1 }
 0x17a   : > { %v1567_v63 = vadd.f32 %v3831_v53, %v1566_v49 }
 0x17b   : > { %2393 = vst [vmem:[%s3847_s27 + $0x50] sm:$0xff] %v2342_v10   ;;  %2755 = vrsqrt.f32 %v1572_v13  ;;  %vm1778_vm12 = vcmp.eq.f32.partialorder %v1572_v13, inf  ;;  %vm1780_vm13 = vcmp.eq.f32.partialorder %v1572_v13, 0.0  ;;  %v1781_v33 = vand.u32 2147483648, %v1572_v13 }
 0x17c   : > { %2757 = vrsqrt.f32 %v1567_v63  ;;  %vm1771_vm14 = vcmp.eq.f32.partialorder %v1567_v63, inf  ;;  %v1774_v27 = vand.u32 2147483648, %v1567_v63  ;;  %vm1773_vm15 = vcmp.eq.f32.partialorder %v1567_v63, 0.0 }
 0x17f   : > { %v2752_v42 = vpop.eup %2751 }
 0x180   : > { %v2754_v1 = vpop.eup %2753  ;;  %v1665_v51 = vmul.f32 %v2752_v42, %v1492_v50 }
 0x181   : > { %v1658_v17 = vmul.f32 %v2754_v1, %v1487_v54  ;;  %v3950_v1 = vld [vmem:[#allocation4_spill] sm:$0xff] }
 0x182   : > { %v1667_v44 = vsel %vm1666_vm8, %v1492_v50, %v1665_v51 }
 0x183   : > { %v1670_v21 = vsel %vm1668_vm9, %v1669_v2, %v1667_v44  ;;  %v1660_v35 = vsel %vm1659_vm10, %v1487_v54, %v1658_v17 }
 0x184   : > { %v1846_v28 = vmul.f32 %v1670_v21, %v3485_v32  ;;  %v1663_v47 = vsel %vm1661_vm11, %v1662_v43, %v1660_v35 }
 0x185   : > { %v2756_v15 = vpop.eup %2755  ;;  %v1845_v58 = vmul.f32 %v1663_v47, %v3431_v38 }
 0x186   : > { %v2758_v62 = vpop.eup %2757  ;;  %v1777_v48 = vmul.f32 %v2756_v15, %v1572_v13 }
 0x187   : > { %v1770_v30 = vmul.f32 %v2758_v62, %v1567_v63  ;;  %v2307_v11 = vpack.c.bf16 %v1846_v28, %v1845_v58  ;;  %v3951_v58 = vld [vmem:[#allocation5_spill] sm:$0xff] }
 0x188   : > { %v1779_v37 = vsel %vm1778_vm12, %v1572_v13, %v1777_v48 }
 0x189   : > { %v1782_v41 = vsel %vm1780_vm13, %v1781_v33, %v1779_v37  ;;  %v1772_v20 = vsel %vm1771_vm14, %v1567_v63, %v1770_v30  ;;  %2386 = vst [vmem:[%s3847_s27 + $0x18] sm:$0xff] %v2307_v11  }
 0x18a   : > { %v1862_v32 = vmul.f32 %v1782_v41, %v3948_v12  ;;  %v1775_v22 = vsel %vm1773_vm15, %v1774_v27, %v1772_v20 }
 0x18b   : > { %v1861_v24 = vmul.f32 %v1775_v22, %v3949_v18 }
 0x18d   : > { %v2347_v45 = vpack.c.bf16 %v1862_v32, %v1861_v24 }
 0x18f   : > { %2394 = vst [vmem:[%s3847_s27 + $0x58] sm:$0xff] %v2347_v45  }
 0x19c   : > { %v2493_v38 = vpop.f32.mrb[8].mxu0 }
 0x19d   : > { %v1502_v60 = vadd.f32 %v2493_v38, %v3831_v53  ;;  %v1496_v36 = vpop.f32.mrb[9].mxu0 }
 0x19e   : > { %v1497_v3 = vadd.f32 %v3831_v53, %v1496_v36 }
 0x19f   : > { %2759 = vrsqrt.f32 %v1502_v60  ;;  %vm1680_vm0 = vcmp.eq.f32.partialorder %v1502_v60, inf  ;;  %v1683_v29 = vand.u32 2147483648, %v1502_v60  ;;  %vm1682_vm1 = vcmp.eq.f32.partialorder %v1502_v60, 0.0 }
 0x1a0   : > { %2761 = vrsqrt.f32 %v1497_v3  ;;  %vm1673_vm2 = vcmp.eq.f32.partialorder %v1497_v3, inf  ;;  %v1676_v61 = vand.u32 2147483648, %v1497_v3  ;;  %vm1675_vm3 = vcmp.eq.f32.partialorder %v1497_v3, 0.0 }
 0x1a1   : > { %v2517_v56 = vpop.f32.mrb[8].mxu1 }
 0x1a2   : > { %v1582_v8 = vadd.f32 %v2517_v56, %v3831_v53  ;;  %v1576_v0 = vpop.f32.mrb[9].mxu1 }
 0x1a3   : > { %v1577_v14 = vadd.f32 %v3831_v53, %v1576_v0 }
 0x1a4   : > { %2763 = vrsqrt.f32 %v1582_v8  ;;  %vm1792_vm4 = vcmp.eq.f32.partialorder %v1582_v8, inf  ;;  %vm1794_vm5 = vcmp.eq.f32.partialorder %v1582_v8, 0.0  ;;  %v1795_v2 = vand.u32 2147483648, %v1582_v8 }
 0x1a5   : > { %2765 = vrsqrt.f32 %v1577_v14  ;;  %vm1785_vm6 = vcmp.eq.f32.partialorder %v1577_v14, inf  ;;  %v1788_v21 = vand.u32 2147483648, %v1577_v14  ;;  %vm1787_vm7 = vcmp.eq.f32.partialorder %v1577_v14, 0.0 }
 0x1a9   : > { %v2760_v50 = vpop.eup %2759 }
 0x1aa   : > { %v2762_v25 = vpop.eup %2761  ;;  %v1679_v39 = vmul.f32 %v2760_v50, %v1502_v60 }
 0x1ab   : > { %v1672_v54 = vmul.f32 %v2762_v25, %v1497_v3 }
 0x1ac   : > { %v1681_v46 = vsel %vm1680_vm0, %v1502_v60, %v1679_v39 }
 0x1ad   : > { %v1684_v40 = vsel %vm1682_vm1, %v1683_v29, %v1681_v46  ;;  %v1674_v7 = vsel %vm1673_vm2, %v1497_v3, %v1672_v54 }
 0x1ae   : > { %v2764_v10 = vpop.eup %2763  ;;  %v1848_v13 = vmul.f32 %v1684_v40, %v3622_v9  ;;  %v1677_v49 = vsel %vm1675_vm3, %v1676_v61, %v1674_v7 }
 0x1af   : > { %v2766_v63 = vpop.eup %2765  ;;  %v1791_v42 = vmul.f32 %v2764_v10, %v1582_v8  ;;  %v1847_v51 = vmul.f32 %v1677_v49, %v3950_v1 }
 0x1b0   : > { %v1784_v17 = vmul.f32 %v2766_v63, %v1577_v14 }
 0x1b1   : > { %v1793_v44 = vsel %vm1792_vm4, %v1582_v8, %v1791_v42  ;;  %v2312_v43 = vpack.c.bf16 %v1848_v13, %v1847_v51 }
 0x1b2   : > { %v1796_v35 = vsel %vm1794_vm5, %v1795_v2, %v1793_v44  ;;  %v1786_v15 = vsel %vm1785_vm6, %v1577_v14, %v1784_v17  ;;  %v2496_v28 = vpop.f32.mrb[10].mxu0 }
 0x1b3   : > { %v1864_v9 = vmul.f32 %v1796_v35, %v3642_v5  ;;  %2387 = vst [vmem:[%s3847_s27 + $0x20] sm:$0xff] %v2312_v43   ;;  %v1789_v47 = vsel %vm1787_vm7, %v1788_v21, %v1786_v15  ;;  %v1512_v62 = vadd.f32 %v2496_v28, %v3831_v53  ;;  %v1506_v48 = vpop.f32.mrb[11].mxu0 }
 0x1b4   : > { %v1863_v33 = vmul.f32 %v1789_v47, %v3951_v58  ;;  %v1507_v30 = vadd.f32 %v3831_v53, %v1506_v48 }
 0x1b5   : > { %2767 = vrsqrt.f32 %v1512_v62  ;;  %vm1694_vm8 = vcmp.eq.f32.partialorder %v1512_v62, inf  ;;  %v1697_v22 = vand.u32 2147483648, %v1512_v62  ;;  %vm1696_vm9 = vcmp.eq.f32.partialorder %v1512_v62, 0.0 }
 0x1b6   : > { %v2352_v37 = vpack.c.bf16 %v1864_v9, %v1863_v33  ;;  %v2520_v11 = vpop.f32.mrb[10].mxu1  ;;  %2769 = vrsqrt.f32 %v1507_v30  ;;  %vm1687_vm10 = vcmp.eq.f32.partialorder %v1507_v30, inf  ;;  %v1690_v45 = vand.u32 2147483648, %v1507_v30 }
 0x1b7   : > { %v1592_v27 = vadd.f32 %v2520_v11, %v3831_v53  ;;  %v1586_v41 = vpop.f32.mrb[11].mxu1  ;;  %vm1689_vm11 = vcmp.eq.f32.partialorder %v1507_v30, 0.0 }
 0x1b8   : > { %2395 = vst [vmem:[%s3847_s27 + $0x60] sm:$0xff] %v2352_v37   ;;  %v1587_v20 = vadd.f32 %v3831_v53, %v1586_v41 }
 0x1b9   : > { %2771 = vrsqrt.f32 %v1592_v27  ;;  %vm1806_vm12 = vcmp.eq.f32.partialorder %v1592_v27, inf  ;;  %v1809_v14 = vand.u32 2147483648, %v1592_v27  ;;  %vm1808_vm13 = vcmp.eq.f32.partialorder %v1592_v27, 0.0 }
 0x1ba   : > { %2773 = vrsqrt.f32 %v1587_v20  ;;  %vm1799_vm14 = vcmp.eq.f32.partialorder %v1587_v20, inf  ;;  %v1802_v29 = vand.u32 2147483648, %v1587_v20  ;;  %vm1801_vm15 = vcmp.eq.f32.partialorder %v1587_v20, 0.0 }
 0x1bf   : > { %v2768_v5 = vpop.eup %2767 }
 0x1c0   : > { %v2770_v12 = vpop.eup %2769  ;;  %v1693_v32 = vmul.f32 %v2768_v5, %v1512_v62 }
 0x1c1   : > { %v1686_v18 = vmul.f32 %v2770_v12, %v1507_v30 }
 0x1c2   : > { %v1695_v24 = vsel %vm1694_vm8, %v1512_v62, %v1693_v32 }
 0x1c3   : > { %v2772_v38 = vpop.eup %2771  ;;  %v1698_v60 = vsel %vm1696_vm9, %v1697_v22, %v1695_v24  ;;  %v1688_v36 = vsel %vm1687_vm10, %v1507_v30, %v1686_v18 }
 0x1c4   : > { %v2774_v3 = vpop.eup %2773  ;;  %v1850_v56 = vmul.f32 %v1698_v60, %v3700_v16  ;;  %v1805_v8 = vmul.f32 %v2772_v38, %v1592_v27  ;;  %v1691_v0 = vsel %vm1689_vm11, %v1690_v45, %v1688_v36 }
 0x1c5   : > { %v1849_v50 = vmul.f32 %v1691_v0, %v3655_v26  ;;  %v1798_v25 = vmul.f32 %v2774_v3, %v1587_v20 }
 0x1c6   : > { %v1807_v39 = vsel %vm1806_vm12, %v1592_v27, %v1805_v8 }
 0x1c7   : > { %v1810_v54 = vsel %vm1808_vm13, %v1809_v14, %v1807_v39  ;;  %v2317_v46 = vpack.c.bf16 %v1850_v56, %v1849_v50  ;;  %v1800_v61 = vsel %vm1799_vm14, %v1587_v20, %v1798_v25 }
 0x1c8   : > { %v1866_v40 = vmul.f32 %v1810_v54, %v3717_v34  ;;  %v1803_v16 = vsel %vm1801_vm15, %v1802_v29, %v1800_v61 }
 0x1c9   : > { %2388 = vst [vmem:[%s3847_s27 + $0x28] sm:$0xff] %v2317_v46   ;;  %v1865_v7 = vmul.f32 %v1803_v16, %v3681_v57 }
 0x1cb   : > { %v2357_v10 = vpack.c.bf16 %v1866_v40, %v1865_v7 }
 0x1cd   : > { %2396 = vst [vmem:[%s3847_s27 + $0x68] sm:$0xff] %v2357_v10  }
 0x1d4   : > { %v2499_v13 = vpop.f32.mrb[12].mxu0 }
 0x1d5   : > { %v1522_v26 = vadd.f32 %v2499_v13, %v3831_v53  ;;  %v1516_v49 = vpop.f32.mrb[13].mxu0 }
 0x1d6   : > { %v1517_v63 = vadd.f32 %v3831_v53, %v1516_v49 }
 0x1d7   : > { %2775 = vrsqrt.f32 %v1522_v26  ;;  %vm1708_vm0 = vcmp.eq.f32.partialorder %v1522_v26, inf  ;;  %v1711_v44 = vand.u32 2147483648, %v1522_v26  ;;  %vm1710_vm1 = vcmp.eq.f32.partialorder %v1522_v26, 0.0 }
 0x1d8   : > { %2777 = vrsqrt.f32 %v1517_v63  ;;  %vm1701_vm2 = vcmp.eq.f32.partialorder %v1517_v63, inf  ;;  %v1704_v35 = vand.u32 2147483648, %v1517_v63  ;;  %vm1703_vm3 = vcmp.eq.f32.partialorder %v1517_v63, 0.0 }
 0x1dd   : > { %v2523_v42 = vpop.f32.mrb[12].mxu1 }
 0x1de   : > { %v1602_v1 = vadd.f32 %v2523_v42, %v3831_v53  ;;  %v1596_v51 = vpop.f32.mrb[13].mxu1 }
 0x1df   : > { %v1597_v34 = vadd.f32 %v3831_v53, %v1596_v51 }
 0x1e0   : > { %2779 = vrsqrt.f32 %v1602_v1  ;;  %vm1820_vm4 = vcmp.eq.f32.partialorder %v1602_v1, inf  ;;  %v1823_v37 = vand.u32 2147483648, %v1602_v1  ;;  %vm1822_vm5 = vcmp.eq.f32.partialorder %v1602_v1, 0.0 }
 0x1e1   : > { %v2776_v2 = vpop.eup %2775  ;;  %2781 = vrsqrt.f32 %v1597_v34  ;;  %vm1813_vm6 = vcmp.eq.f32.partialorder %v1597_v34, inf  ;;  %v1816_v41 = vand.u32 2147483648, %v1597_v34  ;;  %vm1815_vm7 = vcmp.eq.f32.partialorder %v1597_v34, 0.0 }
 0x1e2   : > { %v2778_v57 = vpop.eup %2777  ;;  %v1707_v17 = vmul.f32 %v2776_v2, %v1522_v26 }
 0x1e3   : > { %v1700_v43 = vmul.f32 %v2778_v57, %v1517_v63 }
 0x1e4   : > { %v1709_v21 = vsel %vm1708_vm0, %v1522_v26, %v1707_v17 }
 0x1e5   : > { %v1712_v15 = vsel %vm1710_vm1, %v1711_v44, %v1709_v21  ;;  %v1702_v28 = vsel %vm1701_vm2, %v1517_v63, %v1700_v43 }
 0x1e6   : > { %v1852_v9 = vmul.f32 %v1712_v15, %v3784_v6  ;;  %v1705_v47 = vsel %vm1703_vm3, %v1704_v35, %v1702_v28 }
 0x1e7   : > { %v1851_v62 = vmul.f32 %v1705_v47, %v3736_v31 }
 0x1e9   : > { %v2322_v48 = vpack.c.bf16 %v1852_v9, %v1851_v62 }
 0x1ea   : > { %v2780_v58 = vpop.eup %2779 }
 0x1eb   : > { %v2782_v33 = vpop.eup %2781  ;;  %v1819_v30 = vmul.f32 %v2780_v58, %v1602_v1  ;;  %2389 = vst [vmem:[%s3847_s27 + $0x30] sm:$0xff] %v2322_v48  }
 0x1ec   : > { %v1812_v11 = vmul.f32 %v2782_v33, %v1597_v34 }
 0x1ed   : > { %v1821_v27 = vsel %vm1820_vm4, %v1602_v1, %v1819_v30 }
 0x1ee   : > { %v1824_v20 = vsel %vm1822_vm5, %v1823_v37, %v1821_v27  ;;  %v1814_v5 = vsel %vm1813_vm6, %v1597_v34, %v1812_v11  ;;  %v2502_v32 = vpop.f32.mrb[14].mxu0 }
 0x1ef   : > { %v1868_v6 = vmul.f32 %v1824_v20, %v3795_v4  ;;  %v1817_v12 = vsel %vm1815_vm7, %v1816_v41, %v1814_v5  ;;  %v1532_v18 = vadd.f32 %v2502_v32, %v3831_v53  ;;  %v1526_v24 = vpop.f32.mrb[15].mxu0 }
 0x1f0   : > { %v1867_v31 = vmul.f32 %v1817_v12, %v3763_v19  ;;  %v1527_v45 = vadd.f32 %v3831_v53, %v1526_v24 }
 0x1f1   : > { %2783 = vrsqrt.f32 %v1532_v18  ;;  %vm1722_vm8 = vcmp.eq.f32.partialorder %v1532_v18, inf  ;;  %v1725_v8 = vand.u32 2147483648, %v1532_v18  ;;  %vm1724_vm9 = vcmp.eq.f32.partialorder %v1532_v18, 0.0 }
 0x1f2   : > { %v2362_v22 = vpack.c.bf16 %v1868_v6, %v1867_v31  ;;  %2785 = vrsqrt.f32 %v1527_v45  ;;  %vm1715_vm10 = vcmp.eq.f32.partialorder %v1527_v45, inf  ;;  %v1718_v50 = vand.u32 2147483648, %v1527_v45 }
 0x1f3   : > { %v2526_v38 = vpop.f32.mrb[14].mxu1  ;;  %vm1717_vm11 = vcmp.eq.f32.partialorder %v1527_v45, 0.0 }
 0x1f4   : > { %2397 = vst [vmem:[%s3847_s27 + $0x70] sm:$0xff] %v2362_v22   ;;  %v1612_v60 = vadd.f32 %v2526_v38, %v3831_v53  ;;  %v1606_v36 = vpop.f32.mrb[15].mxu1 }
 0x1f5   : > { %v1607_v3 = vadd.f32 %v3831_v53, %v1606_v36 }
 0x1f6   : > { %2787 = vrsqrt.f32 %v1612_v60  ;;  %vm1834_vm12 = vcmp.eq.f32.partialorder %v1612_v60, inf  ;;  %vm1836_vm13 = vcmp.eq.f32.partialorder %v1612_v60, 0.0  ;;  %v1837_v16 = vand.u32 2147483648, %v1612_v60 }
 0x1f7   : > { %2789 = vrsqrt.f32 %v1607_v3  ;;  %vm1827_vm14 = vcmp.eq.f32.partialorder %v1607_v3, inf  ;;  %v1830_v26 = vand.u32 2147483648, %v1607_v3  ;;  %vm1829_vm15 = vcmp.eq.f32.partialorder %v1607_v3, 0.0 }
 0x1fb   : > { %v2784_v4 = vpop.eup %2783 }
 0x1fc   : > { %v2786_v19 = vpop.eup %2785  ;;  %v1721_v56 = vmul.f32 %v2784_v4, %v1532_v18 }
 0x1fd   : > { %v1714_v0 = vmul.f32 %v2786_v19, %v1527_v45 }
 0x1fe   : > { %v1723_v14 = vsel %vm1722_vm8, %v1532_v18, %v1721_v56 }
 0x1ff   : > { %v1726_v25 = vsel %vm1724_vm9, %v1725_v8, %v1723_v14  ;;  %v1716_v39 = vsel %vm1715_vm10, %v1527_v45, %v1714_v0 }
 0x200   : > { %v2788_v29 = vpop.eup %2787  ;;  %v1854_v54 = vmul.f32 %v1726_v25, %v3819_v59  ;;  %v1719_v46 = vsel %vm1717_vm11, %v1718_v50, %v1716_v39 }
 0x201   : > { %v2790_v53 = vpop.eup %2789  ;;  %v1833_v61 = vmul.f32 %v2788_v29, %v1612_v60  ;;  %v1853_v40 = vmul.f32 %v1719_v46, %v3805_v23 }
 0x202   : > { %v1826_v7 = vmul.f32 %v2790_v53, %v1607_v3 }
 0x203   : > { %v1835_v10 = vsel %vm1834_vm12, %v1612_v60, %v1833_v61  ;;  %v2327_v13 = vpack.c.bf16 %v1854_v54, %v1853_v40 }
 0x204   : > { %v1838_v49 = vsel %vm1836_vm13, %v1837_v16, %v1835_v10  ;;  %v1828_v63 = vsel %vm1827_vm14, %v1607_v3, %v1826_v7 }
 0x205   : > { %v1870_v59 = vmul.f32 %v1838_v49, %v3824_v52  ;;  %2390 = vst [vmem:[%s3847_s27 + $0x38] sm:$0xff] %v2327_v13   ;;  %v1831_v42 = vsel %vm1829_vm15, %v1830_v26, %v1828_v63 }
 0x206   : > { %v1869_v1 = vmul.f32 %v1831_v42, %v3811_v55 }
 0x208   : > { %v2367_v51 = vpack.c.bf16 %v1870_v59, %v1869_v1 }
 0x20a   : > { %2398 = vst [vmem:[%s3847_s27 + $0x78] sm:$0xff] %v2367_v51  }
 0x20b PF: > { %s15_s20 = sadd.s32 1, %s2815_s20   ;;  %s3952_s18 = smov %s2811_s19 }
 0x20c   : > { %p12_p5 = scmp.ge.s32.totalorder %s15_s20, 4   ;;  %s3953_s19 = smov %s3955_s21 }
 0x20e   :  { %14 = sbr.rel (!%p12_p5) target bundleno = 2 (0x2), region = 76 }

</bundles_post_ra>
